<compile_context>
chip_gen: v6e
topology: v6e:2x2x1
jax: 0.10.0
libtpu: 0.0.40
codegen_flags: <defaults>
</compile_context>

<pallas_src>
import functools

import jax
import jax.numpy as jnp
from jax.experimental import pallas as pl
from jax.experimental.pallas import tpu as pltpu


POOL = 5          # cfg.spp_pooling_size
PAD = POOL // 2   # = 2


def _silu(x):
    return x * jax.nn.sigmoid(x)


# ----------------------------------------------------------------------------
# Separable 5-tap max pooling (stride 1, pad 2) on an (NB, H, W, C) value.
# ----------------------------------------------------------------------------
def _make_pool5(nb, h, w, c, dtype, use_roll):
    """Returns pool(a4) computing a 5x5 max pool (stride 1, pad 2)."""
    neg = jnp.asarray(jnp.finfo(dtype).min, dtype)
    # Shared across the three chained pools (hoisted: JAX does not CSE these).
    col = (jax.lax.broadcasted_iota(jnp.int32, (nb * h, w, c), 1)
           if use_roll else None)
    hpad = jnp.full((nb, PAD, w, c), neg, dtype)

    def pool_w_roll(a4):
        # 5-tap max along W (sublane axis) via XLU rolls + edge masks.
        # No padded intermediate, no sublane relayout.
        a = a4.reshape(nb * h, w, c)           # major-dim merge: layout no-op
        out = a
        for d in (1, 2):
            back = pltpu.roll(a, shift=d % w, axis=1)        # back[i] = a[i-d]
            out = jnp.maximum(out, jnp.where(col >= d, back, neg))
            fwd = pltpu.roll(a, shift=(w - d) % w, axis=1)   # fwd[i]  = a[i+d]
            out = jnp.maximum(out, jnp.where(col < w - d, fwd, neg))
        return out.reshape(nb, h, w, c)

    def pool_w_pad(a4):
        # Fallback path: -BIG pad + slices (known-good lowering).
        negw = jnp.full((nb, h, PAD, c), neg, dtype)
        ap = jnp.concatenate([negw, a4, negw], axis=2)
        out = jax.lax.slice_in_dim(ap, 0, w, axis=2)
        for d in range(1, POOL):
            out = jnp.maximum(out, jax.lax.slice_in_dim(ap, d, d + w, axis=2))
        return out

    def pool_h(a4):
        # H is a major dim: concat/slices here are tile-granular (no relayout).
        ap = jnp.concatenate([hpad, a4, hpad], axis=1)
        out = jax.lax.slice_in_dim(ap, 0, h, axis=1)
        for d in range(1, POOL):
            out = jnp.maximum(out, jax.lax.slice_in_dim(ap, d, d + h, axis=1))
        return out

    pool_w = pool_w_roll if use_roll else pool_w_pad
    return lambda a4: pool_h(pool_w(a4))


# ----------------------------------------------------------------------------
# Kernel
# ----------------------------------------------------------------------------
def _sppf_kernel(x_ref, w1_ref, b1_ref, w2_ref, b2_ref, o_ref, *,
                 w_valid, pool_dtype, use_roll, bf16_cat):
    # x_ref:  (NB, H, Wp, Cin) bf16     w1_ref: (Cin, Ci)    bf16 (BN-folded)
    # b1_ref: (1, Ci) f32               w2_ref: (4*Ci, Cout) bf16 (BN-folded)
    # b2_ref: (1, Cout) f32             o_ref:  (NB, H, Wp, Cout)
    NB, H, Wp, Cin = x_ref.shape
    Ci = w1_ref.shape[1]
    Cout = w2_ref.shape[1]
    M = NB * H * Wp

    # ---- cv1: 1x1 conv = bf16 MXU matmul, f32 accumulate + bias + SiLU ----
    x2d = x_ref[...].reshape(M, Cin)
    h = jnp.dot(x2d, w1_ref[...], preferred_element_type=jnp.float32)
    h = _silu(h + b1_ref[...]).astype(pool_dtype)
    h4 = h.reshape(NB, H, Wp, Ci)

    # ---- 3x chained separable 5x5 max pools (all in registers/VMEM) ----
    neg = jnp.asarray(jnp.finfo(pool_dtype).min, pool_dtype)
    if w_valid < Wp:
        # W was padded up to a sublane multiple: mask padded columns so they
        # never win the max (chained max pools then match the unpadded op on
        # all valid columns).
        col4 = jax.lax.broadcasted_iota(jnp.int32, (NB, H, Wp, Ci), 2)
        pool_src = jnp.where(col4 < w_valid, h4, neg)
    else:
        pool_src = h4

    pool = _make_pool5(NB, H, Wp, Ci, pool_dtype, use_roll)
    y1 = pool(pool_src)
    y2 = pool(y1)
    y3 = pool(y2)

    # ---- cv2: channel concat (bf16) + single K=4*Ci MXU matmul ----
    parts = [h4, y1, y2, y3]
    if bf16_cat:
        parts = [p.astype(jnp.bfloat16) for p in parts]
    cat = jnp.concatenate(parts, axis=-1)                     # (NB, H, Wp, 4Ci)
    cat2d = cat.reshape(M, 4 * Ci).astype(jnp.bfloat16)
    z = jnp.dot(cat2d, w2_ref[...], preferred_element_type=jnp.float32)
    z = _silu(z + b2_ref[...])
    o_ref[...] = z.reshape(NB, H, Wp, Cout).astype(o_ref.dtype)


# ----------------------------------------------------------------------------
# Wrappers
# ----------------------------------------------------------------------------
def _vmem_capacity_bytes():
    try:
        return int(pltpu.get_tpu_info().vmem_capacity_bytes)
    except Exception:
        return 64 << 20        # conservative (v7x-sized) fallback


def _pick_batch_block(N, H, Wp, Cin, Ci, Cout, pool_dtype, out_dtype, budget):
    """Largest divisor of N whose full per-step working set fits `budget`."""
    pb = jnp.dtype(pool_dtype).itemsize
    ob = jnp.dtype(out_dtype).itemsize
    per_img = H * Wp * (
        2 * 2 * Cin            # bf16 input block, double-buffered
        + 2 * ob * Cout        # output block, double-buffered
        + 4 * Ci               # f32 cv1 accumulator
        + 6 * pb * Ci          # h/y1/y2/y3 + pool temporaries
        + 4 * Ci               # iota / edge masks
        + 2 * 4 * Ci           # bf16 channel concat
        + 4 * Cout             # f32 cv2 accumulator
    )
    per_img = int(per_img * 1.5)                         # layout/pipeline slack
    fixed = 2 * 2 * (Cin * Ci + 4 * Ci * Cout)           # double-buffered bf16 weights
    avail = max(budget - fixed, per_img)
    nb = max(1, min(N, avail // per_img))
    if N >= 2:                    # keep >=2 grid steps: pipelining + megacore
        nb = min(nb, max(1, N // 2))
    while N % nb:                 # keep blocks full (no ragged block)
        nb -= 1
    return nb


def prepare_params(w1, s1, b1, w2, s2, b2):
    """Fold BN scale into the 1x1 conv weights (f32 fold, then bf16 cast)."""
    w1f = (w1.astype(jnp.float32) * s1.astype(jnp.float32)).astype(jnp.bfloat16)
    w2f = (w2.astype(jnp.float32) * s2.astype(jnp.float32)).astype(jnp.bfloat16)
    return w1f, b1.astype(jnp.float32), w2f, b2.astype(jnp.float32)


def sppf_forward_nhwc(x_nhwc, w1f, b1, w2f, b2, *,
                      pool_dtype=jnp.float32, use_roll=True, bf16_cat=True,
                      out_dtype=jnp.bfloat16):
    """x_nhwc: (N, H, W, Cin) -> (N, H, W, Cout).  Prefer bf16 input."""
    N, H, W, Cin = x_nhwc.shape
    Ci = w1f.shape[1]
    Cout = w2f.shape[1]

    # Pad W up to a sublane multiple so the in-kernel (NB,H,W,C)<->(M,C)
    # reshapes stay layout no-ops at real YOLO widths (20/40/13).
    Wp = -(-W // 8) * 8
    x = x_nhwc.astype(jnp.bfloat16)
    if Wp != W:
        x = jnp.pad(x, ((0, 0), (0, 0), (0, Wp - W), (0, 0)))

    cap = _vmem_capacity_bytes()
    vmem_limit = (cap * 3) // 4                       # generation-aware budget
    NB = _pick_batch_block(N, H, Wp, Cin, Ci, Cout, pool_dtype, out_dtype,
                           budget=int(vmem_limit * 0.6))

    kernel = functools.partial(_sppf_kernel, w_valid=W, pool_dtype=pool_dtype,
                               use_roll=use_roll, bf16_cat=bf16_cat)

    out = pl.pallas_call(
        kernel,
        out_shape=jax.ShapeDtypeStruct((N, H, Wp, Cout), out_dtype),
        grid=(N // NB,),
        in_specs=[
            pl.BlockSpec((NB, H, Wp, Cin), lambda n: (n, 0, 0, 0)),
            pl.BlockSpec((Cin, Ci), lambda n: (0, 0)),
            pl.BlockSpec((1, Ci), lambda n: (0, 0)),
            pl.BlockSpec((4 * Ci, Cout), lambda n: (0, 0)),
            pl.BlockSpec((1, Cout), lambda n: (0, 0)),
        ],
        out_specs=pl.BlockSpec((NB, H, Wp, Cout), lambda n: (n, 0, 0, 0)),
        compiler_params=pltpu.CompilerParams(
            dimension_semantics=("parallel",),
            vmem_limit_bytes=int(vmem_limit)),
    )(x, w1f, b1, w2f, b2)

    if Wp != W:
        out = out[:, :, :W, :]
    return out


def sppf_forward(x_nchw, w1, s1, b1, w2, s2, b2, *,
                 pool_dtype=jnp.float32, use_roll=True, bf16_cat=True,
                 out_dtype=jnp.bfloat16):
    """PyTorch-convention entry: (N, Cin, H, W) -> (N, Cout, H, W).

    Note: in a real model keep NHWC end-to-end and call sppf_forward_nhwc
    directly; these transposes are full HBM round trips.
    """
    w1f, b1f, w2f, b2f = prepare_params(w1, s1, b1, w2, s2, b2)
    x = jnp.transpose(x_nchw, (0, 2, 3, 1)).astype(jnp.bfloat16)
    out = sppf_forward_nhwc(x, w1f, b1f, w2f, b2f, pool_dtype=pool_dtype,
                            use_roll=use_roll, bf16_cat=bf16_cat,
                            out_dtype=out_dtype)
    return jnp.transpose(out, (0, 3, 1, 2))


def _pool_configs():
    """(pool_dtype, use_roll, bf16_cat) candidates, fastest-first per chip."""
    kind = ""
    try:
        kind = jax.devices()[0].device_kind.lower()
    except Exception:
        pass
    old_gen = any(t in kind for t in ("v2", "v3", "v4", "v5"))
    cfgs = []
    if not old_gen:
        cfgs.append((jnp.bfloat16, True, True))   # v6e/v7x: bf16 pool + rolls
    cfgs.append((jnp.float32, True, True))        # f32 pool + rolls, bf16 cat
    cfgs.append((jnp.float32, False, False))      # known-good pad/slice path
    return cfgs


# ----------------------------------------------------------------------------
# Pure-JAX reference (reduce_window pooling; same BN-folded bf16 weights)
# ----------------------------------------------------------------------------
def sppf_reference(x_nchw, w1, s1, b1, w2, s2, b2):
    w1f, b1f, w2f, b2f = prepare_params(w1, s1, b1, w2, s2, b2)
    x = jnp.transpose(x_nchw, (0, 2, 3, 1)).astype(jnp.bfloat16)
    N, H, W, Cin = x.shape
    Ci = w1f.shape[1]
    Cout = w2f.shape[1]

    h = jnp.dot(x.reshape(-1, Cin), w1f, preferred_element_type=jnp.float32)
    h = _silu(h + b1f).reshape(N, H, W, Ci)

    def pool(a):
        return jax.lax.reduce_window(
            a, -jnp.inf, jax.lax.max,
            window_dimensions=(1, POOL, POOL, 1),
            window_strides=(1, 1, 1, 1),
            padding=((0, 0), (PAD, PAD), (PAD, PAD), (0, 0)))

    y1 = pool(h)
    y2 = pool(y1)
    y3 = pool(y2)
    cat = jnp.concatenate([h, y1, y2, y3], axis=-1)
    cat = cat.reshape(-1, 4 * Ci).astype(jnp.bfloat16)
    z = jnp.dot(cat, w2f, preferred_element_type=jnp.float32)
    z = _silu(z + b2f).reshape(N, H, W, Cout)
    return jnp.transpose(z, (0, 3, 1, 2))


def make_params(key, in_dim, inter_dim, out_dim):
    """Deterministic synthetic params; BN expressed as per-channel scale/bias."""
    k1, k2, k3, k4, k5, k6 = jax.random.split(key, 6)
    w1 = jax.random.normal(k1, (in_dim, inter_dim), jnp.float32) / jnp.sqrt(in_dim)
    s1 = 1.0 + 0.1 * jax.random.normal(k2, (1, inter_dim), jnp.float32)
    b1 = 0.1 * jax.random.normal(k3, (1, inter_dim), jnp.float32)
    w2 = jax.random.normal(k4, (4 * inter_dim, out_dim), jnp.float32) / jnp.sqrt(4 * inter_dim)
    s2 = 1.0 + 0.1 * jax.random.normal(k5, (1, out_dim), jnp.float32)
    b2 = 0.1 * jax.random.normal(k6, (1, out_dim), jnp.float32)
    return w1, s1, b1, w2, s2, b2


if __name__ == "__main__":
    # cfg: neck_expand_ratio=0.5, spp_pooling_size=5, neck_act='silu', neck_norm='BN'
    N, in_dim, H, W = 2, 64, 16, 16
    inter_dim = round(in_dim * 0.5)   # 32 -> cv2 K = 4*32 = 128 (lane-dense)
    out_dim = 64

    key = jax.random.PRNGKey(0)
    kx, kp = jax.random.split(key)
    x = jax.random.normal(kx, (N, in_dim, H, W), jnp.float32)   # NCHW input
    params = make_params(kp, in_dim, inter_dim, out_dim)

    out = None
    last_err = None
    for pool_dtype, use_roll, bf16_cat in _pool_configs():
        try:
            fwd = jax.jit(functools.partial(
                sppf_forward, pool_dtype=pool_dtype, use_roll=use_roll,
                bf16_cat=bf16_cat))
            out = fwd(x, *params)
            jax.block_until_ready(out)
            break
        except Exception as e:                      # fall back to safer config
            last_err = e
            out = None
    if out is None:
        raise last_err

    ref = sppf_reference(x, *params)
    assert out.shape == (N, out_dim, H, W)
    out32 = out.astype(jnp.float32)
    assert bool(jnp.all(jnp.isfinite(out32)))
    max_err = float(jnp.max(jnp.abs(out32 - ref)))
    assert jnp.allclose(out32, ref, atol=1e-1, rtol=5e-2), max_err
    print("KERNEL_OK")
</pallas_src>

<mosaic_0001>
module attributes {stable_mosaic.version = 11 : i64} {
  func.func @_sppf_kernel(%arg0: i32, %arg1: memref<1x16x16x64xbf16, #tpu.memory_space<vmem>>, %arg2: memref<64x32xbf16, #tpu.memory_space<vmem>>, %arg3: memref<1x32xf32, #tpu.memory_space<vmem>>, %arg4: memref<128x64xbf16, #tpu.memory_space<vmem>>, %arg5: memref<1x64xf32, #tpu.memory_space<vmem>>, %arg6: memref<1x16x16x64xbf16, #tpu.memory_space<vmem>>) attributes {dimension_semantics = [#tpu.dimension_semantics<parallel>], iteration_bounds = array<i64: 2>, scalar_prefetch = 0 : i64, scratch_operands = 0 : i64, tpu.core_type = #tpu.core_type<tc>, window_params = [{transform_indices = @transform_0, window_bounds = array<i64: 1, 16, 16, 64>}, {pipeline_mode = #tpu.pipeline_mode<synchronous>, transform_indices = @transform_1, window_bounds = array<i64: 64, 32>}, {pipeline_mode = #tpu.pipeline_mode<synchronous>, transform_indices = @transform_2, window_bounds = array<i64: 1, 32>}, {pipeline_mode = #tpu.pipeline_mode<synchronous>, transform_indices = @transform_3, window_bounds = array<i64: 128, 64>}, {pipeline_mode = #tpu.pipeline_mode<synchronous>, transform_indices = @transform_4, window_bounds = array<i64: 1, 64>}, {transform_indices = @transform_5, window_bounds = array<i64: 1, 16, 16, 64>}]} {
    %c0 = arith.constant 0 : index
    %c0_0 = arith.constant 0 : index
    %c0_1 = arith.constant 0 : index
    %c0_2 = arith.constant 0 : index
    %0 = vector.load %arg1[%c0, %c0_0, %c0_1, %c0_2] : memref<1x16x16x64xbf16, #tpu.memory_space<vmem>>, vector<1x16x16x64xbf16>
    %1 = vector.shape_cast %0 : vector<1x16x16x64xbf16> to vector<256x64xbf16>
    %c0_3 = arith.constant 0 : index
    %c0_4 = arith.constant 0 : index
    %2 = vector.load %arg2[%c0_3, %c0_4] : memref<64x32xbf16, #tpu.memory_space<vmem>>, vector<64x32xbf16>
    %cst = arith.constant dense<0.000000e+00> : vector<256x32xf32>
    %3 = tpu.matmul %1, %2, %cst {dimension_numbers = #tpu.dot_dimension_numbers<[1], [0], [0], [1], [0, 0, 1, 1], [], []>} : vector<256x64xbf16>, vector<64x32xbf16>, vector<256x32xf32> -> vector<256x32xf32>
    %c0_5 = arith.constant 0 : index
    %c0_6 = arith.constant 0 : index
    %4 = vector.load %arg3[%c0_5, %c0_6] : memref<1x32xf32, #tpu.memory_space<vmem>>, vector<1x32xf32>
    %5 = vector.broadcast %4 : vector<1x32xf32> to vector<256x32xf32>
    %6 = arith.addf %3, %5 : vector<256x32xf32>
    %7 = arith.negf %6 : vector<256x32xf32>
    %8 = math.exp %7 : vector<256x32xf32>
    %cst_7 = arith.constant 1.000000e+00 : f32
    %9 = vector.broadcast %cst_7 : f32 to vector<256x32xf32>
    %10 = arith.addf %9, %8 : vector<256x32xf32>
    %11 = arith.divf %9, %10 : vector<256x32xf32>
    %12 = arith.mulf %6, %11 : vector<256x32xf32>
    %13 = arith.truncf %12 : vector<256x32xf32> to vector<256x32xbf16>
    %14 = vector.shape_cast %13 : vector<256x32xbf16> to vector<1x16x16x32xbf16>
    %15 = tpu.iota {dimensions = array<i32: 1>} : vector<16x16x32xi32>
    %cst_8 = arith.constant -3.389530e+38 : bf16
    %16 = vector.broadcast %cst_8 : bf16 to vector<1x2x16x32xbf16>
    %17 = vector.shape_cast %14 : vector<1x16x16x32xbf16> to vector<16x16x32xbf16>
    %c1_i32 = arith.constant 1 : i32
    %18 = tpu.dynamic_rotate %17 by %c1_i32 dim 1 : vector<16x16x32xbf16>, i32 -> vector<16x16x32xbf16>
    %c1_i32_9 = arith.constant 1 : i32
    %19 = vector.broadcast %c1_i32_9 : i32 to vector<16x16x32xi32>
    %20 = arith.cmpi sge, %15, %19 : vector<16x16x32xi32>
    %cst_10 = arith.constant -3.389530e+38 : bf16
    %21 = vector.broadcast %cst_10 : bf16 to vector<16x16x32xbf16>
    %22 = arith.select %20, %18, %21 : vector<16x16x32xi1>, vector<16x16x32xbf16>
    %23 = arith.maximumf %17, %22 : vector<16x16x32xbf16>
    %c15_i32 = arith.constant 15 : i32
    %24 = tpu.dynamic_rotate %17 by %c15_i32 dim 1 : vector<16x16x32xbf16>, i32 -> vector<16x16x32xbf16>
    %c15_i32_11 = arith.constant 15 : i32
    %25 = vector.broadcast %c15_i32_11 : i32 to vector<16x16x32xi32>
    %26 = arith.cmpi slt, %15, %25 : vector<16x16x32xi32>
    %cst_12 = arith.constant -3.389530e+38 : bf16
    %27 = vector.broadcast %cst_12 : bf16 to vector<16x16x32xbf16>
    %28 = arith.select %26, %24, %27 : vector<16x16x32xi1>, vector<16x16x32xbf16>
    %29 = arith.maximumf %23, %28 : vector<16x16x32xbf16>
    %c2_i32 = arith.constant 2 : i32
    %30 = tpu.dynamic_rotate %17 by %c2_i32 dim 1 : vector<16x16x32xbf16>, i32 -> vector<16x16x32xbf16>
    %c2_i32_13 = arith.constant 2 : i32
    %31 = vector.broadcast %c2_i32_13 : i32 to vector<16x16x32xi32>
    %32 = arith.cmpi sge, %15, %31 : vector<16x16x32xi32>
    %cst_14 = arith.constant -3.389530e+38 : bf16
    %33 = vector.broadcast %cst_14 : bf16 to vector<16x16x32xbf16>
    %34 = arith.select %32, %30, %33 : vector<16x16x32xi1>, vector<16x16x32xbf16>
    %35 = arith.maximumf %29, %34 : vector<16x16x32xbf16>
    %c14_i32 = arith.constant 14 : i32
    %36 = tpu.dynamic_rotate %17 by %c14_i32 dim 1 : vector<16x16x32xbf16>, i32 -> vector<16x16x32xbf16>
    %c14_i32_15 = arith.constant 14 : i32
    %37 = vector.broadcast %c14_i32_15 : i32 to vector<16x16x32xi32>
    %38 = arith.cmpi slt, %15, %37 : vector<16x16x32xi32>
    %cst_16 = arith.constant -3.389530e+38 : bf16
    %39 = vector.broadcast %cst_16 : bf16 to vector<16x16x32xbf16>
    %40 = arith.select %38, %36, %39 : vector<16x16x32xi1>, vector<16x16x32xbf16>
    %41 = arith.maximumf %35, %40 : vector<16x16x32xbf16>
    %42 = vector.shape_cast %41 : vector<16x16x32xbf16> to vector<1x16x16x32xbf16>
    %43 = tpu.concatenate %16, %42, %16 in 1 : vector<1x2x16x32xbf16>, vector<1x16x16x32xbf16>, vector<1x2x16x32xbf16> -> vector<1x20x16x32xbf16>
    %44 = vector.extract_strided_slice %43 {offsets = [0, 0, 0, 0], sizes = [1, 16, 16, 32], strides = [1, 1, 1, 1]} : vector<1x20x16x32xbf16> to vector<1x16x16x32xbf16>
    %45 = vector.extract_strided_slice %43 {offsets = [0, 1, 0, 0], sizes = [1, 16, 16, 32], strides = [1, 1, 1, 1]} : vector<1x20x16x32xbf16> to vector<1x16x16x32xbf16>
    %46 = arith.maximumf %44, %45 : vector<1x16x16x32xbf16>
    %47 = vector.extract_strided_slice %43 {offsets = [0, 2, 0, 0], sizes = [1, 16, 16, 32], strides = [1, 1, 1, 1]} : vector<1x20x16x32xbf16> to vector<1x16x16x32xbf16>
    %48 = arith.maximumf %46, %47 : vector<1x16x16x32xbf16>
    %49 = vector.extract_strided_slice %43 {offsets = [0, 3, 0, 0], sizes = [1, 16, 16, 32], strides = [1, 1, 1, 1]} : vector<1x20x16x32xbf16> to vector<1x16x16x32xbf16>
    %50 = arith.maximumf %48, %49 : vector<1x16x16x32xbf16>
    %51 = vector.extract_strided_slice %43 {offsets = [0, 4, 0, 0], sizes = [1, 16, 16, 32], strides = [1, 1, 1, 1]} : vector<1x20x16x32xbf16> to vector<1x16x16x32xbf16>
    %52 = arith.maximumf %50, %51 : vector<1x16x16x32xbf16>
    %53 = vector.shape_cast %52 : vector<1x16x16x32xbf16> to vector<16x16x32xbf16>
    %c1_i32_17 = arith.constant 1 : i32
    %54 = tpu.dynamic_rotate %53 by %c1_i32_17 dim 1 : vector<16x16x32xbf16>, i32 -> vector<16x16x32xbf16>
    %c1_i32_18 = arith.constant 1 : i32
    %55 = vector.broadcast %c1_i32_18 : i32 to vector<16x16x32xi32>
    %56 = arith.cmpi sge, %15, %55 : vector<16x16x32xi32>
    %cst_19 = arith.constant -3.389530e+38 : bf16
    %57 = vector.broadcast %cst_19 : bf16 to vector<16x16x32xbf16>
    %58 = arith.select %56, %54, %57 : vector<16x16x32xi1>, vector<16x16x32xbf16>
    %59 = arith.maximumf %53, %58 : vector<16x16x32xbf16>
    %c15_i32_20 = arith.constant 15 : i32
    %60 = tpu.dynamic_rotate %53 by %c15_i32_20 dim 1 : vector<16x16x32xbf16>, i32 -> vector<16x16x32xbf16>
    %c15_i32_21 = arith.constant 15 : i32
    %61 = vector.broadcast %c15_i32_21 : i32 to vector<16x16x32xi32>
    %62 = arith.cmpi slt, %15, %61 : vector<16x16x32xi32>
    %cst_22 = arith.constant -3.389530e+38 : bf16
    %63 = vector.broadcast %cst_22 : bf16 to vector<16x16x32xbf16>
    %64 = arith.select %62, %60, %63 : vector<16x16x32xi1>, vector<16x16x32xbf16>
    %65 = arith.maximumf %59, %64 : vector<16x16x32xbf16>
    %c2_i32_23 = arith.constant 2 : i32
    %66 = tpu.dynamic_rotate %53 by %c2_i32_23 dim 1 : vector<16x16x32xbf16>, i32 -> vector<16x16x32xbf16>
    %c2_i32_24 = arith.constant 2 : i32
    %67 = vector.broadcast %c2_i32_24 : i32 to vector<16x16x32xi32>
    %68 = arith.cmpi sge, %15, %67 : vector<16x16x32xi32>
    %cst_25 = arith.constant -3.389530e+38 : bf16
    %69 = vector.broadcast %cst_25 : bf16 to vector<16x16x32xbf16>
    %70 = arith.select %68, %66, %69 : vector<16x16x32xi1>, vector<16x16x32xbf16>
    %71 = arith.maximumf %65, %70 : vector<16x16x32xbf16>
    %c14_i32_26 = arith.constant 14 : i32
    %72 = tpu.dynamic_rotate %53 by %c14_i32_26 dim 1 : vector<16x16x32xbf16>, i32 -> vector<16x16x32xbf16>
    %c14_i32_27 = arith.constant 14 : i32
    %73 = vector.broadcast %c14_i32_27 : i32 to vector<16x16x32xi32>
    %74 = arith.cmpi slt, %15, %73 : vector<16x16x32xi32>
    %cst_28 = arith.constant -3.389530e+38 : bf16
    %75 = vector.broadcast %cst_28 : bf16 to vector<16x16x32xbf16>
    %76 = arith.select %74, %72, %75 : vector<16x16x32xi1>, vector<16x16x32xbf16>
    %77 = arith.maximumf %71, %76 : vector<16x16x32xbf16>
    %78 = vector.shape_cast %77 : vector<16x16x32xbf16> to vector<1x16x16x32xbf16>
    %79 = tpu.concatenate %16, %78, %16 in 1 : vector<1x2x16x32xbf16>, vector<1x16x16x32xbf16>, vector<1x2x16x32xbf16> -> vector<1x20x16x32xbf16>
    %80 = vector.extract_strided_slice %79 {offsets = [0, 0, 0, 0], sizes = [1, 16, 16, 32], strides = [1, 1, 1, 1]} : vector<1x20x16x32xbf16> to vector<1x16x16x32xbf16>
    %81 = vector.extract_strided_slice %79 {offsets = [0, 1, 0, 0], sizes = [1, 16, 16, 32], strides = [1, 1, 1, 1]} : vector<1x20x16x32xbf16> to vector<1x16x16x32xbf16>
    %82 = arith.maximumf %80, %81 : vector<1x16x16x32xbf16>
    %83 = vector.extract_strided_slice %79 {offsets = [0, 2, 0, 0], sizes = [1, 16, 16, 32], strides = [1, 1, 1, 1]} : vector<1x20x16x32xbf16> to vector<1x16x16x32xbf16>
    %84 = arith.maximumf %82, %83 : vector<1x16x16x32xbf16>
    %85 = vector.extract_strided_slice %79 {offsets = [0, 3, 0, 0], sizes = [1, 16, 16, 32], strides = [1, 1, 1, 1]} : vector<1x20x16x32xbf16> to vector<1x16x16x32xbf16>
    %86 = arith.maximumf %84, %85 : vector<1x16x16x32xbf16>
    %87 = vector.extract_strided_slice %79 {offsets = [0, 4, 0, 0], sizes = [1, 16, 16, 32], strides = [1, 1, 1, 1]} : vector<1x20x16x32xbf16> to vector<1x16x16x32xbf16>
    %88 = arith.maximumf %86, %87 : vector<1x16x16x32xbf16>
    %89 = vector.shape_cast %88 : vector<1x16x16x32xbf16> to vector<16x16x32xbf16>
    %c1_i32_29 = arith.constant 1 : i32
    %90 = tpu.dynamic_rotate %89 by %c1_i32_29 dim 1 : vector<16x16x32xbf16>, i32 -> vector<16x16x32xbf16>
    %c1_i32_30 = arith.constant 1 : i32
    %91 = vector.broadcast %c1_i32_30 : i32 to vector<16x16x32xi32>
    %92 = arith.cmpi sge, %15, %91 : vector<16x16x32xi32>
    %cst_31 = arith.constant -3.389530e+38 : bf16
    %93 = vector.broadcast %cst_31 : bf16 to vector<16x16x32xbf16>
    %94 = arith.select %92, %90, %93 : vector<16x16x32xi1>, vector<16x16x32xbf16>
    %95 = arith.maximumf %89, %94 : vector<16x16x32xbf16>
    %c15_i32_32 = arith.constant 15 : i32
    %96 = tpu.dynamic_rotate %89 by %c15_i32_32 dim 1 : vector<16x16x32xbf16>, i32 -> vector<16x16x32xbf16>
    %c15_i32_33 = arith.constant 15 : i32
    %97 = vector.broadcast %c15_i32_33 : i32 to vector<16x16x32xi32>
    %98 = arith.cmpi slt, %15, %97 : vector<16x16x32xi32>
    %cst_34 = arith.constant -3.389530e+38 : bf16
    %99 = vector.broadcast %cst_34 : bf16 to vector<16x16x32xbf16>
    %100 = arith.select %98, %96, %99 : vector<16x16x32xi1>, vector<16x16x32xbf16>
    %101 = arith.maximumf %95, %100 : vector<16x16x32xbf16>
    %c2_i32_35 = arith.constant 2 : i32
    %102 = tpu.dynamic_rotate %89 by %c2_i32_35 dim 1 : vector<16x16x32xbf16>, i32 -> vector<16x16x32xbf16>
    %c2_i32_36 = arith.constant 2 : i32
    %103 = vector.broadcast %c2_i32_36 : i32 to vector<16x16x32xi32>
    %104 = arith.cmpi sge, %15, %103 : vector<16x16x32xi32>
    %cst_37 = arith.constant -3.389530e+38 : bf16
    %105 = vector.broadcast %cst_37 : bf16 to vector<16x16x32xbf16>
    %106 = arith.select %104, %102, %105 : vector<16x16x32xi1>, vector<16x16x32xbf16>
    %107 = arith.maximumf %101, %106 : vector<16x16x32xbf16>
    %c14_i32_38 = arith.constant 14 : i32
    %108 = tpu.dynamic_rotate %89 by %c14_i32_38 dim 1 : vector<16x16x32xbf16>, i32 -> vector<16x16x32xbf16>
    %c14_i32_39 = arith.constant 14 : i32
    %109 = vector.broadcast %c14_i32_39 : i32 to vector<16x16x32xi32>
    %110 = arith.cmpi slt, %15, %109 : vector<16x16x32xi32>
    %cst_40 = arith.constant -3.389530e+38 : bf16
    %111 = vector.broadcast %cst_40 : bf16 to vector<16x16x32xbf16>
    %112 = arith.select %110, %108, %111 : vector<16x16x32xi1>, vector<16x16x32xbf16>
    %113 = arith.maximumf %107, %112 : vector<16x16x32xbf16>
    %114 = vector.shape_cast %113 : vector<16x16x32xbf16> to vector<1x16x16x32xbf16>
    %115 = tpu.concatenate %16, %114, %16 in 1 : vector<1x2x16x32xbf16>, vector<1x16x16x32xbf16>, vector<1x2x16x32xbf16> -> vector<1x20x16x32xbf16>
    %116 = vector.extract_strided_slice %115 {offsets = [0, 0, 0, 0], sizes = [1, 16, 16, 32], strides = [1, 1, 1, 1]} : vector<1x20x16x32xbf16> to vector<1x16x16x32xbf16>
    %117 = vector.extract_strided_slice %115 {offsets = [0, 1, 0, 0], sizes = [1, 16, 16, 32], strides = [1, 1, 1, 1]} : vector<1x20x16x32xbf16> to vector<1x16x16x32xbf16>
    %118 = arith.maximumf %116, %117 : vector<1x16x16x32xbf16>
    %119 = vector.extract_strided_slice %115 {offsets = [0, 2, 0, 0], sizes = [1, 16, 16, 32], strides = [1, 1, 1, 1]} : vector<1x20x16x32xbf16> to vector<1x16x16x32xbf16>
    %120 = arith.maximumf %118, %119 : vector<1x16x16x32xbf16>
    %121 = vector.extract_strided_slice %115 {offsets = [0, 3, 0, 0], sizes = [1, 16, 16, 32], strides = [1, 1, 1, 1]} : vector<1x20x16x32xbf16> to vector<1x16x16x32xbf16>
    %122 = arith.maximumf %120, %121 : vector<1x16x16x32xbf16>
    %123 = vector.extract_strided_slice %115 {offsets = [0, 4, 0, 0], sizes = [1, 16, 16, 32], strides = [1, 1, 1, 1]} : vector<1x20x16x32xbf16> to vector<1x16x16x32xbf16>
    %124 = arith.maximumf %122, %123 : vector<1x16x16x32xbf16>
    %125 = tpu.concatenate %14, %52, %88, %124 in 3 : vector<1x16x16x32xbf16>, vector<1x16x16x32xbf16>, vector<1x16x16x32xbf16>, vector<1x16x16x32xbf16> -> vector<1x16x16x128xbf16>
    %126 = vector.shape_cast %125 : vector<1x16x16x128xbf16> to vector<256x128xbf16>
    %c0_41 = arith.constant 0 : index
    %c0_42 = arith.constant 0 : index
    %127 = vector.load %arg4[%c0_41, %c0_42] : memref<128x64xbf16, #tpu.memory_space<vmem>>, vector<128x64xbf16>
    %cst_43 = arith.constant dense<0.000000e+00> : vector<256x64xf32>
    %128 = tpu.matmul %126, %127, %cst_43 {dimension_numbers = #tpu.dot_dimension_numbers<[1], [0], [0], [1], [0, 0, 1, 1], [], []>} : vector<256x128xbf16>, vector<128x64xbf16>, vector<256x64xf32> -> vector<256x64xf32>
    %c0_44 = arith.constant 0 : index
    %c0_45 = arith.constant 0 : index
    %129 = vector.load %arg5[%c0_44, %c0_45] : memref<1x64xf32, #tpu.memory_space<vmem>>, vector<1x64xf32>
    %130 = vector.broadcast %129 : vector<1x64xf32> to vector<256x64xf32>
    %131 = arith.addf %128, %130 : vector<256x64xf32>
    %132 = arith.negf %131 : vector<256x64xf32>
    %133 = math.exp %132 : vector<256x64xf32>
    %cst_46 = arith.constant 1.000000e+00 : f32
    %134 = vector.broadcast %cst_46 : f32 to vector<256x64xf32>
    %135 = arith.addf %134, %133 : vector<256x64xf32>
    %136 = arith.divf %134, %135 : vector<256x64xf32>
    %137 = arith.mulf %131, %136 : vector<256x64xf32>
    %138 = vector.shape_cast %137 : vector<256x64xf32> to vector<1x16x16x64xf32>
    %139 = arith.truncf %138 : vector<1x16x16x64xf32> to vector<1x16x16x64xbf16>
    %c0_47 = arith.constant 0 : index
    %c0_48 = arith.constant 0 : index
    %c0_49 = arith.constant 0 : index
    %c0_50 = arith.constant 0 : index
    %140 = vector.load %arg6[%c0_47, %c0_48, %c0_49, %c0_50] : memref<1x16x16x64xbf16, #tpu.memory_space<vmem>>, vector<1x16x16x64xbf16>
    tpu.vector_store %arg6[%c0_47, %c0_48, %c0_49, %c0_50], %139 {strides = array<i32>} : memref<1x16x16x64xbf16, #tpu.memory_space<vmem>>, vector<1x16x16x64xbf16>,
    return
  }
  func.func @transform_0(%arg0: i32) -> (i32, i32, i32, i32) {
    %c0_i32 = arith.constant 0 : i32
    %c0_i32_0 = arith.constant 0 : i32
    %c0_i32_1 = arith.constant 0 : i32
    %c0_i32_2 = arith.constant 0 : i32
    return %arg0, %c0_i32, %c0_i32_0, %c0_i32_1 : i32, i32, i32, i32
  }
  func.func @transform_1(%arg0: i32) -> (i32, i32) {
    %c0_i32 = arith.constant 0 : i32
    %c0_i32_0 = arith.constant 0 : i32
    %c0_i32_1 = arith.constant 0 : i32
    return %c0_i32, %c0_i32_0 : i32, i32
  }
  func.func @transform_2(%arg0: i32) -> (i32, i32) {
    %c0_i32 = arith.constant 0 : i32
    %c0_i32_0 = arith.constant 0 : i32
    %c0_i32_1 = arith.constant 0 : i32
    return %c0_i32, %c0_i32_0 : i32, i32
  }
  func.func @transform_3(%arg0: i32) -> (i32, i32) {
    %c0_i32 = arith.constant 0 : i32
    %c0_i32_0 = arith.constant 0 : i32
    %c0_i32_1 = arith.constant 0 : i32
    return %c0_i32, %c0_i32_0 : i32, i32
  }
  func.func @transform_4(%arg0: i32) -> (i32, i32) {
    %c0_i32 = arith.constant 0 : i32
    %c0_i32_0 = arith.constant 0 : i32
    %c0_i32_1 = arith.constant 0 : i32
    return %c0_i32, %c0_i32_0 : i32, i32
  }
  func.func @transform_5(%arg0: i32) -> (i32, i32, i32, i32) {
    %c0_i32 = arith.constant 0 : i32
    %c0_i32_0 = arith.constant 0 : i32
    %c0_i32_1 = arith.constant 0 : i32
    %c0_i32_2 = arith.constant 0 : i32
    return %arg0, %c0_i32, %c0_i32_0, %c0_i32_1 : i32, i32, i32, i32
  }
}

module attributes {stable_mosaic.version = 11 : i64} {
  func.func @_sppf_kernel(%arg0: i32, %arg1: memref<1x16x16x64xbf16, #tpu.memory_space<vmem>>, %arg2: memref<64x32xbf16, #tpu.memory_space<vmem>>, %arg3: memref<1x32xf32, #tpu.memory_space<vmem>>, %arg4: memref<128x64xbf16, #tpu.memory_space<vmem>>, %arg5: memref<1x64xf32, #tpu.memory_space<vmem>>, %arg6: memref<1x16x16x64xbf16, #tpu.memory_space<vmem>>) attributes {dimension_semantics = [#tpu.dimension_semantics<parallel>], iteration_bounds = array<i64: 2>, scalar_prefetch = 0 : i64, scratch_operands = 0 : i64, tpu.core_type = #tpu.core_type<tc>, window_params = [{transform_indices = @transform_0, window_bounds = array<i64: 1, 16, 16, 64>}, {pipeline_mode = #tpu.pipeline_mode<synchronous>, transform_indices = @transform_1, window_bounds = array<i64: 64, 32>}, {pipeline_mode = #tpu.pipeline_mode<synchronous>, transform_indices = @transform_2, window_bounds = array<i64: 1, 32>}, {pipeline_mode = #tpu.pipeline_mode<synchronous>, transform_indices = @transform_3, window_bounds = array<i64: 128, 64>}, {pipeline_mode = #tpu.pipeline_mode<synchronous>, transform_indices = @transform_4, window_bounds = array<i64: 1, 64>}, {transform_indices = @transform_5, window_bounds = array<i64: 1, 16, 16, 64>}]} {
    %c0 = arith.constant 0 : index
    %c0_0 = arith.constant 0 : index
    %c0_1 = arith.constant 0 : index
    %c0_2 = arith.constant 0 : index
    %0 = vector.load %arg1[%c0, %c0_0, %c0_1, %c0_2] : memref<1x16x16x64xbf16, #tpu.memory_space<vmem>>, vector<1x16x16x64xbf16>
    %1 = vector.shape_cast %0 : vector<1x16x16x64xbf16> to vector<256x64xbf16>
    %c0_3 = arith.constant 0 : index
    %c0_4 = arith.constant 0 : index
    %2 = vector.load %arg2[%c0_3, %c0_4] : memref<64x32xbf16, #tpu.memory_space<vmem>>, vector<64x32xbf16>
    %cst = arith.constant dense<0.000000e+00> : vector<256x32xf32>
    %3 = tpu.matmul %1, %2, %cst {dimension_numbers = #tpu.dot_dimension_numbers<[1], [0], [0], [1], [0, 0, 1, 1], [], []>} : vector<256x64xbf16>, vector<64x32xbf16>, vector<256x32xf32> -> vector<256x32xf32>
    %c0_5 = arith.constant 0 : index
    %c0_6 = arith.constant 0 : index
    %4 = vector.load %arg3[%c0_5, %c0_6] : memref<1x32xf32, #tpu.memory_space<vmem>>, vector<1x32xf32>
    %5 = vector.broadcast %4 : vector<1x32xf32> to vector<256x32xf32>
    %6 = arith.addf %3, %5 : vector<256x32xf32>
    %7 = arith.negf %6 : vector<256x32xf32>
    %8 = math.exp %7 : vector<256x32xf32>
    %cst_7 = arith.constant 1.000000e+00 : f32
    %9 = vector.broadcast %cst_7 : f32 to vector<256x32xf32>
    %10 = arith.addf %9, %8 : vector<256x32xf32>
    %11 = arith.divf %9, %10 : vector<256x32xf32>
    %12 = arith.mulf %6, %11 : vector<256x32xf32>
    %13 = vector.shape_cast %12 : vector<256x32xf32> to vector<1x16x16x32xf32>
    %14 = tpu.iota {dimensions = array<i32: 1>} : vector<16x16x32xi32>
    %cst_8 = arith.constant -3.40282347E+38 : f32
    %15 = vector.broadcast %cst_8 : f32 to vector<1x2x16x32xf32>
    %16 = vector.shape_cast %13 : vector<1x16x16x32xf32> to vector<16x16x32xf32>
    %c1_i32 = arith.constant 1 : i32
    %17 = tpu.dynamic_rotate %16 by %c1_i32 dim 1 : vector<16x16x32xf32>, i32 -> vector<16x16x32xf32>
    %c1_i32_9 = arith.constant 1 : i32
    %18 = vector.broadcast %c1_i32_9 : i32 to vector<16x16x32xi32>
    %19 = arith.cmpi sge, %14, %18 : vector<16x16x32xi32>
    %cst_10 = arith.constant -3.40282347E+38 : f32
    %20 = vector.broadcast %cst_10 : f32 to vector<16x16x32xf32>
    %21 = arith.select %19, %17, %20 : vector<16x16x32xi1>, vector<16x16x32xf32>
    %22 = arith.maximumf %16, %21 : vector<16x16x32xf32>
    %c15_i32 = arith.constant 15 : i32
    %23 = tpu.dynamic_rotate %16 by %c15_i32 dim 1 : vector<16x16x32xf32>, i32 -> vector<16x16x32xf32>
    %c15_i32_11 = arith.constant 15 : i32
    %24 = vector.broadcast %c15_i32_11 : i32 to vector<16x16x32xi32>
    %25 = arith.cmpi slt, %14, %24 : vector<16x16x32xi32>
    %cst_12 = arith.constant -3.40282347E+38 : f32
    %26 = vector.broadcast %cst_12 : f32 to vector<16x16x32xf32>
    %27 = arith.select %25, %23, %26 : vector<16x16x32xi1>, vector<16x16x32xf32>
    %28 = arith.maximumf %22, %27 : vector<16x16x32xf32>
    %c2_i32 = arith.constant 2 : i32
    %29 = tpu.dynamic_rotate %16 by %c2_i32 dim 1 : vector<16x16x32xf32>, i32 -> vector<16x16x32xf32>
    %c2_i32_13 = arith.constant 2 : i32
    %30 = vector.broadcast %c2_i32_13 : i32 to vector<16x16x32xi32>
    %31 = arith.cmpi sge, %14, %30 : vector<16x16x32xi32>
    %cst_14 = arith.constant -3.40282347E+38 : f32
    %32 = vector.broadcast %cst_14 : f32 to vector<16x16x32xf32>
    %33 = arith.select %31, %29, %32 : vector<16x16x32xi1>, vector<16x16x32xf32>
    %34 = arith.maximumf %28, %33 : vector<16x16x32xf32>
    %c14_i32 = arith.constant 14 : i32
    %35 = tpu.dynamic_rotate %16 by %c14_i32 dim 1 : vector<16x16x32xf32>, i32 -> vector<16x16x32xf32>
    %c14_i32_15 = arith.constant 14 : i32
    %36 = vector.broadcast %c14_i32_15 : i32 to vector<16x16x32xi32>
    %37 = arith.cmpi slt, %14, %36 : vector<16x16x32xi32>
    %cst_16 = arith.constant -3.40282347E+38 : f32
    %38 = vector.broadcast %cst_16 : f32 to vector<16x16x32xf32>
    %39 = arith.select %37, %35, %38 : vector<16x16x32xi1>, vector<16x16x32xf32>
    %40 = arith.maximumf %34, %39 : vector<16x16x32xf32>
    %41 = vector.shape_cast %40 : vector<16x16x32xf32> to vector<1x16x16x32xf32>
    %42 = tpu.concatenate %15, %41, %15 in 1 : vector<1x2x16x32xf32>, vector<1x16x16x32xf32>, vector<1x2x16x32xf32> -> vector<1x20x16x32xf32>
    %43 = vector.extract_strided_slice %42 {offsets = [0, 0, 0, 0], sizes = [1, 16, 16, 32], strides = [1, 1, 1, 1]} : vector<1x20x16x32xf32> to vector<1x16x16x32xf32>
    %44 = vector.extract_strided_slice %42 {offsets = [0, 1, 0, 0], sizes = [1, 16, 16, 32], strides = [1, 1, 1, 1]} : vector<1x20x16x32xf32> to vector<1x16x16x32xf32>
    %45 = arith.maximumf %43, %44 : vector<1x16x16x32xf32>
    %46 = vector.extract_strided_slice %42 {offsets = [0, 2, 0, 0], sizes = [1, 16, 16, 32], strides = [1, 1, 1, 1]} : vector<1x20x16x32xf32> to vector<1x16x16x32xf32>
    %47 = arith.maximumf %45, %46 : vector<1x16x16x32xf32>
    %48 = vector.extract_strided_slice %42 {offsets = [0, 3, 0, 0], sizes = [1, 16, 16, 32], strides = [1, 1, 1, 1]} : vector<1x20x16x32xf32> to vector<1x16x16x32xf32>
    %49 = arith.maximumf %47, %48 : vector<1x16x16x32xf32>
    %50 = vector.extract_strided_slice %42 {offsets = [0, 4, 0, 0], sizes = [1, 16, 16, 32], strides = [1, 1, 1, 1]} : vector<1x20x16x32xf32> to vector<1x16x16x32xf32>
    %51 = arith.maximumf %49, %50 : vector<1x16x16x32xf32>
    %52 = vector.shape_cast %51 : vector<1x16x16x32xf32> to vector<16x16x32xf32>
    %c1_i32_17 = arith.constant 1 : i32
    %53 = tpu.dynamic_rotate %52 by %c1_i32_17 dim 1 : vector<16x16x32xf32>, i32 -> vector<16x16x32xf32>
    %c1_i32_18 = arith.constant 1 : i32
    %54 = vector.broadcast %c1_i32_18 : i32 to vector<16x16x32xi32>
    %55 = arith.cmpi sge, %14, %54 : vector<16x16x32xi32>
    %cst_19 = arith.constant -3.40282347E+38 : f32
    %56 = vector.broadcast %cst_19 : f32 to vector<16x16x32xf32>
    %57 = arith.select %55, %53, %56 : vector<16x16x32xi1>, vector<16x16x32xf32>
    %58 = arith.maximumf %52, %57 : vector<16x16x32xf32>
    %c15_i32_20 = arith.constant 15 : i32
    %59 = tpu.dynamic_rotate %52 by %c15_i32_20 dim 1 : vector<16x16x32xf32>, i32 -> vector<16x16x32xf32>
    %c15_i32_21 = arith.constant 15 : i32
    %60 = vector.broadcast %c15_i32_21 : i32 to vector<16x16x32xi32>
    %61 = arith.cmpi slt, %14, %60 : vector<16x16x32xi32>
    %cst_22 = arith.constant -3.40282347E+38 : f32
    %62 = vector.broadcast %cst_22 : f32 to vector<16x16x32xf32>
    %63 = arith.select %61, %59, %62 : vector<16x16x32xi1>, vector<16x16x32xf32>
    %64 = arith.maximumf %58, %63 : vector<16x16x32xf32>
    %c2_i32_23 = arith.constant 2 : i32
    %65 = tpu.dynamic_rotate %52 by %c2_i32_23 dim 1 : vector<16x16x32xf32>, i32 -> vector<16x16x32xf32>
    %c2_i32_24 = arith.constant 2 : i32
    %66 = vector.broadcast %c2_i32_24 : i32 to vector<16x16x32xi32>
    %67 = arith.cmpi sge, %14, %66 : vector<16x16x32xi32>
    %cst_25 = arith.constant -3.40282347E+38 : f32
    %68 = vector.broadcast %cst_25 : f32 to vector<16x16x32xf32>
    %69 = arith.select %67, %65, %68 : vector<16x16x32xi1>, vector<16x16x32xf32>
    %70 = arith.maximumf %64, %69 : vector<16x16x32xf32>
    %c14_i32_26 = arith.constant 14 : i32
    %71 = tpu.dynamic_rotate %52 by %c14_i32_26 dim 1 : vector<16x16x32xf32>, i32 -> vector<16x16x32xf32>
    %c14_i32_27 = arith.constant 14 : i32
    %72 = vector.broadcast %c14_i32_27 : i32 to vector<16x16x32xi32>
    %73 = arith.cmpi slt, %14, %72 : vector<16x16x32xi32>
    %cst_28 = arith.constant -3.40282347E+38 : f32
    %74 = vector.broadcast %cst_28 : f32 to vector<16x16x32xf32>
    %75 = arith.select %73, %71, %74 : vector<16x16x32xi1>, vector<16x16x32xf32>
    %76 = arith.maximumf %70, %75 : vector<16x16x32xf32>
    %77 = vector.shape_cast %76 : vector<16x16x32xf32> to vector<1x16x16x32xf32>
    %78 = tpu.concatenate %15, %77, %15 in 1 : vector<1x2x16x32xf32>, vector<1x16x16x32xf32>, vector<1x2x16x32xf32> -> vector<1x20x16x32xf32>
    %79 = vector.extract_strided_slice %78 {offsets = [0, 0, 0, 0], sizes = [1, 16, 16, 32], strides = [1, 1, 1, 1]} : vector<1x20x16x32xf32> to vector<1x16x16x32xf32>
    %80 = vector.extract_strided_slice %78 {offsets = [0, 1, 0, 0], sizes = [1, 16, 16, 32], strides = [1, 1, 1, 1]} : vector<1x20x16x32xf32> to vector<1x16x16x32xf32>
    %81 = arith.maximumf %79, %80 : vector<1x16x16x32xf32>
    %82 = vector.extract_strided_slice %78 {offsets = [0, 2, 0, 0], sizes = [1, 16, 16, 32], strides = [1, 1, 1, 1]} : vector<1x20x16x32xf32> to vector<1x16x16x32xf32>
    %83 = arith.maximumf %81, %82 : vector<1x16x16x32xf32>
    %84 = vector.extract_strided_slice %78 {offsets = [0, 3, 0, 0], sizes = [1, 16, 16, 32], strides = [1, 1, 1, 1]} : vector<1x20x16x32xf32> to vector<1x16x16x32xf32>
    %85 = arith.maximumf %83, %84 : vector<1x16x16x32xf32>
    %86 = vector.extract_strided_slice %78 {offsets = [0, 4, 0, 0], sizes = [1, 16, 16, 32], strides = [1, 1, 1, 1]} : vector<1x20x16x32xf32> to vector<1x16x16x32xf32>
    %87 = arith.maximumf %85, %86 : vector<1x16x16x32xf32>
    %88 = vector.shape_cast %87 : vector<1x16x16x32xf32> to vector<16x16x32xf32>
    %c1_i32_29 = arith.constant 1 : i32
    %89 = tpu.dynamic_rotate %88 by %c1_i32_29 dim 1 : vector<16x16x32xf32>, i32 -> vector<16x16x32xf32>
    %c1_i32_30 = arith.constant 1 : i32
    %90 = vector.broadcast %c1_i32_30 : i32 to vector<16x16x32xi32>
    %91 = arith.cmpi sge, %14, %90 : vector<16x16x32xi32>
    %cst_31 = arith.constant -3.40282347E+38 : f32
    %92 = vector.broadcast %cst_31 : f32 to vector<16x16x32xf32>
    %93 = arith.select %91, %89, %92 : vector<16x16x32xi1>, vector<16x16x32xf32>
    %94 = arith.maximumf %88, %93 : vector<16x16x32xf32>
    %c15_i32_32 = arith.constant 15 : i32
    %95 = tpu.dynamic_rotate %88 by %c15_i32_32 dim 1 : vector<16x16x32xf32>, i32 -> vector<16x16x32xf32>
    %c15_i32_33 = arith.constant 15 : i32
    %96 = vector.broadcast %c15_i32_33 : i32 to vector<16x16x32xi32>
    %97 = arith.cmpi slt, %14, %96 : vector<16x16x32xi32>
    %cst_34 = arith.constant -3.40282347E+38 : f32
    %98 = vector.broadcast %cst_34 : f32 to vector<16x16x32xf32>
    %99 = arith.select %97, %95, %98 : vector<16x16x32xi1>, vector<16x16x32xf32>
    %100 = arith.maximumf %94, %99 : vector<16x16x32xf32>
    %c2_i32_35 = arith.constant 2 : i32
    %101 = tpu.dynamic_rotate %88 by %c2_i32_35 dim 1 : vector<16x16x32xf32>, i32 -> vector<16x16x32xf32>
    %c2_i32_36 = arith.constant 2 : i32
    %102 = vector.broadcast %c2_i32_36 : i32 to vector<16x16x32xi32>
    %103 = arith.cmpi sge, %14, %102 : vector<16x16x32xi32>
    %cst_37 = arith.constant -3.40282347E+38 : f32
    %104 = vector.broadcast %cst_37 : f32 to vector<16x16x32xf32>
    %105 = arith.select %103, %101, %104 : vector<16x16x32xi1>, vector<16x16x32xf32>
    %106 = arith.maximumf %100, %105 : vector<16x16x32xf32>
    %c14_i32_38 = arith.constant 14 : i32
    %107 = tpu.dynamic_rotate %88 by %c14_i32_38 dim 1 : vector<16x16x32xf32>, i32 -> vector<16x16x32xf32>
    %c14_i32_39 = arith.constant 14 : i32
    %108 = vector.broadcast %c14_i32_39 : i32 to vector<16x16x32xi32>
    %109 = arith.cmpi slt, %14, %108 : vector<16x16x32xi32>
    %cst_40 = arith.constant -3.40282347E+38 : f32
    %110 = vector.broadcast %cst_40 : f32 to vector<16x16x32xf32>
    %111 = arith.select %109, %107, %110 : vector<16x16x32xi1>, vector<16x16x32xf32>
    %112 = arith.maximumf %106, %111 : vector<16x16x32xf32>
    %113 = vector.shape_cast %112 : vector<16x16x32xf32> to vector<1x16x16x32xf32>
    %114 = tpu.concatenate %15, %113, %15 in 1 : vector<1x2x16x32xf32>, vector<1x16x16x32xf32>, vector<1x2x16x32xf32> -> vector<1x20x16x32xf32>
    %115 = vector.extract_strided_slice %114 {offsets = [0, 0, 0, 0], sizes = [1, 16, 16, 32], strides = [1, 1, 1, 1]} : vector<1x20x16x32xf32> to vector<1x16x16x32xf32>
    %116 = vector.extract_strided_slice %114 {offsets = [0, 1, 0, 0], sizes = [1, 16, 16, 32], strides = [1, 1, 1, 1]} : vector<1x20x16x32xf32> to vector<1x16x16x32xf32>
    %117 = arith.maximumf %115, %116 : vector<1x16x16x32xf32>
    %118 = vector.extract_strided_slice %114 {offsets = [0, 2, 0, 0], sizes = [1, 16, 16, 32], strides = [1, 1, 1, 1]} : vector<1x20x16x32xf32> to vector<1x16x16x32xf32>
    %119 = arith.maximumf %117, %118 : vector<1x16x16x32xf32>
    %120 = vector.extract_strided_slice %114 {offsets = [0, 3, 0, 0], sizes = [1, 16, 16, 32], strides = [1, 1, 1, 1]} : vector<1x20x16x32xf32> to vector<1x16x16x32xf32>
    %121 = arith.maximumf %119, %120 : vector<1x16x16x32xf32>
    %122 = vector.extract_strided_slice %114 {offsets = [0, 4, 0, 0], sizes = [1, 16, 16, 32], strides = [1, 1, 1, 1]} : vector<1x20x16x32xf32> to vector<1x16x16x32xf32>
    %123 = arith.maximumf %121, %122 : vector<1x16x16x32xf32>
    %124 = arith.truncf %13 : vector<1x16x16x32xf32> to vector<1x16x16x32xbf16>
    %125 = arith.truncf %51 : vector<1x16x16x32xf32> to vector<1x16x16x32xbf16>
    %126 = arith.truncf %87 : vector<1x16x16x32xf32> to vector<1x16x16x32xbf16>
    %127 = arith.truncf %123 : vector<1x16x16x32xf32> to vector<1x16x16x32xbf16>
    %128 = tpu.concatenate %124, %125, %126, %127 in 3 : vector<1x16x16x32xbf16>, vector<1x16x16x32xbf16>, vector<1x16x16x32xbf16>, vector<1x16x16x32xbf16> -> vector<1x16x16x128xbf16>
    %129 = vector.shape_cast %128 : vector<1x16x16x128xbf16> to vector<256x128xbf16>
    %c0_41 = arith.constant 0 : index
    %c0_42 = arith.constant 0 : index
    %130 = vector.load %arg4[%c0_41, %c0_42] : memref<128x64xbf16, #tpu.memory_space<vmem>>, vector<128x64xbf16>
    %cst_43 = arith.constant dense<0.000000e+00> : vector<256x64xf32>
    %131 = tpu.matmul %129, %130, %cst_43 {dimension_numbers = #tpu.dot_dimension_numbers<[1], [0], [0], [1], [0, 0, 1, 1], [], []>} : vector<256x128xbf16>, vector<128x64xbf16>, vector<256x64xf32> -> vector<256x64xf32>
    %c0_44 = arith.constant 0 : index
    %c0_45 = arith.constant 0 : index
    %132 = vector.load %arg5[%c0_44, %c0_45] : memref<1x64xf32, #tpu.memory_space<vmem>>, vector<1x64xf32>
    %133 = vector.broadcast %132 : vector<1x64xf32> to vector<256x64xf32>
    %134 = arith.addf %131, %133 : vector<256x64xf32>
    %135 = arith.negf %134 : vector<256x64xf32>
    %136 = math.exp %135 : vector<256x64xf32>
    %cst_46 = arith.constant 1.000000e+00 : f32
    %137 = vector.broadcast %cst_46 : f32 to vector<256x64xf32>
    %138 = arith.addf %137, %136 : vector<256x64xf32>
    %139 = arith.divf %137, %138 : vector<256x64xf32>
    %140 = arith.mulf %134, %139 : vector<256x64xf32>
    %141 = vector.shape_cast %140 : vector<256x64xf32> to vector<1x16x16x64xf32>
    %142 = arith.truncf %141 : vector<1x16x16x64xf32> to vector<1x16x16x64xbf16>
    %c0_47 = arith.constant 0 : index
    %c0_48 = arith.constant 0 : index
    %c0_49 = arith.constant 0 : index
    %c0_50 = arith.constant 0 : index
    %143 = vector.load %arg6[%c0_47, %c0_48, %c0_49, %c0_50] : memref<1x16x16x64xbf16, #tpu.memory_space<vmem>>, vector<1x16x16x64xbf16>
    tpu.vector_store %arg6[%c0_47, %c0_48, %c0_49, %c0_50], %142 {strides = array<i32>} : memref<1x16x16x64xbf16, #tpu.memory_space<vmem>>, vector<1x16x16x64xbf16>,
    return
  }
  func.func @transform_0(%arg0: i32) -> (i32, i32, i32, i32) {
    %c0_i32 = arith.constant 0 : i32
    %c0_i32_0 = arith.constant 0 : i32
    %c0_i32_1 = arith.constant 0 : i32
    %c0_i32_2 = arith.constant 0 : i32
    return %arg0, %c0_i32, %c0_i32_0, %c0_i32_1 : i32, i32, i32, i32
  }
  func.func @transform_1(%arg0: i32) -> (i32, i32) {
    %c0_i32 = arith.constant 0 : i32
    %c0_i32_0 = arith.constant 0 : i32
    %c0_i32_1 = arith.constant 0 : i32
    return %c0_i32, %c0_i32_0 : i32, i32
  }
  func.func @transform_2(%arg0: i32) -> (i32, i32) {
    %c0_i32 = arith.constant 0 : i32
    %c0_i32_0 = arith.constant 0 : i32
    %c0_i32_1 = arith.constant 0 : i32
    return %c0_i32, %c0_i32_0 : i32, i32
  }
  func.func @transform_3(%arg0: i32) -> (i32, i32) {
    %c0_i32 = arith.constant 0 : i32
    %c0_i32_0 = arith.constant 0 : i32
    %c0_i32_1 = arith.constant 0 : i32
    return %c0_i32, %c0_i32_0 : i32, i32
  }
  func.func @transform_4(%arg0: i32) -> (i32, i32) {
    %c0_i32 = arith.constant 0 : i32
    %c0_i32_0 = arith.constant 0 : i32
    %c0_i32_1 = arith.constant 0 : i32
    return %c0_i32, %c0_i32_0 : i32, i32
  }
  func.func @transform_5(%arg0: i32) -> (i32, i32, i32, i32) {
    %c0_i32 = arith.constant 0 : i32
    %c0_i32_0 = arith.constant 0 : i32
    %c0_i32_1 = arith.constant 0 : i32
    %c0_i32_2 = arith.constant 0 : i32
    return %arg0, %c0_i32, %c0_i32_0, %c0_i32_1 : i32, i32, i32, i32
  }
}

module attributes {stable_mosaic.version = 11 : i64} {
  func.func @_sppf_kernel(%arg0: i32, %arg1: memref<1x16x16x64xbf16, #tpu.memory_space<vmem>>, %arg2: memref<64x32xbf16, #tpu.memory_space<vmem>>, %arg3: memref<1x32xf32, #tpu.memory_space<vmem>>, %arg4: memref<128x64xbf16, #tpu.memory_space<vmem>>, %arg5: memref<1x64xf32, #tpu.memory_space<vmem>>, %arg6: memref<1x16x16x64xbf16, #tpu.memory_space<vmem>>) attributes {dimension_semantics = [#tpu.dimension_semantics<parallel>], iteration_bounds = array<i64: 2>, scalar_prefetch = 0 : i64, scratch_operands = 0 : i64, tpu.core_type = #tpu.core_type<tc>, window_params = [{transform_indices = @transform_0, window_bounds = array<i64: 1, 16, 16, 64>}, {pipeline_mode = #tpu.pipeline_mode<synchronous>, transform_indices = @transform_1, window_bounds = array<i64: 64, 32>}, {pipeline_mode = #tpu.pipeline_mode<synchronous>, transform_indices = @transform_2, window_bounds = array<i64: 1, 32>}, {pipeline_mode = #tpu.pipeline_mode<synchronous>, transform_indices = @transform_3, window_bounds = array<i64: 128, 64>}, {pipeline_mode = #tpu.pipeline_mode<synchronous>, transform_indices = @transform_4, window_bounds = array<i64: 1, 64>}, {transform_indices = @transform_5, window_bounds = array<i64: 1, 16, 16, 64>}]} {
    %c0 = arith.constant 0 : index
    %c0_0 = arith.constant 0 : index
    %c0_1 = arith.constant 0 : index
    %c0_2 = arith.constant 0 : index
    %0 = vector.load %arg1[%c0, %c0_0, %c0_1, %c0_2] : memref<1x16x16x64xbf16, #tpu.memory_space<vmem>>, vector<1x16x16x64xbf16>
    %1 = vector.shape_cast %0 : vector<1x16x16x64xbf16> to vector<256x64xbf16>
    %c0_3 = arith.constant 0 : index
    %c0_4 = arith.constant 0 : index
    %2 = vector.load %arg2[%c0_3, %c0_4] : memref<64x32xbf16, #tpu.memory_space<vmem>>, vector<64x32xbf16>
    %cst = arith.constant dense<0.000000e+00> : vector<256x32xf32>
    %3 = tpu.matmul %1, %2, %cst {dimension_numbers = #tpu.dot_dimension_numbers<[1], [0], [0], [1], [0, 0, 1, 1], [], []>} : vector<256x64xbf16>, vector<64x32xbf16>, vector<256x32xf32> -> vector<256x32xf32>
    %c0_5 = arith.constant 0 : index
    %c0_6 = arith.constant 0 : index
    %4 = vector.load %arg3[%c0_5, %c0_6] : memref<1x32xf32, #tpu.memory_space<vmem>>, vector<1x32xf32>
    %5 = vector.broadcast %4 : vector<1x32xf32> to vector<256x32xf32>
    %6 = arith.addf %3, %5 : vector<256x32xf32>
    %7 = arith.negf %6 : vector<256x32xf32>
    %8 = math.exp %7 : vector<256x32xf32>
    %cst_7 = arith.constant 1.000000e+00 : f32
    %9 = vector.broadcast %cst_7 : f32 to vector<256x32xf32>
    %10 = arith.addf %9, %8 : vector<256x32xf32>
    %11 = arith.divf %9, %10 : vector<256x32xf32>
    %12 = arith.mulf %6, %11 : vector<256x32xf32>
    %13 = vector.shape_cast %12 : vector<256x32xf32> to vector<1x16x16x32xf32>
    %cst_8 = arith.constant -3.40282347E+38 : f32
    %14 = vector.broadcast %cst_8 : f32 to vector<1x2x16x32xf32>
    %cst_9 = arith.constant -3.40282347E+38 : f32
    %15 = vector.broadcast %cst_9 : f32 to vector<1x16x2x32xf32>
    %16 = tpu.concatenate %15, %13, %15 in 2 : vector<1x16x2x32xf32>, vector<1x16x16x32xf32>, vector<1x16x2x32xf32> -> vector<1x16x20x32xf32>
    %17 = vector.extract_strided_slice %16 {offsets = [0, 0, 0, 0], sizes = [1, 16, 16, 32], strides = [1, 1, 1, 1]} : vector<1x16x20x32xf32> to vector<1x16x16x32xf32>
    %18 = vector.extract_strided_slice %16 {offsets = [0, 0, 1, 0], sizes = [1, 16, 16, 32], strides = [1, 1, 1, 1]} : vector<1x16x20x32xf32> to vector<1x16x16x32xf32>
    %19 = arith.maximumf %17, %18 : vector<1x16x16x32xf32>
    %20 = vector.extract_strided_slice %16 {offsets = [0, 0, 2, 0], sizes = [1, 16, 16, 32], strides = [1, 1, 1, 1]} : vector<1x16x20x32xf32> to vector<1x16x16x32xf32>
    %21 = arith.maximumf %19, %20 : vector<1x16x16x32xf32>
    %22 = vector.extract_strided_slice %16 {offsets = [0, 0, 3, 0], sizes = [1, 16, 16, 32], strides = [1, 1, 1, 1]} : vector<1x16x20x32xf32> to vector<1x16x16x32xf32>
    %23 = arith.maximumf %21, %22 : vector<1x16x16x32xf32>
    %24 = vector.extract_strided_slice %16 {offsets = [0, 0, 4, 0], sizes = [1, 16, 16, 32], strides = [1, 1, 1, 1]} : vector<1x16x20x32xf32> to vector<1x16x16x32xf32>
    %25 = arith.maximumf %23, %24 : vector<1x16x16x32xf32>
    %26 = tpu.concatenate %14, %25, %14 in 1 : vector<1x2x16x32xf32>, vector<1x16x16x32xf32>, vector<1x2x16x32xf32> -> vector<1x20x16x32xf32>
    %27 = vector.extract_strided_slice %26 {offsets = [0, 0, 0, 0], sizes = [1, 16, 16, 32], strides = [1, 1, 1, 1]} : vector<1x20x16x32xf32> to vector<1x16x16x32xf32>
    %28 = vector.extract_strided_slice %26 {offsets = [0, 1, 0, 0], sizes = [1, 16, 16, 32], strides = [1, 1, 1, 1]} : vector<1x20x16x32xf32> to vector<1x16x16x32xf32>
    %29 = arith.maximumf %27, %28 : vector<1x16x16x32xf32>
    %30 = vector.extract_strided_slice %26 {offsets = [0, 2, 0, 0], sizes = [1, 16, 16, 32], strides = [1, 1, 1, 1]} : vector<1x20x16x32xf32> to vector<1x16x16x32xf32>
    %31 = arith.maximumf %29, %30 : vector<1x16x16x32xf32>
    %32 = vector.extract_strided_slice %26 {offsets = [0, 3, 0, 0], sizes = [1, 16, 16, 32], strides = [1, 1, 1, 1]} : vector<1x20x16x32xf32> to vector<1x16x16x32xf32>
    %33 = arith.maximumf %31, %32 : vector<1x16x16x32xf32>
    %34 = vector.extract_strided_slice %26 {offsets = [0, 4, 0, 0], sizes = [1, 16, 16, 32], strides = [1, 1, 1, 1]} : vector<1x20x16x32xf32> to vector<1x16x16x32xf32>
    %35 = arith.maximumf %33, %34 : vector<1x16x16x32xf32>
    %cst_10 = arith.constant -3.40282347E+38 : f32
    %36 = vector.broadcast %cst_10 : f32 to vector<1x16x2x32xf32>
    %37 = tpu.concatenate %36, %35, %36 in 2 : vector<1x16x2x32xf32>, vector<1x16x16x32xf32>, vector<1x16x2x32xf32> -> vector<1x16x20x32xf32>
    %38 = vector.extract_strided_slice %37 {offsets = [0, 0, 0, 0], sizes = [1, 16, 16, 32], strides = [1, 1, 1, 1]} : vector<1x16x20x32xf32> to vector<1x16x16x32xf32>
    %39 = vector.extract_strided_slice %37 {offsets = [0, 0, 1, 0], sizes = [1, 16, 16, 32], strides = [1, 1, 1, 1]} : vector<1x16x20x32xf32> to vector<1x16x16x32xf32>
    %40 = arith.maximumf %38, %39 : vector<1x16x16x32xf32>
    %41 = vector.extract_strided_slice %37 {offsets = [0, 0, 2, 0], sizes = [1, 16, 16, 32], strides = [1, 1, 1, 1]} : vector<1x16x20x32xf32> to vector<1x16x16x32xf32>
    %42 = arith.maximumf %40, %41 : vector<1x16x16x32xf32>
    %43 = vector.extract_strided_slice %37 {offsets = [0, 0, 3, 0], sizes = [1, 16, 16, 32], strides = [1, 1, 1, 1]} : vector<1x16x20x32xf32> to vector<1x16x16x32xf32>
    %44 = arith.maximumf %42, %43 : vector<1x16x16x32xf32>
    %45 = vector.extract_strided_slice %37 {offsets = [0, 0, 4, 0], sizes = [1, 16, 16, 32], strides = [1, 1, 1, 1]} : vector<1x16x20x32xf32> to vector<1x16x16x32xf32>
    %46 = arith.maximumf %44, %45 : vector<1x16x16x32xf32>
    %47 = tpu.concatenate %14, %46, %14 in 1 : vector<1x2x16x32xf32>, vector<1x16x16x32xf32>, vector<1x2x16x32xf32> -> vector<1x20x16x32xf32>
    %48 = vector.extract_strided_slice %47 {offsets = [0, 0, 0, 0], sizes = [1, 16, 16, 32], strides = [1, 1, 1, 1]} : vector<1x20x16x32xf32> to vector<1x16x16x32xf32>
    %49 = vector.extract_strided_slice %47 {offsets = [0, 1, 0, 0], sizes = [1, 16, 16, 32], strides = [1, 1, 1, 1]} : vector<1x20x16x32xf32> to vector<1x16x16x32xf32>
    %50 = arith.maximumf %48, %49 : vector<1x16x16x32xf32>
    %51 = vector.extract_strided_slice %47 {offsets = [0, 2, 0, 0], sizes = [1, 16, 16, 32], strides = [1, 1, 1, 1]} : vector<1x20x16x32xf32> to vector<1x16x16x32xf32>
    %52 = arith.maximumf %50, %51 : vector<1x16x16x32xf32>
    %53 = vector.extract_strided_slice %47 {offsets = [0, 3, 0, 0], sizes = [1, 16, 16, 32], strides = [1, 1, 1, 1]} : vector<1x20x16x32xf32> to vector<1x16x16x32xf32>
    %54 = arith.maximumf %52, %53 : vector<1x16x16x32xf32>
    %55 = vector.extract_strided_slice %47 {offsets = [0, 4, 0, 0], sizes = [1, 16, 16, 32], strides = [1, 1, 1, 1]} : vector<1x20x16x32xf32> to vector<1x16x16x32xf32>
    %56 = arith.maximumf %54, %55 : vector<1x16x16x32xf32>
    %cst_11 = arith.constant -3.40282347E+38 : f32
    %57 = vector.broadcast %cst_11 : f32 to vector<1x16x2x32xf32>
    %58 = tpu.concatenate %57, %56, %57 in 2 : vector<1x16x2x32xf32>, vector<1x16x16x32xf32>, vector<1x16x2x32xf32> -> vector<1x16x20x32xf32>
    %59 = vector.extract_strided_slice %58 {offsets = [0, 0, 0, 0], sizes = [1, 16, 16, 32], strides = [1, 1, 1, 1]} : vector<1x16x20x32xf32> to vector<1x16x16x32xf32>
    %60 = vector.extract_strided_slice %58 {offsets = [0, 0, 1, 0], sizes = [1, 16, 16, 32], strides = [1, 1, 1, 1]} : vector<1x16x20x32xf32> to vector<1x16x16x32xf32>
    %61 = arith.maximumf %59, %60 : vector<1x16x16x32xf32>
    %62 = vector.extract_strided_slice %58 {offsets = [0, 0, 2, 0], sizes = [1, 16, 16, 32], strides = [1, 1, 1, 1]} : vector<1x16x20x32xf32> to vector<1x16x16x32xf32>
    %63 = arith.maximumf %61, %62 : vector<1x16x16x32xf32>
    %64 = vector.extract_strided_slice %58 {offsets = [0, 0, 3, 0], sizes = [1, 16, 16, 32], strides = [1, 1, 1, 1]} : vector<1x16x20x32xf32> to vector<1x16x16x32xf32>
    %65 = arith.maximumf %63, %64 : vector<1x16x16x32xf32>
    %66 = vector.extract_strided_slice %58 {offsets = [0, 0, 4, 0], sizes = [1, 16, 16, 32], strides = [1, 1, 1, 1]} : vector<1x16x20x32xf32> to vector<1x16x16x32xf32>
    %67 = arith.maximumf %65, %66 : vector<1x16x16x32xf32>
    %68 = tpu.concatenate %14, %67, %14 in 1 : vector<1x2x16x32xf32>, vector<1x16x16x32xf32>, vector<1x2x16x32xf32> -> vector<1x20x16x32xf32>
    %69 = vector.extract_strided_slice %68 {offsets = [0, 0, 0, 0], sizes = [1, 16, 16, 32], strides = [1, 1, 1, 1]} : vector<1x20x16x32xf32> to vector<1x16x16x32xf32>
    %70 = vector.extract_strided_slice %68 {offsets = [0, 1, 0, 0], sizes = [1, 16, 16, 32], strides = [1, 1, 1, 1]} : vector<1x20x16x32xf32> to vector<1x16x16x32xf32>
    %71 = arith.maximumf %69, %70 : vector<1x16x16x32xf32>
    %72 = vector.extract_strided_slice %68 {offsets = [0, 2, 0, 0], sizes = [1, 16, 16, 32], strides = [1, 1, 1, 1]} : vector<1x20x16x32xf32> to vector<1x16x16x32xf32>
    %73 = arith.maximumf %71, %72 : vector<1x16x16x32xf32>
    %74 = vector.extract_strided_slice %68 {offsets = [0, 3, 0, 0], sizes = [1, 16, 16, 32], strides = [1, 1, 1, 1]} : vector<1x20x16x32xf32> to vector<1x16x16x32xf32>
    %75 = arith.maximumf %73, %74 : vector<1x16x16x32xf32>
    %76 = vector.extract_strided_slice %68 {offsets = [0, 4, 0, 0], sizes = [1, 16, 16, 32], strides = [1, 1, 1, 1]} : vector<1x20x16x32xf32> to vector<1x16x16x32xf32>
    %77 = arith.maximumf %75, %76 : vector<1x16x16x32xf32>
    %78 = tpu.concatenate %13, %35, %56, %77 in 3 : vector<1x16x16x32xf32>, vector<1x16x16x32xf32>, vector<1x16x16x32xf32>, vector<1x16x16x32xf32> -> vector<1x16x16x128xf32>
    %79 = vector.shape_cast %78 : vector<1x16x16x128xf32> to vector<256x128xf32>
    %80 = arith.truncf %79 : vector<256x128xf32> to vector<256x128xbf16>
    %c0_12 = arith.constant 0 : index
    %c0_13 = arith.constant 0 : index
    %81 = vector.load %arg4[%c0_12, %c0_13] : memref<128x64xbf16, #tpu.memory_space<vmem>>, vector<128x64xbf16>
    %cst_14 = arith.constant dense<0.000000e+00> : vector<256x64xf32>
    %82 = tpu.matmul %80, %81, %cst_14 {dimension_numbers = #tpu.dot_dimension_numbers<[1], [0], [0], [1], [0, 0, 1, 1], [], []>} : vector<256x128xbf16>, vector<128x64xbf16>, vector<256x64xf32> -> vector<256x64xf32>
    %c0_15 = arith.constant 0 : index
    %c0_16 = arith.constant 0 : index
    %83 = vector.load %arg5[%c0_15, %c0_16] : memref<1x64xf32, #tpu.memory_space<vmem>>, vector<1x64xf32>
    %84 = vector.broadcast %83 : vector<1x64xf32> to vector<256x64xf32>
    %85 = arith.addf %82, %84 : vector<256x64xf32>
    %86 = arith.negf %85 : vector<256x64xf32>
    %87 = math.exp %86 : vector<256x64xf32>
    %cst_17 = arith.constant 1.000000e+00 : f32
    %88 = vector.broadcast %cst_17 : f32 to vector<256x64xf32>
    %89 = arith.addf %88, %87 : vector<256x64xf32>
    %90 = arith.divf %88, %89 : vector<256x64xf32>
    %91 = arith.mulf %85, %90 : vector<256x64xf32>
    %92 = vector.shape_cast %91 : vector<256x64xf32> to vector<1x16x16x64xf32>
    %93 = arith.truncf %92 : vector<1x16x16x64xf32> to vector<1x16x16x64xbf16>
    %c0_18 = arith.constant 0 : index
    %c0_19 = arith.constant 0 : index
    %c0_20 = arith.constant 0 : index
    %c0_21 = arith.constant 0 : index
    %94 = vector.load %arg6[%c0_18, %c0_19, %c0_20, %c0_21] : memref<1x16x16x64xbf16, #tpu.memory_space<vmem>>, vector<1x16x16x64xbf16>
    tpu.vector_store %arg6[%c0_18, %c0_19, %c0_20, %c0_21], %93 {strides = array<i32>} : memref<1x16x16x64xbf16, #tpu.memory_space<vmem>>, vector<1x16x16x64xbf16>,
    return
  }
  func.func @transform_0(%arg0: i32) -> (i32, i32, i32, i32) {
    %c0_i32 = arith.constant 0 : i32
    %c0_i32_0 = arith.constant 0 : i32
    %c0_i32_1 = arith.constant 0 : i32
    %c0_i32_2 = arith.constant 0 : i32
    return %arg0, %c0_i32, %c0_i32_0, %c0_i32_1 : i32, i32, i32, i32
  }
  func.func @transform_1(%arg0: i32) -> (i32, i32) {
    %c0_i32 = arith.constant 0 : i32
    %c0_i32_0 = arith.constant 0 : i32
    %c0_i32_1 = arith.constant 0 : i32
    return %c0_i32, %c0_i32_0 : i32, i32
  }
  func.func @transform_2(%arg0: i32) -> (i32, i32) {
    %c0_i32 = arith.constant 0 : i32
    %c0_i32_0 = arith.constant 0 : i32
    %c0_i32_1 = arith.constant 0 : i32
    return %c0_i32, %c0_i32_0 : i32, i32
  }
  func.func @transform_3(%arg0: i32) -> (i32, i32) {
    %c0_i32 = arith.constant 0 : i32
    %c0_i32_0 = arith.constant 0 : i32
    %c0_i32_1 = arith.constant 0 : i32
    return %c0_i32, %c0_i32_0 : i32, i32
  }
  func.func @transform_4(%arg0: i32) -> (i32, i32) {
    %c0_i32 = arith.constant 0 : i32
    %c0_i32_0 = arith.constant 0 : i32
    %c0_i32_1 = arith.constant 0 : i32
    return %c0_i32, %c0_i32_0 : i32, i32
  }
  func.func @transform_5(%arg0: i32) -> (i32, i32, i32, i32) {
    %c0_i32 = arith.constant 0 : i32
    %c0_i32_0 = arith.constant 0 : i32
    %c0_i32_1 = arith.constant 0 : i32
    %c0_i32_2 = arith.constant 0 : i32
    return %arg0, %c0_i32, %c0_i32_0, %c0_i32_1 : i32, i32, i32, i32
  }
}

</mosaic_0001>

<bundles_post_ra>
// kernel: sppf_forward.1
= control target key start
LH: loop header
LB: loop body
LE: loop exit
PB: predicated region body
PF: predicated region fallthrough
CT: control target
= control target key end

     0   :  { %10 = vsyncpa [#allocation3], 0  ;;  %s8253_s0 = inlined_call_operand.vmem [shape: bf16[2,16,16,64], index: 0, kind: input, shape index: {}]   ;;  %s8254_s1 = inlined_call_operand.vmem [shape: bf16[64,32], index: 1, kind: input, shape index: {}]   ;;  %s8255_s2 = inlined_call_operand.vmem [shape: f32[1,32], index: 2, kind: input, shape index: {}]   ;;  %s8256_s3 = inlined_call_operand.vmem [shape: bf16[128,64], index: 3, kind: input, shape index: {}]   ;;  %s8257_s4 = inlined_call_operand.vmem [shape: f32[1,64], index: 4, kind: input, shape index: {}]   ;;  %s8258_s5 = inlined_call_operand.hbm [shape: bf16[2,16,16,64], index: 5, kind: output, shape index: {}]  }
   0x1   :  { %12 = vsyncpa [#allocation3 + $0x1], 0  ;;  %s4511_s18 = smov 0   ;;  %s4513_s19 = smov 0  }
   0x2   :  { %s4515_s20 = smov 0   ;;  %s4517_s21 = smov 0  }
   0x3 LB: > { %s4532_s22 = sadd.s32 4294967295, %s4474_s21   ;;  %s3751_s23 = sadd.s32 4294967294, %s4474_s21   ;;  %s4474_s21 = sphi %s4517_s21, %s8646_s21   ;;  %s4470_s20 = sphi %s4515_s20, %s8645_s20   ;;  %s4466_s19 = sphi %s4513_s19, %s8644_s19   ;;  %s4462_s18 = sphi %s4511_s18, %s8643_s18  }
   0x4   : > { %s4536_s24 = sadd.s32 1, %s4474_s21   ;;  %s135_s25 = sadd.s32 1, %s4470_s20 }
   0x5   : > { %s132_s26 = ssub.s32 %s4474_s21, %s4536_s24  ;;  %p145_p0 = scmp.ne.s32.totalorder %s4470_s20, %s4466_s19 }
   0x6   : > { %p133_p1 = scmp.eq.s32.totalorder %s132_s26, 0  ;;  %p146_p2 = scmp.eq.s32.totalorder %s4532_s22, 1 }
   0x7   : > { %p151_p3 = scmp.ne.s32.totalorder %s4466_s19, %s4462_s18  ;;  %p152_p4 = scmp.eq.s32.totalorder %s3751_s23, 1 }
   0x8   : > { %s4547_s27 = scalar_select %p133_p1, %s4470_s20, %s135_s25  }
   0x9   : > { %p4549_p5 = por %p146_p2, %p145_p0  ;;  %p4553_p6 = por %p152_p4, %p151_p3 }
   0xa   : > { %p3754_p7 = scmp.ge.s32.totalorder %s4474_s21, 1  ;;  %p190_p8 = scmp.lt.s32.totalorder %s4474_s21, 3 }
   0xc   : > { %p191_p9 = pnand %p3754_p7, %p190_p8 }
   0xe   : > { %194 = sbr.rel (%p191_p9) target bundleno = 1138 (0x472), region = 40 }
  0x13   : > { %v4130_v0 = vld [vmem:[%s8254_s1 + $0x18] sm:$0xff]   ;;  %p218_p10 = scmp.lt.s32.totalorder %s4532_s22, 1  ;;  %v4131_v1 = vld [vmem:[%s8254_s1 + $0x10] sm:$0xff]   ;;  %vm375_vm0 = vcmask 523264   ;;  %v4132_v2 = vld [vmem:[%s8254_s1 + $0x8] sm:$0xff]   ;;  %v809_v58 = vlaneseq  ;;  %s4476_s26 = smov 32  }
  0x14   : > { %3983 = vmatprep.subr.bf16.mxu0 %v4130_v0  ;;  %v4133_v4 = vld [vmem:[%s8254_s1] sm:$0xff]   ;;  %s4477_s30 = smov 64   ;;  %s4478_s6 = smov 96   ;;  %vm2928_vm9 = vcmask 261120   ;;  %vm3009_vm10 = vcmask 785408   ;;  %vm3642_vm11 = vcmask 519168  }
  0x15   : > { %s219_s9 = scalar_select %p218_p10, %s4532_s22, 1  ;;  %3984 = vmatpush3.bf16.msra.mxu0 %v4130_v0  ;;  %v4613_v20 = vld [vmem:[%s8255_s2] ss:$0 sm:$0xff] }
  0x16   : > { %3985 = vmatprep.subr.bf16.mxu0 %v4131_v1  ;;  %s215_s10 = sand.u32 1, %s4466_s19   ;;  %s3938_s13 = sshll.u32 %s4532_s22, 11 }
  0x17   : > { %s3905_s12 = sshll.u32 %s219_s9, 7  ;;  %s3755_s11 = sshll.u32 %s215_s10, 7 }
  0x18   : > { %s4573_s15 = scalar_lea.vmem %s8253_s0, %s3905_s12  ;;  %s8030_s12 = scalar_lea.vmem [#allocation2], %s3755_s11 }
  0x19   : > { %v4134_v3 = vld [vmem:[%s4573_s15] sm:$0xff]   ;;  %3986 = vmatpush3.bf16.msra.mxu0 %v4131_v1  ;;  %v4135_v5 = vld [vmem:[%s4573_s15 + $0x8] sm:$0xff]   ;;  %v4136_v6 = vld [vmem:[%s4573_s15 + $0x10] sm:$0xff]   ;;  %s3689_s14 = sshll.u32 %s8030_s12, 4  ;;  %s8201_s17 = scalar_lea.hbm %s8258_s5, %s3938_s13  ;;  %s8203_s14 = int_to_ptr.vmem [resolvable:$true] %s3689_s14 }
  0x1a   : > { %3987 = vmatprep.subr.bf16.mxu0 %v4132_v2  ;;  %3991 = vmatprep.mubr.msk.bf16.mxu0 %vm375_vm0, %v4134_v3  ;;  %v4137_v7 = vld [vmem:[%s4573_s15 + $0x18] sm:$0xff]   ;;  %v4138_v8 = vld [vmem:[%s4573_s15 + $0x20] sm:$0xff]   ;;  %v4139_v9 = vld [vmem:[%s4573_s15 + $0x28] sm:$0xff]   ;;  %s8211_s22 = scalar_lea.sflag [#allocation3], %s215_s10  ;;  %s4414_s23 = scalar_lea.vmem %s8203_s14, 2048 }
  0x1b   : > { %v4140_v10 = vld [vmem:[%s4573_s15 + $0x30] sm:$0xff]   ;;  %v4141_v11 = vld [vmem:[%s4573_s15 + $0x38] sm:$0xff]   ;;  %v4142_v12 = vld [vmem:[%s4573_s15 + $0x40] sm:$0xff]   ;;  %p4415_p11 = scmp.ne.s32.totalorder %s8203_s14, %s4414_s23  ;;  %s4479_s25 = smov [#allocation2]  }
  0x1c   : > { %v4143_v13 = vld [vmem:[%s4573_s15 + $0x48] sm:$0xff]   ;;  %v4144_v14 = vld [vmem:[%s4573_s15 + $0x50] sm:$0xff]   ;;  %v4145_v15 = vld [vmem:[%s4573_s15 + $0x58] sm:$0xff]   ;;  %s4418_s7 = sshll.u32 %s4479_s25, 4  ;;  %s4419_s7 = int_to_ptr.vmem [resolvable:$false] %s4418_s7 }
  0x1d   : > { %3988 = vmatpush3.bf16.msra.mxu0 %v4132_v2  ;;  %v4146_v16 = vld [vmem:[%s4573_s15 + $0x60] sm:$0xff]   ;;  %v4147_v17 = vld [vmem:[%s4573_s15 + $0x68] sm:$0xff]   ;;  %v4148_v18 = vld [vmem:[%s4573_s15 + $0x70] sm:$0xff]   ;;  %p4416_p12 = pnand %p4415_p11, %p4549_p5  ;;  %s4420_s8 = scalar_lea.vmem %s4419_s7, 4096 }
  0x1e   : > { %3989 = vmatprep.subr.bf16.mxu0 %v4133_v4  ;;  %v4149_v19 = vld [vmem:[%s4573_s15 + $0x78] sm:$0xff]   ;;  %p4421_p0 = scmp.lt.s32.totalorder %s8203_s14, %s4419_s7  ;;  %p4422_p1 = scmp.lt.s32.totalorder %s4420_s8, %s4414_s23 }
  0x1f   : > { %p4417_p13 = pneg %p4416_p12 }
  0x20   : > { %p4423_p2 = por %p4422_p1, %p4421_p0 }
  0x21   : > { %3990 = vmatpush3.bf16.msra.mxu0 %v4133_v4 }
  0x22   : > { %p4424_p3 = pnand %p4423_p2, %p4417_p13 }
  0x24   : > { %3992 = vmatmul.mubr.msk.bf16.vlgmr.msra.gmra.mxu0 %vm375_vm0, %v4135_v5  ;;  %v4666_v5 = vshrl.u32 %v809_v58, 7 }
  0x25   : > { %3995 = vmatprep.mubr.msk.bf16.mxu0 %vm375_vm0, %v4136_v6 }
  0x26   : > { %vm844_vm1 = vcmp.lt.s32.totalorder %v4666_v5, 1  ;;  %vm975_vm2 = vcmp.lt.s32.totalorder %v4666_v5, 7  ;;  %vm877_vm3 = vcmp.ge.s32.totalorder %v4666_v5, 1  ;;  %vm1106_vm5 = vcmp.lt.s32.totalorder %v4666_v5, 2 }
  0x27   : > { %vm1237_vm6 = vcmp.lt.s32.totalorder %v4666_v5, 6  ;;  %vm1139_vm7 = vcmp.ge.s32.totalorder %v4666_v5, 2 }
  0x2c   : > { %3996 = vmatmul.mubr.msk.bf16.gmra.mxu0 %vm375_vm0, %v4137_v7 }
  0x2d   : > { %3999 = vmatprep.mubr.msk.bf16.mxu0 %vm375_vm0, %v4138_v8 }
  0x34   : > { %4000 = vmatmul.mubr.msk.bf16.gmra.mxu0 %vm375_vm0, %v4139_v9 }
  0x35   : > { %4003 = vmatprep.mubr.msk.bf16.mxu0 %vm375_vm0, %v4140_v10 }
  0x3c   : > { %4004 = vmatmul.mubr.msk.bf16.gmra.mxu0 %vm375_vm0, %v4141_v11 }
  0x3d   : > { %4007 = vmatprep.mubr.msk.bf16.mxu0 %vm375_vm0, %v4142_v12 }
  0x44   : > { %4008 = vmatmul.mubr.msk.bf16.gmra.mxu0 %vm375_vm0, %v4143_v13 }
  0x45   : > { %4011 = vmatprep.mubr.msk.bf16.mxu0 %vm375_vm0, %v4144_v14 }
  0x4c   : > { %4012 = vmatmul.mubr.msk.bf16.gmra.mxu0 %vm375_vm0, %v4145_v15 }
  0x4d   : > { %4015 = vmatprep.mubr.msk.bf16.mxu0 %vm375_vm0, %v4146_v16  ;;  %v4677_v16 = vadd.s32 8, %v4666_v5 }
  0x4f   : > { %vm1009_vm4 = vcmp.lt.s32.totalorder %v4677_v16, 15  ;;  %vm1271_vm8 = vcmp.lt.s32.totalorder %v4677_v16, 14 }
  0x54   : > { %4016 = vmatmul.mubr.msk.bf16.gmra.mxu0 %vm375_vm0, %v4147_v17 }
  0x55   : > { %4019 = vmatprep.mubr.msk.bf16.mxu0 %vm375_vm0, %v4148_v18 }
  0x5c   : > { %4020 = vmatmul.mubr.msk.bf16.gmra.mxu0 %vm375_vm0, %v4149_v19 }
  0xe4   : > { %v3993_v21 = vpop.f32.mrf.mxu0 }
  0xe5   : > { %v4616_v22 = vadd.f32 %v3993_v21, %v4613_v20 }
  0xe6   : > { %v458_v23 = vpop.f32.mrf.mxu0 }
  0xe7   : > { %v3797_v24 = vmul.f32 -1.442695, %v4616_v22  ;;  %v4620_v25 = vadd.f32 %v4613_v20, %v458_v23 }
  0xe8   : > { %v3994_v26 = vpop.f32.mrf.mxu0 }
  0xe9   : > { %4158 = vpow2.f32 %v3797_v24  ;;  %v3795_v27 = vmul.f32 -1.442695, %v4620_v25  ;;  %v4624_v28 = vadd.f32 %v3994_v26, %v4613_v20 }
  0xea   : > { %v461_v29 = vpop.f32.mrf.mxu0 }
  0xeb   : > { %4160 = vpow2.f32 %v3795_v27  ;;  %v3798_v30 = vmul.f32 -1.442695, %v4624_v28  ;;  %v4628_v31 = vadd.f32 %v4613_v20, %v461_v29 }
  0xec   : > { %v3997_v32 = vpop.f32.mrf.mxu0 }
  0xed   : > { %4162 = vpow2.f32 %v3798_v30  ;;  %v3796_v33 = vmul.f32 -1.442695, %v4628_v31  ;;  %v4632_v34 = vadd.f32 %v3997_v32, %v4613_v20 }
  0xee   : > { %v474_v35 = vpop.f32.mrf.mxu0 }
  0xef   : > { %4164 = vpow2.f32 %v3796_v33  ;;  %v3801_v36 = vmul.f32 -1.442695, %v4632_v34  ;;  %v4636_v37 = vadd.f32 %v4613_v20, %v474_v35 }
  0xf0   : > { %v3998_v38 = vpop.f32.mrf.mxu0 }
  0xf1   : > { %4166 = vpow2.f32 %v3801_v36  ;;  %v3799_v39 = vmul.f32 -1.442695, %v4636_v37  ;;  %v4640_v40 = vadd.f32 %v3998_v38, %v4613_v20 }
  0xf2   : > { %v477_v41 = vpop.f32.mrf.mxu0 }
  0xf3   : > { %4168 = vpow2.f32 %v3799_v39  ;;  %v3802_v42 = vmul.f32 -1.442695, %v4640_v40  ;;  %v4644_v43 = vadd.f32 %v4613_v20, %v477_v41 }
  0xf4   : > { %v4001_v44 = vpop.f32.mrf.mxu0 }
  0xf5   : > { %4170 = vpow2.f32 %v3802_v42  ;;  %v3800_v45 = vmul.f32 -1.442695, %v4644_v43  ;;  %v4648_v46 = vadd.f32 %v4001_v44, %v4613_v20 }
  0xf6   : > { %v4159_v47 = vpop.eup %4158  ;;  %v490_v48 = vpop.f32.mrf.mxu0 }
  0xf7   : > { %v683_v49 = vadd.f32 1.0, %v4159_v47  ;;  %4172 = vpow2.f32 %v3800_v45  ;;  %v3805_v50 = vmul.f32 -1.442695, %v4648_v46  ;;  %v4652_v51 = vadd.f32 %v4613_v20, %v490_v48 }
  0xf8   : > { %v4161_v52 = vpop.eup %4160  ;;  %v4002_v53 = vpop.f32.mrf.mxu0 }
  0xf9   : > { %4174 = vrcp.f32 %v683_v49  ;;  %v681_v54 = vadd.f32 1.0, %v4161_v52  ;;  %v3803_v55 = vmul.f32 -1.442695, %v4652_v51  ;;  %v4656_v56 = vadd.f32 %v4002_v53, %v4613_v20 }
  0xfa   : > { %v4163_v57 = vpop.eup %4162  ;;  %4176 = vpow2.f32 %v3805_v50  ;;  %v493_v59 = vpop.f32.mrf.mxu0 }
  0xfb   : > { %4178 = vrcp.f32 %v681_v54  ;;  %v684_v60 = vadd.f32 1.0, %v4163_v57  ;;  %v3806_v61 = vmul.f32 -1.442695, %v4656_v56  ;;  %v4660_v62 = vadd.f32 %v4613_v20, %v493_v59 }
  0xfc   : > { %v4165_v63 = vpop.eup %4164  ;;  %4180 = vpow2.f32 %v3803_v55  ;;  %v4005_v0 = vpop.f32.mrf.mxu0 }
  0xfd   : > { %4182 = vrcp.f32 %v684_v60  ;;  %v682_v1 = vadd.f32 1.0, %v4165_v63  ;;  %v3804_v2 = vmul.f32 -1.442695, %v4660_v62  ;;  %v4664_v3 = vadd.f32 %v4005_v0, %v4613_v20 }
  0xfe   : > { %v4167_v4 = vpop.eup %4166  ;;  %4184 = vpow2.f32 %v3806_v61  ;;  %v506_v6 = vpop.f32.mrf.mxu0 }
  0xff   : > { %4186 = vrcp.f32 %v682_v1  ;;  %v687_v7 = vadd.f32 1.0, %v4167_v4  ;;  %v3809_v8 = vmul.f32 -1.442695, %v4664_v3  ;;  %v4670_v9 = vadd.f32 %v4613_v20, %v506_v6 }
 0x100   : > { %v4169_v10 = vpop.eup %4168  ;;  %4188 = vpow2.f32 %v3804_v2  ;;  %v4006_v11 = vpop.f32.mrf.mxu0 }
 0x101   : > { %4190 = vrcp.f32 %v687_v7  ;;  %v685_v12 = vadd.f32 1.0, %v4169_v10  ;;  %v3807_v13 = vmul.f32 -1.442695, %v4670_v9  ;;  %v4674_v14 = vadd.f32 %v4006_v11, %v4613_v20 }
 0x102   : > { %v4171_v15 = vpop.eup %4170  ;;  %4192 = vpow2.f32 %v3809_v8  ;;  %v509_v17 = vpop.f32.mrf.mxu0 }
 0x103   : > { %4194 = vrcp.f32 %v685_v12  ;;  %v688_v18 = vadd.f32 1.0, %v4171_v15  ;;  %v3810_v19 = vmul.f32 -1.442695, %v4674_v14  ;;  %v4681_v21 = vadd.f32 %v4613_v20, %v509_v17 }
 0x104   : > { %v4173_v23 = vpop.eup %4172  ;;  %4196 = vpow2.f32 %v3807_v13  ;;  %v4009_v24 = vpop.f32.mrf.mxu0 }
 0x105   : > { %4198 = vrcp.f32 %v688_v18  ;;  %v686_v26 = vadd.f32 1.0, %v4173_v23  ;;  %v3808_v27 = vmul.f32 -1.442695, %v4681_v21  ;;  %v4688_v29 = vadd.f32 %v4009_v24, %v4613_v20 }
 0x106   : > { %v4175_v30 = vpop.eup %4174  ;;  %4200 = vpow2.f32 %v3810_v19  ;;  %v522_v32 = vpop.f32.mrf.mxu0 }
 0x107   : > { %v4177_v33 = vpop.eup %4176  ;;  %v4694_v35 = vmul.f32 %v4175_v30, %v4616_v22  ;;  %4202 = vrcp.f32 %v686_v26  ;;  %v3813_v36 = vmul.f32 -1.442695, %v4688_v29  ;;  %v4698_v38 = vadd.f32 %v4613_v20, %v522_v32 }
 0x108   : > { %v4179_v39 = vpop.eup %4178  ;;  %v691_v41 = vadd.f32 1.0, %v4177_v33  ;;  %4204 = vpow2.f32 %v3808_v27  ;;  %v4010_v42 = vpop.f32.mrf.mxu0 }
 0x109   : > { %8348 = vst [vmem:[#allocation5_spill] sm:$0xff] %v4694_v35  ;;  %v4181_v44 = vpop.eup %4180  ;;  %v813_v45 = vrot.slane %v4694_v35, 7  ;;  %v944_v22 = vrot.slane %v4694_v35, 1  ;;  %v1075_v47 = vrot.slane %v4694_v35, 6  ;;  %v1206_v48 = vrot.slane %v4694_v35, 2 }
 0x10a   : > { %v4183_v49 = vpop.eup %4182  ;;  %v4707_v50 = vmul.f32 %v4179_v39, %v4620_v25  ;;  %4206 = vrcp.f32 %v691_v41  ;;  %v689_v52 = vadd.f32 1.0, %v4181_v44  ;;  %v4710_v53 = vmul.f32 -1.442695, %v4698_v38  ;;  %v525_v54 = vpop.f32.mrf.mxu0 }
 0x10b   : > { %v4185_v55 = vpop.eup %4184  ;;  %v4713_v57 = vmul.f32 %v4183_v49, %v4624_v28  ;;  %4208 = vpow2.f32 %v3813_v36  ;;  %v4716_v58 = vadd.f32 %v4010_v42, %v4613_v20  ;;  %v4719_v59 = vadd.f32 %v4613_v20, %v525_v54 }
 0x10c   : > { %8349 = vst [vmem:[#allocation6_spill] sm:$0xff] %v4707_v50  ;;  %v4187_v60 = vpop.eup %4186  ;;  %v812_v25 = vrot.slane %v4707_v50, 7  ;;  %v943_v61 = vrot.slane %v4707_v50, 1  ;;  %v1074_v63 = vrot.slane %v4707_v50, 6  ;;  %v1205_v0 = vrot.slane %v4707_v50, 2 }
 0x10d   : > { %8350 = vst [vmem:[#allocation7_spill] sm:$0xff] %v4713_v57  ;;  %v4189_v1 = vpop.eup %4188  ;;  %v829_v28 = vrot.slane %v4713_v57, 7  ;;  %v960_v2 = vrot.slane %v4713_v57, 1  ;;  %v1091_v4 = vrot.slane %v4713_v57, 6  ;;  %v1222_v6 = vrot.slane %v4713_v57, 2 }
 0x10e   : > { %v4191_v7 = vpop.eup %4190  ;;  %v4730_v8 = vmul.f32 %v4187_v60, %v4628_v31  ;;  %4210 = vrcp.f32 %v689_v52  ;;  %v4732_v10 = vadd.f32 1.0, %v4185_v55  ;;  %v4734_v11 = vadd.f32 1.0, %v4189_v1 }
 0x10f   : > { %v4736_v12 = vpop.eup %4192  ;;  %v846_v13 = vsel %vm844_vm1, %v813_v45, %v829_v28  ;;  %v862_v15 = vsel %vm844_vm1, %v829_v28, %v813_v45  ;;  %v977_v17 = vsel %vm975_vm2, %v944_v22, %v960_v2  ;;  %v993_v31 = vsel %vm975_vm2, %v960_v2, %v944_v22 }
 0x110   : > { %8351 = vst [vmem:[#allocation8_spill] sm:$0xff] %v4730_v8  ;;  %v4195_v18 = vpop.eup %4194  ;;  %v881_v19 = vsel %vm877_vm3, %v862_v15, -3.4028235e+38  ;;  %v914_v23 = vmax.f32 %v4713_v57, %v846_v13  ;;  %v1013_v24 = vsel %vm1009_vm4, %v993_v31, -3.4028235e+38  ;;  %v1108_v26 = vsel %vm1106_vm5, %v1075_v47, %v1091_v4 }
 0x111   : > { %v4753_v27 = vpop.eup %4196  ;;  %v913_v30 = vmax.f32 %v4694_v35, %v881_v19  ;;  %v1124_v32 = vsel %vm1106_vm5, %v1091_v4, %v1075_v47  ;;  %v1239_v33 = vsel %vm1237_vm6, %v1206_v48, %v1222_v6  ;;  %v1255_v36 = vsel %vm1237_vm6, %v1222_v6, %v1206_v48 }
 0x112   : > { %v4199_v39 = vpop.eup %4198  ;;  %v1045_v41 = vmax.f32 %v914_v23, %v1013_v24  ;;  %v1143_v42 = vsel %vm1139_vm7, %v1124_v32, -3.4028235e+38  ;;  %v1275_v44 = vsel %vm1271_vm8, %v1255_v36, -3.4028235e+38  ;;  %v828_v45 = vrot.slane %v4730_v8, 7 }
 0x113   : > { %v4767_v22 = vpop.eup %4200  ;;  %v1044_v49 = vmax.f32 %v913_v30, %v977_v17  ;;  %v959_v47 = vrot.slane %v4730_v8, 1  ;;  %v1090_v52 = vrot.slane %v4730_v8, 6  ;;  %v1221_v54 = vrot.slane %v4730_v8, 2 }
 0x114   : > { %v4203_v48 = vpop.eup %4202  ;;  %v1176_v55 = vmax.f32 %v1045_v41, %v1108_v26  ;;  %v845_v60 = vsel %vm844_vm1, %v812_v25, %v828_v45  ;;  %v861_v1 = vsel %vm844_vm1, %v828_v45, %v812_v25  ;;  %v4777_v28 = vmul.f32 %v4191_v7, %v4632_v34 }
 0x115   : > { %v4779_v2 = vpop.eup %4204  ;;  %v1175_v4 = vmax.f32 %v1044_v49, %v1143_v42  ;;  %v879_v6 = vsel %vm877_vm3, %v861_v1, -3.4028235e+38  ;;  %v912_v13 = vmax.f32 %v4730_v8, %v845_v60  ;;  %v976_v15 = vsel %vm975_vm2, %v943_v61, %v959_v47  ;;  %v4828_v1 = vpop.f32.mrf.mxu0 }
 0x116   : > { %8352 = vst [vmem:[#allocation9_spill] sm:$0xff] %v4777_v28  ;;  %v4786_v17 = vmax.f32 %v1176_v55, %v1275_v44  ;;  %v911_v31 = vmax.f32 %v4707_v50, %v879_v6  ;;  %v992_v25 = vsel %vm975_vm2, %v959_v47, %v943_v61  ;;  %v1107_v34 = vsel %vm1106_vm5, %v1074_v63, %v1090_v52 }
 0x117   : > { %v4207_v7 = vpop.eup %4206  ;;  %v4793_v19 = vmax.f32 %v1175_v4, %v1239_v33  ;;  %v1011_v23 = vsel %vm1009_vm4, %v992_v25, -3.4028235e+38  ;;  %v1123_v24 = vsel %vm1106_vm5, %v1090_v52, %v1074_v63  ;;  %v1238_v26 = vsel %vm1237_vm6, %v1205_v0, %v1221_v54 }
 0x118   : > { %v4801_v30 = vpop.eup %4208  ;;  %v1042_v32 = vmax.f32 %v911_v31, %v976_v15  ;;  %v1043_v36 = vmax.f32 %v912_v13, %v1011_v23  ;;  %v1141_v61 = vsel %vm1139_vm7, %v1123_v24, -3.4028235e+38  ;;  %v1254_v33 = vsel %vm1237_vm6, %v1221_v54, %v1205_v0  ;;  %v4852_v23 = vpop.f32.mrf.mxu0 }
 0x119   : > { %v1273_v41 = vsel %vm1271_vm8, %v1254_v33, -3.4028235e+38  ;;  %v815_v42 = vrot.slane %v4777_v28, 7  ;;  %v946_v63 = vrot.slane %v4777_v28, 1  ;;  %v1077_v44 = vrot.slane %v4777_v28, 6 }
 0x11a   : > { %v1173_v45 = vmax.f32 %v1042_v32, %v1141_v61  ;;  %v1174_v49 = vmax.f32 %v1043_v36, %v1107_v34  ;;  %v1208_v47 = vrot.slane %v4777_v28, 2  ;;  %v4814_v52 = vmul.f32 %v4195_v18, %v4636_v37 }
 0x11b   : > { %v4816_v55 = vpop.eup %4210  ;;  %v4819_v0 = vmul.f32 %v4199_v39, %v4640_v40  ;;  %v4822_v54 = vmul.f32 %v4203_v48, %v4644_v43  ;;  %v4825_v60 = vmul.f32 %v4207_v7, %v4648_v46  ;;  %4212 = vrcp.f32 %v4732_v10 }
 0x11c   : > { %8353 = vst [vmem:[#allocation10_spill] sm:$0xff] %v4814_v52  ;;  %v4830_v4 = vmax.f32 %v1173_v45, %v1238_v26  ;;  %v4832_v6 = vmax.f32 %v1174_v49, %v1273_v41  ;;  %v814_v37 = vrot.slane %v4814_v52, 7  ;;  %v945_v18 = vrot.slane %v4814_v52, 1 }
 0x11d   : > { %8354 = vst [vmem:[#allocation11_spill] sm:$0xff] %v4819_v0  ;;  %8355 = vst [vmem:[#allocation12_spill] sm:$0xff] %v4822_v54  ;;  %v1076_v40 = vrot.slane %v4814_v52, 6  ;;  %v1207_v43 = vrot.slane %v4814_v52, 2  ;;  %v831_v39 = vrot.slane %v4819_v0, 7  ;;  %v962_v46 = vrot.slane %v4819_v0, 1 }
 0x11e   : > { %8356 = vst [vmem:[#allocation13_spill] sm:$0xff] %v4825_v60  ;;  %v1336_v10 = vmax.f32 %v4830_v4, -3.4028235e+38  ;;  %v1337_v48 = vmax.f32 %v4832_v6, -3.4028235e+38  ;;  %v1093_v13 = vrot.slane %v4819_v0, 6  ;;  %4214 = vrcp.f32 %v4734_v11 }
 0x11f   : > { %v1224_v15 = vrot.slane %v4819_v0, 2  ;;  %v848_v31 = vsel %vm844_vm1, %v815_v42, %v831_v39  ;;  %v864_v25 = vsel %vm844_vm1, %v831_v39, %v815_v42  ;;  %v979_v34 = vsel %vm975_vm2, %v946_v63, %v962_v46 }
 0x120   : > { %v995_v7 = vsel %vm975_vm2, %v962_v46, %v946_v63  ;;  %v4855_v24 = vmax.f32 %v1336_v10, %v4793_v19  ;;  %v1367_v26 = vmax.f32 %v1337_v48, %v4786_v17  ;;  %v885_v32 = vsel %vm877_vm3, %v864_v25, -3.4028235e+38  ;;  %v4878_v25 = vpop.f32.mrf.mxu0 }
 0x121   : > { %v918_v36 = vmax.f32 %v4819_v0, %v848_v31  ;;  %v917_v61 = vmax.f32 %v4777_v28, %v885_v32  ;;  %v1017_v33 = vsel %vm1009_vm4, %v995_v7, -3.4028235e+38  ;;  %v1110_v41 = vsel %vm1106_vm5, %v1077_v44, %v1093_v13 }
 0x122   : > { %v1126_v42 = vsel %vm1106_vm5, %v1093_v13, %v1077_v44  ;;  %v1241_v49 = vsel %vm1237_vm6, %v1208_v47, %v1224_v15  ;;  %v1257_v39 = vsel %vm1237_vm6, %v1224_v15, %v1208_v47  ;;  %v830_v48 = vrot.slane %v4822_v54, 7 }
 0x123   : > { %v1049_v63 = vmax.f32 %v918_v36, %v1017_v33  ;;  %v1147_v45 = vsel %vm1139_vm7, %v1126_v42, -3.4028235e+38  ;;  %v1048_v46 = vmax.f32 %v917_v61, %v979_v34  ;;  %v1279_v10 = vsel %vm1271_vm8, %v1257_v39, -3.4028235e+38  ;;  %v8611_v5 = vld [vmem:[#allocation10_spill] sm:$0xff] }
 0x124   : > { %v961_v31 = vrot.slane %v4822_v54, 1  ;;  %v1092_v13 = vrot.slane %v4822_v54, 6  ;;  %v1223_v7 = vrot.slane %v4822_v54, 2  ;;  %v817_v32 = vrot.slane %v4825_v60, 7 }
 0x125   : > { %v1180_v44 = vmax.f32 %v1049_v63, %v1110_v41  ;;  %v1179_v36 = vmax.f32 %v1048_v46, %v1147_v45  ;;  %v847_v47 = vsel %vm844_vm1, %v814_v37, %v830_v48  ;;  %v863_v15 = vsel %vm844_vm1, %v830_v48, %v814_v37  ;;  %v4903_v46 = vpop.f32.mrf.mxu0 }
 0x126   : > { %v978_v34 = vsel %vm975_vm2, %v945_v18, %v961_v31  ;;  %v883_v33 = vsel %vm877_vm3, %v863_v15, -3.4028235e+38  ;;  %v916_v41 = vmax.f32 %v4822_v54, %v847_v47  ;;  %v994_v42 = vsel %vm975_vm2, %v961_v31, %v945_v18 }
 0x127   : > { %v4889_v61 = vmax.f32 %v1180_v44, %v1279_v10  ;;  %v4896_v63 = vmax.f32 %v1179_v36, %v1241_v49  ;;  %v915_v45 = vmax.f32 %v4814_v52, %v883_v33  ;;  %v1015_v37 = vsel %vm1009_vm4, %v994_v42, -3.4028235e+38 }
 0x128   : > { %v1109_v39 = vsel %vm1106_vm5, %v1076_v40, %v1092_v13  ;;  %v4213_v10 = vpop.eup %4212  ;;  %v1047_v48 = vmax.f32 %v916_v41, %v1015_v37  ;;  %v1125_v44 = vsel %vm1106_vm5, %v1092_v13, %v1076_v40  ;;  %v1240_v18 = vsel %vm1237_vm6, %v1207_v43, %v1223_v7 }
 0x129   : > { %v1256_v49 = vsel %vm1237_vm6, %v1223_v7, %v1207_v43  ;;  %v1046_v31 = vmax.f32 %v915_v45, %v978_v34  ;;  %v1145_v36 = vsel %vm1139_vm7, %v1125_v44, -3.4028235e+38  ;;  %v948_v15 = vrot.slane %v4825_v60, 1  ;;  %v4017_v34 = vpop.f32.mrf.mxu0 }
 0x12a   : > { %v1277_v47 = vsel %vm1271_vm8, %v1256_v49, -3.4028235e+38  ;;  %v1178_v33 = vmax.f32 %v1047_v48, %v1109_v39  ;;  %v1079_v41 = vrot.slane %v4825_v60, 6  ;;  %v1210_v40 = vrot.slane %v4825_v60, 2 }
 0x12b   : > { %v4920_v13 = vmul.f32 %v4816_v55, %v4652_v51  ;;  %v1177_v42 = vmax.f32 %v1046_v31, %v1145_v36  ;;  %v4923_v43 = vmul.f32 %v4213_v10, %v4656_v56  ;;  %v695_v7 = vadd.f32 1.0, %v4736_v12 }
 0x12c   : > { %v4927_v45 = vmax.f32 %v1178_v33, %v1277_v47 }
 0x12d   : > { %8357 = vst [vmem:[#allocation14_spill] sm:$0xff] %v4920_v13  ;;  %8358 = vst [vmem:[#allocation15_spill] sm:$0xff] %v4923_v43  ;;  %v816_v37 = vrot.slane %v4920_v13, 7  ;;  %v4932_v44 = vmax.f32 %v1177_v42, %v1240_v18  ;;  %v833_v56 = vrot.slane %v4923_v43, 7  ;;  %v964_v55 = vrot.slane %v4923_v43, 1 }
 0x12e   : > { %v4938_v11 = vmax.f32 %v1367_v26, %v4927_v45  ;;  %v1095_v12 = vrot.slane %v4923_v43, 6  ;;  %v1226_v10 = vrot.slane %v4923_v43, 2  ;;  %4216 = vrcp.f32 %v695_v7  ;;  %v554_v26 = vpop.f32.mrf.mxu0 }
 0x12f   : > { %v4944_v49 = vmax.f32 %v4855_v24, %v4932_v44  ;;  %v850_v18 = vsel %vm844_vm1, %v817_v32, %v833_v56  ;;  %v866_v31 = vsel %vm844_vm1, %v833_v56, %v817_v32  ;;  %v981_v36 = vsel %vm975_vm2, %v948_v15, %v964_v55 }
 0x130   : > { %8359 = vst [vmem:[#allocation16_spill] sm:$0xff] %v4938_v11  ;;  %v889_v47 = vsel %vm877_vm3, %v866_v31, -3.4028235e+38  ;;  %v922_v33 = vmax.f32 %v4923_v43, %v850_v18  ;;  %v997_v42 = vsel %vm975_vm2, %v964_v55, %v948_v15  ;;  %v1112_v24 = vsel %vm1106_vm5, %v1079_v41, %v1095_v12 }
 0x131   : > { %8360 = vst [vmem:[#allocation17_spill] sm:$0xff] %v4944_v49  ;;  %v921_v7 = vmax.f32 %v4825_v60, %v889_v47  ;;  %v1021_v32 = vsel %vm1009_vm4, %v997_v42, -3.4028235e+38  ;;  %v1128_v56 = vsel %vm1106_vm5, %v1095_v12, %v1079_v41  ;;  %v1243_v51 = vsel %vm1237_vm6, %v1210_v40, %v1226_v10  ;;  %v4018_v12 = vpop.f32.mrf.mxu0 }
 0x132   : > { %v1053_v31 = vmax.f32 %v922_v33, %v1021_v32  ;;  %v1151_v18 = vsel %vm1139_vm7, %v1128_v56, -3.4028235e+38  ;;  %v1259_v15 = vsel %vm1237_vm6, %v1226_v10, %v1210_v40  ;;  %v693_v55 = vadd.f32 1.0, %v4753_v27 }
 0x133   : > { %v1052_v48 = vmax.f32 %v921_v7, %v981_v36  ;;  %v1283_v47 = vsel %vm1271_vm8, %v1259_v15, -3.4028235e+38  ;;  %v696_v42 = vadd.f32 1.0, %v4767_v22  ;;  %v694_v41 = vadd.f32 1.0, %v4779_v2  ;;  %v4215_v36 = vpop.eup %4214 }
 0x134   : > { %v1184_v39 = vmax.f32 %v1053_v31, %v1112_v24  ;;  %4218 = vrcp.f32 %v693_v55  ;;  %v699_v33 = vadd.f32 1.0, %v4801_v30  ;;  %v3814_v32 = vmul.f32 -1.442695, %v4716_v58 }
 0x135   : > { %v1183_v56 = vmax.f32 %v1052_v48, %v1151_v18  ;;  %4220 = vrcp.f32 %v696_v42  ;;  %v3812_v40 = vmul.f32 -1.442695, %v4719_v59  ;;  %v4980_v27 = vadd.f32 %v4828_v1, %v4613_v20 }
 0x136   : > { %v4982_v10 = vmax.f32 %v1184_v39, %v1283_v47  ;;  %4222 = vrcp.f32 %v694_v41  ;;  %v4986_v22 = vadd.f32 %v4613_v20, %v4852_v23  ;;  %v4990_v2 = vadd.f32 %v4878_v25, %v4613_v20  ;;  %v557_v39 = vpop.f32.mrf.mxu0 }
 0x137   : > { %v4992_v30 = vmax.f32 %v1183_v56, %v1243_v51  ;;  %4224 = vrcp.f32 %v699_v33  ;;  %v3817_v48 = vmul.f32 -1.442695, %v4980_v27  ;;  %v4997_v1 = vadd.f32 %v4613_v20, %v4903_v46 }
 0x138   : > { %4226 = vpow2.f32 %v4710_v53  ;;  %v3815_v23 = vmul.f32 -1.442695, %v4986_v22  ;;  %v3818_v24 = vmul.f32 -1.442695, %v4990_v2  ;;  %v5003_v25 = vadd.f32 %v4017_v34, %v4613_v20 }
 0x139   : > { %v5006_v51 = vmul.f32 %v4215_v36, %v4660_v62  ;;  %4228 = vpow2.f32 %v3814_v32  ;;  %v5009_v7 = vmul.f32 -1.442695, %v4997_v1  ;;  %v5012_v46 = vadd.f32 %v4613_v20, %v554_v26 }
 0x13a   : > { %4230 = vpow2.f32 %v3812_v40  ;;  %v5015_v53 = vmul.f32 -1.442695, %v5003_v25  ;;  %v5018_v31 = vadd.f32 %v4018_v12, %v4613_v20  ;;  %v5021_v34 = vadd.f32 %v4613_v20, %v557_v39 }
 0x13b   : > { %8361 = vst [vmem:[#allocation18_spill] sm:$0xff] %v5006_v51  ;;  %v4217_v18 = vpop.eup %4216  ;;  %v832_v62 = vrot.slane %v5006_v51, 7  ;;  %v963_v15 = vrot.slane %v5006_v51, 1  ;;  %v1094_v55 = vrot.slane %v5006_v51, 6  ;;  %v1225_v26 = vrot.slane %v5006_v51, 2 }
 0x13c   : > { %v5028_v47 = vmul.f32 %v4217_v18, %v4664_v3  ;;  %4232 = vpow2.f32 %v3817_v48  ;;  %v5031_v42 = vmul.f32 -1.442695, %v5012_v46  ;;  %v5034_v41 = vmul.f32 -1.442695, %v5018_v31 }
 0x13d   : > { %v849_v12 = vsel %vm844_vm1, %v816_v37, %v832_v62  ;;  %v865_v33 = vsel %vm844_vm1, %v832_v62, %v816_v37  ;;  %v8363_v3 = vrot.slane %v4920_v13, 1  ;;  %v8365_v37 = vrot.slane %v4920_v13, 6 }
 0x13e   : > { %8362 = vst [vmem:[#allocation19_spill] sm:$0xff] %v5028_v47  ;;  %v887_v48 = vsel %vm877_vm3, %v865_v33, -3.4028235e+38  ;;  %v920_v39 = vmax.f32 %v5006_v51, %v849_v12  ;;  %v819_v35 = vrot.slane %v5028_v47, 7  ;;  %v950_v50 = vrot.slane %v5028_v47, 1 }
 0x13f   : > { %v980_v32 = vsel %vm975_vm2, %v8363_v3, %v963_v15  ;;  %v8364_v56 = vmov %v8363_v3  ;;  %v1111_v18 = vsel %vm1106_vm5, %v8365_v37, %v1094_v55  ;;  %v919_v62 = vmax.f32 %v4920_v13, %v887_v48 }
 0x140   : > { %v996_v40 = vsel %vm975_vm2, %v963_v15, %v8364_v56  ;;  %v8366_v3 = vmov %v8365_v37  ;;  %v8367_v56 = vrot.slane %v4920_v13, 2  ;;  %v1212_v43 = vrot.slane %v5028_v47, 2 }
 0x141   : > { %v1019_v36 = vsel %vm1009_vm4, %v996_v40, -3.4028235e+38  ;;  %v1127_v15 = vsel %vm1106_vm5, %v1094_v55, %v8366_v3  ;;  %v4021_v55 = vpop.f32.mrf.mxu0  ;;  %v4219_v3 = vpop.eup %4218  ;;  %v1050_v8 = vmax.f32 %v919_v62, %v980_v32  ;;  %4234 = vpow2.f32 %v3815_v23 }
 0x142   : > { %v1242_v12 = vsel %vm1237_vm6, %v8367_v56, %v1225_v26  ;;  %v8368_v33 = vmov %v8367_v56  ;;  %v1051_v57 = vmax.f32 %v920_v39, %v1019_v36  ;;  %v1149_v37 = vsel %vm1139_vm7, %v1127_v15, -3.4028235e+38  ;;  %v4221_v60 = vpop.eup %4220 }
 0x143   : > { %v1258_v40 = vsel %vm1237_vm6, %v1225_v26, %v8368_v33  ;;  %v1081_v56 = vrot.slane %v5028_v47, 6  ;;  %v5083_v39 = vmul.f32 %v4219_v3, %v4670_v9  ;;  %v5086_v36 = vmul.f32 -1.442695, %v5021_v34  ;;  %v4223_v15 = vpop.eup %4222  ;;  %v570_v52 = vpop.f32.mrf.mxu0 }
 0x144   : > { %v1281_v48 = vsel %vm1271_vm8, %v1258_v40, -3.4028235e+38  ;;  %v1182_v26 = vmax.f32 %v1051_v57, %v1111_v18  ;;  %v1181_v33 = vmax.f32 %v1050_v8, %v1149_v37  ;;  %v5089_v40 = vmul.f32 %v4221_v60, %v4674_v14  ;;  %v4225_v62 = vpop.eup %4224 }
 0x145   : > { %8369 = vst [vmem:[#allocation20_spill] sm:$0xff] %v5083_v39  ;;  %4236 = vpow2.f32 %v3818_v24  ;;  %v5092_v32 = vadd.f32 %v4021_v55, %v4613_v20  ;;  %v818_v57 = vrot.slane %v5083_v39, 7  ;;  %v949_v9 = vrot.slane %v5083_v39, 1  ;;  %v4227_v18 = vpop.eup %4226 }
 0x146   : > { %8370 = vst [vmem:[#allocation21_spill] sm:$0xff] %v5089_v40  ;;  %v5094_v51 = vmax.f32 %v1182_v26, %v1281_v48  ;;  %v1080_v23 = vrot.slane %v5083_v39, 6  ;;  %v5099_v3 = vmax.f32 %v1181_v33, %v1242_v12  ;;  %v1211_v8 = vrot.slane %v5083_v39, 2  ;;  %v4229_v24 = vpop.eup %4228 }
 0x147   : > { %v835_v14 = vrot.slane %v5089_v40, 7  ;;  %v966_v60 = vrot.slane %v5089_v40, 1  ;;  %v1097_v37 = vrot.slane %v5089_v40, 6  ;;  %v1228_v48 = vrot.slane %v5089_v40, 2  ;;  %v4231_v13 = vpop.eup %4230 }
 0x148   : > { %v5107_v55 = vmul.f32 %v4223_v15, %v4681_v21  ;;  %v5110_v26 = vmul.f32 %v4225_v62, %v4688_v29 }
 0x149   : > { %v852_v12 = vsel %vm844_vm1, %v819_v35, %v835_v14  ;;  %v868_v33 = vsel %vm844_vm1, %v835_v14, %v819_v35  ;;  %v983_v0 = vsel %vm975_vm2, %v950_v50, %v966_v60  ;;  %v999_v28 = vsel %vm975_vm2, %v966_v60, %v950_v50  ;;  %v4233_v54 = vpop.eup %4232 }
 0x14a   : > { %8371 = vst [vmem:[#allocation22_spill] sm:$0xff] %v5107_v55  ;;  %8372 = vst [vmem:[#allocation23_spill] sm:$0xff] %v5110_v26  ;;  %v893_v21 = vsel %vm877_vm3, %v868_v33, -3.4028235e+38  ;;  %v926_v15 = vmax.f32 %v5089_v40, %v852_v12  ;;  %v1025_v29 = vsel %vm1009_vm4, %v999_v28, -3.4028235e+38  ;;  %v1114_v62 = vsel %vm1106_vm5, %v1081_v56, %v1097_v37 }
 0x14b   : > { %v925_v35 = vmax.f32 %v5028_v47, %v893_v21  ;;  %v1130_v14 = vsel %vm1106_vm5, %v1097_v37, %v1081_v56  ;;  %v1245_v50 = vsel %vm1237_vm6, %v1212_v43, %v1228_v48  ;;  %v1261_v60 = vsel %vm1237_vm6, %v1228_v48, %v1212_v43 }
 0x14c   : > { %v1057_v33 = vmax.f32 %v926_v15, %v1025_v29  ;;  %v1155_v12 = vsel %vm1139_vm7, %v1130_v14, -3.4028235e+38  ;;  %v1287_v28 = vsel %vm1271_vm8, %v1261_v60, -3.4028235e+38  ;;  %v834_v40 = vrot.slane %v5107_v55, 7 }
 0x14d   : > { %v1056_v21 = vmax.f32 %v925_v35, %v983_v0  ;;  %v965_v47 = vrot.slane %v5107_v55, 1  ;;  %v1096_v56 = vrot.slane %v5107_v55, 6  ;;  %v1227_v37 = vrot.slane %v5107_v55, 2 }
 0x14e   : > { %v1188_v11 = vmax.f32 %v1057_v33, %v1114_v62  ;;  %v851_v43 = vsel %vm844_vm1, %v818_v57, %v834_v40  ;;  %v867_v48 = vsel %vm844_vm1, %v834_v40, %v818_v57  ;;  %v4022_v57 = vpop.f32.mrf.mxu0 }
 0x14f   : > { %v1187_v29 = vmax.f32 %v1056_v21, %v1155_v12  ;;  %v891_v14 = vsel %vm877_vm3, %v867_v48, -3.4028235e+38  ;;  %v924_v0 = vmax.f32 %v5107_v55, %v851_v43  ;;  %v982_v35 = vsel %vm975_vm2, %v949_v9, %v965_v47  ;;  %v4235_v12 = vpop.eup %4234 }
 0x150   : > { %v5152_v60 = vmax.f32 %v1188_v11, %v1287_v28  ;;  %v923_v62 = vmax.f32 %v5083_v39, %v891_v14  ;;  %v998_v33 = vsel %vm975_vm2, %v965_v47, %v949_v9  ;;  %v1113_v40 = vsel %vm1106_vm5, %v1080_v23, %v1096_v56 }
 0x151   : > { %v5159_v21 = vmax.f32 %v1187_v29, %v1245_v50  ;;  %v1023_v43 = vsel %vm1009_vm4, %v998_v33, -3.4028235e+38  ;;  %v1129_v48 = vsel %vm1106_vm5, %v1096_v56, %v1080_v23  ;;  %v1244_v11 = vsel %vm1237_vm6, %v1211_v8, %v1227_v37 }
 0x152   : > { %8373 = vst [vmem:[#allocation24_spill] sm:$0xff] %v5152_v60  ;;  %v4237_v28 = vpop.eup %4236  ;;  %v1054_v14 = vmax.f32 %v923_v62, %v982_v35  ;;  %v1055_v15 = vmax.f32 %v924_v0, %v1023_v43  ;;  %v1153_v47 = vsel %vm1139_vm7, %v1129_v48, -3.4028235e+38  ;;  %v1260_v9 = vsel %vm1237_vm6, %v1227_v37, %v1211_v8  ;;  %v573_v0 = vpop.f32.mrf.mxu0 }
 0x153   : > { %v1285_v50 = vsel %vm1271_vm8, %v1260_v9, -3.4028235e+38  ;;  %v952_v29 = vrot.slane %v5110_v26, 1  ;;  %v1083_v33 = vrot.slane %v5110_v26, 6  ;;  %v1214_v23 = vrot.slane %v5110_v26, 2 }
 0x154   : > { %v1185_v56 = vmax.f32 %v1054_v14, %v1153_v47  ;;  %v1186_v55 = vmax.f32 %v1055_v15, %v1113_v40  ;;  %v697_v39 = vadd.f32 1.0, %v4227_v18  ;;  %v700_v35 = vadd.f32 1.0, %v4229_v24 }
 0x155   : > { %v698_v62 = vadd.f32 1.0, %v4231_v13  ;;  %v703_v43 = vadd.f32 1.0, %v4233_v54  ;;  %v701_v48 = vadd.f32 1.0, %v4235_v12  ;;  %v704_v49 = vadd.f32 1.0, %v4237_v28 }
 0x156   : > { %v5176_v60 = vmax.f32 %v1185_v56, %v1244_v11  ;;  %v5178_v8 = vmax.f32 %v1186_v55, %v1285_v50  ;;  %4238 = vrcp.f32 %v697_v39  ;;  %v3825_v37 = vmul.f32 -1.442695, %v5092_v32 }
 0x157   : > { %4240 = vrcp.f32 %v700_v35  ;;  %v5182_v9 = vadd.f32 %v4613_v20, %v570_v52  ;;  %v5185_v15 = vadd.f32 %v4022_v57, %v4613_v20  ;;  %v5188_v18 = vadd.f32 %v4613_v20, %v573_v0 }
 0x158   : > { %4242 = vrcp.f32 %v698_v62  ;;  %v1338_v54 = vmax.f32 %v4830_v4, %v4793_v19  ;;  %v1339_v13 = vmax.f32 %v4832_v6, %v4786_v17  ;;  %v1340_v39 = vmax.f32 %v4793_v19, %v4932_v44 }
 0x159   : > { %4244 = vrcp.f32 %v703_v43  ;;  %v3823_v52 = vmul.f32 -1.442695, %v5182_v9  ;;  %v3826_v24 = vmul.f32 -1.442695, %v5185_v15  ;;  %v3824_v55 = vmul.f32 -1.442695, %v5188_v18 }
 0x15a   : > { %4246 = vrcp.f32 %v701_v48  ;;  %v1368_v20 = vmax.f32 %v1338_v54, %v4932_v44  ;;  %v1369_v40 = vmax.f32 %v1339_v13, %v4927_v45  ;;  %v1341_v4 = vmax.f32 %v4786_v17, %v4927_v45 }
 0x15b   : > { %4248 = vrcp.f32 %v704_v49  ;;  %v1370_v6 = vmax.f32 %v1340_v39, %v4896_v63  ;;  %v1342_v19 = vmax.f32 %v4932_v44, %v4896_v63  ;;  %v1343_v57 = vmax.f32 %v4927_v45, %v4889_v61 }
 0x15c   : > { %4250 = vpow2.f32 %v5009_v7  ;;  %v1398_v12 = vmax.f32 %v1368_v20, %v4896_v63  ;;  %v1399_v11 = vmax.f32 %v1369_v40, %v4889_v61  ;;  %v1371_v28 = vmax.f32 %v1341_v4, %v4889_v61 }
 0x15d   : > { %4252 = vpow2.f32 %v5015_v53  ;;  %v1400_v17 = vmax.f32 %v1370_v6, %v5099_v3  ;;  %v5215_v49 = vmax.f32 %v1342_v19, %v5099_v3  ;;  %v5218_v44 = vmax.f32 %v1343_v57, %v5094_v51 }
 0x15e   : > { %4254 = vpow2.f32 %v5031_v42  ;;  %v5222_v45 = vmax.f32 %v1398_v12, %v5099_v3  ;;  %v5225_v7 = vmax.f32 %v1399_v11, %v5094_v51  ;;  %v1401_v14 = vmax.f32 %v1371_v28, %v5094_v51 }
 0x15f   : > { %4256 = vpow2.f32 %v5034_v41  ;;  %v5230_v53 = vmax.f32 %v1400_v17, %v4992_v30  ;;  %v8380_v48 = vrot.slane %v5110_v26, 7 }
 0x160   : > { %4258 = vpow2.f32 %v5086_v36  ;;  %v1458_v42 = vrot.slane %v5222_v45, 7  ;;  %v2738_v0 = vpack.c.bf16 %v5225_v7, %v5222_v45  ;;  %v1474_v62 = vrot.slane %v5225_v7, 7 }
 0x161   : > { %4260 = vpow2.f32 %v3825_v37  ;;  %v5255_v39 = vmax.f32 %v1401_v14, %v4982_v10  ;;  %v8279_v57 = vrot.slane %v5230_v53, 7 }
 0x162   : > { %4262 = vpow2.f32 %v3823_v52  ;;  %2804 = vrot.lane.b32.xlu0 %v2738_v0, %s4476_s26  ;;  %v5250_v37 = vsel %vm844_vm1, %v1458_v42, %v1474_v62  ;;  %v1506_v13 = vsel %vm844_vm1, %v1474_v62, %v1458_v42 }
 0x163   : > { %v4239_v54 = vpop.eup %4238  ;;  %4264 = vpow2.f32 %v3826_v24  ;;  %8374 = vst [vmem:[#allocation25_spill] sm:$0xff] %v5250_v37  ;;  %v5262_v24 = vsel %vm877_vm3, %v1506_v13, -3.4028235e+38 }
 0x164   : > { %v4241_v52 = vpop.eup %4240  ;;  %v5258_v20 = vmul.f32 %v4239_v54, %v4698_v38  ;;  %4266 = vpow2.f32 %v3824_v55  ;;  %v8278_v38 = vrot.slane %v5255_v39, 7 }
 0x165   : > { %v4243_v4 = vpop.eup %4242  ;;  %v5267_v6 = vmul.f32 %v4241_v52, %v4716_v58 }
 0x166   : > { %8375 = vst [vmem:[#allocation26_spill] sm:$0xff] %v5258_v20  ;;  %v4245_v12 = vpop.eup %4244  ;;  %v820_v55 = vrot.slane %v5258_v20, 7  ;;  %v951_v11 = vrot.slane %v5258_v20, 1  ;;  %v1082_v28 = vrot.slane %v5258_v20, 6  ;;  %v1213_v17 = vrot.slane %v5258_v20, 2 }
 0x167   : > { %8376 = vst [vmem:[#allocation27_spill] sm:$0xff] %v5267_v6  ;;  %v4247_v14 = vpop.eup %4246  ;;  %v837_v58 = vrot.slane %v5267_v6, 7  ;;  %v968_v42 = vrot.slane %v5267_v6, 1  ;;  %v1099_v0 = vrot.slane %v5267_v6, 6  ;;  %v1230_v62 = vrot.slane %v5267_v6, 2 }
 0x168   : > { %v5281_v54 = vpop.eup %4248  ;;  %v5284_v13 = vmul.f32 %v4243_v4, %v4719_v59  ;;  %v5287_v52 = vmul.f32 %v4245_v12, %v4980_v27  ;;  %v5290_v41 = vmul.f32 %v4247_v14, %v4986_v22  ;;  %v5298_v36 = vsel %vm844_vm1, %v8279_v57, %v8278_v38 }
 0x169   : > { %v4251_v35 = vpop.eup %4250  ;;  %v854_v59 = vsel %vm844_vm1, %v8380_v48, %v837_v58  ;;  %v8381_v27 = vmov %v8380_v48  ;;  %v985_v4 = vsel %vm975_vm2, %v952_v29, %v968_v42  ;;  %v1001_v12 = vsel %vm975_vm2, %v968_v42, %v952_v29 }
 0x16a   : > { %8377 = vst [vmem:[#allocation28_spill] sm:$0xff] %v5284_v13  ;;  %8378 = vst [vmem:[#allocation29_spill] sm:$0xff] %v5287_v52  ;;  %v870_v22 = vsel %vm844_vm1, %v837_v58, %v8381_v27  ;;  %v4253_v14 = vpop.eup %4252  ;;  %v930_v48 = vmax.f32 %v5267_v6, %v854_v59  ;;  %v1029_v19 = vsel %vm1009_vm4, %v1001_v12, -3.4028235e+38  ;;  %v1116_v58 = vsel %vm1106_vm5, %v1083_v33, %v1099_v0 }
 0x16b   : > { %8379 = vst [vmem:[#allocation30_spill] sm:$0xff] %v5290_v41  ;;  %v897_v40 = vsel %vm877_vm3, %v870_v22, -3.4028235e+38  ;;  %v4255_v27 = vpop.eup %4254  ;;  %v1132_v29 = vsel %vm1106_vm5, %v1099_v0, %v1083_v33  ;;  %v1247_v42 = vsel %vm1237_vm6, %v1214_v23, %v1230_v62  ;;  %v1263_v59 = vsel %vm1237_vm6, %v1230_v62, %v1214_v23 }
 0x16c   : > { %v929_v56 = vmax.f32 %v5110_v26, %v897_v40  ;;  %v4257_v22 = vpop.eup %4256  ;;  %v1061_v12 = vmax.f32 %v930_v48, %v1029_v19  ;;  %v1159_v40 = vsel %vm1139_vm7, %v1132_v29, -3.4028235e+38  ;;  %v1291_v43 = vsel %vm1271_vm8, %v1263_v59, -3.4028235e+38 }
 0x16d   : > { %v836_v33 = vrot.slane %v5284_v13, 7  ;;  %v4259_v0 = vpop.eup %4258  ;;  %v967_v47 = vrot.slane %v5284_v13, 1  ;;  %v1098_v38 = vrot.slane %v5284_v13, 6  ;;  %v1229_v57 = vrot.slane %v5284_v13, 2 }
 0x16e   : > { %v1060_v50 = vmax.f32 %v929_v56, %v985_v4  ;;  %v4261_v6 = vpop.eup %4260  ;;  %v1192_v23 = vmax.f32 %v1061_v12, %v1116_v58  ;;  %v823_v48 = vrot.slane %v5287_v52, 7 }
 0x16f   : > { %v853_v19 = vsel %vm844_vm1, %v820_v55, %v836_v33  ;;  %v869_v62 = vsel %vm844_vm1, %v836_v33, %v820_v55  ;;  %v4263_v29 = vpop.eup %4262  ;;  %v984_v26 = vsel %vm975_vm2, %v951_v11, %v967_v47  ;;  %v1000_v55 = vsel %vm975_vm2, %v967_v47, %v951_v11 }
 0x170   : > { %v1191_v59 = vmax.f32 %v1060_v50, %v1159_v40  ;;  %v895_v56 = vsel %vm877_vm3, %v869_v62, -3.4028235e+38  ;;  %v928_v4 = vmax.f32 %v5284_v13, %v853_v19  ;;  %v4265_v37 = vpop.eup %4264  ;;  %v5356_v58 = vmax.f32 %v1192_v23, %v1291_v43 }
 0x171   : > { %v927_v12 = vmax.f32 %v5258_v20, %v895_v56  ;;  %v1115_v33 = vsel %vm1106_vm5, %v1082_v28, %v1098_v38  ;;  %v4267_v50 = vpop.eup %4266  ;;  %v1027_v19 = vsel %vm1009_vm4, %v1000_v55, -3.4028235e+38  ;;  %v1131_v62 = vsel %vm1106_vm5, %v1098_v38, %v1082_v28 }
 0x172   : > { %v5363_v40 = vmax.f32 %v1191_v59, %v1247_v42  ;;  %v1246_v43 = vsel %vm1237_vm6, %v1213_v17, %v1229_v57  ;;  %v1059_v56 = vmax.f32 %v928_v4, %v1027_v19  ;;  %v1157_v47 = vsel %vm1139_vm7, %v1131_v62, -3.4028235e+38 }
 0x173   : > { %v1058_v23 = vmax.f32 %v927_v12, %v984_v26  ;;  %v1262_v11 = vsel %vm1237_vm6, %v1229_v57, %v1213_v17  ;;  %v954_v59 = vrot.slane %v5287_v52, 1  ;;  %v1085_v55 = vrot.slane %v5287_v52, 6 }
 0x174   : > { %v1289_v42 = vsel %vm1271_vm8, %v1262_v11, -3.4028235e+38  ;;  %v1216_v38 = vrot.slane %v5287_v52, 2  ;;  %v1190_v13 = vmax.f32 %v1059_v56, %v1115_v33  ;;  %v822_v26 = vrot.slane %v5290_v41, 7 }
 0x175   : > { %v1189_v28 = vmax.f32 %v1058_v23, %v1157_v47  ;;  %v5386_v57 = vmul.f32 %v5281_v54, %v4990_v2  ;;  %v702_v17 = vadd.f32 1.0, %v4251_v35  ;;  %v707_v20 = vadd.f32 1.0, %v4253_v14 }
 0x176   : > { %v5390_v11 = vmax.f32 %v1190_v13, %v1289_v42  ;;  %v705_v23 = vadd.f32 1.0, %v4255_v27  ;;  %v708_v19 = vadd.f32 1.0, %v4257_v22  ;;  %v706_v4 = vadd.f32 1.0, %v4259_v0 }
 0x177   : > { %8382 = vst [vmem:[#allocation31_spill] sm:$0xff] %v5386_v57  ;;  %v5388_v62 = vmax.f32 %v1189_v28, %v1246_v43  ;;  %v839_v33 = vrot.slane %v5386_v57, 7  ;;  %v970_v56 = vrot.slane %v5386_v57, 1  ;;  %v1101_v47 = vrot.slane %v5386_v57, 6 }
 0x178   : > { %v1232_v12 = vrot.slane %v5386_v57, 2  ;;  %4268 = vrcp.f32 %v702_v17  ;;  %v711_v2 = vadd.f32 1.0, %v4261_v6 }
 0x179   : > { %v856_v35 = vsel %vm844_vm1, %v823_v48, %v839_v33  ;;  %v872_v54 = vsel %vm844_vm1, %v839_v33, %v823_v48  ;;  %v987_v13 = vsel %vm975_vm2, %v954_v59, %v970_v56  ;;  %v1003_v14 = vsel %vm975_vm2, %v970_v56, %v954_v59 }
 0x17a   : > { %v901_v27 = vsel %vm877_vm3, %v872_v54, -3.4028235e+38  ;;  %v934_v43 = vmax.f32 %v5386_v57, %v856_v35  ;;  %v1033_v6 = vsel %vm1009_vm4, %v1003_v14, -3.4028235e+38  ;;  %v1118_v22 = vsel %vm1106_vm5, %v1085_v55, %v1101_v47 }
 0x17b   : > { %v933_v0 = vmax.f32 %v5287_v52, %v901_v27  ;;  %v1134_v48 = vsel %vm1106_vm5, %v1101_v47, %v1085_v55  ;;  %v1249_v42 = vsel %vm1237_vm6, %v1216_v38, %v1232_v12  ;;  %v1265_v59 = vsel %vm1237_vm6, %v1232_v12, %v1216_v38 }
 0x17c   : > { %v1065_v28 = vmax.f32 %v934_v43, %v1033_v6  ;;  %v1163_v17 = vsel %vm1139_vm7, %v1134_v48, -3.4028235e+38  ;;  %v1295_v33 = vsel %vm1271_vm8, %v1265_v59, -3.4028235e+38  ;;  %4270 = vrcp.f32 %v707_v20 }
 0x17d   : > { %v1064_v56 = vmax.f32 %v933_v0, %v987_v13  ;;  %4272 = vrcp.f32 %v705_v23  ;;  %v709_v35 = vadd.f32 1.0, %v4263_v29  ;;  %v712_v54 = vadd.f32 1.0, %v4265_v37 }
 0x17e   : > { %v1196_v14 = vmax.f32 %v1065_v28, %v1118_v22  ;;  %4274 = vrcp.f32 %v708_v19  ;;  %v710_v55 = vadd.f32 1.0, %v4267_v50  ;;  %v8383_v47 = vrot.slane %v5230_v53, 7 }
 0x17f   : > { %v8384_v27 = vrot.slane %v5255_v39, 7  ;;  %v1195_v12 = vmax.f32 %v1064_v56, %v1163_v17  ;;  %4276 = vrcp.f32 %v706_v4  ;;  %v8387_v0 = vmax.f32 %v5215_v49, %v4992_v30 }
 0x180   : > { %v5434_v37 = vmax.f32 %v1196_v14, %v1295_v33  ;;  %4278 = vrcp.f32 %v711_v2  ;;  %v2739_v2 = vpack.c.bf16 %v5255_v39, %v5230_v53  ;;  %v1344_v28 = vmax.f32 %v4896_v63, %v5099_v3 }
 0x181   : > { %v1507_v38 = vsel %vm844_vm1, %v8384_v27, %v8383_v47  ;;  %v5439_v19 = vmax.f32 %v1195_v12, %v1249_v42  ;;  %4280 = vrcp.f32 %v709_v35  ;;  %v5452_v48 = vmax.f32 %v8387_v0, %v5176_v60 }
 0x182   : > { %v5430_v43 = vsel %vm877_vm3, %v1507_v38, -3.4028235e+38  ;;  %8385 = vst [vmem:[#allocation32_spill] sm:$0xff] %v5434_v37  ;;  %4282 = vrcp.f32 %v712_v54  ;;  %v8388_v42 = vmax.f32 %v5218_v44, %v4982_v10  ;;  %v1345_v17 = vmax.f32 %v4889_v61, %v5094_v51  ;;  %2806 = vrot.lane.b32.xlu0 %v2739_v2, %s4476_s26 }
 0x183   : > { %8386 = vst [vmem:[#allocation33_spill] sm:$0xff] %v5439_v19  ;;  %4284 = vrcp.f32 %v710_v55  ;;  %v1460_v35 = vrot.slane %v5452_v48, 7  ;;  %v5487_v0 = vmax.f32 %v1344_v28, %v4992_v30  ;;  %v8390_v13 = vrot.slane %v5290_v41, 1 }
 0x184   : > { %v5458_v59 = vmax.f32 %v8388_v42, %v5178_v8 }
 0x185   : > { %v4269_v56 = vpop.eup %4268  ;;  %v8391_v28 = vmov %v8390_v13 }
 0x186   : > { %v1476_v44 = vrot.slane %v5458_v59, 7  ;;  %v5474_v55 = vmul.f32 %v4269_v56, %v4997_v1  ;;  %v2740_v38 = vpack.c.bf16 %v5458_v59, %v5452_v48  ;;  %v5490_v1 = vmax.f32 %v1345_v17, %v4982_v10 }
 0x188   : > { %8389 = vst [vmem:[#allocation34_spill] sm:$0xff] %v5474_v55  ;;  %v5482_v12 = vsel %vm844_vm1, %v1460_v35, %v1476_v44  ;;  %v1508_v2 = vsel %vm844_vm1, %v1476_v44, %v1460_v35  ;;  %v838_v42 = vrot.slane %v5474_v55, 7  ;;  %v969_v56 = vrot.slane %v5474_v55, 1  ;;  %2808 = vrot.lane.b32.xlu0 %v2740_v38, %s4476_s26 }
 0x189   : > { %v1100_v6 = vrot.slane %v5474_v55, 6  ;;  %v1231_v22 = vrot.slane %v5474_v55, 2  ;;  %v4271_v47 = vpop.eup %4270  ;;  %v5498_v27 = vsel %vm877_vm3, %v1508_v2, -3.4028235e+38 }
 0x18a   : > { %v4273_v44 = vpop.eup %4272  ;;  %v855_v23 = vsel %vm844_vm1, %v822_v26, %v838_v42  ;;  %v871_v2 = vsel %vm844_vm1, %v838_v42, %v822_v26  ;;  %v986_v38 = vsel %vm975_vm2, %v8390_v13, %v969_v56  ;;  %v1002_v20 = vsel %vm975_vm2, %v969_v56, %v8391_v28 }
 0x18b   : > { %v4275_v29 = vpop.eup %4274  ;;  %v899_v54 = vsel %vm877_vm3, %v871_v2, -3.4028235e+38  ;;  %v932_v14 = vmax.f32 %v5474_v55, %v855_v23  ;;  %v1031_v50 = vsel %vm1009_vm4, %v1002_v20, -3.4028235e+38  ;;  %v8392_v26 = vrot.slane %v5290_v41, 6 }
 0x18c   : > { %v4277_v13 = vpop.eup %4276  ;;  %v931_v4 = vmax.f32 %v5290_v41, %v899_v54  ;;  %v8394_v28 = vrot.slane %v5290_v41, 2  ;;  %v5558_v57 = vmul.f32 %v4275_v29, %v5018_v31 }
 0x18d   : > { %v1117_v42 = vsel %vm1106_vm5, %v8392_v26, %v1100_v6  ;;  %v8393_v49 = vmov %v8392_v26  ;;  %v4279_v33 = vpop.eup %4278  ;;  %v1063_v26 = vmax.f32 %v932_v14, %v1031_v50  ;;  %v5561_v50 = vmul.f32 %v4277_v13, %v5021_v34 }
 0x18e   : > { %v1133_v56 = vsel %vm1106_vm5, %v1100_v6, %v8393_v49  ;;  %v1248_v23 = vsel %vm1237_vm6, %v8394_v28, %v1231_v22  ;;  %v8395_v20 = vmov %v8394_v28  ;;  %v5550_v6 = vmul.f32 %v4271_v47, %v5003_v25  ;;  %v5552_v49 = vpop.eup %4280  ;;  %8398 = vst [vmem:[#allocation37_spill] sm:$0xff] %v5558_v57 }
 0x18f   : > { %v1264_v2 = vsel %vm1237_vm6, %v1231_v22, %v8395_v20  ;;  %v1161_v54 = vsel %vm1139_vm7, %v1133_v56, -3.4028235e+38  ;;  %v1062_v17 = vmax.f32 %v931_v4, %v986_v38  ;;  %v5555_v28 = vmul.f32 %v4273_v44, %v5012_v46  ;;  %8399 = vst [vmem:[#allocation38_spill] sm:$0xff] %v5561_v50  ;;  %v5563_v22 = vpop.eup %4282 }
 0x190   : > { %v1293_v35 = vsel %vm1271_vm8, %v1264_v2, -3.4028235e+38  ;;  %8396 = vst [vmem:[#allocation35_spill] sm:$0xff] %v5550_v6  ;;  %v1194_v14 = vmax.f32 %v1063_v26, %v1117_v42  ;;  %v825_v56 = vrot.slane %v5550_v6, 7  ;;  %v956_v25 = vrot.slane %v5550_v6, 1  ;;  %v5568_v20 = vpop.eup %4284 }
 0x191   : > { %8397 = vst [vmem:[#allocation36_spill] sm:$0xff] %v5555_v28  ;;  %v1087_v47 = vrot.slane %v5550_v6, 6  ;;  %v1193_v4 = vmax.f32 %v1062_v17, %v1161_v54  ;;  %v1218_v46 = vrot.slane %v5550_v6, 2  ;;  %v824_v31 = vrot.slane %v5555_v28, 7 }
 0x192   : > { %v955_v29 = vrot.slane %v5555_v28, 1  ;;  %v5573_v34 = vmax.f32 %v1194_v14, %v1293_v35  ;;  %v1086_v44 = vrot.slane %v5555_v28, 6  ;;  %v1217_v38 = vrot.slane %v5555_v28, 2 }
 0x193   : > { %v841_v42 = vrot.slane %v5558_v57, 7  ;;  %v5578_v13 = vmax.f32 %v1193_v4, %v1248_v23  ;;  %v972_v2 = vrot.slane %v5558_v57, 1  ;;  %v1103_v17 = vrot.slane %v5558_v57, 6 }
 0x194   : > { %v1234_v26 = vrot.slane %v5558_v57, 2  ;;  %v840_v14 = vrot.slane %v5561_v50, 7  ;;  %v971_v52 = vrot.slane %v5561_v50, 1 }
 0x195   : > { %v858_v54 = vsel %vm844_vm1, %v825_v56, %v841_v42  ;;  %v874_v35 = vsel %vm844_vm1, %v841_v42, %v825_v56  ;;  %v989_v55 = vsel %vm975_vm2, %v956_v25, %v972_v2  ;;  %v1005_v41 = vsel %vm975_vm2, %v972_v2, %v956_v25 }
 0x196   : > { %v905_v23 = vsel %vm877_vm3, %v874_v35, -3.4028235e+38  ;;  %v938_v4 = vmax.f32 %v5558_v57, %v858_v54  ;;  %v1037_v56 = vsel %vm1009_vm4, %v1005_v41, -3.4028235e+38  ;;  %v1120_v42 = vsel %vm1106_vm5, %v1087_v47, %v1103_v17 }
 0x197   : > { %v937_v37 = vmax.f32 %v5550_v6, %v905_v23  ;;  %v1136_v19 = vsel %vm1106_vm5, %v1103_v17, %v1087_v47  ;;  %v1251_v57 = vsel %vm1237_vm6, %v1218_v46, %v1234_v26  ;;  %v1267_v25 = vsel %vm1237_vm6, %v1234_v26, %v1218_v46 }
 0x198   : > { %v1069_v35 = vmax.f32 %v938_v4, %v1037_v56  ;;  %v1167_v54 = vsel %vm1139_vm7, %v1136_v19, -3.4028235e+38  ;;  %v1299_v41 = vsel %vm1271_vm8, %v1267_v25, -3.4028235e+38  ;;  %v857_v23 = vsel %vm844_vm1, %v824_v31, %v840_v14 }
 0x199   : > { %v1068_v2 = vmax.f32 %v937_v37, %v989_v55  ;;  %v873_v47 = vsel %vm844_vm1, %v840_v14, %v824_v31  ;;  %v936_v4 = vmax.f32 %v5561_v50, %v857_v23  ;;  %v988_v56 = vsel %vm975_vm2, %v955_v29, %v971_v52 }
 0x19a   : > { %v1200_v17 = vmax.f32 %v1069_v35, %v1120_v42  ;;  %v903_v19 = vsel %vm877_vm3, %v873_v47, -3.4028235e+38  ;;  %v1004_v55 = vsel %vm975_vm2, %v971_v52, %v955_v29  ;;  %v1102_v26 = vrot.slane %v5561_v50, 6 }
 0x19b   : > { %v1199_v46 = vmax.f32 %v1068_v2, %v1167_v54  ;;  %v935_v37 = vmax.f32 %v5555_v28, %v903_v19  ;;  %v1035_v31 = vsel %vm1009_vm4, %v1004_v55, -3.4028235e+38  ;;  %v1233_v14 = vrot.slane %v5561_v50, 2 }
 0x19c   : > { %v5624_v25 = vmax.f32 %v1200_v17, %v1299_v41  ;;  %v5630_v42 = vmul.f32 %v4279_v33, %v5092_v32  ;;  %v1067_v2 = vmax.f32 %v936_v4, %v1035_v31  ;;  %v1119_v23 = vsel %vm1106_vm5, %v1086_v44, %v1102_v26 }
 0x19d   : > { %v5632_v35 = vmax.f32 %v1199_v46, %v1251_v57  ;;  %v1066_v54 = vmax.f32 %v935_v37, %v988_v56  ;;  %v1135_v52 = vsel %vm1106_vm5, %v1102_v26, %v1086_v44  ;;  %v1250_v29 = vsel %vm1237_vm6, %v1217_v38, %v1233_v14 }
 0x19e   : > { %8400 = vst [vmem:[#allocation39_spill] sm:$0xff] %v5624_v25  ;;  %8401 = vst [vmem:[#allocation40_spill] sm:$0xff] %v5630_v42  ;;  %v1266_v41 = vsel %vm1237_vm6, %v1233_v14, %v1217_v38  ;;  %v827_v47 = vrot.slane %v5630_v42, 7  ;;  %v1165_v32 = vsel %vm1139_vm7, %v1135_v52, -3.4028235e+38  ;;  %v1198_v57 = vmax.f32 %v1067_v2, %v1119_v23 }
 0x19f   : > { %8402 = vst [vmem:[#allocation41_spill] sm:$0xff] %v5632_v35  ;;  %v1297_v33 = vsel %vm1271_vm8, %v1266_v41, -3.4028235e+38  ;;  %v958_v17 = vrot.slane %v5630_v42, 1  ;;  %v1197_v19 = vmax.f32 %v1066_v54, %v1165_v32  ;;  %v1089_v44 = vrot.slane %v5630_v42, 6 }
 0x1a0   : > { %v1220_v4 = vrot.slane %v5630_v42, 2  ;;  %v5652_v56 = vmul.f32 %v5552_v49, %v5182_v9  ;;  %v5654_v38 = vmax.f32 %v1198_v57, %v1297_v33  ;;  %v5658_v46 = vmul.f32 %v5563_v22, %v5185_v15 }
 0x1a1   : > { %v5662_v37 = vmul.f32 %v5568_v20, %v5188_v18  ;;  %v5666_v26 = vmax.f32 %v1197_v19, %v1250_v29 }
 0x1a2   : > { %8403 = vst [vmem:[#allocation42_spill] sm:$0xff] %v5652_v56  ;;  %8404 = vst [vmem:[#allocation43_spill] sm:$0xff] %v5654_v38  ;;  %v826_v31 = vrot.slane %v5652_v56, 7  ;;  %v957_v9 = vrot.slane %v5652_v56, 1  ;;  %v1088_v49 = vrot.slane %v5652_v56, 6  ;;  %v1219_v14 = vrot.slane %v5652_v56, 2 }
 0x1a3   : > { %8405 = vst [vmem:[#allocation44_spill] sm:$0xff] %v5658_v46  ;;  %8406 = vst [vmem:[#allocation45_spill] sm:$0xff] %v5662_v37  ;;  %v843_v15 = vrot.slane %v5658_v46, 7  ;;  %v974_v22 = vrot.slane %v5658_v46, 1  ;;  %v1105_v18 = vrot.slane %v5658_v46, 6  ;;  %v1236_v20 = vrot.slane %v5658_v46, 2 }
 0x1a4   : > { %8407 = vst [vmem:[#allocation46_spill] sm:$0xff] %v5666_v26  ;;  %v842_v54 = vrot.slane %v5662_v37, 7  ;;  %v973_v2 = vrot.slane %v5662_v37, 1  ;;  %v1104_v23 = vrot.slane %v5662_v37, 6 }
 0x1a5   : > { %v860_v52 = vsel %vm844_vm1, %v827_v47, %v843_v15  ;;  %v876_v29 = vsel %vm844_vm1, %v843_v15, %v827_v47  ;;  %v991_v41 = vsel %vm975_vm2, %v958_v17, %v974_v22  ;;  %v1007_v32 = vsel %vm975_vm2, %v974_v22, %v958_v17 }
 0x1a6   : > { %v909_v57 = vsel %vm877_vm3, %v876_v29, -3.4028235e+38  ;;  %v942_v33 = vmax.f32 %v5658_v46, %v860_v52  ;;  %v1041_v19 = vsel %vm1009_vm4, %v1007_v32, -3.4028235e+38  ;;  %v5694_v55 = vsel %vm1106_vm5, %v1089_v44, %v1105_v18 }
 0x1a7   : > { %8408 = vst [vmem:[#allocation47_spill] sm:$0xff] %v5694_v55  ;;  %v941_v47 = vmax.f32 %v5630_v42, %v909_v57  ;;  %v1138_v15 = vsel %vm1106_vm5, %v1105_v18, %v1089_v44  ;;  %v1253_v17 = vsel %vm1237_vm6, %v1220_v4, %v1236_v20  ;;  %v1269_v22 = vsel %vm1237_vm6, %v1236_v20, %v1220_v4 }
 0x1a8   : > { %v5703_v29 = vmax.f32 %v942_v33, %v1041_v19  ;;  %v1171_v52 = vsel %vm1139_vm7, %v1138_v15, -3.4028235e+38  ;;  %v5709_v32 = vsel %vm1271_vm8, %v1269_v22, -3.4028235e+38  ;;  %v859_v57 = vsel %vm844_vm1, %v826_v31, %v842_v54 }
 0x1a9   : > { %8410 = vst [vmem:[#allocation49_spill] sm:$0xff] %v5709_v32  ;;  %v1072_v46 = vmax.f32 %v941_v47, %v991_v41  ;;  %v875_v44 = vsel %vm844_vm1, %v842_v54, %v826_v31  ;;  %v940_v18 = vmax.f32 %v5662_v37, %v859_v57  ;;  %v990_v4 = vsel %vm975_vm2, %v957_v9, %v973_v2 }
 0x1aa   : > { %8409 = vst [vmem:[#allocation48_spill] sm:$0xff] %v5703_v29  ;;  %v907_v33 = vsel %vm877_vm3, %v875_v44, -3.4028235e+38  ;;  %v1006_v19 = vsel %vm975_vm2, %v973_v2, %v957_v9  ;;  %v1121_v41 = vsel %vm1106_vm5, %v1088_v49, %v1104_v23  ;;  %v1137_v15 = vsel %vm1106_vm5, %v1104_v23, %v1088_v49 }
 0x1ab   : > { %v1203_v47 = vmax.f32 %v1072_v46, %v1171_v52  ;;  %v939_v31 = vmax.f32 %v5652_v56, %v907_v33  ;;  %v1039_v54 = vsel %vm1009_vm4, %v1006_v19, -3.4028235e+38  ;;  %v1169_v57 = vsel %vm1139_vm7, %v1137_v15, -3.4028235e+38  ;;  %v8413_v19 = vld [vmem:[#allocation24_spill] sm:$0xff] }
 0x1ac   : > { %v1071_v22 = vmax.f32 %v940_v18, %v1039_v54  ;;  %v1235_v44 = vrot.slane %v5662_v37, 2  ;;  %v1362_v9 = vmax.f32 %v5666_v26, %v5632_v35  ;;  %v8412_v52 = vmax.f32 %v5487_v0, %v5176_v60 }
 0x1ad   : > { %v5736_v2 = vmax.f32 %v1203_v47, %v1253_v17  ;;  %v1070_v46 = vmax.f32 %v939_v31, %v990_v4  ;;  %v8414_v49 = vmax.f32 %v5490_v1, %v5178_v8  ;;  %v8415_v4 = vmax.f32 %v5099_v3, %v4992_v30 }
 0x1ae   : > { %v5742_v33 = vmax.f32 %v8412_v52, %v5159_v21  ;;  %v1202_v18 = vmax.f32 %v1071_v22, %v1121_v41  ;;  %v1252_v54 = vsel %vm1237_vm6, %v1219_v14, %v1235_v44  ;;  %v1268_v17 = vsel %vm1237_vm6, %v1235_v44, %v1219_v14 }
 0x1af   : > { %8411 = vst [vmem:[#allocation50_spill] sm:$0xff] %v5736_v2  ;;  %v5748_v23 = vmax.f32 %v8414_v49, %v8413_v19  ;;  %v1376_v0 = vmax.f32 %v8415_v4, %v5176_v60  ;;  %v1201_v47 = vmax.f32 %v1070_v46, %v1169_v57  ;;  %v1301_v31 = vsel %vm1271_vm8, %v1268_v17, -3.4028235e+38 }
 0x1b0   : > { %v1461_v1 = vrot.slane %v5742_v33, 7  ;;  %v5762_v41 = vmax.f32 %v1202_v18, %v1301_v31  ;;  %v8418_v18 = vmax.f32 %v5094_v51, %v4982_v10 }
 0x1b1   : > { %v2741_v14 = vpack.c.bf16 %v5748_v23, %v5742_v33  ;;  %v5768_v44 = vmax.f32 %v1201_v47, %v1252_v54  ;;  %v1477_v3 = vrot.slane %v5748_v23, 7  ;;  %v1406_v4 = vmax.f32 %v1376_v0, %v5159_v21 }
 0x1b2   : > { %8416 = vst [vmem:[#allocation24_spill] sm:$0xff] %v5762_v41  ;;  %v1377_v17 = vmax.f32 %v8418_v18, %v5178_v8  ;;  %v1348_v54 = vmax.f32 %v4992_v30, %v5176_v60 }
 0x1b3   : > { %8417 = vst [vmem:[#allocation51_spill] sm:$0xff] %v5768_v44  ;;  %2810 = vrot.lane.b32.xlu1 %v2741_v14, %s4476_s26  ;;  %v1364_v47 = vmax.f32 %v5632_v35, %v5768_v44  ;;  %v1392_v31 = vmax.f32 %v1362_v9, %v5768_v44  ;;  %v5787_v14 = vsel %vm844_vm1, %v1461_v1, %v1477_v3 }
 0x1b4   : > { %v1509_v20 = vsel %vm844_vm1, %v1477_v3, %v1461_v1  ;;  %v1407_v30 = vmax.f32 %v1377_v17, %v8413_v19  ;;  %v5799_v18 = vmax.f32 %v1406_v4, %v5388_v62  ;;  %v1349_v1 = vmax.f32 %v4982_v10, %v5178_v8 }
 0x1b5   : > { %v5793_v51 = vsel %vm877_vm3, %v1509_v20, -3.4028235e+38  ;;  %v1394_v9 = vmax.f32 %v1364_v47, %v5736_v2  ;;  %v1422_v52 = vmax.f32 %v1392_v31, %v5736_v2  ;;  %v1378_v47 = vmax.f32 %v1348_v54, %v5159_v21 }
 0x1b6   : > { %v5808_v20 = vmax.f32 %v1407_v30, %v5390_v11  ;;  %v1462_v3 = vrot.slane %v5799_v18, 7  ;;  %v1379_v31 = vmax.f32 %v1349_v1, %v8413_v19  ;;  %v8435_v2 = vrot.slane %v5452_v48, 1 }
 0x1b7   : > { %v1424_v22 = vmax.f32 %v1394_v9, -3.4028235e+38  ;;  %v5813_v46 = vmax.f32 %v1422_v52, -3.4028235e+38  ;;  %v1408_v4 = vmax.f32 %v1378_v47, %v5388_v62  ;;  %v8421_v9 = vld [vmem:[#allocation17_spill] sm:$0xff] }
 0x1b8   : > { %v1478_v0 = vrot.slane %v5808_v20, 7  ;;  %v2742_v49 = vpack.c.bf16 %v5808_v20, %v5799_v18  ;;  %v1409_v52 = vmax.f32 %v1379_v31, %v5390_v11  ;;  %v5828_v54 = vmax.f32 %v8421_v9, %v4896_v63 }
 0x1b9   : > { %8419 = vst [vmem:[#allocation52_spill] sm:$0xff] %v5813_v46  ;;  %v5822_v15 = vmax.f32 %v1424_v22, -3.4028235e+38  ;;  %v8424_v22 = vld [vmem:[#allocation16_spill] sm:$0xff]  ;;  %v1456_v47 = vrot.slane %v8421_v9, 7  ;;  %v5849_v10 = vmax.f32 %v1408_v4, %v5363_v40  ;;  %v8434_v46 = vrot.slane %v5458_v59, 1 }
 0x1ba   : > { %8422 = vst [vmem:[#allocation54_spill] sm:$0xff] %v5828_v54  ;;  %v5832_v1 = vsel %vm844_vm1, %v1462_v3, %v1478_v0  ;;  %v1510_v30 = vsel %vm844_vm1, %v1478_v0, %v1462_v3  ;;  %2812 = vrot.lane.b32.xlu0 %v2742_v49, %s4476_s26  ;;  %v5839_v17 = vmax.f32 %v8424_v22, %v4889_v61  ;;  %v1457_v61 = vrot.slane %v5828_v54, 7 }
 0x1bb   : > { %8420 = vst [vmem:[#allocation53_spill] sm:$0xff] %v5822_v15  ;;  %8423 = vst [vmem:[#allocation55_spill] sm:$0xff] %v5832_v1  ;;  %v5844_v31 = vsel %vm877_vm3, %v1510_v30, -3.4028235e+38  ;;  %v5852_v0 = vmax.f32 %v1409_v52, %v5356_v58  ;;  %v1472_v3 = vrot.slane %v8424_v22, 7  ;;  %v1463_v30 = vrot.slane %v5849_v10, 7 }
 0x1bc   : > { %8425 = vst [vmem:[#allocation56_spill] sm:$0xff] %v5839_v17  ;;  %8426 = vst [vmem:[#allocation57_spill] sm:$0xff] %v5849_v10  ;;  %v1473_v57 = vrot.slane %v5839_v17, 7  ;;  %v1584_v15 = vrot.slane %v8421_v9, 1  ;;  %v1620_v55 = vsel %vm975_vm2, %v8435_v2, %v8434_v46  ;;  %v8441_v44 = vmov %v8434_v46 }
 0x1bd   : > { %8427 = vst [vmem:[#allocation58_spill] sm:$0xff] %v5852_v0  ;;  %v1479_v42 = vrot.slane %v5852_v0, 7  ;;  %v2743_v49 = vpack.c.bf16 %v5852_v0, %v5849_v10  ;;  %v1488_v56 = vsel %vm844_vm1, %v1456_v47, %v1472_v3  ;;  %v1504_v52 = vsel %vm844_vm1, %v1472_v3, %v1456_v47 }
 0x1be   : > { %v1489_v63 = vsel %vm844_vm1, %v1457_v61, %v1473_v57  ;;  %v1505_v28 = vsel %vm844_vm1, %v1473_v57, %v1457_v61  ;;  %v1553_v3 = vmax.f32 %v8424_v22, %v1488_v56  ;;  %v1585_v57 = vrot.slane %v5828_v54, 1 }
 0x1bf   : > { %v5871_v6 = vsel %vm844_vm1, %v1463_v30, %v1479_v42  ;;  %v1511_v50 = vsel %vm844_vm1, %v1479_v42, %v1463_v30  ;;  %2814 = vrot.lane.b32.xlu1 %v2743_v49, %s4476_s26  ;;  %v1520_v42 = vsel %vm877_vm3, %v1504_v52, -3.4028235e+38  ;;  %v1522_v47 = vsel %vm877_vm3, %v1505_v28, -3.4028235e+38 }
 0x1c0   : > { %8428 = vst [vmem:[#allocation59_spill] sm:$0xff] %v5871_v6  ;;  %v5881_v37 = vsel %vm877_vm3, %v1511_v50, -3.4028235e+38  ;;  %v1552_v50 = vmax.f32 %v8421_v9, %v1520_v42  ;;  %v1554_v4 = vmax.f32 %v5828_v54, %v1522_v47  ;;  %v1555_v49 = vmax.f32 %v5839_v17, %v1489_v63 }
 0x1c1   : > { %8429 = vst [vmem:[#allocation60_spill] sm:$0xff] %v5881_v37  ;;  %v1600_v61 = vrot.slane %v8424_v22, 1  ;;  %v1601_v52 = vrot.slane %v5839_v17, 1  ;;  %v8430_v30 = vrot.slane %v5225_v7, 1  ;;  %v8431_v28 = vrot.slane %v5222_v45, 1 }
 0x1c2   : > { %v8432_v56 = vrot.slane %v5255_v39, 1  ;;  %v8433_v47 = vrot.slane %v5230_v53, 1  ;;  %v1844_v1 = vrot.slane %v5452_v48, 2 }
 0x1c3   : > { %v1618_v42 = vsel %vm975_vm2, %v8431_v28, %v8430_v30  ;;  %v8436_v29 = vmov %v8431_v28  ;;  %v8437_v32 = vmov %v8430_v30  ;;  %v1616_v46 = vsel %vm975_vm2, %v1584_v15, %v1600_v61 }
 0x1c4   : > { %v1619_v63 = vsel %vm975_vm2, %v8433_v47, %v8432_v56  ;;  %v1634_v30 = vsel %vm975_vm2, %v8437_v32, %v8436_v29  ;;  %v8438_v28 = vmov %v8433_v47  ;;  %v8439_v41 = vmov %v8432_v56 }
 0x1c5   : > { %v1635_v56 = vsel %vm975_vm2, %v8439_v41, %v8438_v28  ;;  %v8440_v47 = vmov %v8435_v2  ;;  %v1617_v29 = vsel %vm975_vm2, %v1585_v57, %v1601_v52  ;;  %v1632_v32 = vsel %vm975_vm2, %v1600_v61, %v1584_v15 }
 0x1c6   : > { %v1636_v2 = vsel %vm975_vm2, %v8441_v44, %v8440_v47  ;;  %v1633_v25 = vsel %vm975_vm2, %v1601_v52, %v1585_v57  ;;  %v1649_v41 = vsel %vm1009_vm4, %v1632_v32, -3.4028235e+38  ;;  %v1653_v44 = vsel %vm1009_vm4, %v1634_v30, -3.4028235e+38  ;;  %v8443_v32 = vld [vmem:[#allocation25_spill] sm:$0xff] }
 0x1c7   : > { %v1651_v28 = vsel %vm1009_vm4, %v1633_v25, -3.4028235e+38  ;;  %v1680_v47 = vmax.f32 %v1552_v50, %v1616_v46  ;;  %v1655_v35 = vsel %vm1009_vm4, %v1635_v56, -3.4028235e+38  ;;  %v1657_v38 = vsel %vm1009_vm4, %v1636_v2, -3.4028235e+38 }
 0x1c8   : > { %v1681_v15 = vmax.f32 %v1553_v3, %v1649_v41  ;;  %v1682_v61 = vmax.f32 %v1554_v4, %v1617_v29  ;;  %v1683_v26 = vmax.f32 %v1555_v49, %v1651_v28  ;;  %v8442_v57 = vmax.f32 %v5222_v45, %v5262_v24 }
 0x1c9   : > { %v8444_v25 = vmax.f32 %v5225_v7, %v8443_v32  ;;  %v8445_v50 = vmax.f32 %v5230_v53, %v5430_v43  ;;  %v8446_v56 = vmax.f32 %v5255_v39, %v5298_v36  ;;  %v8447_v4 = vmax.f32 %v5452_v48, %v5498_v27 }
 0x1ca   : > { %v1684_v52 = vmax.f32 %v8442_v57, %v1618_v42  ;;  %v8448_v24 = vmax.f32 %v5458_v59, %v5482_v12  ;;  %v1712_v42 = vrot.slane %v8421_v9, 6  ;;  %v1713_v2 = vrot.slane %v5828_v54, 6 }
 0x1cb   : > { %v1685_v6 = vmax.f32 %v8444_v25, %v1653_v44  ;;  %v1686_v30 = vmax.f32 %v8445_v50, %v1619_v63  ;;  %v1687_v46 = vmax.f32 %v8446_v56, %v1655_v35  ;;  %v1688_v3 = vmax.f32 %v8447_v4, %v1620_v55 }
 0x1cc   : > { %v1689_v49 = vmax.f32 %v8448_v24, %v1657_v38  ;;  %v1728_v29 = vrot.slane %v8424_v22, 6  ;;  %v1729_v43 = vrot.slane %v5839_v17, 6  ;;  %v8449_v63 = vrot.slane %v5225_v7, 6 }
 0x1cd   : > { %v8450_v36 = vrot.slane %v5222_v45, 6  ;;  %v8451_v35 = vrot.slane %v5255_v39, 6  ;;  %v8452_v12 = vrot.slane %v5230_v53, 6  ;;  %v8453_v55 = vrot.slane %v5458_v59, 6 }
 0x1ce   : > { %v8454_v41 = vrot.slane %v5452_v48, 6  ;;  %v8456_v57 = vmov %v8449_v63  ;;  %v1744_v4 = vsel %vm1106_vm5, %v1712_v42, %v1728_v29  ;;  %v1745_v24 = vsel %vm1106_vm5, %v1713_v2, %v1729_v43 }
 0x1cf   : > { %v1746_v27 = vsel %vm1106_vm5, %v8450_v36, %v8449_v63  ;;  %v1747_v38 = vsel %vm1106_vm5, %v8452_v12, %v8451_v35  ;;  %v8455_v44 = vmov %v8450_v36  ;;  %v8457_v25 = vmov %v8452_v12 }
 0x1d0   : > { %v1748_v28 = vsel %vm1106_vm5, %v8454_v41, %v8453_v55  ;;  %v1762_v32 = vsel %vm1106_vm5, %v8456_v57, %v8455_v44  ;;  %v8458_v50 = vmov %v8451_v35  ;;  %v1760_v63 = vsel %vm1106_vm5, %v1728_v29, %v1712_v42 }
 0x1d1   : > { %v1763_v56 = vsel %vm1106_vm5, %v8458_v50, %v8457_v25  ;;  %v1761_v36 = vsel %vm1106_vm5, %v1729_v43, %v1713_v2  ;;  %v8459_v35 = vmov %v8454_v41  ;;  %v8460_v12 = vmov %v8453_v55 }
 0x1d2   : > { %v1764_v55 = vsel %vm1106_vm5, %v8460_v12, %v8459_v35  ;;  %v1776_v41 = vsel %vm1139_vm7, %v1760_v63, -3.4028235e+38  ;;  %v1778_v44 = vsel %vm1139_vm7, %v1761_v36, -3.4028235e+38  ;;  %v1780_v57 = vsel %vm1139_vm7, %v1762_v32, -3.4028235e+38 }
 0x1d3   : > { %v1782_v42 = vsel %vm1139_vm7, %v1763_v56, -3.4028235e+38  ;;  %v1784_v2 = vsel %vm1139_vm7, %v1764_v55, -3.4028235e+38  ;;  %v1808_v29 = vmax.f32 %v1680_v47, %v1776_v41  ;;  %v1809_v43 = vmax.f32 %v1681_v15, %v1744_v4 }
 0x1d4   : > { %v1810_v25 = vmax.f32 %v1682_v61, %v1778_v44  ;;  %v1811_v50 = vmax.f32 %v1683_v26, %v1745_v24  ;;  %v1812_v35 = vmax.f32 %v1684_v52, %v1780_v57  ;;  %v1813_v12 = vmax.f32 %v1685_v6, %v1746_v27 }
 0x1d5   : > { %v1814_v37 = vmax.f32 %v1686_v30, %v1782_v42  ;;  %v1815_v63 = vmax.f32 %v1687_v46, %v1747_v38  ;;  %v1816_v10 = vmax.f32 %v1688_v3, %v1784_v2  ;;  %v1817_v0 = vmax.f32 %v1689_v49, %v1748_v28 }
 0x1d6   : > { %v1840_v36 = vrot.slane %v8421_v9, 2  ;;  %v1841_v32 = vrot.slane %v5828_v54, 2  ;;  %v1856_v56 = vrot.slane %v8424_v22, 2  ;;  %v1857_v55 = vrot.slane %v5839_v17, 2 }
 0x1d7   : > { %v1860_v47 = vrot.slane %v5458_v59, 2  ;;  %v8461_v26 = vrot.slane %v5225_v7, 2  ;;  %v8462_v6 = vrot.slane %v5222_v45, 2  ;;  %v8463_v61 = vrot.slane %v5255_v39, 2 }
 0x1d8   : > { %v8464_v52 = vrot.slane %v5230_v53, 2  ;;  %v1872_v30 = vsel %vm1237_vm6, %v1840_v36, %v1856_v56  ;;  %v1888_v59 = vsel %vm1237_vm6, %v1856_v56, %v1840_v36  ;;  %v1873_v4 = vsel %vm1237_vm6, %v1841_v32, %v1857_v55 }
 0x1d9   : > { %v1874_v15 = vsel %vm1237_vm6, %v8462_v6, %v8461_v26  ;;  %v8465_v46 = vmov %v8462_v6  ;;  %v8466_v3 = vmov %v8461_v26  ;;  %v8468_v38 = vmov %v8463_v61 }
 0x1da   : > { %v1875_v48 = vsel %vm1237_vm6, %v8464_v52, %v8463_v61  ;;  %v1890_v49 = vsel %vm1237_vm6, %v8466_v3, %v8465_v46  ;;  %v8467_v27 = vmov %v8464_v52  ;;  %v1876_v24 = vsel %vm1237_vm6, %v1844_v1, %v1860_v47 }
 0x1db   : > { %v1891_v28 = vsel %vm1237_vm6, %v8468_v38, %v8467_v27  ;;  %v1889_v45 = vsel %vm1237_vm6, %v1857_v55, %v1841_v32  ;;  %v1892_v7 = vsel %vm1237_vm6, %v1860_v47, %v1844_v1  ;;  %v1905_v53 = vsel %vm1271_vm8, %v1888_v59, -3.4028235e+38 }
 0x1dc   : > { %v1907_v39 = vsel %vm1271_vm8, %v1889_v45, -3.4028235e+38  ;;  %v1909_v41 = vsel %vm1271_vm8, %v1890_v49, -3.4028235e+38  ;;  %v1936_v44 = vmax.f32 %v1808_v29, %v1872_v30  ;;  %v1911_v57 = vsel %vm1271_vm8, %v1891_v28, -3.4028235e+38 }
 0x1dd   : > { %v1913_v42 = vsel %vm1271_vm8, %v1892_v7, -3.4028235e+38  ;;  %v1937_v2 = vmax.f32 %v1809_v43, %v1905_v53  ;;  %v6084_v36 = vmax.f32 %v1810_v25, %v1873_v4  ;;  %v6086_v1 = vmax.f32 %v1811_v50, %v1907_v39 }
 0x1de   : > { %v6088_v32 = vmax.f32 %v1812_v35, %v1874_v15  ;;  %v6090_v56 = vmax.f32 %v1813_v12, %v1909_v41  ;;  %v6092_v55 = vmax.f32 %v1814_v37, %v1875_v48  ;;  %v6094_v47 = vmax.f32 %v1815_v63, %v1911_v57 }
 0x1df   : > { %v6096_v29 = vmax.f32 %v1816_v10, %v1876_v24  ;;  %v6098_v26 = vmax.f32 %v1817_v0, %v1913_v42  ;;  %v1968_v6 = vmax.f32 %v1936_v44, -3.4028235e+38  ;;  %v1969_v61 = vmax.f32 %v1937_v2, -3.4028235e+38 }
 0x1e0   : > { %v1970_v43 = vmax.f32 %v1936_v44, %v6084_v36  ;;  %v1971_v25 = vmax.f32 %v1937_v2, %v6086_v1  ;;  %v1350_v50 = vmax.f32 %v5176_v60, %v5159_v21  ;;  %v1351_v37 = vmax.f32 %v5178_v8, %v8413_v19 }
 0x1e1   : > { %v1998_v35 = vmax.f32 %v1968_v6, %v6084_v36  ;;  %v8469_v12 = vrot.slane %v5748_v23, 1  ;;  %v8470_v10 = vrot.slane %v5742_v33, 1  ;;  %v1999_v60 = vmax.f32 %v1969_v61, %v6086_v1 }
 0x1e2   : > { %v2000_v48 = vmax.f32 %v1970_v43, %v6088_v32  ;;  %v2001_v8 = vmax.f32 %v1971_v25, %v6090_v56  ;;  %v1380_v30 = vmax.f32 %v1350_v50, %v5388_v62  ;;  %v1381_v46 = vmax.f32 %v1351_v37, %v5390_v11 }
 0x1e3   : > { %v1621_v0 = vsel %vm975_vm2, %v8470_v10, %v8469_v12  ;;  %v8471_v63 = vmov %v8470_v10  ;;  %v8472_v15 = vmov %v8469_v12  ;;  %v6124_v59 = vmax.f32 %v1998_v35, %v6088_v32 }
 0x1e4   : > { %v1637_v52 = vsel %vm975_vm2, %v8472_v15, %v8471_v63  ;;  %v8473_v49 = vmax.f32 %v5742_v33, %v5793_v51  ;;  %v6133_v38 = vmax.f32 %v1999_v60, %v6090_v56  ;;  %v2030_v28 = vmax.f32 %v2000_v48, %v6092_v55 }
 0x1e5   : > { %v1659_v3 = vsel %vm1009_vm4, %v1637_v52, -3.4028235e+38  ;;  %v2031_v4 = vmax.f32 %v2001_v8, %v6094_v47  ;;  %v1410_v24 = vmax.f32 %v1380_v30, %v5363_v40  ;;  %v1411_v45 = vmax.f32 %v1381_v46, %v5356_v58 }
 0x1e6   : > { %v1690_v27 = vmax.f32 %v8473_v49, %v1621_v0  ;;  %v8474_v7 = vmax.f32 %v5748_v23, %v5787_v14  ;;  %v8475_v39 = vrot.slane %v5748_v23, 6  ;;  %v8476_v51 = vrot.slane %v5742_v33, 6 }
 0x1e7   : > { %v6155_v2 = vmax.f32 %v2030_v28, %v6096_v29  ;;  %v6158_v14 = vmax.f32 %v2031_v4, %v6098_v26  ;;  %v6161_v6 = vmax.f32 %v1410_v24, %v5578_v13  ;;  %v6166_v43 = vmax.f32 %v1411_v45, %v5573_v34 }
 0x1e8   : > { %v1691_v53 = vmax.f32 %v8474_v7, %v1659_v3  ;;  %v1749_v41 = vsel %vm1106_vm5, %v8476_v51, %v8475_v39  ;;  %v8477_v44 = vmov %v8476_v51  ;;  %v8478_v57 = vmov %v8475_v39 }
 0x1e9   : > { %v1765_v42 = vsel %vm1106_vm5, %v8478_v57, %v8477_v44  ;;  %v8479_v35 = vrot.slane %v5748_v23, 2  ;;  %v8480_v37 = vrot.slane %v5742_v33, 2  ;;  %v2754_v10 = vpack.c.bf16 %v6158_v14, %v6155_v2 }
 0x1ea   : > { %v1786_v61 = vsel %vm1139_vm7, %v1765_v42, -3.4028235e+38  ;;  %v1819_v50 = vmax.f32 %v1691_v53, %v1749_v41  ;;  %v1464_v0 = vrot.slane %v6161_v6, 7  ;;  %v1592_v63 = vrot.slane %v6161_v6, 1 }
 0x1eb   : > { %v1818_v25 = vmax.f32 %v1690_v27, %v1786_v61  ;;  %v1877_v12 = vsel %vm1237_vm6, %v8480_v37, %v8479_v35  ;;  %v1720_v15 = vrot.slane %v6161_v6, 6  ;;  %v1480_v52 = vrot.slane %v6166_v43, 7  ;;  %2852 = vrot.lane.b32.xlu1 %v2754_v10, %s4477_s30 }
 0x1ec   : > { %v1608_v60 = vrot.slane %v6166_v43, 1  ;;  %v1736_v48 = vrot.slane %v6166_v43, 6  ;;  %v2744_v8 = vpack.c.bf16 %v6166_v43, %v6161_v6  ;;  %v8481_v30 = vmov %v8480_v37 }
 0x1ed   : > { %v8482_v46 = vmov %v8479_v35  ;;  %v6191_v49 = vmax.f32 %v1818_v25, %v1877_v12  ;;  %v1972_v27 = vmax.f32 %v6084_v36, %v6088_v32  ;;  %v1973_v28 = vmax.f32 %v6086_v1, %v6090_v56 }
 0x1ee   : > { %v1893_v3 = vsel %vm1237_vm6, %v8482_v46, %v8481_v30  ;;  %v6199_v4 = vsel %vm844_vm1, %v1464_v0, %v1480_v52  ;;  %v1512_v33 = vsel %vm844_vm1, %v1480_v52, %v1464_v0  ;;  %2816 = vrot.lane.b32.xlu0 %v2744_v8, %s4476_s26  ;;  %v8483_v24 = vrot.slane %v5808_v20, 1  ;;  %v8492_v30 = vld [vmem:[#allocation55_spill] sm:$0xff] }
 0x1ef   : > { %v1915_v23 = vsel %vm1271_vm8, %v1893_v3, -3.4028235e+38  ;;  %v8484_v45 = vrot.slane %v5799_v18, 1  ;;  %v6214_v1 = vsel %vm877_vm3, %v1512_v33, -3.4028235e+38  ;;  %v1569_v7 = vmax.f32 %v6166_v43, %v6199_v4 }
 0x1f0   : > { %v6218_v53 = vmax.f32 %v1819_v50, %v1915_v23  ;;  %v2002_v39 = vmax.f32 %v1972_v27, %v6092_v55  ;;  %v1568_v51 = vmax.f32 %v6161_v6, %v6214_v1  ;;  %v2003_v41 = vmax.f32 %v1973_v28, %v6094_v47 }
 0x1f1   : > { %v1622_v36 = vsel %vm975_vm2, %v8484_v45, %v8483_v24  ;;  %v8485_v44 = vmov %v8484_v45  ;;  %v8486_v57 = vmov %v8483_v24  ;;  %v8487_v61 = vmax.f32 %v5799_v18, %v5844_v31 }
 0x1f2   : > { %v1638_v42 = vsel %vm975_vm2, %v8486_v57, %v8485_v44  ;;  %v2032_v50 = vmax.f32 %v2002_v39, %v6096_v29  ;;  %v8488_v37 = vrot.slane %v5808_v20, 6  ;;  %v8489_v12 = vrot.slane %v5799_v18, 6 }
 0x1f3   : > { %v1692_v25 = vmax.f32 %v8487_v61, %v1622_v36  ;;  %v1661_v35 = vsel %vm1009_vm4, %v1638_v42, -3.4028235e+38  ;;  %v2033_v8 = vmax.f32 %v2003_v41, %v6098_v26  ;;  %v8493_v46 = vmax.f32 %v5808_v20, %v8492_v30 }
 0x1f4   : > { %v1750_v10 = vsel %vm1106_vm5, %v8489_v12, %v8488_v37  ;;  %v8490_v0 = vmov %v8489_v12  ;;  %v8491_v52 = vmov %v8488_v37  ;;  %v1846_v28 = vrot.slane %v5799_v18, 2 }
 0x1f5   : > { %v1766_v31 = vsel %vm1106_vm5, %v8491_v52, %v8490_v0  ;;  %v1693_v3 = vmax.f32 %v8493_v46, %v1661_v35  ;;  %v6256_v33 = vmax.f32 %v2032_v50, %v6191_v49  ;;  %v1862_v24 = vrot.slane %v5808_v20, 2  ;;  %v8494_v0 = vld [vmem:[#allocation58_spill] sm:$0xff] }
 0x1f6   : > { %v1788_v27 = vsel %vm1139_vm7, %v1766_v31, -3.4028235e+38  ;;  %v1974_v45 = vmax.f32 %v6088_v32, %v6092_v55  ;;  %v6262_v36 = vmax.f32 %v2033_v8, %v6218_v53  ;;  %v1975_v41 = vmax.f32 %v6090_v56, %v6094_v47  ;;  %v8496_v31 = vld [vmem:[#allocation57_spill] sm:$0xff] }
 0x1f7   : > { %v1820_v23 = vmax.f32 %v1692_v25, %v1788_v27  ;;  %v1821_v39 = vmax.f32 %v1693_v3, %v1750_v10  ;;  %v1352_v44 = vmax.f32 %v5159_v21, %v5388_v62  ;;  %v1878_v18 = vsel %vm1237_vm6, %v1846_v28, %v1862_v24 }
 0x1f8   : > { %v1894_v57 = vsel %vm1237_vm6, %v1862_v24, %v1846_v28  ;;  %v2004_v20 = vmax.f32 %v1974_v45, %v6096_v29  ;;  %v1353_v32 = vmax.f32 %v8413_v19, %v5390_v11  ;;  %v2755_v42 = vpack.c.bf16 %v6262_v36, %v6256_v33 }
 0x1f9   : > { %v1917_v56 = vsel %vm1271_vm8, %v1894_v57, -3.4028235e+38  ;;  %v6279_v61 = vmax.f32 %v1820_v23, %v1878_v18  ;;  %v2005_v21 = vmax.f32 %v1975_v41, %v6098_v26  ;;  %v1382_v35 = vmax.f32 %v1352_v44, %v5363_v40  ;;  %v8500_v41 = vld [vmem:[#allocation33_spill] sm:$0xff]  ;;  %v8501_v18 = vld [vmem:[#allocation32_spill] sm:$0xff] }
 0x1fa   : > { %v6282_v25 = vmax.f32 %v1821_v39, %v1917_v56  ;;  %v2034_v50 = vmax.f32 %v2004_v20, %v6191_v49  ;;  %v1383_v37 = vmax.f32 %v1353_v32, %v5356_v58  ;;  %2854 = vrot.lane.b32.xlu1 %v2755_v42, %s4477_s30  ;;  %v1354_v12 = vmax.f32 %v5388_v62, %v5363_v40  ;;  %v8502_v20 = vld [vmem:[#allocation60_spill] sm:$0xff]  ;;  %v8504_v56 = vld [vmem:[#allocation59_spill] sm:$0xff] }
 0x1fb   : > { %v2035_v19 = vmax.f32 %v2005_v21, %v6218_v53  ;;  %v1355_v10 = vmax.f32 %v5390_v11, %v5356_v58  ;;  %v8495_v52 = vrot.slane %v8494_v0, 1  ;;  %v8497_v8 = vrot.slane %v8496_v31, 1 }
 0x1fc   : > { %v6300_v46 = vmax.f32 %v2034_v50, %v6279_v61  ;;  %v1412_v3 = vmax.f32 %v1382_v35, %v5578_v13  ;;  %v1413_v27 = vmax.f32 %v1383_v37, %v5573_v34  ;;  %v1384_v24 = vmax.f32 %v1354_v12, %v5578_v13 }
 0x1fd   : > { %v1623_v30 = vsel %vm975_vm2, %v8497_v8, %v8495_v52  ;;  %v8498_v28 = vmov %v8497_v8  ;;  %v8499_v62 = vmov %v8495_v52  ;;  %v6311_v23 = vmax.f32 %v2035_v19, %v6282_v25 }
 0x1fe   : > { %v1639_v11 = vsel %vm975_vm2, %v8499_v62, %v8498_v28  ;;  %v1385_v45 = vmax.f32 %v1355_v10, %v5573_v34  ;;  %v6318_v44 = vmax.f32 %v1412_v3, %v8500_v41  ;;  %v6321_v57 = vmax.f32 %v1413_v27, %v8501_v18 }
 0x1ff   : > { %v1663_v39 = vsel %vm1009_vm4, %v1639_v11, -3.4028235e+38  ;;  %v8503_v32 = vmax.f32 %v8496_v31, %v8502_v20  ;;  %v8505_v21 = vmax.f32 %v8494_v0, %v8504_v56  ;;  %v2756_v35 = vpack.c.bf16 %v6311_v23, %v6300_v46 }
 0x200   : > { %v1414_v37 = vmax.f32 %v1384_v24, %v8500_v41  ;;  %v1415_v19 = vmax.f32 %v1385_v45, %v8501_v18  ;;  %v8506_v12 = vrot.slane %v8494_v0, 6  ;;  %v8507_v10 = vrot.slane %v8496_v31, 6  ;;  %v8508_v24 = vld [vmem:[#allocation46_spill] sm:$0xff] }
 0x201   : > { %v1694_v42 = vmax.f32 %v8503_v32, %v1623_v30  ;;  %v1695_v50 = vmax.f32 %v8505_v21, %v1663_v39  ;;  %v1465_v8 = vrot.slane %v6318_v44, 7  ;;  %v1481_v30 = vrot.slane %v6321_v57, 7  ;;  %2856 = vrot.lane.b32.xlu0 %v2756_v35, %s4477_s30  ;;  %v8509_v32 = vld [vmem:[#allocation43_spill] sm:$0xff] }
 0x202   : > { %v1751_v52 = vsel %vm1106_vm5, %v8507_v10, %v8506_v12  ;;  %v1609_v27 = vrot.slane %v6321_v57, 1  ;;  %v2745_v11 = vpack.c.bf16 %v6321_v57, %v6318_v44  ;;  %v6349_v45 = vmax.f32 %v1414_v37, %v8508_v24 }
 0x203   : > { %v6353_v39 = vsel %vm844_vm1, %v1465_v8, %v1481_v30  ;;  %v1513_v20 = vsel %vm844_vm1, %v1481_v30, %v1465_v8  ;;  %v6358_v56 = vmax.f32 %v1415_v19, %v8509_v32  ;;  %v8510_v21 = vmov %v8507_v10 }
 0x204   : > { %v8511_v35 = vmov %v8506_v12  ;;  %v6368_v37 = vsel %vm877_vm3, %v1513_v20, -3.4028235e+38  ;;  %2818 = vrot.lane.b32.xlu1 %v2745_v11, %s4476_s26  ;;  %v1466_v8 = vrot.slane %v6349_v45, 7  ;;  %v1823_v10 = vmax.f32 %v1695_v50, %v1751_v52 }
 0x205   : > { %v1767_v12 = vsel %vm1106_vm5, %v8511_v35, %v8510_v21  ;;  %v1482_v28 = vrot.slane %v6358_v56, 7  ;;  %v2746_v62 = vpack.c.bf16 %v6358_v56, %v6349_v45  ;;  %v1847_v21 = vrot.slane %v8496_v31, 2 }
 0x206   : > { %v1790_v11 = vsel %vm1139_vm7, %v1767_v12, -3.4028235e+38  ;;  %v1863_v50 = vrot.slane %v8494_v0, 2  ;;  %v1976_v52 = vmax.f32 %v6092_v55, %v6096_v29  ;;  %v1977_v31 = vmax.f32 %v6094_v47, %v6098_v26 }
 0x207   : > { %v6387_v19 = vsel %vm844_vm1, %v1466_v8, %v1482_v28  ;;  %v1514_v30 = vsel %vm844_vm1, %v1482_v28, %v1466_v8  ;;  %v1822_v3 = vmax.f32 %v1694_v42, %v1790_v11  ;;  %2820 = vrot.lane.b32.xlu0 %v2746_v62, %s4476_s26  ;;  %v1624_v42 = vsel %vm975_vm2, %v1592_v63, %v1608_v60 }
 0x208   : > { %v6394_v35 = vsel %vm877_vm3, %v1514_v30, -3.4028235e+38  ;;  %v1640_v0 = vsel %vm975_vm2, %v1608_v60, %v1592_v63  ;;  %v1879_v62 = vsel %vm1237_vm6, %v1847_v21, %v1863_v50  ;;  %v1895_v12 = vsel %vm1237_vm6, %v1863_v50, %v1847_v21 }
 0x209   : > { %v2006_v8 = vmax.f32 %v1976_v52, %v6191_v49  ;;  %v1665_v30 = vsel %vm1009_vm4, %v1640_v0, -3.4028235e+38  ;;  %v1919_v11 = vsel %vm1271_vm8, %v1895_v12, -3.4028235e+38  ;;  %v6427_v20 = vmax.f32 %v1822_v3, %v1879_v62 }
 0x20a   : > { %v2007_v28 = vmax.f32 %v1977_v31, %v6218_v53  ;;  %v1696_v63 = vmax.f32 %v1568_v51, %v1624_v42  ;;  %v6433_v60 = vmax.f32 %v1823_v10, %v1919_v11  ;;  %v1697_v50 = vmax.f32 %v1569_v7, %v1665_v30 }
 0x20b   : > { %v2036_v21 = vmax.f32 %v2006_v8, %v6279_v61  ;;  %v1752_v3 = vsel %vm1106_vm5, %v1720_v15, %v1736_v48  ;;  %v1768_v1 = vsel %vm1106_vm5, %v1736_v48, %v1720_v15  ;;  %v1848_v51 = vrot.slane %v6161_v6, 2 }
 0x20c   : > { %v2037_v52 = vmax.f32 %v2007_v28, %v6282_v25  ;;  %v1864_v4 = vrot.slane %v6166_v43, 2  ;;  %v1792_v10 = vsel %vm1139_vm7, %v1768_v1, -3.4028235e+38  ;;  %v1825_v31 = vmax.f32 %v1697_v50, %v1752_v3 }
 0x20d   : > { %v6455_v7 = vmax.f32 %v2036_v21, %v6427_v20  ;;  %v1978_v28 = vmax.f32 %v6096_v29, %v6191_v49  ;;  %v1824_v0 = vmax.f32 %v1696_v63, %v1792_v10  ;;  %v1979_v48 = vmax.f32 %v6098_v26, %v6218_v53 }
 0x20e   : > { %v6462_v42 = vmax.f32 %v2037_v52, %v6433_v60  ;;  %v1880_v15 = vsel %vm1237_vm6, %v1848_v51, %v1864_v4  ;;  %v1896_v6 = vsel %vm1237_vm6, %v1864_v4, %v1848_v51  ;;  %v1356_v29 = vmax.f32 %v5363_v40, %v5578_v13 }
 0x20f   : > { %v1921_v43 = vsel %vm1271_vm8, %v1896_v6, -3.4028235e+38  ;;  %v2008_v62 = vmax.f32 %v1978_v28, %v6279_v61  ;;  %v6477_v8 = vmax.f32 %v1824_v0, %v1880_v15  ;;  %v1357_v11 = vmax.f32 %v5356_v58, %v5573_v34 }
 0x210   : > { %v2757_v12 = vpack.c.bf16 %v6462_v42, %v6455_v7  ;;  %v6479_v30 = vmax.f32 %v1825_v31, %v1921_v43  ;;  %v2009_v63 = vmax.f32 %v1979_v48, %v6282_v25  ;;  %v1386_v26 = vmax.f32 %v1356_v29, %v8500_v41  ;;  %v8515_v43 = vld [vmem:[#allocation41_spill] sm:$0xff] }
 0x211   : > { %v2038_v21 = vmax.f32 %v2008_v62, %v6427_v20  ;;  %v1358_v50 = vmax.f32 %v5578_v13, %v8500_v41  ;;  %v1387_v40 = vmax.f32 %v1357_v11, %v8501_v18  ;;  %v1359_v3 = vmax.f32 %v5573_v34, %v8501_v18  ;;  %v8517_v11 = vld [vmem:[#allocation39_spill] sm:$0xff] }
 0x212   : > { %2858 = vrot.lane.b32.xlu1 %v2757_v12, %s4477_s30  ;;  %v8512_v58 = vrot.slane %v6318_v44, 1  ;;  %v2039_v51 = vmax.f32 %v2009_v63, %v6433_v60  ;;  %v1416_v34 = vmax.f32 %v1386_v26, %v8508_v24  ;;  %v8514_v15 = vmax.f32 %v6318_v44, %v6368_v37 }
 0x213   : > { %v6506_v4 = vmax.f32 %v2038_v21, %v6477_v8  ;;  %v1388_v10 = vmax.f32 %v1358_v50, %v8508_v24  ;;  %v1417_v31 = vmax.f32 %v1387_v40, %v8509_v32  ;;  %v1389_v28 = vmax.f32 %v1359_v3, %v8509_v32 }
 0x214   : > { %v1625_v52 = vsel %vm975_vm2, %v8512_v58, %v1609_v27  ;;  %v8513_v1 = vmov %v8512_v58  ;;  %v6518_v6 = vmax.f32 %v2039_v51, %v6479_v30  ;;  %v6521_v48 = vmax.f32 %v1416_v34, %v8515_v43 }
 0x215   : > { %v1641_v13 = vsel %vm975_vm2, %v1609_v27, %v8513_v1  ;;  %v1698_v27 = vmax.f32 %v8514_v15, %v1625_v52  ;;  %v1418_v62 = vmax.f32 %v1388_v10, %v8515_v43  ;;  %v8516_v29 = vmax.f32 %v6321_v57, %v6353_v39  ;;  %v8524_v15 = vld [vmem:[#allocation24_spill] sm:$0xff] }
 0x216   : > { %v1667_v0 = vsel %vm1009_vm4, %v1641_v13, -3.4028235e+38  ;;  %v6528_v63 = vmax.f32 %v1417_v31, %v8517_v11  ;;  %v1419_v21 = vmax.f32 %v1389_v28, %v8517_v11  ;;  %v8518_v37 = vrot.slane %v6321_v57, 6  ;;  %v8522_v28 = vld [vmem:[#allocation51_spill] sm:$0xff]  ;;  %v8531_v13 = vld [vmem:[#allocation48_spill] sm:$0xff] }
 0x217   : > { %v1699_v12 = vmax.f32 %v8516_v29, %v1667_v0  ;;  %v8519_v26 = vrot.slane %v6318_v44, 6  ;;  %v2758_v58 = vpack.c.bf16 %v6518_v6, %v6506_v4  ;;  %v1467_v52 = vrot.slane %v6521_v48, 7 }
 0x218   : > { %v8521_v3 = vmov %v8518_v37  ;;  %v1483_v51 = vrot.slane %v6528_v63, 7  ;;  %v2747_v31 = vpack.c.bf16 %v6528_v63, %v6521_v48  ;;  %v6555_v0 = vmax.f32 %v1418_v62, %v8522_v28 }
 0x219   : > { %v1753_v50 = vsel %vm1106_vm5, %v8519_v26, %v8518_v37  ;;  %v8520_v40 = vmov %v8519_v26  ;;  %2860 = vrot.lane.b32.xlu0 %v2758_v58, %s4477_s30  ;;  %v6558_v29 = vmax.f32 %v1419_v21, %v8524_v15  ;;  %v1849_v62 = vrot.slane %v6318_v44, 2 }
 0x21a   : > { %v1769_v39 = vsel %vm1106_vm5, %v8521_v3, %v8520_v40  ;;  %8523 = vst [vmem:[#allocation25_spill] sm:$0xff] %v6555_v0  ;;  %v1827_v26 = vmax.f32 %v1699_v12, %v1753_v50  ;;  %v6564_v40 = vsel %vm844_vm1, %v1467_v52, %v1483_v51  ;;  %v1515_v3 = vsel %vm844_vm1, %v1483_v51, %v1467_v52 }
 0x21b   : > { %8525 = vst [vmem:[#allocation55_spill] sm:$0xff] %v6558_v29  ;;  %v1794_v37 = vsel %vm1139_vm7, %v1769_v39, -3.4028235e+38  ;;  %8526 = vst [vmem:[#allocation58_spill] sm:$0xff] %v6564_v40  ;;  %2822 = vrot.lane.b32.xlu1 %v2747_v31, %s4476_s26  ;;  %v6572_v21 = vsel %vm877_vm3, %v1515_v3, -3.4028235e+38  ;;  %v2748_v3 = vpack.c.bf16 %v6558_v29, %v6555_v0  ;;  %v1360_v52 = vmax.f32 %v8500_v41, %v8508_v24 }
 0x21c   : > { %v1826_v58 = vmax.f32 %v1698_v27, %v1794_v37  ;;  %8527 = vst [vmem:[#allocation57_spill] sm:$0xff] %v6572_v21  ;;  %v1468_v12 = vrot.slane %v6555_v0, 7  ;;  %v1484_v50 = vrot.slane %v6558_v29, 7  ;;  %v1865_v44 = vrot.slane %v6321_v57, 2  ;;  %v8530_v37 = vld [vmem:[#allocation49_spill] sm:$0xff] }
 0x21d   : > { %v1980_v27 = vmax.f32 %v6191_v49, %v6279_v61  ;;  %2824 = vrot.lane.b32.xlu0 %v2748_v3, %s4476_s26  ;;  %v1361_v3 = vmax.f32 %v8501_v18, %v8509_v32  ;;  %v1363_v41 = vmax.f32 %v8509_v32, %v8517_v11 }
 0x21e   : > { %v6585_v51 = vsel %vm844_vm1, %v1468_v12, %v1484_v50  ;;  %v1516_v31 = vsel %vm844_vm1, %v1484_v50, %v1468_v12  ;;  %v1981_v50 = vmax.f32 %v6218_v53, %v6282_v25  ;;  %v1881_v57 = vsel %vm1237_vm6, %v1849_v62, %v1865_v44 }
 0x21f   : > { %8528 = vst [vmem:[#allocation33_spill] sm:$0xff] %v6585_v51  ;;  %v6594_v39 = vsel %vm877_vm3, %v1516_v31, -3.4028235e+38  ;;  %v8532_v31 = vld [vmem:[#allocation47_spill] sm:$0xff]  ;;  %v1897_v49 = vsel %vm1237_vm6, %v1865_v44, %v1849_v62  ;;  %v2010_v12 = vmax.f32 %v1980_v27, %v6427_v20  ;;  %v6621_v34 = vmax.f32 %v1826_v58, %v1881_v57  ;;  %v8536_v57 = vld [vmem:[#allocation50_spill] sm:$0xff] }
 0x220   : > { %8529 = vst [vmem:[#allocation32_spill] sm:$0xff] %v6594_v39  ;;  %v8533_v10 = vmax.f32 %v8531_v13, %v8532_v31  ;;  %v1923_v53 = vsel %vm1271_vm8, %v1897_v49, -3.4028235e+38  ;;  %v2011_v13 = vmax.f32 %v1981_v50, %v6433_v60  ;;  %v1365_v62 = vmax.f32 %v8517_v11, %v8524_v15 }
 0x221   : > { %v6626_v24 = vmax.f32 %v1827_v26, %v1923_v53  ;;  %v1390_v27 = vmax.f32 %v1360_v52, %v8515_v43  ;;  %v1391_v44 = vmax.f32 %v1361_v3, %v8517_v11  ;;  %v1393_v58 = vmax.f32 %v1363_v41, %v8524_v15 }
 0x222   : > { %v1335_v1 = vmax.f32 %v8533_v10, %v8530_v37  ;;  %v2040_v10 = vmax.f32 %v2010_v12, %v6477_v8  ;;  %v2041_v18 = vmax.f32 %v2011_v13, %v6479_v30  ;;  %v6637_v37 = vmax.f32 %v6124_v59, %v6092_v55 }
 0x223   : > { %v1420_v12 = vmax.f32 %v1390_v27, %v8522_v28  ;;  %v6645_v50 = vmax.f32 %v6133_v38, %v6094_v47  ;;  %v1421_v11 = vmax.f32 %v1391_v44, %v8524_v15  ;;  %v2088_v31 = vrot.slane %v6124_v59, 7 }
 0x224   : > { %v6640_v32 = vmax.f32 %v2040_v10, %v6621_v34  ;;  %v1395_v26 = vmax.f32 %v1365_v62, %v1335_v1  ;;  %v6648_v43 = vmax.f32 %v2041_v18, %v6626_v24  ;;  %v1423_v52 = vmax.f32 %v1393_v58, %v1335_v1 }
 0x225   : > { %v6653_v49 = vmax.f32 %v1420_v12, %v8536_v57  ;;  %v2089_v3 = vrot.slane %v6637_v37, 7  ;;  %v2090_v28 = vrot.slane %v6155_v2, 7  ;;  %v6659_v53 = vmax.f32 %v1421_v11, %v1335_v1 }
 0x226   : > { %8534 = vst [vmem:[#allocation60_spill] sm:$0xff] %v6640_v32  ;;  %8535 = vst [vmem:[#allocation59_spill] sm:$0xff] %v6648_v43  ;;  %v1425_v55 = vmax.f32 %v1395_v26, -3.4028235e+38  ;;  %v2759_v47 = vpack.c.bf16 %v6648_v43, %v6640_v32  ;;  %v6661_v13 = vmax.f32 %v1423_v52, -3.4028235e+38 }
 0x227   : > { %8537 = vst [vmem:[#allocation46_spill] sm:$0xff] %v6653_v49  ;;  %8538 = vst [vmem:[#allocation43_spill] sm:$0xff] %v6659_v53  ;;  %v2091_v15 = vrot.slane %v6256_v33, 7  ;;  %v1469_v10 = vrot.slane %v6653_v49, 7  ;;  %v1485_v18 = vrot.slane %v6659_v53, 7  ;;  %v2749_v12 = vpack.c.bf16 %v6659_v53, %v6653_v49 }
 0x228   : > { %8539 = vst [vmem:[#allocation41_spill] sm:$0xff] %v6661_v13  ;;  %v6664_v41 = vmax.f32 %v1425_v55, -3.4028235e+38  ;;  %2862 = vrot.lane.b32.xlu1 %v2759_v47, %s4477_s30  ;;  %v2092_v11 = vrot.slane %v6300_v46, 7  ;;  %v2104_v52 = vrot.slane %v6133_v38, 7  ;;  %v2105_v47 = vrot.slane %v6645_v50, 7 }
 0x229   : > { %v6681_v55 = vsel %vm844_vm1, %v1469_v10, %v1485_v18  ;;  %v1517_v57 = vsel %vm844_vm1, %v1485_v18, %v1469_v10  ;;  %v2106_v58 = vrot.slane %v6158_v14, 7  ;;  %v2107_v1 = vrot.slane %v6262_v36, 7 }
 0x22a   : > { %8540 = vst [vmem:[#allocation39_spill] sm:$0xff] %v6664_v41  ;;  %8541 = vst [vmem:[#allocation51_spill] sm:$0xff] %v6681_v55  ;;  %v6689_v26 = vsel %vm877_vm3, %v1517_v57, -3.4028235e+38  ;;  %v2108_v62 = vrot.slane %v6311_v23, 7  ;;  %v2120_v10 = vsel %vm844_vm1, %v2088_v31, %v2104_v52  ;;  %v2121_v18 = vsel %vm844_vm1, %v2089_v3, %v2105_v47 }
 0x22b   : > { %8542 = vst [vmem:[#allocation24_spill] sm:$0xff] %v6689_v26  ;;  %v2122_v57 = vsel %vm844_vm1, %v2090_v28, %v2106_v58  ;;  %v2123_v27 = vsel %vm844_vm1, %v2091_v15, %v2107_v1  ;;  %v2136_v44 = vsel %vm844_vm1, %v2104_v52, %v2088_v31  ;;  %v2138_v54 = vsel %vm844_vm1, %v2106_v58, %v2090_v28 }
 0x22c   : > { %2826 = vrot.lane.b32.xlu1 %v2749_v12, %s4476_s26  ;;  %v2124_v17 = vsel %vm844_vm1, %v2092_v11, %v2108_v62  ;;  %v2137_v12 = vsel %vm844_vm1, %v2105_v47, %v2089_v3  ;;  %v2139_v41 = vsel %vm844_vm1, %v2107_v1, %v2091_v15  ;;  %v2140_v22 = vsel %vm844_vm1, %v2108_v62, %v2092_v11 }
 0x22d   : > { %v2152_v9 = vsel %vm877_vm3, %v2136_v44, -3.4028235e+38  ;;  %v2154_v55 = vsel %vm877_vm3, %v2137_v12, -3.4028235e+38  ;;  %v2156_v31 = vsel %vm877_vm3, %v2138_v54, -3.4028235e+38  ;;  %v2185_v1 = vmax.f32 %v6133_v38, %v2120_v10 }
 0x22e   : > { %v2158_v3 = vsel %vm877_vm3, %v2139_v41, -3.4028235e+38  ;;  %v2184_v28 = vmax.f32 %v6124_v59, %v2152_v9  ;;  %v2160_v15 = vsel %vm877_vm3, %v2140_v22, -3.4028235e+38  ;;  %v2186_v62 = vmax.f32 %v6637_v37, %v2154_v55 }
 0x22f   : > { %v2187_v44 = vmax.f32 %v6645_v50, %v2121_v18  ;;  %v2188_v58 = vmax.f32 %v6155_v2, %v2156_v31  ;;  %v2189_v11 = vmax.f32 %v6158_v14, %v2122_v57  ;;  %v2190_v54 = vmax.f32 %v6256_v33, %v2158_v3 }
 0x230   : > { %v2191_v52 = vmax.f32 %v6262_v36, %v2123_v27  ;;  %v2192_v41 = vmax.f32 %v6300_v46, %v2160_v15  ;;  %v2193_v9 = vmax.f32 %v6311_v23, %v2124_v17  ;;  %v2216_v22 = vrot.slane %v6124_v59, 1 }
 0x231   : > { %v2217_v47 = vrot.slane %v6637_v37, 1  ;;  %v2218_v55 = vrot.slane %v6155_v2, 1  ;;  %v2219_v10 = vrot.slane %v6256_v33, 1  ;;  %v2220_v18 = vrot.slane %v6300_v46, 1 }
 0x232   : > { %v2232_v57 = vrot.slane %v6133_v38, 1  ;;  %v2233_v12 = vrot.slane %v6645_v50, 1  ;;  %v2234_v27 = vrot.slane %v6158_v14, 1  ;;  %v2235_v31 = vrot.slane %v6262_v36, 1 }
 0x233   : > { %v2236_v17 = vrot.slane %v6311_v23, 1  ;;  %v2344_v26 = vrot.slane %v6124_v59, 6  ;;  %v2345_v49 = vrot.slane %v6637_v37, 6 }
 0x234   : > { %v2248_v3 = vsel %vm975_vm2, %v2216_v22, %v2232_v57  ;;  %v2264_v15 = vsel %vm975_vm2, %v2232_v57, %v2216_v22  ;;  %v2249_v53 = vsel %vm975_vm2, %v2217_v47, %v2233_v12  ;;  %v2250_v13 = vsel %vm975_vm2, %v2218_v55, %v2234_v27 }
 0x235   : > { %v2251_v43 = vsel %vm975_vm2, %v2219_v10, %v2235_v31  ;;  %v2252_v32 = vsel %vm975_vm2, %v2220_v18, %v2236_v17  ;;  %v2265_v51 = vsel %vm975_vm2, %v2233_v12, %v2217_v47  ;;  %v2266_v22 = vsel %vm975_vm2, %v2234_v27, %v2218_v55 }
 0x236   : > { %v2267_v57 = vsel %vm975_vm2, %v2235_v31, %v2219_v10  ;;  %v2268_v39 = vsel %vm975_vm2, %v2236_v17, %v2220_v18  ;;  %v2281_v0 = vsel %vm1009_vm4, %v2264_v15, -3.4028235e+38  ;;  %v2283_v29 = vsel %vm1009_vm4, %v2265_v51, -3.4028235e+38 }
 0x237   : > { %v2285_v40 = vsel %vm1009_vm4, %v2266_v22, -3.4028235e+38  ;;  %v6776_v21 = vmax.f32 %v2184_v28, %v2248_v3  ;;  %v2287_v47 = vsel %vm1009_vm4, %v2267_v57, -3.4028235e+38  ;;  %v2289_v55 = vsel %vm1009_vm4, %v2268_v39, -3.4028235e+38 }
 0x238   : > { %v6782_v10 = vmax.f32 %v2185_v1, %v2281_v0  ;;  %v6784_v18 = vmax.f32 %v2186_v62, %v2249_v53  ;;  %v6786_v12 = vmax.f32 %v2187_v44, %v2283_v29  ;;  %v6788_v27 = vmax.f32 %v2188_v58, %v2250_v13 }
 0x239   : > { %v6790_v51 = vmax.f32 %v2189_v11, %v2285_v40  ;;  %v6792_v31 = vmax.f32 %v2190_v54, %v2251_v43  ;;  %v6794_v28 = vmax.f32 %v2191_v52, %v2287_v47  ;;  %v6796_v17 = vmax.f32 %v2192_v41, %v2252_v32 }
 0x23a   : > { %v6798_v3 = vmax.f32 %v2193_v9, %v2289_v55  ;;  %v2346_v39 = vrot.slane %v6155_v2, 6  ;;  %v2347_v0 = vrot.slane %v6256_v33, 6  ;;  %v2348_v53 = vrot.slane %v6300_v46, 6 }
 0x23b   : > { %v2360_v29 = vrot.slane %v6133_v38, 6  ;;  %v2361_v13 = vrot.slane %v6645_v50, 6  ;;  %v2362_v40 = vrot.slane %v6158_v14, 6  ;;  %v2363_v43 = vrot.slane %v6262_v36, 6 }
 0x23c   : > { %v2364_v1 = vrot.slane %v6311_v23, 6  ;;  %v2472_v32 = vrot.slane %v6124_v59, 2 }
 0x23d   : > { %v2376_v62 = vsel %vm1106_vm5, %v2344_v26, %v2360_v29  ;;  %v2377_v44 = vsel %vm1106_vm5, %v2345_v49, %v2361_v13  ;;  %v2392_v58 = vsel %vm1106_vm5, %v2360_v29, %v2344_v26  ;;  %v2393_v11 = vsel %vm1106_vm5, %v2361_v13, %v2345_v49 }
 0x23e   : > { %v2378_v54 = vsel %vm1106_vm5, %v2346_v39, %v2362_v40  ;;  %v2379_v52 = vsel %vm1106_vm5, %v2347_v0, %v2363_v43  ;;  %v2380_v41 = vsel %vm1106_vm5, %v2348_v53, %v2364_v1  ;;  %v2394_v9 = vsel %vm1106_vm5, %v2362_v40, %v2346_v39 }
 0x23f   : > { %v2395_v15 = vsel %vm1106_vm5, %v2363_v43, %v2347_v0  ;;  %v2396_v26 = vsel %vm1106_vm5, %v2364_v1, %v2348_v53  ;;  %v2408_v49 = vsel %vm1139_vm7, %v2392_v58, -3.4028235e+38  ;;  %v2410_v22 = vsel %vm1139_vm7, %v2393_v11, -3.4028235e+38 }
 0x240   : > { %v2412_v57 = vsel %vm1139_vm7, %v2394_v9, -3.4028235e+38  ;;  %v2414_v47 = vsel %vm1139_vm7, %v2395_v15, -3.4028235e+38  ;;  %v2416_v55 = vsel %vm1139_vm7, %v2396_v26, -3.4028235e+38  ;;  %v2440_v39 = vmax.f32 %v6776_v21, %v2408_v49 }
 0x241   : > { %v2441_v0 = vmax.f32 %v6782_v10, %v2376_v62  ;;  %v2442_v53 = vmax.f32 %v6784_v18, %v2410_v22  ;;  %v2443_v29 = vmax.f32 %v6786_v12, %v2377_v44  ;;  %v2444_v13 = vmax.f32 %v6788_v27, %v2412_v57 }
 0x242   : > { %v2445_v40 = vmax.f32 %v6790_v51, %v2378_v54  ;;  %v2446_v43 = vmax.f32 %v6792_v31, %v2414_v47  ;;  %v2447_v1 = vmax.f32 %v6794_v28, %v2379_v52  ;;  %v2448_v58 = vmax.f32 %v6796_v17, %v2416_v55 }
 0x243   : > { %v2449_v11 = vmax.f32 %v6798_v3, %v2380_v41  ;;  %v2473_v21 = vrot.slane %v6637_v37, 2  ;;  %v2474_v10 = vrot.slane %v6155_v2, 2  ;;  %v2475_v18 = vrot.slane %v6256_v33, 2 }
 0x244   : > { %v2476_v12 = vrot.slane %v6300_v46, 2  ;;  %v2488_v27 = vrot.slane %v6133_v38, 2  ;;  %v2489_v51 = vrot.slane %v6645_v50, 2  ;;  %v2490_v31 = vrot.slane %v6158_v14, 2 }
 0x245   : > { %v2491_v28 = vrot.slane %v6262_v36, 2  ;;  %v2492_v17 = vrot.slane %v6311_v23, 2  ;;  %v8543_v3 = vrot.slane %v6358_v56, 1  ;;  %v8544_v62 = vrot.slane %v6349_v45, 1 }
 0x246   : > { %v2504_v14 = vsel %vm1237_vm6, %v2472_v32, %v2488_v27  ;;  %v2505_v36 = vsel %vm1237_vm6, %v2473_v21, %v2489_v51  ;;  %v2506_v23 = vsel %vm1237_vm6, %v2474_v10, %v2490_v31  ;;  %v2520_v54 = vsel %vm1237_vm6, %v2488_v27, %v2472_v32 }
 0x247   : > { %v1626_v2 = vsel %vm975_vm2, %v8544_v62, %v8543_v3  ;;  %v8545_v33 = vmov %v8544_v62  ;;  %v8546_v46 = vmov %v8543_v3  ;;  %v2507_v52 = vsel %vm1237_vm6, %v2475_v18, %v2491_v28 }
 0x248   : > { %v1642_v44 = vsel %vm975_vm2, %v8546_v46, %v8545_v33  ;;  %v2508_v41 = vsel %vm1237_vm6, %v2476_v12, %v2492_v17  ;;  %v2521_v9 = vsel %vm1237_vm6, %v2489_v51, %v2473_v21  ;;  %v2522_v15 = vsel %vm1237_vm6, %v2490_v31, %v2474_v10 }
 0x249   : > { %v2523_v26 = vsel %vm1237_vm6, %v2491_v28, %v2475_v18  ;;  %v2524_v49 = vsel %vm1237_vm6, %v2492_v17, %v2476_v12  ;;  %v2537_v32 = vsel %vm1271_vm8, %v2520_v54, -3.4028235e+38  ;;  %v2539_v22 = vsel %vm1271_vm8, %v2521_v9, -3.4028235e+38 }
 0x24a   : > { %v2541_v57 = vsel %vm1271_vm8, %v2522_v15, -3.4028235e+38  ;;  %v2543_v47 = vsel %vm1271_vm8, %v2523_v26, -3.4028235e+38  ;;  %v2545_v55 = vsel %vm1271_vm8, %v2524_v49, -3.4028235e+38  ;;  %v6900_v21 = vmax.f32 %v2440_v39, %v2504_v14 }
 0x24b   : > { %v6902_v10 = vmax.f32 %v2441_v0, %v2537_v32  ;;  %v6904_v18 = vmax.f32 %v2442_v53, %v2505_v36  ;;  %v6906_v12 = vmax.f32 %v2443_v29, %v2539_v22  ;;  %v6908_v27 = vmax.f32 %v2444_v13, %v2506_v23 }
 0x24c   : > { %v6910_v51 = vmax.f32 %v2445_v40, %v2541_v57  ;;  %v6912_v31 = vmax.f32 %v2446_v43, %v2507_v52  ;;  %v6914_v28 = vmax.f32 %v2447_v1, %v2543_v47  ;;  %v6916_v17 = vmax.f32 %v2448_v58, %v2508_v41 }
 0x24d   : > { %v6918_v3 = vmax.f32 %v2449_v11, %v2545_v55  ;;  %v2602_v39 = vmax.f32 %v6900_v21, %v6904_v18  ;;  %v2603_v0 = vmax.f32 %v6902_v10, %v6906_v12  ;;  %v1669_v53 = vsel %vm1009_vm4, %v1642_v44, -3.4028235e+38 }
 0x24e   : > { %8547 = vst [vmem:[#allocation49_spill] sm:$0xff] %v6912_v31  ;;  %8548 = vst [vmem:[#allocation48_spill] sm:$0xff] %v6914_v28  ;;  %v8549_v29 = vmax.f32 %v6349_v45, %v6394_v35  ;;  %v8550_v40 = vmax.f32 %v6358_v56, %v6387_v19  ;;  %v8551_v1 = vrot.slane %v6358_v56, 6  ;;  %v8552_v58 = vrot.slane %v6349_v45, 6 }
 0x24f   : > { %v2632_v35 = vmax.f32 %v2602_v39, %v6908_v27  ;;  %v1850_v44 = vrot.slane %v6349_v45, 2  ;;  %v1866_v23 = vrot.slane %v6358_v56, 2  ;;  %v1982_v54 = vmax.f32 %v6279_v61, %v6427_v20 }
 0x250   : > { %v1700_v13 = vmax.f32 %v8549_v29, %v1626_v2  ;;  %v1701_v43 = vmax.f32 %v8550_v40, %v1669_v53  ;;  %v1754_v11 = vsel %vm1106_vm5, %v8552_v58, %v8551_v1  ;;  %v8553_v62 = vmov %v8552_v58 }
 0x251   : > { %v8554_v33 = vmov %v8551_v1  ;;  %v2633_v2 = vmax.f32 %v2603_v0, %v6910_v51  ;;  %v2662_v52 = vmax.f32 %v2632_v35, %v6912_v31  ;;  %v1983_v9 = vmax.f32 %v6282_v25, %v6433_v60 }
 0x252   : > { %v1770_v46 = vsel %vm1106_vm5, %v8554_v33, %v8553_v62  ;;  %v1829_v36 = vmax.f32 %v1701_v43, %v1754_v11  ;;  %v2093_v15 = vrot.slane %v6455_v7, 7  ;;  %v1882_v26 = vsel %vm1237_vm6, %v1850_v44, %v1866_v23 }
 0x253   : > { %v1796_v19 = vsel %vm1139_vm7, %v1770_v46, -3.4028235e+38  ;;  %v2663_v41 = vmax.f32 %v2633_v2, %v6914_v28  ;;  %v1898_v45 = vsel %vm1237_vm6, %v1866_v23, %v1850_v44  ;;  %v2012_v56 = vmax.f32 %v1982_v54, %v6477_v8 }
 0x254   : > { %v1828_v14 = vmax.f32 %v1700_v13, %v1796_v19  ;;  %v2109_v49 = vrot.slane %v6462_v42, 7  ;;  %v2692_v61 = vmax.f32 %v2662_v52, %v6916_v17  ;;  %v1925_v22 = vsel %vm1271_vm8, %v1898_v45, -3.4028235e+38 }
 0x255   : > { %v2693_v32 = vmax.f32 %v2663_v41, %v6918_v3  ;;  %v6969_v57 = vmax.f32 %v1829_v36, %v1925_v22  ;;  %v2013_v47 = vmax.f32 %v1983_v9, %v6479_v30  ;;  %v2042_v55 = vmax.f32 %v2012_v56, %v6621_v34 }
 0x256   : > { %v6967_v25 = vmax.f32 %v1828_v14, %v1882_v26  ;;  %v2125_v39 = vsel %vm844_vm1, %v2093_v15, %v2109_v49  ;;  %v2141_v53 = vsel %vm844_vm1, %v2109_v49, %v2093_v15  ;;  %v2221_v13 = vrot.slane %v6455_v7, 1 }
 0x257   : > { %v2770_v0 = vpack.c.bf16 %v2693_v32, %v2692_v61  ;;  %v2195_v29 = vmax.f32 %v6462_v42, %v2125_v39  ;;  %v2043_v40 = vmax.f32 %v2013_v47, %v6626_v24  ;;  %v2162_v1 = vsel %vm877_vm3, %v2141_v53, -3.4028235e+38 }
 0x258   : > { %v6981_v43 = vmax.f32 %v2042_v55, %v6967_v25  ;;  %v2237_v58 = vrot.slane %v6462_v42, 1  ;;  %v2194_v11 = vmax.f32 %v6455_v7, %v2162_v1  ;;  %v2349_v62 = vrot.slane %v6455_v7, 6 }
 0x259   : > { %2900 = vrot.lane.b32.xlu0 %v2770_v0, %s4478_s6  ;;  %v2365_v33 = vrot.slane %v6462_v42, 6  ;;  %v2477_v46 = vrot.slane %v6455_v7, 2  ;;  %v6992_v35 = vmax.f32 %v2043_v40, %v6969_v57  ;;  %v2493_v44 = vrot.slane %v6462_v42, 2 }
 0x25a   : > { %v2253_v2 = vsel %vm975_vm2, %v2221_v13, %v2237_v58  ;;  %v2269_v19 = vsel %vm975_vm2, %v2237_v58, %v2221_v13  ;;  %v2604_v26 = vmax.f32 %v6904_v18, %v6908_v27  ;;  %v2605_v45 = vmax.f32 %v6906_v12, %v6910_v51 }
 0x25b   : > { %v2291_v14 = vsel %vm1009_vm4, %v2269_v19, -3.4028235e+38  ;;  %v2322_v36 = vmax.f32 %v2194_v11, %v2253_v2  ;;  %v2381_v23 = vsel %vm1106_vm5, %v2349_v62, %v2365_v33  ;;  %v2397_v7 = vsel %vm1106_vm5, %v2365_v33, %v2349_v62 }
 0x25c   : > { %v2760_v54 = vpack.c.bf16 %v6992_v35, %v6981_v43  ;;  %v2323_v52 = vmax.f32 %v2195_v29, %v2291_v14  ;;  %v2418_v41 = vsel %vm1139_vm7, %v2397_v7, -3.4028235e+38  ;;  %v2509_v42 = vsel %vm1237_vm6, %v2477_v46, %v2493_v44 }
 0x25d   : > { %v2450_v9 = vmax.f32 %v2322_v36, %v2418_v41  ;;  %v2525_v15 = vsel %vm1237_vm6, %v2493_v44, %v2477_v46  ;;  %v2094_v61 = vrot.slane %v6506_v4, 7  ;;  %v2110_v32 = vrot.slane %v6518_v6, 7 }
 0x25e   : > { %2864 = vrot.lane.b32.xlu0 %v2760_v54, %s4477_s30  ;;  %v2451_v56 = vmax.f32 %v2323_v52, %v2381_v23  ;;  %v2547_v49 = vsel %vm1271_vm8, %v2525_v15, -3.4028235e+38  ;;  %v2634_v47 = vmax.f32 %v2604_v26, %v6912_v31  ;;  %v2635_v55 = vmax.f32 %v2605_v45, %v6914_v28 }
 0x25f   : > { %v7022_v22 = vmax.f32 %v2450_v9, %v2509_v42  ;;  %v2222_v39 = vrot.slane %v6506_v4, 1  ;;  %v2126_v53 = vsel %vm844_vm1, %v2094_v61, %v2110_v32  ;;  %v2142_v29 = vsel %vm844_vm1, %v2110_v32, %v2094_v61 }
 0x260   : > { %v7027_v0 = vmax.f32 %v2451_v56, %v2547_v49  ;;  %v2238_v13 = vrot.slane %v6518_v6, 1  ;;  %v2664_v40 = vmax.f32 %v2634_v47, %v6916_v17  ;;  %v2665_v1 = vmax.f32 %v2635_v55, %v6918_v3 }
 0x261   : > { %v2164_v58 = vsel %vm877_vm3, %v2142_v29, -3.4028235e+38  ;;  %v2197_v11 = vmax.f32 %v6518_v6, %v2126_v53  ;;  %v2350_v2 = vrot.slane %v6506_v4, 6  ;;  %v2366_v36 = vrot.slane %v6518_v6, 6 }
 0x262   : > { %v2196_v62 = vmax.f32 %v6506_v4, %v2164_v58  ;;  %v2254_v33 = vsel %vm975_vm2, %v2222_v39, %v2238_v13  ;;  %v2270_v46 = vsel %vm975_vm2, %v2238_v13, %v2222_v39  ;;  %v2694_v19 = vmax.f32 %v2664_v40, %v7022_v22 }
 0x263   : > { %v2695_v44 = vmax.f32 %v2665_v1, %v7027_v0  ;;  %v2293_v14 = vsel %vm1009_vm4, %v2270_v46, -3.4028235e+38  ;;  %v2478_v54 = vrot.slane %v6506_v4, 2  ;;  %v2494_v52 = vrot.slane %v6518_v6, 2 }
 0x264   : > { %v2324_v23 = vmax.f32 %v2196_v62, %v2254_v33  ;;  %v2325_v7 = vmax.f32 %v2197_v11, %v2293_v14  ;;  %v2382_v42 = vsel %vm1106_vm5, %v2350_v2, %v2366_v36  ;;  %v2398_v9 = vsel %vm1106_vm5, %v2366_v36, %v2350_v2  ;;  %v8563_v36 = vld [vmem:[#allocation58_spill] sm:$0xff] }
 0x265   : > { %v2771_v41 = vpack.c.bf16 %v2695_v44, %v2694_v19  ;;  %v2606_v15 = vmax.f32 %v6908_v27, %v6912_v31  ;;  %v2420_v26 = vsel %vm1139_vm7, %v2398_v9, -3.4028235e+38  ;;  %v2510_v56 = vsel %vm1237_vm6, %v2478_v54, %v2494_v52  ;;  %v8561_v19 = vld [vmem:[#allocation57_spill] sm:$0xff] }
 0x266   : > { %v2453_v45 = vmax.f32 %v2325_v7, %v2382_v42  ;;  %v2526_v4 = vsel %vm1237_vm6, %v2494_v52, %v2478_v54  ;;  %v2452_v6 = vmax.f32 %v2324_v23, %v2420_v26  ;;  %v2607_v61 = vmax.f32 %v6910_v51, %v6914_v28 }
 0x267   : > { %2902 = vrot.lane.b32.xlu1 %v2771_v41, %s4478_s6  ;;  %v2549_v49 = vsel %vm1271_vm8, %v2526_v4, -3.4028235e+38  ;;  %v2636_v32 = vmax.f32 %v2606_v15, %v6916_v17  ;;  %v8555_v55 = vrot.slane %v6528_v63, 1  ;;  %v8556_v39 = vrot.slane %v6521_v48, 1 }
 0x268   : > { %v7070_v47 = vmax.f32 %v2453_v45, %v2549_v49  ;;  %v8559_v1 = vrot.slane %v6528_v63, 6  ;;  %v8560_v58 = vrot.slane %v6521_v48, 6  ;;  %v7090_v62 = vmax.f32 %v2452_v6, %v2510_v56 }
 0x269   : > { %v1627_v53 = vsel %vm975_vm2, %v8556_v39, %v8555_v55  ;;  %v8557_v29 = vmov %v8556_v39  ;;  %v8558_v13 = vmov %v8555_v55  ;;  %v2637_v33 = vmax.f32 %v2607_v61, %v6918_v3  ;;  %v8567_v55 = vld [vmem:[#allocation55_spill] sm:$0xff] }
 0x26a   : > { %v1643_v40 = vsel %vm975_vm2, %v8558_v13, %v8557_v29  ;;  %v1755_v11 = vsel %vm1106_vm5, %v8560_v58, %v8559_v1  ;;  %v2666_v46 = vmax.f32 %v2636_v32, %v7022_v22  ;;  %v8562_v44 = vmax.f32 %v6521_v48, %v8561_v19 }
 0x26b   : > { %v1671_v2 = vsel %vm1009_vm4, %v1643_v40, -3.4028235e+38  ;;  %v8564_v23 = vmax.f32 %v6528_v63, %v8563_v36  ;;  %v8565_v54 = vmov %v8560_v58  ;;  %v8566_v52 = vmov %v8559_v1 }
 0x26c   : > { %v1702_v14 = vmax.f32 %v8562_v44, %v1627_v53  ;;  %v1771_v41 = vsel %vm1106_vm5, %v8566_v52, %v8565_v54  ;;  %v1851_v42 = vrot.slane %v6521_v48, 2  ;;  %v2667_v9 = vmax.f32 %v2637_v33, %v7027_v0  ;;  %v8569_v53 = vld [vmem:[#allocation25_spill] sm:$0xff] }
 0x26d   : > { %v1703_v7 = vmax.f32 %v8564_v23, %v1671_v2  ;;  %v2696_v15 = vmax.f32 %v2666_v46, %v7090_v62  ;;  %v1798_v26 = vsel %vm1139_vm7, %v1771_v41, -3.4028235e+38  ;;  %v1867_v45 = vrot.slane %v6528_v63, 2  ;;  %v8573_v2 = vld [vmem:[#allocation32_spill] sm:$0xff]  ;;  %v8577_v41 = vld [vmem:[#allocation33_spill] sm:$0xff] }
 0x26e   : > { %v1830_v56 = vmax.f32 %v1702_v14, %v1798_v26  ;;  %v1984_v6 = vmax.f32 %v6427_v20, %v6477_v8  ;;  %v1985_v49 = vmax.f32 %v6433_v60, %v6479_v30  ;;  %v2697_v61 = vmax.f32 %v2667_v9, %v7070_v47 }
 0x26f   : > { %v1831_v4 = vmax.f32 %v1703_v7, %v1755_v11  ;;  %v1883_v48 = vsel %vm1237_vm6, %v1851_v42, %v1867_v45  ;;  %v1899_v32 = vsel %vm1237_vm6, %v1867_v45, %v1851_v42  ;;  %v8568_v39 = vrot.slane %v8567_v55, 1 }
 0x270   : > { %v8570_v63 = vrot.slane %v8569_v53, 1  ;;  %v1927_v20 = vsel %vm1271_vm8, %v1899_v32, -3.4028235e+38  ;;  %v7131_v13 = vmax.f32 %v1830_v56, %v1883_v48  ;;  %v2014_v60 = vmax.f32 %v1984_v6, %v6621_v34 }
 0x271   : > { %v2015_v40 = vmax.f32 %v1985_v49, %v6626_v24  ;;  %v2772_v1 = vpack.c.bf16 %v2697_v61, %v2696_v15  ;;  %v7135_v58 = vmax.f32 %v1831_v4, %v1927_v20  ;;  %v8572_v33 = vmov %v8568_v39 }
 0x272   : > { %v1628_v29 = vsel %vm975_vm2, %v8570_v63, %v8568_v39  ;;  %v8571_v11 = vmov %v8570_v63  ;;  %v8574_v19 = vmax.f32 %v8569_v53, %v8573_v2  ;;  %v2044_v14 = vmax.f32 %v2014_v60, %v6967_v25 }
 0x273   : > { %v1644_v46 = vsel %vm975_vm2, %v8572_v33, %v8571_v11  ;;  %v2045_v36 = vmax.f32 %v2015_v40, %v6969_v57  ;;  %v8575_v7 = vrot.slane %v8567_v55, 6  ;;  %v8576_v54 = vrot.slane %v8569_v53, 6  ;;  %2904 = vrot.lane.b32.xlu0 %v2772_v1, %s4478_s6  ;;  %v8581_v1 = vld [vmem:[#allocation60_spill] sm:$0xff]  ;;  %v8582_v33 = vld [vmem:[#allocation59_spill] sm:$0xff] }
 0x274   : > { %v1704_v44 = vmax.f32 %v8574_v19, %v1628_v29  ;;  %v1673_v23 = vsel %vm1009_vm4, %v1644_v46, -3.4028235e+38  ;;  %v8578_v42 = vmax.f32 %v8567_v55, %v8577_v41  ;;  %v1852_v56 = vrot.slane %v8569_v53, 2 }
 0x275   : > { %v1756_v52 = vsel %vm1106_vm5, %v8576_v54, %v8575_v7  ;;  %v8579_v15 = vmov %v8576_v54  ;;  %v8580_v26 = vmov %v8575_v7  ;;  %v1868_v4 = vrot.slane %v8567_v55, 2 }
 0x276   : > { %v1705_v9 = vmax.f32 %v8578_v42, %v1673_v23  ;;  %v1772_v45 = vsel %vm1106_vm5, %v8580_v26, %v8579_v15  ;;  %v7169_v6 = vmax.f32 %v2044_v14, %v7131_v13  ;;  %v7172_v49 = vmax.f32 %v2045_v36, %v7135_v58 }
 0x277   : > { %v1800_v61 = vsel %vm1139_vm7, %v1772_v45, -3.4028235e+38  ;;  %v1986_v48 = vmax.f32 %v6477_v8, %v6621_v34  ;;  %v1884_v63 = vsel %vm1237_vm6, %v1852_v56, %v1868_v4  ;;  %v1900_v55 = vsel %vm1237_vm6, %v1868_v4, %v1852_v56 }
 0x278   : > { %v1832_v32 = vmax.f32 %v1704_v44, %v1800_v61  ;;  %v1833_v39 = vmax.f32 %v1705_v9, %v1756_v52  ;;  %v2761_v53 = vpack.c.bf16 %v7172_v49, %v7169_v6  ;;  %v1929_v29 = vsel %vm1271_vm8, %v1900_v55, -3.4028235e+38 }
 0x279   : > { %v1987_v20 = vmax.f32 %v6479_v30, %v6626_v24  ;;  %v2016_v60 = vmax.f32 %v1986_v48, %v6967_v25  ;;  %v2095_v11 = vrot.slane %v8581_v1, 7  ;;  %v2111_v46 = vrot.slane %v8582_v33, 7 }
 0x27a   : > { %v7189_v8 = vmax.f32 %v1832_v32, %v1884_v63  ;;  %v7191_v40 = vmax.f32 %v1833_v39, %v1929_v29  ;;  %2866 = vrot.lane.b32.xlu1 %v2761_v53, %s4477_s30  ;;  %v2223_v44 = vrot.slane %v8581_v1, 1  ;;  %v2239_v30 = vrot.slane %v8582_v33, 1  ;;  %v4150_v53 = vld [vmem:[%s8256_s3 + $0x38] sm:$0xff]   ;;  %v4151_v29 = vld [vmem:[%s8256_s3 + $0x30] sm:$0xff]  }
 0x27b   : > { %v2017_v2 = vmax.f32 %v1987_v20, %v6969_v57  ;;  %v2046_v19 = vmax.f32 %v2016_v60, %v7131_v13  ;;  %v2127_v14 = vsel %vm844_vm1, %v2095_v11, %v2111_v46  ;;  %v2143_v36 = vsel %vm844_vm1, %v2111_v46, %v2095_v11  ;;  %v8583_v11 = vld [vmem:[#allocation52_spill] sm:$0xff]  ;;  %4071 = vmatprep.subr.bf16.mxu1 %v4150_v53 }
 0x27c   : > { %v2351_v23 = vrot.slane %v8581_v1, 6  ;;  %v2367_v7 = vrot.slane %v8582_v33, 6  ;;  %v2166_v41 = vsel %vm877_vm3, %v2143_v36, -3.4028235e+38  ;;  %v2199_v42 = vmax.f32 %v8582_v33, %v2127_v14  ;;  %4079 = vmatpush3.bf16.msra.mxu1 %v4150_v53  ;;  %4023 = vmatprep.subr.bf16.mxu0 %v4150_v53 }
 0x27d   : > { %v2047_v54 = vmax.f32 %v2017_v2, %v7135_v58  ;;  %v7208_v52 = vmax.f32 %v2046_v19, %v7189_v8  ;;  %v2198_v9 = vmax.f32 %v8581_v1, %v2166_v41  ;;  %v2255_v15 = vsel %vm975_vm2, %v2223_v44, %v2239_v30  ;;  %4072 = vmatprep.subr.bf16.mxu1 %v4151_v29 }
 0x27e   : > { %v2271_v26 = vsel %vm975_vm2, %v2239_v30, %v2223_v44  ;;  %v2383_v45 = vsel %vm1106_vm5, %v2351_v23, %v2367_v7  ;;  %v2399_v61 = vsel %vm1106_vm5, %v2367_v7, %v2351_v23  ;;  %v2479_v48 = vrot.slane %v8581_v1, 2  ;;  %v8584_v23 = vld [vmem:[#allocation41_spill] sm:$0xff]  ;;  %4024 = vmatpush3.bf16.msra.mxu0 %v4150_v53 }
 0x27f   : > { %v7221_v56 = vmax.f32 %v2047_v54, %v7191_v40  ;;  %v2295_v4 = vsel %vm1009_vm4, %v2271_v26, -3.4028235e+38  ;;  %v2326_v32 = vmax.f32 %v2198_v9, %v2255_v15  ;;  %v2422_v63 = vsel %vm1139_vm7, %v2399_v61, -3.4028235e+38  ;;  %v4152_v15 = vld [vmem:[%s8256_s3 + $0x28] sm:$0xff]   ;;  %4025 = vmatprep.subr.bf16.mxu0 %v4151_v29 }
 0x280   : > { %v2327_v39 = vmax.f32 %v2199_v42, %v2295_v4  ;;  %v2495_v55 = vrot.slane %v8582_v33, 2  ;;  %v2608_v60 = vmax.f32 %v6912_v31, %v6916_v17  ;;  %v2609_v1 = vmax.f32 %v6914_v28, %v6918_v3  ;;  %4080 = vmatpush3.bf16.msra.mxu1 %v4151_v29 }
 0x281   : > { %v2762_v20 = vpack.c.bf16 %v7221_v56, %v7208_v52  ;;  %v1470_v46 = vrot.slane %v8583_v11, 7  ;;  %v2454_v33 = vmax.f32 %v2326_v32, %v2422_v63  ;;  %v1486_v7 = vrot.slane %v8584_v23, 7  ;;  %4073 = vmatprep.subr.bf16.mxu1 %v4152_v15 }
 0x282   : > { %v2455_v2 = vmax.f32 %v2327_v39, %v2383_v45  ;;  %v2511_v19 = vsel %vm1237_vm6, %v2479_v48, %v2495_v55  ;;  %v2527_v44 = vsel %vm1237_vm6, %v2495_v55, %v2479_v48  ;;  %v2638_v14 = vmax.f32 %v2608_v60, %v7022_v22  ;;  %v8585_v39 = vld [vmem:[#allocation43_spill] sm:$0xff]  ;;  %v8587_v55 = vld [vmem:[#allocation46_spill] sm:$0xff]  ;;  %4026 = vmatpush3.bf16.msra.mxu0 %v4151_v29 }
 0x283   : > { %2868 = vrot.lane.b32.xlu0 %v2762_v20, %s4477_s30  ;;  %v2551_v30 = vsel %vm1271_vm8, %v2527_v44, -3.4028235e+38  ;;  %v2639_v36 = vmax.f32 %v2609_v1, %v7027_v0  ;;  %v7254_v54 = vmax.f32 %v2454_v33, %v2511_v19  ;;  %v1598_v42 = vrot.slane %v8583_v11, 1  ;;  %4027 = vmatprep.subr.bf16.mxu0 %v4152_v15 }
 0x284   : > { %v7256_v41 = vmax.f32 %v2455_v2, %v2551_v30  ;;  %v1614_v9 = vrot.slane %v8584_v23, 1  ;;  %v2668_v26 = vmax.f32 %v2638_v14, %v7090_v62  ;;  %v1502_v4 = vsel %vm844_vm1, %v1470_v46, %v1486_v7  ;;  %4081 = vmatpush3.bf16.msra.mxu1 %v4152_v15 }
 0x285   : > { %v2669_v45 = vmax.f32 %v2639_v36, %v7070_v47  ;;  %v1518_v61 = vsel %vm844_vm1, %v1486_v7, %v1470_v46  ;;  %v1581_v32 = vmax.f32 %v8584_v23, %v1502_v4  ;;  %v8586_v63 = vrot.slane %v8585_v39, 1  ;;  %v8591_v36 = vld [vmem:[#allocation24_spill] sm:$0xff]  ;;  %v4153_v4 = vld [vmem:[%s8256_s3 + $0x20] sm:$0xff]  }
 0x286   : > { %v1548_v48 = vsel %vm877_vm3, %v1518_v61, -3.4028235e+38  ;;  %v8588_v20 = vrot.slane %v8587_v55, 1  ;;  %v1630_v1 = vsel %vm975_vm2, %v1598_v42, %v1614_v9  ;;  %v2698_v33 = vmax.f32 %v2668_v26, %v7254_v54  ;;  %4074 = vmatprep.subr.bf16.mxu1 %v4153_v4  ;;  %4028 = vmatpush3.bf16.msra.mxu0 %v4152_v15 }
 0x287   : > { %v2699_v53 = vmax.f32 %v2669_v45, %v7256_v41  ;;  %v1580_v46 = vmax.f32 %v8583_v11, %v1548_v48  ;;  %v8590_v19 = vmov %v8586_v63  ;;  %v1646_v30 = vsel %vm975_vm2, %v1614_v9, %v1598_v42  ;;  %v8593_v42 = vld [vmem:[#allocation51_spill] sm:$0xff]  ;;  %4029 = vmatprep.subr.bf16.mxu0 %v4153_v4 }
 0x288   : > { %v1629_v60 = vsel %vm975_vm2, %v8588_v20, %v8586_v63  ;;  %v8589_v2 = vmov %v8588_v20  ;;  %v8592_v7 = vmax.f32 %v8587_v55, %v8591_v36  ;;  %v1726_v45 = vrot.slane %v8583_v11, 6  ;;  %4082 = vmatpush3.bf16.msra.mxu1 %v4153_v4 }
 0x289   : > { %v1645_v44 = vsel %vm975_vm2, %v8590_v19, %v8589_v2  ;;  %v2773_v61 = vpack.c.bf16 %v2699_v53, %v2698_v33  ;;  %v1677_v48 = vsel %vm1009_vm4, %v1646_v30, -3.4028235e+38  ;;  %v8594_v9 = vmax.f32 %v8585_v39, %v8593_v42 }
 0x28a   : > { %v1675_v14 = vsel %vm1009_vm4, %v1645_v44, -3.4028235e+38  ;;  %v1706_v26 = vmax.f32 %v8592_v7, %v1629_v60  ;;  %v1708_v20 = vmax.f32 %v1580_v46, %v1630_v1  ;;  %v1709_v2 = vmax.f32 %v1581_v32, %v1677_v48  ;;  %4030 = vmatpush3.bf16.msra.mxu0 %v4153_v4 }
 0x28b   : > { %v1707_v63 = vmax.f32 %v8594_v9, %v1675_v14  ;;  %v1742_v60 = vrot.slane %v8584_v23, 6  ;;  %v8595_v19 = vrot.slane %v8585_v39, 6  ;;  %v8596_v44 = vrot.slane %v8587_v55, 6  ;;  %2906 = vrot.lane.b32.xlu1 %v2773_v61, %s4478_s6 }
 0x28c   : > { %v1854_v1 = vrot.slane %v8583_v11, 2  ;;  %v1870_v46 = vrot.slane %v8584_v23, 2  ;;  %v8599_v42 = vrot.slane %v8585_v39, 2  ;;  %v8600_v61 = vrot.slane %v8587_v55, 2 }
 0x28d   : > { %v1757_v36 = vsel %vm1106_vm5, %v8596_v44, %v8595_v19  ;;  %v8597_v33 = vmov %v8596_v44  ;;  %v8598_v53 = vmov %v8595_v19  ;;  %v1758_v14 = vsel %vm1106_vm5, %v1726_v45, %v1742_v60 }
 0x28e   : > { %v1773_v30 = vsel %vm1106_vm5, %v8598_v53, %v8597_v33  ;;  %v1835_v32 = vmax.f32 %v1707_v63, %v1757_v36  ;;  %v1774_v7 = vsel %vm1106_vm5, %v1742_v60, %v1726_v45  ;;  %v1885_v9 = vsel %vm1237_vm6, %v8600_v61, %v8599_v42  ;;  %v4154_v63 = vld [vmem:[%s8256_s3 + $0x18] sm:$0xff]  }
 0x28f   : > { %v1802_v29 = vsel %vm1139_vm7, %v1773_v30, -3.4028235e+38  ;;  %v1804_v19 = vsel %vm1139_vm7, %v1774_v7, -3.4028235e+38  ;;  %v1837_v44 = vmax.f32 %v1709_v2, %v1758_v14  ;;  %v1886_v45 = vsel %vm1237_vm6, %v1854_v1, %v1870_v46  ;;  %4075 = vmatprep.subr.bf16.mxu1 %v4154_v63  ;;  %4031 = vmatprep.subr.bf16.mxu0 %v4154_v63 }
 0x290   : > { %v1834_v48 = vmax.f32 %v1706_v26, %v1802_v29  ;;  %v8601_v26 = vmov %v8600_v61  ;;  %v8602_v60 = vmov %v8599_v42  ;;  %v1836_v33 = vmax.f32 %v1708_v20, %v1804_v19  ;;  %4083 = vmatpush3.bf16.msra.mxu1 %v4154_v63  ;;  %4032 = vmatpush3.bf16.msra.mxu0 %v4154_v63 }
 0x291   : > { %v1901_v36 = vsel %vm1237_vm6, %v8602_v60, %v8601_v26  ;;  %v1902_v53 = vsel %vm1237_vm6, %v1870_v46, %v1854_v1  ;;  %v1990_v39 = vmax.f32 %v6967_v25, %v7131_v13  ;;  %v1991_v15 = vmax.f32 %v6969_v57, %v7135_v58 }
 0x292   : > { %v1931_v30 = vsel %vm1271_vm8, %v1901_v36, -3.4028235e+38  ;;  %v7350_v29 = vmax.f32 %v1834_v48, %v1885_v9  ;;  %v1933_v2 = vsel %vm1271_vm8, %v1902_v53, -3.4028235e+38  ;;  %v7360_v20 = vmax.f32 %v1836_v33, %v1886_v45  ;;  %v4156_v33 = vld [vmem:[%s8256_s3 + $0x8] sm:$0xff]  }
 0x293   : > { %v7354_v55 = vmax.f32 %v1835_v32, %v1931_v30  ;;  %v7362_v1 = vmax.f32 %v1837_v44, %v1933_v2  ;;  %v1988_v46 = vmax.f32 %v6621_v34, %v6967_v25  ;;  %v1989_v14 = vmax.f32 %v6626_v24, %v6969_v57  ;;  %v4155_v32 = vld [vmem:[%s8256_s3 + $0x10] sm:$0xff]  }
 0x294   : > { %v2020_v7 = vmax.f32 %v1990_v39, %v7189_v8  ;;  %v2021_v48 = vmax.f32 %v1991_v15, %v7191_v40  ;;  %v2096_v42 = vrot.slane %v6981_v43, 7  ;;  %v2112_v61 = vrot.slane %v6992_v35, 7  ;;  %4076 = vmatprep.subr.bf16.mxu1 %v4155_v32  ;;  %4033 = vmatprep.subr.bf16.mxu0 %v4155_v32 }
 0x295   : > { %v2018_v9 = vmax.f32 %v1988_v46, %v7131_v13  ;;  %v2019_v34 = vmax.f32 %v1989_v14, %v7135_v58  ;;  %v2224_v24 = vrot.slane %v6981_v43, 1  ;;  %v2240_v25 = vrot.slane %v6992_v35, 1  ;;  %4084 = vmatpush3.bf16.msra.mxu1 %v4155_v32  ;;  %4034 = vmatpush3.bf16.msra.mxu0 %v4155_v32 }
 0x296   : > { %v2050_v57 = vmax.f32 %v2020_v7, %v7350_v29  ;;  %v2051_v19 = vmax.f32 %v2021_v48, %v7354_v55  ;;  %v2128_v44 = vsel %vm844_vm1, %v2096_v42, %v2112_v61  ;;  %v2144_v45 = vsel %vm844_vm1, %v2112_v61, %v2096_v42  ;;  %4077 = vmatprep.subr.bf16.mxu1 %v4156_v33 }
 0x297   : > { %v2048_v4 = vmax.f32 %v2018_v9, %v7189_v8  ;;  %v2049_v26 = vmax.f32 %v2019_v34, %v7191_v40  ;;  %v2168_v60 = vsel %vm877_vm3, %v2144_v45, -3.4028235e+38  ;;  %v2201_v36 = vmax.f32 %v6992_v35, %v2128_v44  ;;  %4035 = vmatprep.subr.bf16.mxu0 %v4156_v33 }
 0x298   : > { %v7394_v53 = vmax.f32 %v2050_v57, %v7360_v20  ;;  %v7397_v30 = vmax.f32 %v2051_v19, %v7362_v1  ;;  %v2200_v2 = vmax.f32 %v6981_v43, %v2168_v60  ;;  %v2256_v39 = vsel %vm975_vm2, %v2224_v24, %v2240_v25 }
 0x299   : > { %v7403_v15 = vmax.f32 %v2048_v4, %v7350_v29  ;;  %v7406_v46 = vmax.f32 %v2049_v26, %v7354_v55  ;;  %v2272_v14 = vsel %vm975_vm2, %v2240_v25, %v2224_v24  ;;  %v2352_v7 = vrot.slane %v6981_v43, 6  ;;  %v4157_v25 = vld [vmem:[%s8256_s3] sm:$0xff]   ;;  %4085 = vmatpush3.bf16.msra.mxu1 %v4156_v33  ;;  %4036 = vmatpush3.bf16.msra.mxu0 %v4156_v33 }
 0x29a   : > { %v2764_v48 = vpack.c.bf16 %v7397_v30, %v7394_v53  ;;  %v2297_v42 = vsel %vm1009_vm4, %v2272_v14, -3.4028235e+38  ;;  %v2328_v61 = vmax.f32 %v2200_v2, %v2256_v39  ;;  %v2368_v63 = vrot.slane %v6992_v35, 6  ;;  %4078 = vmatprep.subr.bf16.mxu1 %v4157_v25  ;;  %4037 = vmatprep.subr.bf16.mxu0 %v4157_v25 }
 0x29b   : > { %v2763_v9 = vpack.c.bf16 %v7406_v46, %v7403_v15  ;;  %v2329_v34 = vmax.f32 %v2201_v36, %v2297_v42  ;;  %v2480_v57 = vrot.slane %v6981_v43, 2  ;;  %v2496_v24 = vrot.slane %v6992_v35, 2 }
 0x29c   : > { %2872 = vrot.lane.b32.xlu0 %v2764_v48, %s4477_s30  ;;  %v2384_v19 = vsel %vm1106_vm5, %v2352_v7, %v2368_v63  ;;  %v2400_v44 = vsel %vm1106_vm5, %v2368_v63, %v2352_v7  ;;  %v2610_v45 = vmax.f32 %v6916_v17, %v7022_v22  ;;  %v2611_v43 = vmax.f32 %v6918_v3, %v7027_v0  ;;  %v8603_v7 = vld [vmem:[#allocation17_spill] sm:$0xff]  ;;  %v8604_v48 = vld [vmem:[#allocation16_spill] sm:$0xff] }
 0x29d   : > { %2870 = vrot.lane.b32.xlu1 %v2763_v9, %s4477_s30  ;;  %v2424_v35 = vsel %vm1139_vm7, %v2400_v44, -3.4028235e+38  ;;  %v2457_v4 = vmax.f32 %v2329_v34, %v2384_v19  ;;  %v2512_v26 = vsel %vm1237_vm6, %v2480_v57, %v2496_v24  ;;  %v2528_v60 = vsel %vm1237_vm6, %v2496_v24, %v2480_v57  ;;  %v8605_v63 = vld [vmem:[#allocation53_spill] sm:$0xff]  ;;  %v8606_v57 = vld [vmem:[#allocation39_spill] sm:$0xff]  ;;  %4086 = vmatpush3.bf16.msra.mxu1 %v4157_v25 }
 0x29e   : > { %v2456_v36 = vmax.f32 %v2328_v61, %v2424_v35  ;;  %v2553_v17 = vsel %vm1271_vm8, %v2528_v60, -3.4028235e+38  ;;  %v2640_v2 = vmax.f32 %v2610_v45, %v7090_v62  ;;  %v2641_v3 = vmax.f32 %v2611_v43, %v7070_v47  ;;  %4038 = vmatpush3.bf16.msra.mxu0 %v4157_v25 }
 0x29f   : > { %v7443_v39 = vmax.f32 %v2457_v4, %v2553_v17  ;;  %v2750_v14 = vpack.c.bf16 %v8584_v23, %v8583_v11  ;;  %v2736_v42 = vpack.c.bf16 %v8604_v48, %v8603_v7  ;;  %v1471_v32 = vrot.slane %v8605_v63, 7 }
 0x2a0   : > { %v7450_v61 = vmax.f32 %v2456_v36, %v2512_v26  ;;  %v2670_v9 = vmax.f32 %v2640_v2, %v7254_v54  ;;  %v2671_v34 = vmax.f32 %v2641_v3, %v7256_v41  ;;  %v1487_v24 = vrot.slane %v8606_v57, 7 }
 0x2a1   : > { %2828 = vrot.lane.b32.xlu1 %v2750_v14, %s4476_s26  ;;  %v1599_v19 = vrot.slane %v8605_v63, 1  ;;  %v1615_v11 = vrot.slane %v8606_v57, 1  ;;  %v1727_v23 = vrot.slane %v8605_v63, 6  ;;  %v1743_v44 = vrot.slane %v8606_v57, 6 }
 0x2a2   : > { %v2700_v45 = vmax.f32 %v2670_v9, %v7450_v61  ;;  %v2701_v43 = vmax.f32 %v2671_v34, %v7443_v39  ;;  %v1503_v35 = vsel %vm844_vm1, %v1471_v32, %v1487_v24  ;;  %v1519_v4 = vsel %vm844_vm1, %v1487_v24, %v1471_v32 }
 0x2a3   : > { %v1550_v26 = vsel %vm877_vm3, %v1519_v4, -3.4028235e+38  ;;  %v1583_v60 = vmax.f32 %v8606_v57, %v1503_v35  ;;  %v1631_v36 = vsel %vm975_vm2, %v1599_v19, %v1615_v11  ;;  %v1647_v33 = vsel %vm975_vm2, %v1615_v11, %v1599_v19 }
 0x2a4   : > { %v2774_v17 = vpack.c.bf16 %v2701_v43, %v2700_v45  ;;  %v1582_v2 = vmax.f32 %v8605_v63, %v1550_v26  ;;  %v1679_v3 = vsel %vm1009_vm4, %v1647_v33, -3.4028235e+38  ;;  %v1759_v14 = vsel %vm1106_vm5, %v1727_v23, %v1743_v44 }
 0x2a5   : > { %v1711_v7 = vmax.f32 %v1583_v60, %v1679_v3  ;;  %v1775_v48 = vsel %vm1106_vm5, %v1743_v44, %v1727_v23  ;;  %v1855_v32 = vrot.slane %v8605_v63, 2  ;;  %v1871_v9 = vrot.slane %v8606_v57, 2 }
 0x2a6   : > { %2908 = vrot.lane.b32.xlu0 %v2774_v17, %s4478_s6  ;;  %v1710_v34 = vmax.f32 %v1582_v2, %v1631_v36  ;;  %v1806_v24 = vsel %vm1139_vm7, %v1775_v48, -3.4028235e+38  ;;  %v1992_v19 = vmax.f32 %v7131_v13, %v7189_v8  ;;  %v1993_v11 = vmax.f32 %v7135_v58, %v7191_v40 }
 0x2a7   : > { %v1839_v45 = vmax.f32 %v1711_v7, %v1759_v14  ;;  %v1887_v23 = vsel %vm1237_vm6, %v1855_v32, %v1871_v9  ;;  %v1903_v44 = vsel %vm1237_vm6, %v1871_v9, %v1855_v32  ;;  %v2097_v25 = vrot.slane %v7169_v6, 7 }
 0x2a8   : > { %v1838_v43 = vmax.f32 %v1710_v34, %v1806_v24  ;;  %v1935_v35 = vsel %vm1271_vm8, %v1903_v44, -3.4028235e+38  ;;  %v2022_v4 = vmax.f32 %v1992_v19, %v7350_v29  ;;  %v2023_v13 = vmax.f32 %v1993_v11, %v7354_v55 }
 0x2a9   : > { %v7498_v26 = vmax.f32 %v1839_v45, %v1935_v35  ;;  %v2098_v58 = vrot.slane %v7208_v52, 7  ;;  %v2113_v60 = vrot.slane %v7172_v49, 7  ;;  %v2114_v36 = vrot.slane %v7221_v56, 7 }
 0x2aa   : > { %2800 = vrot.lane.b32.xlu0 %v2736_v42, %s4476_s26  ;;  %v7504_v33 = vmax.f32 %v1838_v43, %v1887_v23  ;;  %v2052_v17 = vmax.f32 %v2022_v4, %v7360_v20  ;;  %v2053_v2 = vmax.f32 %v2023_v13, %v7362_v1  ;;  %v2225_v3 = vrot.slane %v7169_v6, 1 }
 0x2ab   : > { %v2129_v14 = vsel %vm844_vm1, %v2097_v25, %v2113_v60  ;;  %v2130_v7 = vsel %vm844_vm1, %v2098_v58, %v2114_v36  ;;  %v2145_v48 = vsel %vm844_vm1, %v2113_v60, %v2097_v25  ;;  %v2146_v42 = vsel %vm844_vm1, %v2114_v36, %v2098_v58 }
 0x2ac   : > { %v7518_v32 = vmax.f32 %v2052_v17, %v7504_v33  ;;  %v7521_v9 = vmax.f32 %v2053_v2, %v7498_v26  ;;  %v2170_v34 = vsel %vm877_vm3, %v2145_v48, -3.4028235e+38  ;;  %v2172_v24 = vsel %vm877_vm3, %v2146_v42, -3.4028235e+38 }
 0x2ad   : > { %v2202_v19 = vmax.f32 %v7169_v6, %v2170_v34  ;;  %v2203_v11 = vmax.f32 %v7172_v49, %v2129_v14  ;;  %v2204_v45 = vmax.f32 %v7208_v52, %v2172_v24  ;;  %v2205_v23 = vmax.f32 %v7221_v56, %v2130_v7 }
 0x2ae   : > { %v2765_v44 = vpack.c.bf16 %v7521_v9, %v7518_v32  ;;  %v2226_v25 = vrot.slane %v7208_v52, 1  ;;  %v2241_v43 = vrot.slane %v7172_v49, 1  ;;  %v2242_v35 = vrot.slane %v7221_v56, 1 }
 0x2af   : > { %v2353_v4 = vrot.slane %v7169_v6, 6  ;;  %v2354_v13 = vrot.slane %v7208_v52, 6  ;;  %v2369_v58 = vrot.slane %v7172_v49, 6  ;;  %v2370_v60 = vrot.slane %v7221_v56, 6 }
 0x2b0   : > { %2874 = vrot.lane.b32.xlu1 %v2765_v44, %s4477_s30  ;;  %v2257_v36 = vsel %vm975_vm2, %v2225_v3, %v2241_v43  ;;  %v2258_v17 = vsel %vm975_vm2, %v2226_v25, %v2242_v35  ;;  %v2273_v2 = vsel %vm975_vm2, %v2241_v43, %v2225_v3  ;;  %v2274_v14 = vsel %vm975_vm2, %v2242_v35, %v2226_v25 }
 0x2b1   : > { %v2299_v7 = vsel %vm1009_vm4, %v2273_v2, -3.4028235e+38  ;;  %v2301_v48 = vsel %vm1009_vm4, %v2274_v14, -3.4028235e+38  ;;  %v2330_v42 = vmax.f32 %v2202_v19, %v2257_v36  ;;  %v2332_v34 = vmax.f32 %v2204_v45, %v2258_v17 }
 0x2b2   : > { %v2331_v24 = vmax.f32 %v2203_v11, %v2299_v7  ;;  %v2333_v44 = vmax.f32 %v2205_v23, %v2301_v48  ;;  %v2385_v28 = vsel %vm1106_vm5, %v2353_v4, %v2369_v58  ;;  %v2386_v31 = vsel %vm1106_vm5, %v2354_v13, %v2370_v60 }
 0x2b3   : > { %v2401_v3 = vsel %vm1106_vm5, %v2369_v58, %v2353_v4  ;;  %v2402_v25 = vsel %vm1106_vm5, %v2370_v60, %v2354_v13  ;;  %v2481_v43 = vrot.slane %v7169_v6, 2  ;;  %v2482_v35 = vrot.slane %v7208_v52, 2 }
 0x2b4   : > { %v2426_v19 = vsel %vm1139_vm7, %v2401_v3, -3.4028235e+38  ;;  %v2428_v11 = vsel %vm1139_vm7, %v2402_v25, -3.4028235e+38  ;;  %v2459_v45 = vmax.f32 %v2331_v24, %v2385_v28  ;;  %v2461_v23 = vmax.f32 %v2333_v44, %v2386_v31  ;;  %v8607_v24 = vld [vmem:[#allocation54_spill] sm:$0xff]  ;;  %v8608_v44 = vld [vmem:[#allocation56_spill] sm:$0xff] }
 0x2b5   : > { %v2458_v36 = vmax.f32 %v2330_v42, %v2426_v19  ;;  %v2460_v17 = vmax.f32 %v2332_v34, %v2428_v11  ;;  %v2497_v2 = vrot.slane %v7172_v49, 2  ;;  %v2498_v4 = vrot.slane %v7221_v56, 2 }
 0x2b6   : > { %v2614_v13 = vmax.f32 %v7090_v62, %v7254_v54  ;;  %v2615_v6 = vmax.f32 %v7070_v47, %v7256_v41  ;;  %v2612_v52 = vmax.f32 %v7022_v22, %v7090_v62  ;;  %v2613_v58 = vmax.f32 %v7027_v0, %v7070_v47 }
 0x2b7   : > { %v2513_v31 = vsel %vm1237_vm6, %v2481_v43, %v2497_v2  ;;  %v2514_v28 = vsel %vm1237_vm6, %v2482_v35, %v2498_v4  ;;  %v2529_v49 = vsel %vm1237_vm6, %v2497_v2, %v2481_v43  ;;  %v2530_v56 = vsel %vm1237_vm6, %v2498_v4, %v2482_v35 }
 0x2b8   : > { %v2555_v60 = vsel %vm1271_vm8, %v2529_v49, -3.4028235e+38  ;;  %v2557_v22 = vsel %vm1271_vm8, %v2530_v56, -3.4028235e+38  ;;  %v7589_v62 = vmax.f32 %v2458_v36, %v2513_v31  ;;  %v7591_v0 = vmax.f32 %v2460_v17, %v2514_v28 }
 0x2b9   : > { %v7593_v47 = vmax.f32 %v2459_v45, %v2555_v60  ;;  %v7595_v14 = vmax.f32 %v2461_v23, %v2557_v22  ;;  %v2644_v7 = vmax.f32 %v2614_v13, %v7450_v61  ;;  %v2645_v48 = vmax.f32 %v2615_v6, %v7443_v39 }
 0x2ba   : > { %v2642_v42 = vmax.f32 %v2612_v52, %v7254_v54  ;;  %v2643_v34 = vmax.f32 %v2613_v58, %v7256_v41  ;;  %v2737_v3 = vpack.c.bf16 %v8608_v44, %v8607_v24  ;;  %v2751_v25 = vpack.c.bf16 %v8606_v57, %v8605_v63 }
 0x2bb   : > { %v2674_v43 = vmax.f32 %v2644_v7, %v7589_v62  ;;  %v2675_v35 = vmax.f32 %v2645_v48, %v7593_v47  ;;  %v2099_v19 = vrot.slane %v7403_v15, 7  ;;  %v2100_v11 = vrot.slane %v7394_v53, 7 }
 0x2bc   : > { %v2672_v45 = vmax.f32 %v2642_v42, %v7450_v61  ;;  %v2673_v23 = vmax.f32 %v2643_v34, %v7443_v39  ;;  %v2115_v36 = vrot.slane %v7406_v46, 7  ;;  %v2116_v17 = vrot.slane %v7397_v30, 7 }
 0x2bd   : > { %v2704_v2 = vmax.f32 %v2674_v43, %v7591_v0  ;;  %v2705_v63 = vmax.f32 %v2675_v35, %v7595_v14  ;;  %v2227_v57 = vrot.slane %v7403_v15, 1  ;;  %v2228_v4 = vrot.slane %v7394_v53, 1  ;;  %v7638_v43 = vpop.permute.xlu0 %2804 }
 0x2be   : > { %v2702_v13 = vmax.f32 %v2672_v45, %v7589_v62  ;;  %v2703_v6 = vmax.f32 %v2673_v23, %v7593_v47  ;;  %v2131_v52 = vsel %vm844_vm1, %v2099_v19, %v2115_v36  ;;  %v2132_v58 = vsel %vm844_vm1, %v2100_v11, %v2116_v17 }
 0x2bf   : > { %v2776_v31 = vpack.c.bf16 %v2705_v63, %v2704_v2  ;;  %v2147_v28 = vsel %vm844_vm1, %v2115_v36, %v2099_v19  ;;  %v2148_v49 = vsel %vm844_vm1, %v2116_v17, %v2100_v11  ;;  %v2207_v56 = vmax.f32 %v7406_v46, %v2131_v52  ;;  %v7653_v63 = vpop.permute.xlu1 %2810 }
 0x2c0   : > { %v2775_v60 = vpack.c.bf16 %v2703_v6, %v2702_v13  ;;  %v2174_v22 = vsel %vm877_vm3, %v2147_v28, -3.4028235e+38  ;;  %v2176_v7 = vsel %vm877_vm3, %v2148_v49, -3.4028235e+38  ;;  %v2209_v48 = vmax.f32 %v7397_v30, %v2132_v58 }
 0x2c1   : > { %2912 = vrot.lane.b32.xlu0 %v2776_v31, %s4478_s6  ;;  %v2206_v42 = vmax.f32 %v7403_v15, %v2174_v22  ;;  %v2208_v34 = vmax.f32 %v7394_v53, %v2176_v7  ;;  %v2243_v24 = vrot.slane %v7406_v46, 1  ;;  %v2244_v44 = vrot.slane %v7397_v30, 1 }
 0x2c2   : > { %2910 = vrot.lane.b32.xlu1 %v2775_v60, %s4478_s6  ;;  %v2355_v35 = vrot.slane %v7403_v15, 6  ;;  %v2356_v19 = vrot.slane %v7394_v53, 6  ;;  %v2371_v11 = vrot.slane %v7406_v46, 6  ;;  %v2372_v45 = vrot.slane %v7397_v30, 6 }
 0x2c3   : > { %v2259_v23 = vsel %vm975_vm2, %v2227_v57, %v2243_v24  ;;  %v2260_v36 = vsel %vm975_vm2, %v2228_v4, %v2244_v44  ;;  %v2275_v17 = vsel %vm975_vm2, %v2243_v24, %v2227_v57  ;;  %v2276_v2 = vsel %vm975_vm2, %v2244_v44, %v2228_v4 }
 0x2c4   : > { %v2303_v13 = vsel %vm1009_vm4, %v2275_v17, -3.4028235e+38  ;;  %v2305_v6 = vsel %vm1009_vm4, %v2276_v2, -3.4028235e+38  ;;  %v2334_v52 = vmax.f32 %v2206_v42, %v2259_v23  ;;  %v2336_v58 = vmax.f32 %v2208_v34, %v2260_v36  ;;  %v7675_v34 = vpop.permute.xlu0 %2806 }
 0x2c5   : > { %2802 = vrot.lane.b32.xlu0 %v2737_v3, %s4476_s26  ;;  %v2335_v31 = vmax.f32 %v2207_v56, %v2303_v13  ;;  %v2337_v28 = vmax.f32 %v2209_v48, %v2305_v6  ;;  %v2387_v57 = vsel %vm1106_vm5, %v2355_v35, %v2371_v11  ;;  %v2388_v4 = vsel %vm1106_vm5, %v2356_v19, %v2372_v45 }
 0x2c6   : > { %2830 = vrot.lane.b32.xlu1 %v2751_v25, %s4476_s26  ;;  %v2403_v49 = vsel %vm1106_vm5, %v2371_v11, %v2355_v35  ;;  %v2404_v60 = vsel %vm1106_vm5, %v2372_v45, %v2356_v19  ;;  %v2483_v22 = vrot.slane %v7403_v15, 2  ;;  %v2484_v3 = vrot.slane %v7394_v53, 2  ;;  %v7677_v25 = vpop.permute.xlu1 %2814 }
 0x2c7   : > { %v2430_v56 = vsel %vm1139_vm7, %v2403_v49, -3.4028235e+38  ;;  %v2432_v7 = vsel %vm1139_vm7, %v2404_v60, -3.4028235e+38  ;;  %v2463_v48 = vmax.f32 %v2335_v31, %v2387_v57  ;;  %v2465_v42 = vmax.f32 %v2337_v28, %v2388_v4 }
 0x2c8   : > { %v2462_v24 = vmax.f32 %v2334_v52, %v2430_v56  ;;  %v2464_v44 = vmax.f32 %v2336_v58, %v2432_v7  ;;  %v2499_v35 = vrot.slane %v7406_v46, 2  ;;  %v2500_v15 = vrot.slane %v7397_v30, 2  ;;  %v7717_v57 = vpop.permute.xlu0 %2808 }
 0x2c9   : > { %v2618_v53 = vmax.f32 %v7450_v61, %v7589_v62  ;;  %v2619_v19 = vmax.f32 %v7443_v39, %v7593_v47  ;;  %v2616_v11 = vmax.f32 %v7254_v54, %v7450_v61  ;;  %v2617_v45 = vmax.f32 %v7256_v41, %v7443_v39 }
 0x2ca   : > { %v2515_v23 = vsel %vm1237_vm6, %v2483_v22, %v2499_v35  ;;  %v2516_v46 = vsel %vm1237_vm6, %v2484_v3, %v2500_v15  ;;  %v2531_v30 = vsel %vm1237_vm6, %v2499_v35, %v2483_v22  ;;  %v2532_v36 = vsel %vm1237_vm6, %v2500_v15, %v2484_v3  ;;  %v7719_v4 = vpop.permute.xlu1 %2852 }
 0x2cb   : > { %v2559_v17 = vsel %vm1271_vm8, %v2531_v30, -3.4028235e+38  ;;  %v2561_v54 = vsel %vm1271_vm8, %v2532_v36, -3.4028235e+38  ;;  %v7701_v61 = vmax.f32 %v2462_v24, %v2515_v23  ;;  %v7703_v41 = vmax.f32 %v2464_v44, %v2516_v46 }
 0x2cc   : > { %v7705_v39 = vmax.f32 %v2463_v48, %v2559_v17  ;;  %v7707_v2 = vmax.f32 %v2465_v42, %v2561_v54  ;;  %v2648_v13 = vmax.f32 %v2618_v53, %v7591_v0  ;;  %v2649_v6 = vmax.f32 %v2619_v19, %v7595_v14  ;;  %v7739_v53 = vpop.permute.xlu0 %2812 }
 0x2cd   : > { %v2646_v52 = vmax.f32 %v2616_v11, %v7589_v62  ;;  %v2647_v58 = vmax.f32 %v2617_v45, %v7593_v47  ;;  %v2752_v31 = vpack.c.bf16 %v6133_v38, %v6124_v59  ;;  %v1994_v28 = vmax.f32 %v7189_v8, %v7350_v29 }
 0x2ce   : > { %v2678_v49 = vmax.f32 %v2648_v13, %v7701_v61  ;;  %v2679_v60 = vmax.f32 %v2649_v6, %v7705_v39  ;;  %v1995_v22 = vmax.f32 %v7191_v40, %v7354_v55  ;;  %v2101_v3 = vrot.slane %v7518_v32, 7  ;;  %v7748_v54 = vpop.permute.xlu1 %2854 }
 0x2cf   : > { %v2676_v56 = vmax.f32 %v2646_v52, %v7591_v0  ;;  %v2677_v59 = vmax.f32 %v2647_v58, %v7595_v14  ;;  %v2024_v38 = vmax.f32 %v1994_v28, %v7360_v20  ;;  %v2117_v8 = vrot.slane %v7521_v9, 7 }
 0x2d0   : > { %v2708_v7 = vmax.f32 %v2678_v49, %v7703_v41  ;;  %v2709_v48 = vmax.f32 %v2679_v60, %v7707_v2  ;;  %v2025_v42 = vmax.f32 %v1995_v22, %v7362_v1  ;;  %v2229_v24 = vrot.slane %v7518_v32, 1 }
 0x2d1   : > { %v2706_v40 = vmax.f32 %v2676_v56, %v7701_v61  ;;  %v2707_v44 = vmax.f32 %v2677_v59, %v7705_v39  ;;  %v2054_v35 = vmax.f32 %v2024_v38, %v7504_v33  ;;  %v2133_v15 = vsel %vm844_vm1, %v2101_v3, %v2117_v8 }
 0x2d2   : > { %v2778_v19 = vpack.c.bf16 %v2709_v48, %v2708_v7  ;;  %v2055_v11 = vmax.f32 %v2025_v42, %v7498_v26  ;;  %v2149_v45 = vsel %vm844_vm1, %v2117_v8, %v2101_v3  ;;  %v2211_v23 = vmax.f32 %v7521_v9, %v2133_v15  ;;  %v7759_v3 = vpop.permute.xlu0 %2816 }
 0x2d3   : > { %v2777_v46 = vpack.c.bf16 %v2707_v44, %v2706_v40  ;;  %v2084_v30 = vmax.f32 %v2054_v35, -3.4028235e+38  ;;  %v2178_v36 = vsel %vm877_vm3, %v2149_v45, -3.4028235e+38  ;;  %v2245_v17 = vrot.slane %v7521_v9, 1 }
 0x2d4   : > { %2916 = vrot.lane.b32.xlu0 %v2778_v19, %s4478_s6  ;;  %v2085_v13 = vmax.f32 %v2055_v11, -3.4028235e+38  ;;  %v2210_v6 = vmax.f32 %v7518_v32, %v2178_v36  ;;  %v2357_v52 = vrot.slane %v7518_v32, 6  ;;  %v2373_v58 = vrot.slane %v7521_v9, 6 }
 0x2d5   : > { %2914 = vrot.lane.b32.xlu1 %v2777_v46, %s4478_s6  ;;  %v2102_v28 = vrot.slane %v2084_v30, 7  ;;  %v2230_v49 = vrot.slane %v2084_v30, 1  ;;  %v2261_v60 = vsel %vm975_vm2, %v2229_v24, %v2245_v17  ;;  %v2277_v22 = vsel %vm975_vm2, %v2245_v17, %v2229_v24  ;;  %v7781_v46 = vpop.permute.xlu1 %2818 }
 0x2d6   : > { %v2766_v56 = vpack.c.bf16 %v2085_v13, %v2084_v30  ;;  %v2118_v59 = vrot.slane %v2085_v13, 7  ;;  %v2246_v38 = vrot.slane %v2085_v13, 1  ;;  %v2307_v8 = vsel %vm1009_vm4, %v2277_v22, -3.4028235e+38 }
 0x2d7   : > { %v2338_v7 = vmax.f32 %v2210_v6, %v2261_v60  ;;  %v2339_v48 = vmax.f32 %v2211_v23, %v2307_v8  ;;  %v2358_v42 = vrot.slane %v2084_v30, 6  ;;  %v2374_v40 = vrot.slane %v2085_v13, 6  ;;  %v7779_v23 = vpop.permute.xlu0 %2856 }
 0x2d8   : > { %2848 = vrot.lane.b32.xlu0 %v2752_v31, %s4477_s30  ;;  %v2134_v44 = vsel %vm844_vm1, %v2102_v28, %v2118_v59  ;;  %v2150_v24 = vsel %vm844_vm1, %v2118_v59, %v2102_v28  ;;  %v2262_v35 = vsel %vm975_vm2, %v2230_v49, %v2246_v38  ;;  %v2278_v15 = vsel %vm975_vm2, %v2246_v38, %v2230_v49 }
 0x2d9   : > { %2876 = vrot.lane.b32.xlu1 %v2766_v56, %s4477_s30  ;;  %v2180_v19 = vsel %vm877_vm3, %v2150_v24, -3.4028235e+38  ;;  %v2213_v11 = vmax.f32 %v2085_v13, %v2134_v44  ;;  %v2309_v31 = vsel %vm1009_vm4, %v2278_v15, -3.4028235e+38  ;;  %v2389_v45 = vsel %vm1106_vm5, %v2357_v52, %v2373_v58 }
 0x2da   : > { %v2212_v36 = vmax.f32 %v2084_v30, %v2180_v19  ;;  %v2390_v17 = vsel %vm1106_vm5, %v2358_v42, %v2374_v40  ;;  %v2405_v6 = vsel %vm1106_vm5, %v2373_v58, %v2357_v52  ;;  %v2406_v28 = vsel %vm1106_vm5, %v2374_v40, %v2358_v42 }
 0x2db   : > { %v2341_v49 = vmax.f32 %v2213_v11, %v2309_v31  ;;  %v2434_v60 = vsel %vm1139_vm7, %v2405_v6, -3.4028235e+38  ;;  %v2436_v22 = vsel %vm1139_vm7, %v2406_v28, -3.4028235e+38  ;;  %v2467_v56 = vmax.f32 %v2339_v48, %v2389_v45  ;;  %v7811_v48 = vpop.permute.xlu0 %2820 }
 0x2dc   : > { %v2340_v59 = vmax.f32 %v2212_v36, %v2262_v35  ;;  %v2466_v38 = vmax.f32 %v2338_v7, %v2434_v60  ;;  %v2485_v8 = vrot.slane %v7518_v32, 2  ;;  %v2486_v44 = vrot.slane %v2084_v30, 2  ;;  %v7813_v35 = vpop.permute.xlu1 %2858 }
 0x2dd   : > { %v2469_v24 = vmax.f32 %v2341_v49, %v2390_v17  ;;  %v2501_v15 = vrot.slane %v7521_v9, 2  ;;  %v2502_v52 = vrot.slane %v2085_v13, 2  ;;  %v2622_v58 = vmax.f32 %v7591_v0, %v7701_v61 }
 0x2de   : > { %v2468_v42 = vmax.f32 %v2340_v59, %v2436_v22  ;;  %v2623_v40 = vmax.f32 %v7595_v14, %v7705_v39  ;;  %v2620_v19 = vmax.f32 %v7589_v62, %v7591_v0  ;;  %v2621_v7 = vmax.f32 %v7593_v47, %v7595_v14 }
 0x2df   : > { %v2517_v32 = vsel %vm1237_vm6, %v2485_v8, %v2501_v15  ;;  %v2518_v9 = vsel %vm1237_vm6, %v2486_v44, %v2502_v52  ;;  %v2533_v30 = vsel %vm1237_vm6, %v2501_v15, %v2485_v8  ;;  %v2534_v13 = vsel %vm1237_vm6, %v2502_v52, %v2486_v44  ;;  %v7846_v52 = vpop.permute.xlu0 %2860 }
 0x2e0   : > { %v2563_v62 = vsel %vm1271_vm8, %v2533_v30, -3.4028235e+38  ;;  %v2565_v0 = vsel %vm1271_vm8, %v2534_v13, -3.4028235e+38  ;;  %v7819_v47 = vmax.f32 %v2466_v38, %v2517_v32  ;;  %v7821_v14 = vmax.f32 %v2468_v42, %v2518_v9 }
 0x2e1   : > { %v7823_v11 = vmax.f32 %v2467_v56, %v2563_v62  ;;  %v7825_v31 = vmax.f32 %v2469_v24, %v2565_v0  ;;  %v2652_v45 = vmax.f32 %v2622_v58, %v7703_v41  ;;  %v2653_v36 = vmax.f32 %v2623_v40, %v7707_v2 }
 0x2e2   : > { %v2650_v17 = vmax.f32 %v2620_v19, %v7701_v61  ;;  %v2651_v6 = vmax.f32 %v2621_v7, %v7705_v39  ;;  %v1996_v28 = vmax.f32 %v7350_v29, %v7360_v20  ;;  %v1997_v22 = vmax.f32 %v7354_v55, %v7362_v1  ;;  %v7848_v55 = vpop.permute.xlu1 %2822 }
 0x2e3   : > { %v2682_v49 = vmax.f32 %v2652_v45, %v7819_v47  ;;  %v2683_v60 = vmax.f32 %v2653_v36, %v7823_v11  ;;  %v2600_v56 = vmax.f32 %v6900_v21, -3.4028235e+38  ;;  %v2601_v44 = vmax.f32 %v6902_v10, -3.4028235e+38 }
 0x2e4   : > { %v2680_v59 = vmax.f32 %v2650_v17, %v7703_v41  ;;  %v2681_v38 = vmax.f32 %v2651_v6, %v7707_v2  ;;  %v2026_v8 = vmax.f32 %v1996_v28, %v7504_v33  ;;  %v2027_v20 = vmax.f32 %v1997_v22, %v7498_v26  ;;  %v7865_v6 = vpop.permute.xlu0 %2824 }
 0x2e5   : > { %v2712_v24 = vmax.f32 %v2682_v49, %v7821_v14  ;;  %v2713_v29 = vmax.f32 %v2683_v60, %v7825_v31  ;;  %v2630_v15 = vmax.f32 %v2600_v56, %v6904_v18  ;;  %v2631_v33 = vmax.f32 %v2601_v44, %v6906_v12 }
 0x2e6   : > { %v2710_v21 = vmax.f32 %v2680_v59, %v7819_v47  ;;  %v2711_v1 = vmax.f32 %v2681_v38, %v7823_v11  ;;  %v2056_v58 = vmax.f32 %v2026_v8, -3.4028235e+38  ;;  %v2057_v42 = vmax.f32 %v2027_v20, -3.4028235e+38 }
 0x2e7   : > { %v2780_v10 = vpack.c.bf16 %v2713_v29, %v2712_v24  ;;  %v2660_v40 = vmax.f32 %v2630_v15, %v6908_v27  ;;  %v2624_v26 = vmax.f32 %v7701_v61, %v7703_v41  ;;  %v2753_v7 = vpack.c.bf16 %v6645_v50, %v6637_v37  ;;  %v8609_v61 = vld [vmem:[#allocation49_spill] sm:$0xff]  ;;  %v7867_v37 = vpop.permute.xlu1 %2862 }
 0x2e8   : > { %v2779_v19 = vpack.c.bf16 %v2711_v1, %v2710_v21  ;;  %v2086_v18 = vmax.f32 %v2056_v58, -3.4028235e+38  ;;  %v2087_v32 = vmax.f32 %v2057_v42, -3.4028235e+38  ;;  %v2661_v9 = vmax.f32 %v2631_v33, %v6910_v51  ;;  %v8610_v42 = vld [vmem:[#allocation48_spill] sm:$0xff] }
 0x2e9   : > { %2920 = vrot.lane.b32.xlu0 %v2780_v10, %s4478_s6  ;;  %v2625_v12 = vmax.f32 %v7705_v39, %v7707_v2  ;;  %v2654_v13 = vmax.f32 %v2624_v26, %v7819_v47  ;;  %v2690_v62 = vmax.f32 %v2660_v40, %v8609_v61  ;;  %v2626_v39 = vmax.f32 %v7703_v41, %v7819_v47 }
 0x2ea   : > { %2918 = vrot.lane.b32.xlu1 %v2779_v19, %s4478_s6  ;;  %v2103_v30 = vrot.slane %v2086_v18, 7  ;;  %v2231_v27 = vrot.slane %v2086_v18, 1  ;;  %v2119_v0 = vrot.slane %v2087_v32, 7  ;;  %v2247_v45 = vrot.slane %v2087_v32, 1 }
 0x2eb   : > { %v2359_v36 = vrot.slane %v2086_v18, 6  ;;  %v2375_v17 = vrot.slane %v2087_v32, 6  ;;  %v2767_v50 = vpack.c.bf16 %v2087_v32, %v2086_v18  ;;  %v2487_v51 = vrot.slane %v2086_v18, 2  ;;  %v7901_v19 = vpop.permute.xlu1 %2826 }
 0x2ec   : > { %v2503_v28 = vrot.slane %v2087_v32, 2  ;;  %v2768_v49 = vpack.c.bf16 %v2661_v9, %v2660_v40  ;;  %v2135_v60 = vsel %vm844_vm1, %v2103_v30, %v2119_v0  ;;  %v2151_v22 = vsel %vm844_vm1, %v2119_v0, %v2103_v30 }
 0x2ed   : > { %2850 = vrot.lane.b32.xlu0 %v2753_v7, %s4477_s30  ;;  %v2279_v56 = vsel %vm975_vm2, %v2247_v45, %v2231_v27  ;;  %v2182_v59 = vsel %vm877_vm3, %v2151_v22, -3.4028235e+38  ;;  %v2215_v38 = vmax.f32 %v2087_v32, %v2135_v60  ;;  %v2655_v8 = vmax.f32 %v2625_v12, %v7823_v11 }
 0x2ee   : > { %2878 = vrot.lane.b32.xlu1 %v2767_v50, %s4477_s30  ;;  %v2311_v41 = vsel %vm1009_vm4, %v2279_v56, -3.4028235e+38  ;;  %v2214_v44 = vmax.f32 %v2086_v18, %v2182_v59  ;;  %v2407_v24 = vsel %vm1106_vm5, %v2375_v17, %v2359_v36  ;;  %v2535_v29 = vsel %vm1237_vm6, %v2503_v28, %v2487_v51  ;;  %v2901_v18 = vpop.permute.xlu0 %2900  ;;  %v8614_v59 = vld [vmem:[#allocation11_spill] sm:$0xff] }
 0x2ef   : > { %v2684_v20 = vmax.f32 %v2654_v13, %v7821_v14  ;;  %v2263_v15 = vsel %vm975_vm2, %v2231_v27, %v2247_v45  ;;  %v2343_v21 = vmax.f32 %v2215_v38, %v2311_v41  ;;  %v2391_v1 = vsel %vm1106_vm5, %v2359_v36, %v2375_v17  ;;  %v8615_v41 = vld [vmem:[#allocation14_spill] sm:$0xff] }
 0x2f0   : > { %v2438_v58 = vsel %vm1139_vm7, %v2407_v24, -3.4028235e+38  ;;  %v2342_v33 = vmax.f32 %v2214_v44, %v2263_v15  ;;  %v2567_v10 = vsel %vm1271_vm8, %v2535_v29, -3.4028235e+38  ;;  %v2691_v40 = vmax.f32 %v2661_v9, %v8610_v42 }
 0x2f1   : > { %2896 = vrot.lane.b32.xlu0 %v2768_v49, %s4478_s6  ;;  %v2627_v26 = vmax.f32 %v7707_v2, %v7823_v11  ;;  %v2471_v7 = vmax.f32 %v2343_v21, %v2391_v1  ;;  %v2685_v32 = vmax.f32 %v2655_v8, %v7825_v31  ;;  %v2656_v12 = vmax.f32 %v2626_v39, %v7821_v14  ;;  %v8616_v8 = vld [vmem:[#allocation18_spill] sm:$0xff] }
 0x2f2   : > { %v2629_v30 = vmax.f32 %v7823_v11, %v7825_v31  ;;  %v2470_v27 = vmax.f32 %v2342_v33, %v2438_v58  ;;  %v2769_v13 = vpack.c.bf16 %v2691_v40, %v2690_v62  ;;  %v2628_v9 = vmax.f32 %v7819_v47, %v7821_v14  ;;  %v2865_v49 = vpop.permute.xlu0 %2864  ;;  %v2903_v62 = vpop.permute.xlu1 %2902  ;;  %v8612_v14 = vld [vmem:[#allocation12_spill] sm:$0xff] }
 0x2f3   : > { %v2657_v16 = vmax.f32 %v2627_v26, %v7825_v31  ;;  %v2519_v2 = vsel %vm1237_vm6, %v2487_v51, %v2503_v28  ;;  %v2599_v61 = vmax.f32 %v2471_v7, %v2567_v10  ;;  %v2722_v51 = vpack.c.bf16 %v8612_v14, %v8611_v5  ;;  %v8613_v28 = vld [vmem:[#allocation9_spill] sm:$0xff] }
 0x2f4   : > { %v2598_v0 = vmax.f32 %v2470_v27, %v2519_v2  ;;  %v2723_v38 = vpack.c.bf16 %v8614_v59, %v8613_v28  ;;  %v2724_v44 = vpack.c.bf16 %v8616_v8, %v8615_v41  ;;  %v8617_v7 = vld [vmem:[#allocation13_spill] sm:$0xff]  ;;  %v8619_v27 = vld [vmem:[#allocation36_spill] sm:$0xff] }
 0x2f5   : > { %2898 = vrot.lane.b32.xlu0 %v2769_v13, %s4478_s6  ;;  %v2715_v45 = vmax.f32 %v2685_v32, %v2599_v61  ;;  %v2687_v36 = vmax.f32 %v2657_v16, %v2599_v61  ;;  %v2659_v17 = vmax.f32 %v2629_v30, %v2599_v61  ;;  %v2937_v15 = vsel %vm2928_vm9, %v2722_v51, %v7638_v43  ;;  %v8620_v13 = vld [vmem:[#allocation38_spill] sm:$0xff] }
 0x2f6   : > { %v2714_v50 = vmax.f32 %v2684_v20, %v2598_v0  ;;  %v2686_v39 = vmax.f32 %v2656_v12, %v2598_v0  ;;  %v2658_v11 = vmax.f32 %v2628_v9, %v2598_v0  ;;  %v2905_v21 = vpop.permute.xlu0 %2904  ;;  %v2867_v1 = vpop.permute.xlu1 %2866  ;;  %v2940_v58 = vsel %vm2928_vm9, %v2723_v38, %v7675_v34  ;;  %v8621_v0 = vld [vmem:[#allocation20_spill] sm:$0xff] }
 0x2f7   : > { %v2717_v60 = vmax.f32 %v2687_v36, -3.4028235e+38  ;;  %v2689_v47 = vmax.f32 %v2659_v17, -3.4028235e+38  ;;  %v2943_v33 = vsel %vm2928_vm9, %v2724_v44, %v7717_v57  ;;  %v2982_v10 = vsel %vm375_vm0, %v2937_v15, %v7719_v4  ;;  %v8618_v4 = vld [vmem:[#allocation15_spill] sm:$0xff] }
 0x2f8   : > { %v2781_v31 = vpack.c.bf16 %v2715_v45, %v2714_v50  ;;  %v2716_v22 = vmax.f32 %v2686_v39, -3.4028235e+38  ;;  %v2688_v56 = vmax.f32 %v2658_v11, -3.4028235e+38  ;;  %v2984_v42 = vsel %vm375_vm0, %v2940_v58, %v7748_v54  ;;  %v8622_v45 = vld [vmem:[#allocation22_spill] sm:$0xff] }
 0x2f9   : > { %v2719_v20 = vmax.f32 %v2689_v47, -3.4028235e+38  ;;  %v2986_v43 = vsel %vm375_vm0, %v2943_v33, %v7779_v23  ;;  %v3017_v40 = vsel %vm3009_vm10, %v2982_v10, %v2901_v18  ;;  %v3020_v34 = vsel %vm3009_vm10, %v2984_v42, %v2903_v62  ;;  %v8626_v47 = vld [vmem:[#allocation21_spill] sm:$0xff] }
 0x2fa   : > { %2922 = vrot.lane.b32.xlu1 %v2781_v31, %s4478_s6  ;;  %v2782_v24 = vpack.c.bf16 %v2717_v60, %v2716_v22  ;;  %v2718_v29 = vmax.f32 %v2688_v56, -3.4028235e+38  ;;  %4043 = vmatprep.mubr.bf16.mxu1 %v3017_v40  ;;  %v3023_v26 = vsel %vm3009_vm10, %v2986_v43, %v2905_v21  ;;  %v2725_v32 = vpack.c.bf16 %v8618_v4, %v8617_v7  ;;  %v2869_v30 = vpop.permute.xlu0 %2868  ;;  %v8623_v60 = vld [vmem:[#allocation26_spill] sm:$0xff]  ;;  %v8624_v31 = vld [vmem:[#allocation28_spill] sm:$0xff]  ;;  %v8625_v56 = vld [vmem:[#allocation19_spill] sm:$0xff] }
 0x2fb   : > { %4044 = vmatmul.mubr.bf16.vlgmr.msra.gmra.mxu1 %v3020_v34  ;;  %v2732_v16 = vpack.c.bf16 %v8620_v13, %v8619_v27  ;;  %v2726_v36 = vpack.c.bf16 %v8622_v45, %v8621_v0  ;;  %v2728_v22 = vpack.c.bf16 %v8624_v31, %v8623_v60  ;;  %v2727_v5 = vpack.c.bf16 %v8626_v47, %v8625_v56  ;;  %v8640_v56 = vld [vmem:[#allocation45_spill] sm:$0xff] }
 0x2fc   : > { %v2783_v57 = vpack.c.bf16 %v2719_v20, %v2718_v29  ;;  %4047 = vmatprep.mubr.bf16.mxu1 %v3023_v26  ;;  %v2946_v54 = vsel %vm2928_vm9, %v2725_v32, %v7653_v63  ;;  %v8629_v20 = vld [vmem:[#allocation23_spill] sm:$0xff]  ;;  %v8631_v26 = vld [vmem:[#allocation29_spill] sm:$0xff] }
 0x2fd   : > { %v2907_v12 = vpop.permute.xlu1 %2906  ;;  %v2988_v23 = vsel %vm375_vm0, %v2946_v54, %v7813_v35  ;;  %v2967_v9 = vsel %vm2928_vm9, %v2732_v16, %v7865_v6  ;;  %v2949_v63 = vsel %vm2928_vm9, %v2726_v36, %v7739_v53  ;;  %v2955_v53 = vsel %vm2928_vm9, %v2728_v22, %v7759_v3  ;;  %v8628_v3 = vld [vmem:[#allocation34_spill] sm:$0xff] }
 0x2fe   : > { %2924 = vrot.lane.b32.xlu1 %v2782_v24, %s4478_s6  ;;  %v3026_v18 = vsel %vm3009_vm10, %v2988_v23, %v2907_v12  ;;  %v2990_v35 = vsel %vm375_vm0, %v2949_v63, %v7846_v52  ;;  %v2952_v52 = vsel %vm2928_vm9, %v2727_v5, %v7677_v25  ;;  %v2994_v14 = vsel %vm375_vm0, %v2955_v53, %v2865_v49  ;;  %v8627_v24 = vld [vmem:[#allocation30_spill] sm:$0xff]  ;;  %v8630_v25 = vld [vmem:[#allocation27_spill] sm:$0xff] }
 0x2ff   : > { %v2992_v28 = vsel %vm375_vm0, %v2952_v52, %v7867_v37  ;;  %v2730_v29 = vpack.c.bf16 %v8628_v3, %v8627_v24  ;;  %v2729_v15 = vpack.c.bf16 %v8630_v25, %v8629_v20  ;;  %v8633_v23 = vld [vmem:[#allocation6_spill] sm:$0xff] }
 0x300   : > { %v8639_v22 = vld [vmem:[#allocation42_spill] sm:$0xff] }
 0x301   : > { %v2961_v49 = vsel %vm2928_vm9, %v2730_v29, %v7811_v48  ;;  %v2958_v37 = vsel %vm2928_vm9, %v2729_v15, %v7781_v46  ;;  %v2734_v47 = vpack.c.bf16 %v8640_v56, %v8639_v22 }
 0x302   : > { %2926 = vrot.lane.b32.xlu1 %v2783_v57, %s4478_s6  ;;  %v2998_v21 = vsel %vm375_vm0, %v2961_v49, %v2869_v30  ;;  %v2996_v33 = vsel %vm375_vm0, %v2958_v37, %v2867_v1  ;;  %v8632_v57 = vld [vmem:[#allocation31_spill] sm:$0xff] }
 0x303   : > { %4048 = vmatmul.mubr.bf16.gmra.mxu1 %v3026_v18  ;;  %v2731_v48 = vpack.c.bf16 %v8632_v57, %v8631_v26  ;;  %v8634_v18 = vld [vmem:[#allocation8_spill] sm:$0xff] }
 0x304   : > { %v2720_v30 = vpack.c.bf16 %v8634_v18, %v8633_v23 }
 0x305   : > { %v2964_v46 = vsel %vm2928_vm9, %v2731_v48, %v7848_v55  ;;  %v8635_v55 = vld [vmem:[#allocation5_spill] sm:$0xff] }
 0x30e   : > { %v2873_v2 = vpop.permute.xlu0 %2872 }
 0x30f   : > { %v3002_v61 = vsel %vm375_vm0, %v2967_v9, %v2873_v2  ;;  %v2871_v39 = vpop.permute.xlu1 %2870  ;;  %v8636_v9 = vld [vmem:[#allocation7_spill] sm:$0xff] }
 0x310   : > { %v3000_v4 = vsel %vm375_vm0, %v2964_v46, %v2871_v39  ;;  %v2721_v2 = vpack.c.bf16 %v8636_v9, %v8635_v55 }
 0x313   : > { %v2829_v11 = vpop.permute.xlu1 %2828 }
 0x314   : > { %v2973_v53 = vsel %vm2928_vm9, %v2734_v47, %v2829_v11  ;;  %v8017_v11 = vld [vmem:[%s8257_s4] ss:$0 sm:$0xff] }
 0x318   : > { %v2909_v17 = vpop.permute.xlu0 %2908 }
 0x319   : > { %v3029_v50 = vsel %vm3009_vm10, %v2990_v35, %v2909_v17  ;;  %v8637_v17 = vld [vmem:[#allocation35_spill] sm:$0xff] }
 0x31a   : > { %4051 = vmatprep.mubr.bf16.mxu1 %v3029_v50  ;;  %v8638_v50 = vld [vmem:[#allocation37_spill] sm:$0xff] }
 0x31b   : > { %v2733_v39 = vpack.c.bf16 %v8638_v50, %v8637_v17 }
 0x31c   : > { %v2801_v62 = vpop.permute.xlu0 %2800 }
 0x31d   : > { %v2931_v27 = vsel %vm2928_vm9, %v2720_v30, %v2801_v62  ;;  %v2970_v62 = vsel %vm2928_vm9, %v2733_v39, %v7901_v19 }
 0x322   : > { %v2875_v6 = vpop.permute.xlu1 %2874 }
 0x323   : > { %v3004_v60 = vsel %vm375_vm0, %v2970_v62, %v2875_v6 }
 0x333   : > { %v2913_v51 = vpop.permute.xlu0 %2912 }
 0x334   : > { %v2911_v59 = vpop.permute.xlu1 %2910  ;;  %v3035_v38 = vsel %vm3009_vm10, %v2994_v14, %v2913_v51  ;;  %v8641_v51 = vld [vmem:[#allocation40_spill] sm:$0xff] }
 0x335   : > { %v3032_v41 = vsel %vm3009_vm10, %v2992_v28, %v2911_v59  ;;  %v8642_v28 = vld [vmem:[#allocation44_spill] sm:$0xff] }
 0x336   : > { %4052 = vmatmul.mubr.bf16.gmra.mxu1 %v3032_v41  ;;  %v2735_v59 = vpack.c.bf16 %v8642_v28, %v8641_v51 }
 0x337   : > { %4055 = vmatprep.mubr.bf16.mxu1 %v3035_v38  ;;  %v2803_v8 = vpop.permute.xlu0 %2802 }
 0x338   : > { %v2831_v44 = vpop.permute.xlu1 %2830 }
 0x339   : > { %v2976_v19 = vsel %vm2928_vm9, %v2735_v59, %v2831_v44 }
 0x346   : > { %v2917_v58 = vpop.permute.xlu0 %2916 }
 0x347   : > { %v2915_v10 = vpop.permute.xlu1 %2914  ;;  %v3041_v42 = vsel %vm3009_vm10, %v2998_v21, %v2917_v58 }
 0x348   : > { %v3038_v43 = vsel %vm3009_vm10, %v2996_v33, %v2915_v10 }
 0x349   : > { %4056 = vmatmul.mubr.bf16.gmra.mxu1 %v3038_v43 }
 0x34a   : > { %4059 = vmatprep.mubr.bf16.mxu1 %v3041_v42  ;;  %v2849_v40 = vpop.permute.xlu0 %2848 }
 0x34b   : > { %v2877_v34 = vpop.permute.xlu1 %2876  ;;  %v2978_v13 = vsel %vm375_vm0, %v2931_v27, %v2849_v40 }
 0x34c   : > { %v3006_v52 = vsel %vm375_vm0, %v2973_v53, %v2877_v34 }
 0x35b   : > { %v2921_v7 = vpop.permute.xlu0 %2920 }
 0x35c   : > { %v2919_v32 = vpop.permute.xlu1 %2918  ;;  %v3047_v1 = vsel %vm3009_vm10, %v3002_v61, %v2921_v7  ;;  %v2934_v61 = vsel %vm2928_vm9, %v2721_v2, %v2803_v8 }
 0x35d   : > { %v3044_v12 = vsel %vm3009_vm10, %v3000_v4, %v2919_v32 }
 0x35e   : > { %4060 = vmatmul.mubr.bf16.gmra.mxu1 %v3044_v12 }
 0x35f   : > { %4063 = vmatprep.mubr.bf16.mxu1 %v3047_v1  ;;  %v2851_v54 = vpop.permute.xlu0 %2850 }
 0x360   : > { %v2980_v45 = vsel %vm375_vm0, %v2934_v61, %v2851_v54  ;;  %v2879_v36 = vpop.permute.xlu1 %2878 }
 0x361   : > { %v3008_v6 = vsel %vm375_vm0, %v2976_v19, %v2879_v36 }
 0x363   : > { %v2897_v16 = vpop.permute.xlu0 %2896 }
 0x364   : > { %v3011_v0 = vsel %vm3009_vm10, %v2978_v13, %v2897_v16 }
 0x365   : > { %4039 = vmatprep.mubr.bf16.mxu0 %v3011_v0 }
 0x367   : > { %v2899_v63 = vpop.permute.xlu0 %2898 }
 0x368   : > { %v3014_v35 = vsel %vm3009_vm10, %v2980_v45, %v2899_v63 }
 0x369   : > { %4040 = vmatmul.mubr.bf16.vlgmr.msra.gmra.mxu0 %v3014_v35 }
 0x36c   : > { %v2923_v31 = vpop.permute.xlu1 %2922 }
 0x36d   : > { %v3050_v5 = vsel %vm3009_vm10, %v3004_v60, %v2923_v31 }
 0x36e   : > { %4064 = vmatmul.mubr.bf16.gmra.mxu1 %v3050_v5 }
 0x370   : > { %v2925_v14 = vpop.permute.xlu1 %2924 }
 0x371   : > { %v3053_v38 = vsel %vm3009_vm10, %v3006_v52, %v2925_v14 }
 0x372   : > { %4067 = vmatprep.mubr.bf16.mxu1 %v3053_v38 }
 0x374   : > { %v2927_v41 = vpop.permute.xlu1 %2926 }
 0x375   : > { %v3056_v8 = vsel %vm3009_vm10, %v3008_v6, %v2927_v41 }
 0x376   : > { %4068 = vmatmul.mubr.bf16.gmra.mxu1 %v3056_v8 }
 0x3bb   : > { %v4045_v24 = vpop.f32.mrf.mxu1 }
 0x3bc   : > { %v3188_v3 = vadd.f32 %v4045_v24, %v8017_v11 }
 0x3bd   : > { %v3179_v29 = vpop.f32.mrf.mxu1 }
 0x3be   : > { %v3842_v20 = vmul.f32 -1.442695, %v3188_v3  ;;  %v3180_v25 = vadd.f32 %v8017_v11, %v3179_v29 }
 0x3bf   : > { %v4046_v15 = vpop.f32.mrf.mxu1 }
 0x3c0   : > { %4286 = vpow2.f32 %v3842_v20  ;;  %v3840_v44 = vmul.f32 -1.442695, %v3180_v25  ;;  %v3191_v49 = vadd.f32 %v4046_v15, %v8017_v11 }
 0x3c1   : > { %v3182_v37 = vpop.f32.mrf.mxu1 }
 0x3c2   : > { %4288 = vpow2.f32 %v3840_v44  ;;  %v3843_v21 = vmul.f32 -1.442695, %v3191_v49  ;;  %v3183_v58 = vadd.f32 %v8017_v11, %v3182_v37 }
 0x3c3   : > { %v4049_v33 = vpop.f32.mrf.mxu1 }
 0x3c4   : > { %4290 = vpow2.f32 %v3843_v21  ;;  %v3841_v10 = vmul.f32 -1.442695, %v3183_v58  ;;  %v3204_v42 = vadd.f32 %v4049_v33, %v8017_v11 }
 0x3c5   : > { %v3195_v43 = vpop.f32.mrf.mxu1 }
 0x3c6   : > { %4292 = vpow2.f32 %v3841_v10  ;;  %v3846_v40 = vmul.f32 -1.442695, %v3204_v42  ;;  %v3196_v34 = vadd.f32 %v8017_v11, %v3195_v43 }
 0x3c7   : > { %v4050_v26 = vpop.f32.mrf.mxu1 }
 0x3c8   : > { %4294 = vpow2.f32 %v3846_v40  ;;  %v3844_v57 = vmul.f32 -1.442695, %v3196_v34  ;;  %v3207_v48 = vadd.f32 %v4050_v26, %v8017_v11 }
 0x3c9   : > { %v3198_v46 = vpop.f32.mrf.mxu1 }
 0x3ca   : > { %4296 = vpow2.f32 %v3844_v57  ;;  %v3847_v7 = vmul.f32 -1.442695, %v3207_v48  ;;  %v3199_v4 = vadd.f32 %v8017_v11, %v3198_v46 }
 0x3cc   : > { %4298 = vpow2.f32 %v3847_v7  ;;  %v3845_v32 = vmul.f32 -1.442695, %v3199_v4 }
 0x3cd   : > { %v4287_v1 = vpop.eup %4286 }
 0x3ce   : > { %v3392_v12 = vadd.f32 1.0, %v4287_v1  ;;  %4300 = vpow2.f32 %v3845_v32 }
 0x3cf   : > { %v4289_v54 = vpop.eup %4288 }
 0x3d0   : > { %4302 = vrcp.f32 %v3392_v12  ;;  %v3390_v23 = vadd.f32 1.0, %v4289_v54 }
 0x3d1   : > { %v4291_v18 = vpop.eup %4290 }
 0x3d2   : > { %4304 = vrcp.f32 %v3390_v23  ;;  %v3393_v30 = vadd.f32 1.0, %v4291_v18 }
 0x3d3   : > { %v4293_v27 = vpop.eup %4292 }
 0x3d4   : > { %4306 = vrcp.f32 %v3393_v30  ;;  %v3391_v13 = vadd.f32 1.0, %v4293_v27 }
 0x3d5   : > { %v4295_v16 = vpop.eup %4294 }
 0x3d6   : > { %4308 = vrcp.f32 %v3391_v13  ;;  %v3396_v55 = vadd.f32 1.0, %v4295_v16 }
 0x3d7   : > { %v4297_v9 = vpop.eup %4296 }
 0x3d8   : > { %4310 = vrcp.f32 %v3396_v55  ;;  %v3394_v2 = vadd.f32 1.0, %v4297_v9 }
 0x3d9   : > { %v4299_v0 = vpop.eup %4298 }
 0x3da   : > { %4312 = vrcp.f32 %v3394_v2  ;;  %v3397_v61 = vadd.f32 1.0, %v4299_v0 }
 0x3db   : > { %v4301_v45 = vpop.eup %4300 }
 0x3dc   : > { %4314 = vrcp.f32 %v3397_v61  ;;  %v3395_v36 = vadd.f32 1.0, %v4301_v45 }
 0x3dd   : > { %v4303_v63 = vpop.eup %4302 }
 0x3de   : > { %v3488_v35 = vmul.f32 %v4303_v63, %v3188_v3  ;;  %4316 = vrcp.f32 %v3395_v36 }
 0x3df   : > { %v4305_v17 = vpop.eup %4304 }
 0x3e0   : > { %v3912_v50 = vpack.c.bf16 %v3488_v35, %v3488_v35  ;;  %v3486_v39 = vmul.f32 %v4305_v17, %v3180_v25 }
 0x3e1   : > { %v4307_v62 = vpop.eup %4306 }
 0x3e2   : > { %3649 = vst.msk [vmem:[%s8030_s12 + $0x18] sm:$0xf] %vm3642_vm11, %v3912_v50  ;;  %v3910_v60 = vpack.c.bf16 %v3486_v39, %v3486_v39  ;;  %v3489_v31 = vmul.f32 %v4307_v62, %v3191_v49 }
 0x3e3   : > { %v4309_v22 = vpop.eup %4308 }
 0x3e4   : > { %3647 = vst.msk [vmem:[%s8030_s12 + $0x10] sm:$0xf] %vm3642_vm11, %v3910_v60  ;;  %v3913_v56 = vpack.c.bf16 %v3489_v31, %v3489_v31  ;;  %v3487_v47 = vmul.f32 %v4309_v22, %v3183_v58 }
 0x3e5   : > { %v4311_v5 = vpop.eup %4310 }
 0x3e6   : > { %3650 = vst.msk [vmem:[%s8030_s12 + $0x1c] sm:$0xf] %vm3642_vm11, %v3913_v56  ;;  %v3911_v53 = vpack.c.bf16 %v3487_v47, %v3487_v47  ;;  %v3492_v52 = vmul.f32 %v4311_v5, %v3204_v42 }
 0x3e7   : > { %v4313_v14 = vpop.eup %4312 }
 0x3e8   : > { %3648 = vst.msk [vmem:[%s8030_s12 + $0x14] sm:$0xf] %vm3642_vm11, %v3911_v53  ;;  %v3916_v51 = vpack.c.bf16 %v3492_v52, %v3492_v52  ;;  %v3490_v28 = vmul.f32 %v4313_v14, %v3196_v34 }
 0x3e9   : > { %v4315_v59 = vpop.eup %4314 }
 0x3ea   : > { %3653 = vst.msk [vmem:[%s8030_s12 + $0x28] sm:$0xf] %vm3642_vm11, %v3916_v51  ;;  %v3914_v38 = vpack.c.bf16 %v3490_v28, %v3490_v28  ;;  %v3493_v19 = vmul.f32 %v4315_v59, %v3207_v48 }
 0x3eb   : > { %v4317_v6 = vpop.eup %4316 }
 0x3ec   : > { %3651 = vst.msk [vmem:[%s8030_s12 + $0x20] sm:$0xf] %vm3642_vm11, %v3914_v38  ;;  %v3917_v41 = vpack.c.bf16 %v3493_v19, %v3493_v19  ;;  %v3491_v8 = vmul.f32 %v4317_v6, %v3199_v4 }
 0x3ee   : > { %3654 = vst.msk [vmem:[%s8030_s12 + $0x2c] sm:$0xf] %vm3642_vm11, %v3917_v41  ;;  %v3915_v24 = vpack.c.bf16 %v3491_v8, %v3491_v8 }
 0x3f0   : > { %3652 = vst.msk [vmem:[%s8030_s12 + $0x24] sm:$0xf] %vm3642_vm11, %v3915_v24 }
 0x3f6   : > { %v4053_v3 = vpop.f32.mrf.mxu1 }
 0x3f7   : > { %v3220_v29 = vadd.f32 %v4053_v3, %v8017_v11 }
 0x3f8   : > { %v3211_v20 = vpop.f32.mrf.mxu1 }
 0x3f9   : > { %v3850_v25 = vmul.f32 -1.442695, %v3220_v29  ;;  %v3212_v15 = vadd.f32 %v8017_v11, %v3211_v20 }
 0x3fa   : > { %v4054_v44 = vpop.f32.mrf.mxu1 }
 0x3fb   : > { %4318 = vpow2.f32 %v3850_v25  ;;  %v3848_v49 = vmul.f32 -1.442695, %v3212_v15  ;;  %v3223_v37 = vadd.f32 %v4054_v44, %v8017_v11 }
 0x3fc   : > { %v3214_v21 = vpop.f32.mrf.mxu1 }
 0x3fd   : > { %4320 = vpow2.f32 %v3848_v49  ;;  %v3851_v58 = vmul.f32 -1.442695, %v3223_v37  ;;  %v3215_v33 = vadd.f32 %v8017_v11, %v3214_v21 }
 0x3ff   : > { %4322 = vpow2.f32 %v3851_v58  ;;  %v3849_v10 = vmul.f32 -1.442695, %v3215_v33 }
 0x401   : > { %4324 = vpow2.f32 %v3849_v10 }
 0x408   : > { %v4319_v42 = vpop.eup %4318 }
 0x409   : > { %v3400_v43 = vadd.f32 1.0, %v4319_v42  ;;  %v4057_v40 = vpop.f32.mrf.mxu1 }
 0x40a   : > { %v4321_v34 = vpop.eup %4320  ;;  %v8053_v26 = vadd.f32 %v4057_v40, %v8017_v11 }
 0x40b   : > { %4326 = vrcp.f32 %v3400_v43  ;;  %v3398_v57 = vadd.f32 1.0, %v4321_v34  ;;  %v3227_v48 = vpop.f32.mrf.mxu1 }
 0x40c   : > { %v4323_v46 = vpop.eup %4322  ;;  %v3854_v7 = vmul.f32 -1.442695, %v8053_v26  ;;  %v8057_v4 = vadd.f32 %v8017_v11, %v3227_v48 }
 0x40d   : > { %4328 = vrcp.f32 %v3398_v57  ;;  %v3401_v32 = vadd.f32 1.0, %v4323_v46  ;;  %v4058_v1 = vpop.f32.mrf.mxu1 }
 0x40e   : > { %v4325_v12 = vpop.eup %4324  ;;  %4330 = vpow2.f32 %v3854_v7  ;;  %v3852_v54 = vmul.f32 -1.442695, %v8057_v4  ;;  %v8061_v23 = vadd.f32 %v4058_v1, %v8017_v11 }
 0x40f   : > { %4332 = vrcp.f32 %v3401_v32  ;;  %v3399_v18 = vadd.f32 1.0, %v4325_v12  ;;  %v3230_v30 = vpop.f32.mrf.mxu1 }
 0x410   : > { %4334 = vpow2.f32 %v3852_v54  ;;  %v3855_v27 = vmul.f32 -1.442695, %v8061_v23  ;;  %v8065_v13 = vadd.f32 %v8017_v11, %v3230_v30 }
 0x411   : > { %4336 = vrcp.f32 %v3399_v18 }
 0x412   : > { %4338 = vpow2.f32 %v3855_v27  ;;  %v3853_v16 = vmul.f32 -1.442695, %v8065_v13 }
 0x414   : > { %4340 = vpow2.f32 %v3853_v16 }
 0x418   : > { %v4327_v55 = vpop.eup %4326 }
 0x419   : > { %v3496_v9 = vmul.f32 %v4327_v55, %v3220_v29 }
 0x41a   : > { %v4329_v2 = vpop.eup %4328 }
 0x41b   : > { %v4331_v0 = vpop.eup %4330  ;;  %v3920_v61 = vpack.c.bf16 %v3496_v9, %v3496_v9  ;;  %v3494_v45 = vmul.f32 %v4329_v2, %v3212_v15 }
 0x41c   : > { %v4333_v36 = vpop.eup %4332  ;;  %v3404_v63 = vadd.f32 1.0, %v4331_v0 }
 0x41d   : > { %v4335_v35 = vpop.eup %4334  ;;  %3657 = vst.msk [vmem:[%s8030_s12 + $0x38] sm:$0xf] %vm3642_vm11, %v3920_v61  ;;  %v3918_v17 = vpack.c.bf16 %v3494_v45, %v3494_v45  ;;  %v3497_v50 = vmul.f32 %v4333_v36, %v3223_v37 }
 0x41e   : > { %v4337_v39 = vpop.eup %4336  ;;  %4342 = vrcp.f32 %v3404_v63  ;;  %v3402_v62 = vadd.f32 1.0, %v4335_v35  ;;  %v4061_v60 = vpop.f32.mrf.mxu1 }
 0x41f   : > { %v4339_v31 = vpop.eup %4338  ;;  %3655 = vst.msk [vmem:[%s8030_s12 + $0x30] sm:$0xf] %vm3642_vm11, %v3918_v17  ;;  %v3921_v22 = vpack.c.bf16 %v3497_v50, %v3497_v50  ;;  %v3495_v56 = vmul.f32 %v4337_v39, %v3215_v33  ;;  %v8073_v47 = vadd.f32 %v4061_v60, %v8017_v11 }
 0x420   : > { %4344 = vrcp.f32 %v3402_v62  ;;  %v3405_v5 = vadd.f32 1.0, %v4339_v31  ;;  %v3243_v53 = vpop.f32.mrf.mxu1 }
 0x421   : > { %v4341_v52 = vpop.eup %4340  ;;  %3658 = vst.msk [vmem:[%s8030_s12 + $0x3c] sm:$0xf] %vm3642_vm11, %v3921_v22  ;;  %v3919_v14 = vpack.c.bf16 %v3495_v56, %v3495_v56  ;;  %v3858_v51 = vmul.f32 -1.442695, %v8073_v47  ;;  %v8079_v28 = vadd.f32 %v8017_v11, %v3243_v53 }
 0x422   : > { %4346 = vrcp.f32 %v3405_v5  ;;  %v3403_v59 = vadd.f32 1.0, %v4341_v52  ;;  %v4062_v38 = vpop.f32.mrf.mxu1 }
 0x423   : > { %3656 = vst.msk [vmem:[%s8030_s12 + $0x34] sm:$0xf] %vm3642_vm11, %v3919_v14  ;;  %4348 = vpow2.f32 %v3858_v51  ;;  %v3856_v19 = vmul.f32 -1.442695, %v8079_v28  ;;  %v8085_v6 = vadd.f32 %v4062_v38, %v8017_v11 }
 0x424   : > { %4350 = vrcp.f32 %v3403_v59  ;;  %v3246_v41 = vpop.f32.mrf.mxu1 }
 0x425   : > { %4352 = vpow2.f32 %v3856_v19  ;;  %v3859_v8 = vmul.f32 -1.442695, %v8085_v6  ;;  %v8089_v24 = vadd.f32 %v8017_v11, %v3246_v41 }
 0x427   : > { %4354 = vpow2.f32 %v3859_v8  ;;  %v3857_v3 = vmul.f32 -1.442695, %v8089_v24 }
 0x429   : > { %4356 = vpow2.f32 %v3857_v3  ;;  %v4041_v29 = vpop.f32.mrf.mxu0 }
 0x42a   : > { %v8093_v20 = vadd.f32 %v4041_v29, %v8017_v11 }
 0x42b   : > { %v4343_v25 = vpop.eup %4342  ;;  %v3163_v15 = vpop.f32.mrf.mxu0 }
 0x42c   : > { %v3500_v44 = vmul.f32 %v4343_v25, %v8053_v26  ;;  %v3838_v49 = vmul.f32 -1.442695, %v8093_v20  ;;  %v8098_v37 = vadd.f32 %v8017_v11, %v3163_v15 }
 0x42d   : > { %v4345_v21 = vpop.eup %4344  ;;  %v4042_v42 = vpop.f32.mrf.mxu0 }
 0x42e   : > { %v3924_v58 = vpack.c.bf16 %v3500_v44, %v3500_v44  ;;  %v3498_v33 = vmul.f32 %v4345_v21, %v8057_v4  ;;  %4358 = vpow2.f32 %v3838_v49  ;;  %v3836_v10 = vmul.f32 -1.442695, %v8098_v37  ;;  %v4065_v40 = vpop.f32.mrf.mxu1 }
 0x42f   : > { %v4347_v43 = vpop.eup %4346  ;;  %v8106_v48 = vadd.f32 %v4065_v40, %v8017_v11  ;;  %v8116_v16 = vadd.f32 %v4042_v42, %v8017_v11 }
 0x430   : > { %v4349_v34 = vpop.eup %4348  ;;  %3661 = vst.msk [vmem:[%s8030_s12 + $0x48] sm:$0xf] %vm3642_vm11, %v3924_v58  ;;  %v3922_v26 = vpack.c.bf16 %v3498_v33, %v3498_v33  ;;  %v3501_v57 = vmul.f32 %v4347_v43, %v8061_v23  ;;  %4360 = vpow2.f32 %v3836_v10  ;;  %v3259_v4 = vpop.f32.mrf.mxu1 }
 0x431   : > { %v4351_v46 = vpop.eup %4350  ;;  %v3408_v7 = vadd.f32 1.0, %v4349_v34  ;;  %v3862_v54 = vmul.f32 -1.442695, %v8106_v48  ;;  %v8113_v18 = vadd.f32 %v8017_v11, %v3259_v4  ;;  %v3166_v23 = vpop.f32.mrf.mxu0  ;;  %v3839_v50 = vmul.f32 -1.442695, %v8116_v16 }
 0x432   : > { %v4353_v32 = vpop.eup %4352  ;;  %3659 = vst.msk [vmem:[%s8030_s12 + $0x40] sm:$0xf] %vm3642_vm11, %v3922_v26  ;;  %v3925_v1 = vpack.c.bf16 %v3501_v57, %v3501_v57  ;;  %v3499_v12 = vmul.f32 %v4351_v46, %v8065_v13  ;;  %v4066_v27 = vpop.f32.mrf.mxu1  ;;  %v8125_v45 = vadd.f32 %v8017_v11, %v3166_v23 }
 0x433   : > { %4362 = vrcp.f32 %v3408_v7  ;;  %v3406_v30 = vadd.f32 1.0, %v4353_v32  ;;  %v3860_v13 = vmul.f32 -1.442695, %v8113_v18  ;;  %v8122_v2 = vadd.f32 %v4066_v27, %v8017_v11 }
 0x434   : > { %v4355_v55 = vpop.eup %4354  ;;  %3662 = vst.msk [vmem:[%s8030_s12 + $0x4c] sm:$0xf] %vm3642_vm11, %v3925_v1  ;;  %v3923_v9 = vpack.c.bf16 %v3499_v12, %v3499_v12  ;;  %4364 = vpow2.f32 %v3862_v54  ;;  %v3262_v61 = vpop.f32.mrf.mxu1  ;;  %v3837_v31 = vmul.f32 -1.442695, %v8125_v45 }
 0x435   : > { %4366 = vrcp.f32 %v3406_v30  ;;  %v3409_v0 = vadd.f32 1.0, %v4355_v55  ;;  %v3863_v63 = vmul.f32 -1.442695, %v8122_v2  ;;  %v8131_v35 = vadd.f32 %v8017_v11, %v3262_v61 }
 0x436   : > { %v4357_v36 = vpop.eup %4356  ;;  %3660 = vst.msk [vmem:[%s8030_s12 + $0x44] sm:$0xf] %vm3642_vm11, %v3923_v9  ;;  %4368 = vpow2.f32 %v3860_v13  ;;  %v4069_v39 = vpop.f32.mrf.mxu1 }
 0x437   : > { %4370 = vrcp.f32 %v3409_v0  ;;  %v3407_v17 = vadd.f32 1.0, %v4357_v36  ;;  %v3861_v62 = vmul.f32 -1.442695, %v8131_v35  ;;  %v8136_v60 = vadd.f32 %v4069_v39, %v8017_v11 }
 0x438   : > { %4372 = vpow2.f32 %v3863_v63  ;;  %v3275_v22 = vpop.f32.mrf.mxu1 }
 0x439   : > { %4374 = vrcp.f32 %v3407_v17  ;;  %v3866_v56 = vmul.f32 -1.442695, %v8136_v60  ;;  %v8141_v5 = vadd.f32 %v8017_v11, %v3275_v22 }
 0x43a   : > { %4376 = vpow2.f32 %v3861_v62  ;;  %v4070_v52 = vpop.f32.mrf.mxu1 }
 0x43b   : > { %v4359_v53 = vpop.eup %4358  ;;  %4378 = vpow2.f32 %v3839_v50  ;;  %v3864_v51 = vmul.f32 -1.442695, %v8141_v5  ;;  %v8145_v59 = vadd.f32 %v4070_v52, %v8017_v11 }
 0x43c   : > { %v3388_v14 = vadd.f32 1.0, %v4359_v53  ;;  %4380 = vpow2.f32 %v3866_v56  ;;  %v3278_v19 = vpop.f32.mrf.mxu1 }
 0x43d   : > { %v4361_v38 = vpop.eup %4360  ;;  %4382 = vpow2.f32 %v3837_v31  ;;  %v3867_v8 = vmul.f32 -1.442695, %v8145_v59  ;;  %v8149_v3 = vadd.f32 %v8017_v11, %v3278_v19 }
 0x43e   : > { %4384 = vrcp.f32 %v3388_v14  ;;  %v3386_v41 = vadd.f32 1.0, %v4361_v38 }
 0x43f   : > { %4386 = vpow2.f32 %v3864_v51  ;;  %v3865_v25 = vmul.f32 -1.442695, %v8149_v3 }
 0x440   : > { %v4363_v29 = vpop.eup %4362  ;;  %4388 = vrcp.f32 %v3386_v41 }
 0x441   : > { %v4365_v15 = vpop.eup %4364  ;;  %v3504_v44 = vmul.f32 %v4363_v29, %v8073_v47  ;;  %4390 = vpow2.f32 %v3867_v8 }
 0x442   : > { %v4367_v49 = vpop.eup %4366  ;;  %v3412_v21 = vadd.f32 1.0, %v4365_v15  ;;  %4392 = vpow2.f32 %v3865_v25 }
 0x443   : > { %v4369_v58 = vpop.eup %4368  ;;  %v3928_v33 = vpack.c.bf16 %v3504_v44, %v3504_v44  ;;  %v3502_v10 = vmul.f32 %v4367_v49, %v8079_v28 }
 0x444   : > { %v4371_v11 = vpop.eup %4370  ;;  %4394 = vrcp.f32 %v3412_v21  ;;  %v3410_v42 = vadd.f32 1.0, %v4369_v58 }
 0x445   : > { %v4373_v43 = vpop.eup %4372  ;;  %3665 = vst.msk [vmem:[%s8030_s12 + $0x58] sm:$0xf] %vm3642_vm11, %v3928_v33  ;;  %v3926_v40 = vpack.c.bf16 %v3502_v10, %v3502_v10  ;;  %v3505_v34 = vmul.f32 %v4371_v11, %v8085_v6 }
 0x446   : > { %v4375_v47 = vpop.eup %4374  ;;  %4396 = vrcp.f32 %v3410_v42  ;;  %v3413_v26 = vadd.f32 1.0, %v4373_v43 }
 0x447   : > { %v4377_v57 = vpop.eup %4376  ;;  %3663 = vst.msk [vmem:[%s8030_s12 + $0x50] sm:$0xf] %vm3642_vm11, %v3926_v40  ;;  %v3929_v46 = vpack.c.bf16 %v3505_v34, %v3505_v34  ;;  %v3503_v28 = vmul.f32 %v4375_v47, %v8089_v24 }
 0x448   : > { %v4379_v7 = vpop.eup %4378  ;;  %4398 = vrcp.f32 %v3413_v26  ;;  %v3411_v4 = vadd.f32 1.0, %v4377_v57 }
 0x449   : > { %v4381_v32 = vpop.eup %4380  ;;  %3666 = vst.msk [vmem:[%s8030_s12 + $0x5c] sm:$0xf] %vm3642_vm11, %v3929_v46  ;;  %v3927_v1 = vpack.c.bf16 %v3503_v28, %v3503_v28  ;;  %v3389_v12 = vadd.f32 1.0, %v4379_v7 }
 0x44a   : > { %v4383_v54 = vpop.eup %4382  ;;  %4400 = vrcp.f32 %v3411_v4  ;;  %v3416_v6 = vadd.f32 1.0, %v4381_v32 }
 0x44b   : > { %v4385_v23 = vpop.eup %4384  ;;  %3664 = vst.msk [vmem:[%s8030_s12 + $0x54] sm:$0xf] %vm3642_vm11, %v3927_v1  ;;  %4402 = vrcp.f32 %v3389_v12  ;;  %v3387_v30 = vadd.f32 1.0, %v4383_v54 }
 0x44c   : > { %v4387_v27 = vpop.eup %4386  ;;  %v3484_v24 = vmul.f32 %v4385_v23, %v8093_v20  ;;  %4404 = vrcp.f32 %v3416_v6 }
 0x44d   : > { %v4389_v55 = vpop.eup %4388  ;;  %4406 = vrcp.f32 %v3387_v30  ;;  %v3414_v9 = vadd.f32 1.0, %v4387_v27 }
 0x44e   : > { %v4391_v13 = vpop.eup %4390  ;;  %v3908_v0 = vpack.c.bf16 %v3484_v24, %v3484_v24  ;;  %v3482_v61 = vmul.f32 %v4389_v55, %v8098_v37 }
 0x44f   : > { %v4393_v36 = vpop.eup %4392  ;;  %4408 = vrcp.f32 %v3414_v9  ;;  %v3417_v63 = vadd.f32 1.0, %v4391_v13 }
 0x450   : > { %3645 = vst.msk [vmem:[%s8030_s12 + $0x8] sm:$0xf] %vm3642_vm11, %v3908_v0  ;;  %v3906_v17 = vpack.c.bf16 %v3482_v61, %v3482_v61  ;;  %v3415_v50 = vadd.f32 1.0, %v4393_v36 }
 0x451   : > { %v4395_v39 = vpop.eup %4394  ;;  %4410 = vrcp.f32 %v3417_v63 }
 0x452   : > { %v3508_v20 = vmul.f32 %v4395_v39, %v8106_v48  ;;  %3643 = vst.msk [vmem:[%s8030_s12] sm:$0xf] %vm3642_vm11, %v3906_v17  ;;  %4412 = vrcp.f32 %v3415_v50 }
 0x453   : > { %v4397_v62 = vpop.eup %4396 }
 0x454   : > { %v3932_v31 = vpack.c.bf16 %v3508_v20, %v3508_v20  ;;  %v3506_v37 = vmul.f32 %v4397_v62, %v8113_v18 }
 0x455   : > { %v4399_v22 = vpop.eup %4398 }
 0x456   : > { %3669 = vst.msk [vmem:[%s8030_s12 + $0x68] sm:$0xf] %vm3642_vm11, %v3932_v31  ;;  %v3930_v56 = vpack.c.bf16 %v3506_v37, %v3506_v37  ;;  %v3509_v53 = vmul.f32 %v4399_v22, %v8122_v2 }
 0x457   : > { %v4401_v52 = vpop.eup %4400 }
 0x458   : > { %v4403_v14 = vpop.eup %4402  ;;  %3667 = vst.msk [vmem:[%s8030_s12 + $0x60] sm:$0xf] %vm3642_vm11, %v3930_v56  ;;  %v3933_v48 = vpack.c.bf16 %v3509_v53, %v3509_v53  ;;  %v3507_v51 = vmul.f32 %v4401_v52, %v8131_v35 }
 0x459   : > { %v4405_v38 = vpop.eup %4404  ;;  %v3485_v18 = vmul.f32 %v4403_v14, %v8116_v16 }
 0x45a   : > { %v4407_v19 = vpop.eup %4406  ;;  %3670 = vst.msk [vmem:[%s8030_s12 + $0x6c] sm:$0xf] %vm3642_vm11, %v3933_v48  ;;  %v3931_v41 = vpack.c.bf16 %v3507_v51, %v3507_v51  ;;  %v3512_v2 = vmul.f32 %v4405_v38, %v8136_v60 }
 0x45b   : > { %v3909_v8 = vpack.c.bf16 %v3485_v18, %v3485_v18  ;;  %v3483_v29 = vmul.f32 %v4407_v19, %v8125_v45 }
 0x45c   : > { %v4409_v25 = vpop.eup %4408  ;;  %3668 = vst.msk [vmem:[%s8030_s12 + $0x64] sm:$0xf] %vm3642_vm11, %v3931_v41  ;;  %v3936_v35 = vpack.c.bf16 %v3512_v2, %v3512_v2 }
 0x45d   : > { %3646 = vst.msk [vmem:[%s8030_s12 + $0xc] sm:$0xf] %vm3642_vm11, %v3909_v8  ;;  %v3907_v15 = vpack.c.bf16 %v3483_v29, %v3483_v29  ;;  %v3510_v16 = vmul.f32 %v4409_v25, %v8141_v5 }
 0x45e   : > { %v4411_v44 = vpop.eup %4410  ;;  %3673 = vst.msk [vmem:[%s8030_s12 + $0x78] sm:$0xf] %vm3642_vm11, %v3936_v35 }
 0x45f   : > { %v4413_v60 = vpop.eup %4412  ;;  %3644 = vst.msk [vmem:[%s8030_s12 + $0x4] sm:$0xf] %vm3642_vm11, %v3907_v15  ;;  %v3934_v45 = vpack.c.bf16 %v3510_v16, %v3510_v16  ;;  %v3513_v49 = vmul.f32 %v4411_v44, %v8145_v59 }
 0x460   : > { %v3511_v21 = vmul.f32 %v4413_v60, %v8149_v3 }
 0x461   : > { %3671 = vst.msk [vmem:[%s8030_s12 + $0x70] sm:$0xf] %vm3642_vm11, %v3934_v45  ;;  %v3937_v58 = vpack.c.bf16 %v3513_v49, %v3513_v49 }
 0x462   : > { %v3935_v5 = vpack.c.bf16 %v3511_v21, %v3511_v21 }
 0x463   : > { %3674 = vst.msk [vmem:[%s8030_s12 + $0x7c] sm:$0xf] %vm3642_vm11, %v3937_v58 }
 0x464   : > { %3672 = vst.msk [vmem:[%s8030_s12 + $0x74] sm:$0xf] %vm3642_vm11, %v3935_v5 }
 0x465   : > { %4427 = shalt.err (!%p4424_p3)
}
 0x466   : > { %s4428_s9 = scalar_lea.hbm %s8201_s17, 2048  ;;  %s4432_s10 = scalar_lea.hbm %s8258_s5, 4096 }
 0x467   : > { %p4429_p4 = scmp.ne.s32.totalorder %s8201_s17, %s4428_s9  ;;  %p4433_p9 = scmp.lt.s32.totalorder %s8201_s17, %s8258_s5 }
 0x468   : > { %p4434_p10 = scmp.lt.s32.totalorder %s4432_s10, %s4428_s9 }
 0x469   : > { %p4430_p7 = pnand %p4429_p4, %p4549_p5 }
 0x46a   : > { %p4435_p11 = por %p4434_p10, %p4433_p9 }
 0x46b   : > { %p4431_p8 = pneg %p4430_p7 }
 0x46d   : > { %p4436_p12 = pnand %p4435_p11, %p4431_p8 }
 0x46f   : > { %4439 = shalt.err (!%p4436_p12)
}
 0x470   : > { %s4480_s13 = smov 4  }
 0x471   : > { %4087 = dma.vmem_to_hbm [thread:$0]  (%p4549_p5), %s8203_s14, 2048, %s8201_s17, %s8211_s22, %s4477_s30, %s4477_s30, %s4480_s13  }
 0x472 PF: > { %p4093_p13 = scmp.ge.s32.totalorder %s4474_s21, 2  ;;  %s3704_s15 = sand.u32 1, %s4462_s18  }
 0x473   : > { %s3705_s16 = scalar_lea.sflag [#allocation3], %s3704_s15 }
 0x474   : > { %p4090_p0 = pnand %p4093_p13, %p4553_p6 }
 0x476   : > { %p4091_p1 = pneg %p4090_p0 }
 0x478   : > { %4457 = dma.done.wait (%p4091_p1), %s3705_s16, 2048  }
 0x479   : > { %4459 = vsyncadd (%p4091_p1), %s3705_s16, 4294965248  ;;  %p15_p2 = scmp.ge.s32.totalorder %s4536_s24, 4   ;;  %s8643_s18 = smov %s4466_s19 }
 0x47a   : > { %s8644_s19 = smov %s4470_s20  ;;  %s8645_s20 = smov %s4547_s27 }
 0x47b   : > { %s8646_s21 = smov %s4536_s24  ;;  %17 = sbr.rel (!%p15_p2) target bundleno = 3 (0x3), region = 75 }
 0x480   :  { %3710 = vsyncpa [#allocation3], 1 }
 0x481   :  { %3712 = vsyncpa [#allocation3 + $0x1], 1 }

// kernel: sppf_forward.1
= control target key start
LH: loop header
LB: loop body
LE: loop exit
PB: predicated region body
PF: predicated region fallthrough
CT: control target
= control target key end

     0   :  { %10 = vsyncpa [#allocation3], 0  ;;  %s9437_s0 = inlined_call_operand.vmem [shape: bf16[2,16,16,64], index: 0, kind: input, shape index: {}]   ;;  %s9438_s1 = inlined_call_operand.vmem [shape: bf16[64,32], index: 1, kind: input, shape index: {}]   ;;  %s9439_s2 = inlined_call_operand.vmem [shape: f32[1,32], index: 2, kind: input, shape index: {}]   ;;  %s9440_s3 = inlined_call_operand.vmem [shape: bf16[128,64], index: 3, kind: input, shape index: {}]   ;;  %s9441_s4 = inlined_call_operand.vmem [shape: f32[1,64], index: 4, kind: input, shape index: {}]   ;;  %s9442_s5 = inlined_call_operand.hbm [shape: bf16[2,16,16,64], index: 5, kind: output, shape index: {}]  }
   0x1   :  { %12 = vsyncpa [#allocation3 + $0x1], 0  ;;  %s5605_s18 = smov 0   ;;  %s5607_s19 = smov 0  }
   0x2   :  { %s5609_s20 = smov 0   ;;  %s5611_s21 = smov 0  }
   0x3 LB: > { %s5626_s22 = sadd.s32 4294967295, %s5568_s21   ;;  %s4605_s23 = sadd.s32 4294967294, %s5568_s21   ;;  %s5568_s21 = sphi %s5611_s21, %s10167_s21   ;;  %s5564_s20 = sphi %s5609_s20, %s10166_s20   ;;  %s5560_s19 = sphi %s5607_s19, %s10165_s19   ;;  %s5556_s18 = sphi %s5605_s18, %s10164_s18  }
   0x4   : > { %s5630_s24 = sadd.s32 1, %s5568_s21   ;;  %s135_s25 = sadd.s32 1, %s5564_s20 }
   0x5   : > { %s132_s26 = ssub.s32 %s5568_s21, %s5630_s24  ;;  %p145_p0 = scmp.ne.s32.totalorder %s5564_s20, %s5560_s19 }
   0x6   : > { %p133_p1 = scmp.eq.s32.totalorder %s132_s26, 0  ;;  %p146_p2 = scmp.eq.s32.totalorder %s5626_s22, 1 }
   0x7   : > { %p151_p3 = scmp.ne.s32.totalorder %s5560_s19, %s5556_s18  ;;  %p152_p4 = scmp.eq.s32.totalorder %s4605_s23, 1 }
   0x8   : > { %s5641_s27 = scalar_select %p133_p1, %s5564_s20, %s135_s25  }
   0x9   : > { %p5643_p5 = por %p146_p2, %p145_p0  ;;  %p5647_p6 = por %p152_p4, %p151_p3 }
   0xa   : > { %p4608_p7 = scmp.ge.s32.totalorder %s5568_s21, 1  ;;  %p190_p8 = scmp.lt.s32.totalorder %s5568_s21, 3 }
   0xc   : > { %p191_p9 = pnand %p4608_p7, %p190_p8 }
   0xe   : > { %194 = sbr.rel (%p191_p9) target bundleno = 1202 (0x4b2), region = 40 }
  0x13   : > { %v5224_v0 = vld [vmem:[%s9438_s1 + $0x18] sm:$0xff]   ;;  %p218_p10 = scmp.lt.s32.totalorder %s5626_s22, 1  ;;  %v5225_v1 = vld [vmem:[%s9438_s1 + $0x10] sm:$0xff]   ;;  %vm375_vm0 = vcmask 523264   ;;  %v5226_v2 = vld [vmem:[%s9438_s1 + $0x8] sm:$0xff]   ;;  %vm841_vm1 = vcmask 1041408  }
  0x14   : > { %4837 = vmatprep.subr.bf16.mxu0 %v5224_v0  ;;  %v5227_v4 = vld [vmem:[%s9438_s1] sm:$0xff]   ;;  %vm1002_vm2 = vcmask 1046528   ;;  %vm1147_vm3 = vcmask 1045504   ;;  %vm1292_vm4 = vcmask 1044480   ;;  %vm1437_vm5 = vcmask 1043456   ;;  %s5570_s26 = smov 32  }
  0x15   : > { %s219_s9 = scalar_select %p218_p10, %s5626_s22, 1  ;;  %4838 = vmatpush3.bf16.msra.mxu0 %v5224_v0  ;;  %v5707_v20 = vld [vmem:[%s9439_s2] ss:$0 sm:$0xff]  ;;  %vm3798_vm6 = vcmask 261120   ;;  %vm3863_vm7 = vcmask 785408   ;;  %vm4496_vm8 = vcmask 519168  }
  0x16   : > { %4839 = vmatprep.subr.bf16.mxu0 %v5225_v1  ;;  %s5571_s30 = smov 64   ;;  %s5572_s6 = smov 96  }
  0x17   : > { %s4759_s12 = sshll.u32 %s219_s9, 7  ;;  %s215_s10 = sand.u32 1, %s5560_s19  }
  0x18   : > { %s5667_s15 = scalar_lea.vmem %s9437_s0, %s4759_s12  ;;  %s4609_s11 = sshll.u32 %s215_s10, 7 }
  0x19   : > { %v5228_v3 = vld [vmem:[%s5667_s15] sm:$0xff]   ;;  %4840 = vmatpush3.bf16.msra.mxu0 %v5225_v1  ;;  %v5229_v5 = vld [vmem:[%s5667_s15 + $0x8] sm:$0xff]   ;;  %v5230_v6 = vld [vmem:[%s5667_s15 + $0x10] sm:$0xff]   ;;  %s9198_s12 = scalar_lea.vmem [#allocation2], %s4609_s11  ;;  %s4792_s13 = sshll.u32 %s5626_s22, 11 }
  0x1a   : > { %4841 = vmatprep.subr.bf16.mxu0 %v5226_v2  ;;  %4845 = vmatprep.mubr.msk.bf16.mxu0 %vm375_vm0, %v5228_v3  ;;  %v5231_v7 = vld [vmem:[%s5667_s15 + $0x18] sm:$0xff]   ;;  %v5232_v8 = vld [vmem:[%s5667_s15 + $0x20] sm:$0xff]   ;;  %v5233_v9 = vld [vmem:[%s5667_s15 + $0x28] sm:$0xff]   ;;  %s4543_s14 = sshll.u32 %s9198_s12, 4  ;;  %s9385_s17 = scalar_lea.hbm %s9442_s5, %s4792_s13  ;;  %s9389_s14 = int_to_ptr.vmem [resolvable:$true] %s4543_s14 }
  0x1b   : > { %v5234_v10 = vld [vmem:[%s5667_s15 + $0x30] sm:$0xff]   ;;  %v5235_v11 = vld [vmem:[%s5667_s15 + $0x38] sm:$0xff]   ;;  %v5236_v12 = vld [vmem:[%s5667_s15 + $0x40] sm:$0xff]   ;;  %s9395_s22 = scalar_lea.sflag [#allocation3], %s215_s10  ;;  %s5508_s23 = scalar_lea.vmem %s9389_s14, 2048 }
  0x1c   : > { %v5237_v13 = vld [vmem:[%s5667_s15 + $0x48] sm:$0xff]   ;;  %v5238_v14 = vld [vmem:[%s5667_s15 + $0x50] sm:$0xff]   ;;  %v5239_v15 = vld [vmem:[%s5667_s15 + $0x58] sm:$0xff]   ;;  %p5509_p11 = scmp.ne.s32.totalorder %s9389_s14, %s5508_s23  ;;  %s5573_s25 = smov [#allocation2]  }
  0x1d   : > { %4842 = vmatpush3.bf16.msra.mxu0 %v5226_v2  ;;  %v5240_v16 = vld [vmem:[%s5667_s15 + $0x60] sm:$0xff]   ;;  %v5241_v17 = vld [vmem:[%s5667_s15 + $0x68] sm:$0xff]   ;;  %v5242_v18 = vld [vmem:[%s5667_s15 + $0x70] sm:$0xff]   ;;  %s5512_s7 = sshll.u32 %s5573_s25, 4  ;;  %s5513_s7 = int_to_ptr.vmem [resolvable:$false] %s5512_s7 }
  0x1e   : > { %4843 = vmatprep.subr.bf16.mxu0 %v5227_v4  ;;  %v5243_v19 = vld [vmem:[%s5667_s15 + $0x78] sm:$0xff]   ;;  %p5510_p12 = pnand %p5509_p11, %p5643_p5  ;;  %s5514_s8 = scalar_lea.vmem %s5513_s7, 4096 }
  0x1f   : > { %p5515_p0 = scmp.lt.s32.totalorder %s9389_s14, %s5513_s7  ;;  %p5516_p1 = scmp.lt.s32.totalorder %s5514_s8, %s5508_s23 }
  0x20   : > { %p5511_p13 = pneg %p5510_p12 }
  0x21   : > { %4844 = vmatpush3.bf16.msra.mxu0 %v5227_v4  ;;  %p5517_p2 = por %p5516_p1, %p5515_p0 }
  0x23   : > { %p5518_p3 = pnand %p5517_p2, %p5511_p13 }
  0x24   : > { %4846 = vmatmul.mubr.msk.bf16.vlgmr.msra.gmra.mxu0 %vm375_vm0, %v5229_v5 }
  0x25   : > { %4849 = vmatprep.mubr.msk.bf16.mxu0 %vm375_vm0, %v5230_v6 }
  0x2c   : > { %4850 = vmatmul.mubr.msk.bf16.gmra.mxu0 %vm375_vm0, %v5231_v7 }
  0x2d   : > { %4853 = vmatprep.mubr.msk.bf16.mxu0 %vm375_vm0, %v5232_v8 }
  0x34   : > { %4854 = vmatmul.mubr.msk.bf16.gmra.mxu0 %vm375_vm0, %v5233_v9 }
  0x35   : > { %4857 = vmatprep.mubr.msk.bf16.mxu0 %vm375_vm0, %v5234_v10 }
  0x3c   : > { %4858 = vmatmul.mubr.msk.bf16.gmra.mxu0 %vm375_vm0, %v5235_v11 }
  0x3d   : > { %4861 = vmatprep.mubr.msk.bf16.mxu0 %vm375_vm0, %v5236_v12 }
  0x44   : > { %4862 = vmatmul.mubr.msk.bf16.gmra.mxu0 %vm375_vm0, %v5237_v13 }
  0x45   : > { %4865 = vmatprep.mubr.msk.bf16.mxu0 %vm375_vm0, %v5238_v14 }
  0x4c   : > { %4866 = vmatmul.mubr.msk.bf16.gmra.mxu0 %vm375_vm0, %v5239_v15 }
  0x4d   : > { %4869 = vmatprep.mubr.msk.bf16.mxu0 %vm375_vm0, %v5240_v16 }
  0x54   : > { %4870 = vmatmul.mubr.msk.bf16.gmra.mxu0 %vm375_vm0, %v5241_v17 }
  0x55   : > { %4873 = vmatprep.mubr.msk.bf16.mxu0 %vm375_vm0, %v5242_v18 }
  0x5c   : > { %4874 = vmatmul.mubr.msk.bf16.gmra.mxu0 %vm375_vm0, %v5243_v19 }
  0xe4   : > { %v4847_v21 = vpop.f32.mrf.mxu0 }
  0xe5   : > { %v5710_v22 = vadd.f32 %v4847_v21, %v5707_v20 }
  0xe6   : > { %v458_v23 = vpop.f32.mrf.mxu0 }
  0xe7   : > { %v4651_v24 = vmul.f32 -1.442695, %v5710_v22  ;;  %v5714_v25 = vadd.f32 %v5707_v20, %v458_v23 }
  0xe8   : > { %v4848_v26 = vpop.f32.mrf.mxu0 }
  0xe9   : > { %5252 = vpow2.f32 %v4651_v24  ;;  %v4649_v27 = vmul.f32 -1.442695, %v5714_v25  ;;  %v5718_v28 = vadd.f32 %v4848_v26, %v5707_v20 }
  0xea   : > { %v461_v29 = vpop.f32.mrf.mxu0 }
  0xeb   : > { %5254 = vpow2.f32 %v4649_v27  ;;  %v4652_v30 = vmul.f32 -1.442695, %v5718_v28  ;;  %v5722_v31 = vadd.f32 %v5707_v20, %v461_v29 }
  0xec   : > { %v4851_v32 = vpop.f32.mrf.mxu0 }
  0xed   : > { %5256 = vpow2.f32 %v4652_v30  ;;  %v4650_v33 = vmul.f32 -1.442695, %v5722_v31  ;;  %v5726_v34 = vadd.f32 %v4851_v32, %v5707_v20 }
  0xee   : > { %v474_v35 = vpop.f32.mrf.mxu0 }
  0xef   : > { %5258 = vpow2.f32 %v4650_v33  ;;  %v4655_v36 = vmul.f32 -1.442695, %v5726_v34  ;;  %v5730_v37 = vadd.f32 %v5707_v20, %v474_v35 }
  0xf0   : > { %v4852_v38 = vpop.f32.mrf.mxu0 }
  0xf1   : > { %5260 = vpow2.f32 %v4655_v36  ;;  %v4653_v39 = vmul.f32 -1.442695, %v5730_v37  ;;  %v5734_v40 = vadd.f32 %v4852_v38, %v5707_v20 }
  0xf2   : > { %v477_v41 = vpop.f32.mrf.mxu0 }
  0xf3   : > { %5262 = vpow2.f32 %v4653_v39  ;;  %v4656_v42 = vmul.f32 -1.442695, %v5734_v40  ;;  %v5738_v43 = vadd.f32 %v5707_v20, %v477_v41 }
  0xf4   : > { %v4855_v44 = vpop.f32.mrf.mxu0 }
  0xf5   : > { %5264 = vpow2.f32 %v4656_v42  ;;  %v4654_v45 = vmul.f32 -1.442695, %v5738_v43  ;;  %v5742_v46 = vadd.f32 %v4855_v44, %v5707_v20 }
  0xf6   : > { %v5253_v47 = vpop.eup %5252  ;;  %v490_v48 = vpop.f32.mrf.mxu0 }
  0xf7   : > { %v683_v49 = vadd.f32 1.0, %v5253_v47  ;;  %5266 = vpow2.f32 %v4654_v45  ;;  %v4659_v50 = vmul.f32 -1.442695, %v5742_v46  ;;  %v5746_v51 = vadd.f32 %v5707_v20, %v490_v48 }
  0xf8   : > { %v5255_v52 = vpop.eup %5254  ;;  %v4856_v53 = vpop.f32.mrf.mxu0 }
  0xf9   : > { %5268 = vrcp.f32 %v683_v49  ;;  %v681_v54 = vadd.f32 1.0, %v5255_v52  ;;  %v4657_v55 = vmul.f32 -1.442695, %v5746_v51  ;;  %v5750_v56 = vadd.f32 %v4856_v53, %v5707_v20 }
  0xfa   : > { %v5257_v57 = vpop.eup %5256  ;;  %5270 = vpow2.f32 %v4659_v50  ;;  %v493_v58 = vpop.f32.mrf.mxu0 }
  0xfb   : > { %5272 = vrcp.f32 %v681_v54  ;;  %v684_v59 = vadd.f32 1.0, %v5257_v57  ;;  %v4660_v60 = vmul.f32 -1.442695, %v5750_v56  ;;  %v5754_v61 = vadd.f32 %v5707_v20, %v493_v58 }
  0xfc   : > { %v5259_v62 = vpop.eup %5258  ;;  %5274 = vpow2.f32 %v4657_v55  ;;  %v4859_v63 = vpop.f32.mrf.mxu0 }
  0xfd   : > { %5276 = vrcp.f32 %v684_v59  ;;  %v682_v0 = vadd.f32 1.0, %v5259_v62  ;;  %v4658_v1 = vmul.f32 -1.442695, %v5754_v61  ;;  %v5758_v2 = vadd.f32 %v4859_v63, %v5707_v20 }
  0xfe   : > { %v5261_v3 = vpop.eup %5260  ;;  %5278 = vpow2.f32 %v4660_v60  ;;  %v506_v4 = vpop.f32.mrf.mxu0 }
  0xff   : > { %5280 = vrcp.f32 %v682_v0  ;;  %v687_v5 = vadd.f32 1.0, %v5261_v3  ;;  %v4663_v6 = vmul.f32 -1.442695, %v5758_v2  ;;  %v5762_v7 = vadd.f32 %v5707_v20, %v506_v4 }
 0x100   : > { %v5263_v8 = vpop.eup %5262  ;;  %5282 = vpow2.f32 %v4658_v1  ;;  %v4860_v9 = vpop.f32.mrf.mxu0 }
 0x101   : > { %5284 = vrcp.f32 %v687_v5  ;;  %v685_v10 = vadd.f32 1.0, %v5263_v8  ;;  %v4661_v11 = vmul.f32 -1.442695, %v5762_v7  ;;  %v5766_v12 = vadd.f32 %v4860_v9, %v5707_v20 }
 0x102   : > { %v5265_v13 = vpop.eup %5264  ;;  %5286 = vpow2.f32 %v4663_v6  ;;  %v509_v14 = vpop.f32.mrf.mxu0 }
 0x103   : > { %5288 = vrcp.f32 %v685_v10  ;;  %v688_v15 = vadd.f32 1.0, %v5265_v13  ;;  %v4664_v16 = vmul.f32 -1.442695, %v5766_v12  ;;  %v5770_v17 = vadd.f32 %v5707_v20, %v509_v14 }
 0x104   : > { %v5267_v18 = vpop.eup %5266  ;;  %5290 = vpow2.f32 %v4661_v11  ;;  %v4863_v19 = vpop.f32.mrf.mxu0 }
 0x105   : > { %5292 = vrcp.f32 %v688_v15  ;;  %v686_v21 = vadd.f32 1.0, %v5267_v18  ;;  %v4662_v23 = vmul.f32 -1.442695, %v5770_v17  ;;  %v5774_v24 = vadd.f32 %v4863_v19, %v5707_v20 }
 0x106   : > { %v5269_v26 = vpop.eup %5268  ;;  %5294 = vpow2.f32 %v4664_v16  ;;  %v522_v27 = vpop.f32.mrf.mxu0 }
 0x107   : > { %v5271_v29 = vpop.eup %5270  ;;  %v5777_v30 = vmul.f32 %v5269_v26, %v5710_v22  ;;  %5296 = vrcp.f32 %v686_v21  ;;  %v4667_v32 = vmul.f32 -1.442695, %v5774_v24  ;;  %v5781_v33 = vadd.f32 %v5707_v20, %v522_v27 }
 0x108   : > { %v5273_v35 = vpop.eup %5272  ;;  %v691_v36 = vadd.f32 1.0, %v5271_v29  ;;  %5298 = vpow2.f32 %v4662_v23  ;;  %v4864_v38 = vpop.f32.mrf.mxu0 }
 0x109   : > { %9632 = vst [vmem:[#allocation5_spill] sm:$0xff] %v5777_v30  ;;  %v5275_v39 = vpop.eup %5274  ;;  %v845_v41 = vrot.slane %v5777_v30, 6  ;;  %v5785_v42 = vmul.f32 %v5273_v35, %v5714_v25  ;;  %5300 = vpow2.f32 %v4667_v32  ;;  %v4665_v22 = vmul.f32 -1.442695, %v5781_v33 }
 0x10a   : > { %v5277_v44 = vpop.eup %5276  ;;  %5302 = vrcp.f32 %v691_v36  ;;  %v689_v45 = vadd.f32 1.0, %v5275_v39  ;;  %v5789_v47 = vadd.f32 %v4864_v38, %v5707_v20  ;;  %v5791_v48 = vpop.f32.mrf.mxu0 }
 0x10b   : > { %9633 = vst [vmem:[#allocation6_spill] sm:$0xff] %v5785_v42  ;;  %v5793_v49 = vpop.eup %5278  ;;  %v5796_v50 = vsel %vm841_vm1, -3.4028235e+38, %v845_v41  ;;  %v842_v25 = vrot.slane %v5785_v42, 6  ;;  %v5800_v52 = vmul.f32 %v5277_v44, %v5718_v28  ;;  %5304 = vpow2.f32 %v4665_v22 }
 0x10c   : > { %v5281_v53 = vpop.eup %5280  ;;  %v1008_v54 = vrot.slane %v5796_v50, 1  ;;  %v5806_v59 = vpop.f32.mrf.mxu0  ;;  %5306 = vrcp.f32 %v689_v45 }
 0x10d   : > { %9634 = vst [vmem:[#allocation7_spill] sm:$0xff] %v5800_v52  ;;  %v5808_v60 = vpop.eup %5282  ;;  %v5811_v62 = vsel %vm841_vm1, -3.4028235e+38, %v842_v25  ;;  %v846_v28 = vrot.slane %v5800_v52, 6  ;;  %v5815_v63 = vmul.f32 %v5281_v53, %v5722_v31 }
 0x10e   : > { %v5285_v0 = vpop.eup %5284  ;;  %v5821_v6 = vpop.f32.mrf.mxu0 }
 0x10f   : > { %9635 = vst [vmem:[#allocation8_spill] sm:$0xff] %v5815_v63  ;;  %v5823_v8 = vpop.eup %5286  ;;  %v5826_v9 = vsel %vm841_vm1, %v845_v41, %v846_v28  ;;  %v5829_v31 = vsel %vm841_vm1, %v846_v28, -3.4028235e+38  ;;  %v843_v10 = vrot.slane %v5815_v63, 6  ;;  %v5833_v11 = vmul.f32 %v5285_v0, %v5726_v34 }
 0x110   : > { %9636 = vst [vmem:[#allocation9_spill] sm:$0xff] %v5829_v31  ;;  %v5289_v13 = vpop.eup %5288  ;;  %v1009_v14 = vrot.slane %v5826_v9, 1  ;;  %v1011_v15 = vrot.slane %v5829_v31, 1  ;;  %v9444_v16 = vrot.slane %v5826_v9, 2  ;;  %v1156_v18 = vrot.slane %v5829_v31, 2  ;;  %v5839_v19 = vpop.f32.mrf.mxu0 }
 0x111   : > { %9637 = vst [vmem:[#allocation10_spill] sm:$0xff] %v5833_v11  ;;  %v5841_v21 = vpop.eup %5290  ;;  %v9443_v23 = vrot.slane %v5826_v9, 3  ;;  %v1301_v26 = vrot.slane %v5829_v31, 3  ;;  %v5855_v38 = vsel %vm841_vm1, %v842_v25, %v843_v10  ;;  %v5868_v45 = vsel %vm841_vm1, %v843_v10, -3.4028235e+38 }
 0x112   : > { %v5293_v29 = vpop.eup %5292  ;;  %v5848_v32 = vsel %vm1002_vm2, %v1008_v54, %v1009_v14  ;;  %v1012_v35 = vsel %vm1002_vm2, %v1009_v14, %v1011_v15  ;;  %v1157_v36 = vsel %vm1147_vm3, %v9444_v16, %v1156_v18  ;;  %v5857_v39 = vpop.f32.mrf.mxu0  ;;  %9639 = vst [vmem:[#allocation12_spill] sm:$0xff] %v5868_v45  ;;  %v9446_v53 = vrot.slane %v5855_v38, 1 }
 0x113   : > { %v5859_v41 = vpop.eup %5294  ;;  %v1118_v22 = vmax.f32 %v5826_v9, %v1012_v35  ;;  %v5865_v44 = vsel %vm1292_vm4, %v9443_v23, %v1301_v26  ;;  %v1006_v25 = vrot.slane %v5868_v45, 1  ;;  %v9445_v28 = vrot.slane %v5855_v38, 2 }
 0x114   : > { %9638 = vst [vmem:[#allocation11_spill] sm:$0xff] %v5865_v44  ;;  %v5297_v54 = vpop.eup %5296  ;;  %v1151_v0 = vrot.slane %v5868_v45, 2  ;;  %v5875_v15 = vpop.f32.mrf.mxu0  ;;  %v5903_v57 = vmul.f32 %v5293_v29, %v5734_v40  ;;  %v5909_v23 = vadd.f32 1.0, %v5793_v49  ;;  %v5921_v40 = vadd.f32 1.0, %v5808_v60 }
 0x115   : > { %v5877_v18 = vpop.eup %5298  ;;  %v5879_v26 = vmax.f32 %v1118_v22, %v1157_v36  ;;  %v5889_v34 = vsel %vm1002_vm2, %v9446_v53, %v1006_v25  ;;  %v851_v36 = vrot.slane %v5833_v11, 6  ;;  %v5898_v22 = vmul.f32 %v5289_v13, %v5730_v37 }
 0x116   : > { %v5884_v58 = vpop.eup %5300  ;;  %v5894_v5 = vsel %vm1147_vm3, %v9445_v28, %v1151_v0  ;;  %9642 = vst [vmem:[#allocation15_spill] sm:$0xff] %v5903_v57  ;;  %v5906_v25 = vmul.f32 %v5297_v54, %v5738_v43  ;;  %v5923_v29 = vpop.f32.mrf.mxu0  ;;  %5308 = vrcp.f32 %v5909_v23  ;;  %v4668_v23 = vmul.f32 -1.442695, %v5789_v47 }
 0x117   : > { %9640 = vst [vmem:[#allocation13_spill] sm:$0xff] %v5879_v26  ;;  %9641 = vst [vmem:[#allocation14_spill] sm:$0xff] %v5898_v22  ;;  %v5303_v35 = vpop.eup %5302  ;;  %v5914_v10 = vsel %vm841_vm1, -3.4028235e+38, %v851_v36  ;;  %v848_v37 = vrot.slane %v5898_v22, 6  ;;  %5310 = vrcp.f32 %v5921_v40 }
 0x118   : > { %9643 = vst [vmem:[#allocation16_spill] sm:$0xff] %v5906_v25  ;;  %v5911_v0 = vpop.eup %5304  ;;  %v5918_v13 = vmul.f32 %v5303_v35, %v5742_v46  ;;  %v1018_v43 = vrot.slane %v5914_v10, 1  ;;  %v1163_v49 = vrot.slane %v5914_v10, 2  ;;  %v1308_v54 = vrot.slane %v5914_v10, 3  ;;  %v5947_v52 = vpop.f32.mrf.mxu0 }
 0x119   : > { %v5307_v14 = vpop.eup %5306  ;;  %v5930_v27 = vsel %vm841_vm1, -3.4028235e+38, %v848_v37  ;;  %v852_v46 = vrot.slane %v5903_v57, 6  ;;  %v849_v35 = vrot.slane %v5906_v25, 6 }
 0x11a   : > { %9644 = vst [vmem:[#allocation17_spill] sm:$0xff] %v5918_v13  ;;  %v1013_v55 = vrot.slane %v5930_v27, 1  ;;  %v1158_v16 = vrot.slane %v5930_v27, 2  ;;  %v5963_v45 = vpop.f32.mrf.mxu0 }
 0x11b   : > { %v5940_v4 = vsel %vm841_vm1, %v851_v36, %v852_v46  ;;  %v957_v1 = vsel %vm841_vm1, %v852_v46, -3.4028235e+38  ;;  %v5944_v53 = vsel %vm841_vm1, %v848_v37, %v849_v35  ;;  %v956_v30 = vsel %vm841_vm1, %v849_v35, -3.4028235e+38 }
 0x11c   : > { %v1019_v60 = vrot.slane %v5940_v4, 1  ;;  %v1021_v42 = vrot.slane %v957_v1, 1  ;;  %v1164_v63 = vrot.slane %v5940_v4, 2  ;;  %v1166_v3 = vrot.slane %v957_v1, 2 }
 0x11d   : > { %v1309_v28 = vrot.slane %v5940_v4, 3  ;;  %v1311_v25 = vrot.slane %v957_v1, 3  ;;  %v9458_v36 = vrot.slane %v5940_v4, 4  ;;  %v1456_v22 = vrot.slane %v957_v1, 4 }
 0x11e   : > { %v1020_v46 = vsel %vm1002_vm2, %v1018_v43, %v1019_v60  ;;  %v1022_v37 = vsel %vm1002_vm2, %v1019_v60, %v1021_v42  ;;  %v1165_v35 = vsel %vm1147_vm3, %v1163_v49, %v1164_v63  ;;  %v1167_v11 = vsel %vm1147_vm3, %v1164_v63, %v1166_v3 }
 0x11f   : > { %v1121_v57 = vmax.f32 %v5914_v10, %v1020_v46  ;;  %v1122_v31 = vmax.f32 %v5940_v4, %v1022_v37  ;;  %v5960_v26 = vsel %vm1292_vm4, %v1308_v54, %v1309_v28  ;;  %v1312_v44 = vsel %vm1292_vm4, %v1309_v28, %v1311_v25 }
 0x120   : > { %v1457_v1 = vsel %vm1437_vm5, %v9458_v36, %v1456_v22  ;;  %v1014_v42 = vrot.slane %v5944_v53, 1  ;;  %v1016_v43 = vrot.slane %v956_v30, 1  ;;  %v1159_v63 = vrot.slane %v5944_v53, 2 }
 0x121   : > { %v5970_v3 = vmax.f32 %v1121_v57, %v1165_v35  ;;  %v1267_v49 = vmax.f32 %v1122_v31, %v1167_v11  ;;  %v1161_v60 = vrot.slane %v956_v30, 2  ;;  %v9460_v54 = vrot.slane %v5944_v53, 3  ;;  %v4875_v11 = vpop.f32.mrf.mxu0 }
 0x122   : > { %v5974_v46 = vsel %vm1002_vm2, %v1013_v55, %v1014_v42  ;;  %v1017_v28 = vsel %vm1002_vm2, %v1014_v42, %v1016_v43  ;;  %v5978_v25 = vsel %vm1147_vm3, %v1158_v16, %v1159_v63  ;;  %v1306_v22 = vrot.slane %v956_v30, 3 }
 0x123   : > { %v1412_v37 = vmax.f32 %v1267_v49, %v1312_v44  ;;  %v1120_v57 = vmax.f32 %v5944_v53, %v1017_v28  ;;  %v1162_v31 = vsel %vm1147_vm3, %v1159_v63, %v1161_v60  ;;  %v9459_v35 = vrot.slane %v5944_v53, 4 }
 0x124   : > { %v5987_v55 = vsel %vm1292_vm4, %v9460_v54, %v1306_v22  ;;  %v1451_v42 = vrot.slane %v956_v30, 4  ;;  %v9645_v16 = vrot.slane %v5918_v13, 6  ;;  %v694_v22 = vadd.f32 1.0, %v5877_v18 }
 0x125   : > { %v5995_v43 = vmax.f32 %v1412_v37, %v1457_v1  ;;  %v5997_v49 = vmax.f32 %v1120_v57, %v1162_v31  ;;  %v695_v37 = vadd.f32 1.0, %v5823_v8  ;;  %v693_v57 = vadd.f32 1.0, %v5841_v21  ;;  %v570_v31 = vpop.f32.mrf.mxu0 }
 0x126   : > { %v5993_v44 = vsel %vm841_vm1, -3.4028235e+38, %v9645_v16  ;;  %v6004_v28 = vsel %vm1437_vm5, %v9459_v35, %v1451_v42  ;;  %v6009_v16 = vmul.f32 %v5307_v14, %v5746_v51  ;;  %v696_v35 = vadd.f32 1.0, %v5859_v41 }
 0x127   : > { %9646 = vst [vmem:[#allocation18_spill] sm:$0xff] %v5993_v44  ;;  %9647 = vst [vmem:[#allocation19_spill] sm:$0xff] %v5995_v43  ;;  %5312 = vrcp.f32 %v695_v37  ;;  %v699_v51 = vadd.f32 1.0, %v5884_v58  ;;  %v697_v14 = vadd.f32 1.0, %v5911_v0  ;;  %v6030_v21 = vadd.f32 %v5707_v20, %v5791_v48  ;;  %v4876_v37 = vpop.f32.mrf.mxu0 }
 0x128   : > { %9648 = vst [vmem:[#allocation20_spill] sm:$0xff] %v6009_v16  ;;  %v9461_v42 = vrot.slane %v6009_v16, 6  ;;  %5314 = vrcp.f32 %v693_v57  ;;  %v6034_v41 = vadd.f32 %v5806_v59, %v5707_v20  ;;  %v6044_v48 = vadd.f32 %v5707_v20, %v5821_v6 }
 0x129   : > { %5316 = vrcp.f32 %v696_v35  ;;  %v4666_v57 = vmul.f32 -1.442695, %v6030_v21  ;;  %v6048_v59 = vadd.f32 %v5839_v19, %v5707_v20  ;;  %v6052_v0 = vadd.f32 %v5707_v20, %v5857_v39 }
 0x12a   : > { %v6026_v8 = vsel %vm841_vm1, -3.4028235e+38, %v9461_v42  ;;  %9649 = vst [vmem:[#allocation21_spill] sm:$0xff] %v6034_v41  ;;  %v4671_v1 = vmul.f32 -1.442695, %v6034_v41  ;;  %9650 = vst [vmem:[#allocation22_spill] sm:$0xff] %v6044_v48  ;;  %5318 = vrcp.f32 %v694_v22  ;;  %v6056_v35 = vadd.f32 %v5875_v15, %v5707_v20  ;;  %v573_v15 = vpop.f32.mrf.mxu0 }
 0x12b   : > { %9651 = vst [vmem:[#allocation23_spill] sm:$0xff] %v6048_v59  ;;  %9652 = vst [vmem:[#allocation24_spill] sm:$0xff] %v6052_v0  ;;  %5320 = vrcp.f32 %v699_v51  ;;  %v4669_v40 = vmul.f32 -1.442695, %v6044_v48  ;;  %v6061_v6 = vadd.f32 %v5707_v20, %v5923_v29  ;;  %v6065_v22 = vadd.f32 %v5947_v52, %v5707_v20 }
 0x12c   : > { %9653 = vst [vmem:[#allocation25_spill] sm:$0xff] %v6056_v35  ;;  %5322 = vrcp.f32 %v697_v14  ;;  %v4672_v19 = vmul.f32 -1.442695, %v6048_v59  ;;  %v4670_v39 = vmul.f32 -1.442695, %v6052_v0  ;;  %v6074_v29 = vadd.f32 %v5707_v20, %v5963_v45 }
 0x12d   : > { %9654 = vst [vmem:[#allocation26_spill] sm:$0xff] %v6061_v6  ;;  %9655 = vst [vmem:[#allocation27_spill] sm:$0xff] %v6065_v22  ;;  %v4675_v54 = vmul.f32 -1.442695, %v6056_v35  ;;  %5324 = vpow2.f32 %v4668_v23  ;;  %v4673_v51 = vmul.f32 -1.442695, %v6061_v6  ;;  %v6077_v52 = vadd.f32 %v4875_v11, %v5707_v20 }
 0x12e   : > { %v4676_v18 = vmul.f32 -1.442695, %v6065_v22  ;;  %9656 = vst [vmem:[#allocation28_spill] sm:$0xff] %v6074_v29  ;;  %5326 = vpow2.f32 %v4666_v57  ;;  %v6080_v14 = vadd.f32 %v5707_v20, %v570_v31  ;;  %v6083_v58 = vadd.f32 %v4876_v37, %v5707_v20  ;;  %v5309_v37 = vpop.eup %5308 }
 0x12f   : > { %9657 = vst [vmem:[#allocation29_spill] sm:$0xff] %v6077_v52  ;;  %5328 = vpow2.f32 %v4671_v1  ;;  %v4674_v23 = vmul.f32 -1.442695, %v6074_v29  ;;  %v6087_v42 = vadd.f32 %v5707_v20, %v573_v15  ;;  %v9661_v30 = vrot.slane %v5855_v38, 1 }
 0x130   : > { %9658 = vst [vmem:[#allocation30_spill] sm:$0xff] %v6080_v14  ;;  %9659 = vst [vmem:[#allocation31_spill] sm:$0xff] %v6083_v58  ;;  %v9662_v45 = vrot.slane %v5811_v62, 1  ;;  %5330 = vpow2.f32 %v4669_v40  ;;  %v6095_v11 = vmul.f32 -1.442695, %v6077_v52  ;;  %v5311_v40 = vpop.eup %5310  ;;  %v9664_v60 = vrot.slane %v5855_v38, 2 }
 0x131   : > { %9660 = vst [vmem:[#allocation32_spill] sm:$0xff] %v6087_v42  ;;  %v6098_v31 = vmul.f32 -1.442695, %v6080_v14  ;;  %v6101_v1 = vmul.f32 -1.442695, %v6083_v58  ;;  %5332 = vpow2.f32 %v4672_v19  ;;  %v9665_v63 = vrot.slane %v5811_v62, 2 }
 0x132   : > { %v1005_v57 = vsel %vm1002_vm2, %v9662_v45, %v9661_v30  ;;  %v6104_v20 = vmul.f32 -1.442695, %v6087_v42  ;;  %v1117_v30 = vmax.f32 %v5796_v50, %v5848_v32  ;;  %v6110_v45 = vmul.f32 %v5309_v37, %v5750_v56 }
 0x133   : > { %v1115_v15 = vmax.f32 %v5811_v62, %v1005_v57  ;;  %5334 = vpow2.f32 %v4670_v39  ;;  %v1150_v36 = vsel %vm1147_vm3, %v9665_v63, %v9664_v60  ;;  %v9666_v19 = vrot.slane %v5826_v9, 2 }
 0x134   : > { %9663 = vst [vmem:[#allocation33_spill] sm:$0xff] %v6110_v45  ;;  %v9667_v42 = vrot.slane %v5796_v50, 2  ;;  %v5313_v58 = vpop.eup %5312  ;;  %v6123_v32 = vmul.f32 %v5311_v40, %v5754_v61  ;;  %5336 = vpow2.f32 %v4675_v54  ;;  %v9669_v39 = vmax.f32 %v5855_v38, %v5889_v34 }
 0x135   : > { %v6125_v56 = vmax.f32 %v1115_v15, %v1150_v36  ;;  %v5315_v63 = vpop.eup %5314  ;;  %v858_v60 = vrot.slane %v6110_v45, 6  ;;  %v6135_v14 = vmul.f32 %v5313_v58, %v5758_v2  ;;  %5338 = vpow2.f32 %v4673_v51 }
 0x136   : > { %v1155_v57 = vsel %vm1147_vm3, %v9667_v42, %v9666_v19  ;;  %9668 = vst [vmem:[#allocation34_spill] sm:$0xff] %v6123_v32  ;;  %v6131_v37 = vmax.f32 %v9669_v39, %v5894_v5  ;;  %v855_v61 = vrot.slane %v6123_v32, 6  ;;  %v6141_v36 = vmul.f32 %v5315_v63, %v5762_v7  ;;  %v6149_v54 = vpop.eup %5316 }
 0x137   : > { %9670 = vst [vmem:[#allocation35_spill] sm:$0xff] %v6135_v14  ;;  %v6137_v42 = vmax.f32 %v1117_v30, %v1155_v57  ;;  %5340 = vpow2.f32 %v4676_v18  ;;  %v9672_v5 = vmax.f32 %v5930_v27, %v5974_v46  ;;  %v9673_v2 = vrot.slane %v5918_v13, 6  ;;  %v5319_v7 = vpop.eup %5318 }
 0x138   : > { %9671 = vst [vmem:[#allocation36_spill] sm:$0xff] %v6141_v36  ;;  %v959_v51 = vsel %vm841_vm1, %v858_v60, -3.4028235e+38  ;;  %5342 = vpow2.f32 %v4674_v23  ;;  %v5321_v40 = vpop.eup %5320  ;;  %v9676_v15 = vrot.slane %v5993_v44, 2  ;;  %v9684_v22 = vrot.slane %v6026_v8, 1 }
 0x139   : > { %v6147_v34 = vmax.f32 %v9672_v5, %v5978_v25  ;;  %v6154_v58 = vsel %vm841_vm1, %v9673_v2, %v858_v60  ;;  %v1031_v30 = vrot.slane %v959_v51, 1  ;;  %v1176_v25 = vrot.slane %v959_v51, 2  ;;  %v5323_v5 = vpop.eup %5322 }
 0x13a   : > { %9674 = vst [vmem:[#allocation37_spill] sm:$0xff] %v6154_v58  ;;  %v1029_v18 = vrot.slane %v6154_v58, 1  ;;  %v1174_v46 = vrot.slane %v6154_v58, 2  ;;  %v1319_v19 = vrot.slane %v6154_v58, 3  ;;  %v1321_v57 = vrot.slane %v959_v51, 3  ;;  %v5325_v32 = vpop.eup %5324 }
 0x13b   : > { %v1466_v63 = vrot.slane %v959_v51, 4  ;;  %v9675_v60 = vrot.slane %v5993_v44, 1  ;;  %v9677_v51 = vrot.slane %v5993_v44, 3  ;;  %v5327_v29 = vpop.eup %5326  ;;  %v9685_v6 = vrot.slane %v6026_v8, 2 }
 0x13c   : > { %v1032_v23 = vsel %vm1002_vm2, %v1029_v18, %v1031_v30  ;;  %v1175_v13 = vsel %vm1147_vm3, %v9676_v15, %v1174_v46  ;;  %v1177_v45 = vsel %vm1147_vm3, %v1174_v46, %v1176_v25  ;;  %v9680_v15 = vrot.slane %v6009_v16, 6 }
 0x13d   : > { %v1030_v2 = vsel %vm1002_vm2, %v9675_v60, %v1029_v18  ;;  %v1126_v43 = vmax.f32 %v6154_v58, %v1032_v23  ;;  %v6175_v39 = vsel %vm1292_vm4, %v9677_v51, %v1319_v19  ;;  %v1322_v60 = vsel %vm1292_vm4, %v1319_v19, %v1321_v57  ;;  %v6192_v51 = vpop.eup %5328 }
 0x13e   : > { %v1125_v52 = vmax.f32 %v5993_v44, %v1030_v2  ;;  %9678 = vst [vmem:[#allocation38_spill] sm:$0xff] %v6175_v39  ;;  %v9679_v18 = vrot.slane %v6154_v58, 4  ;;  %v6184_v46 = vsel %vm841_vm1, %v9680_v15, %v855_v61  ;;  %v958_v25 = vsel %vm841_vm1, %v855_v61, -3.4028235e+38 }
 0x13f   : > { %v9681_v2 = vrot.slane %v6135_v14, 6  ;;  %v1271_v57 = vmax.f32 %v1126_v43, %v1177_v45  ;;  %v1024_v44 = vrot.slane %v6184_v46, 1  ;;  %v1169_v15 = vrot.slane %v6184_v46, 2 }
 0x140   : > { %v1467_v30 = vsel %vm1437_vm5, %v9679_v18, %v1466_v63  ;;  %v6194_v19 = vmax.f32 %v1125_v52, %v1175_v13  ;;  %v1026_v63 = vrot.slane %v958_v25, 1  ;;  %v6197_v18 = vpop.eup %5330  ;;  %v1171_v16 = vrot.slane %v958_v25, 2 }
 0x141   : > { %v6190_v23 = vsel %vm841_vm1, -3.4028235e+38, %v9681_v2  ;;  %v1316_v58 = vrot.slane %v958_v25, 3  ;;  %v6201_v39 = vpop.eup %5332  ;;  %v1416_v2 = vmax.f32 %v1271_v57, %v1322_v60  ;;  %v6206_v13 = vsel %vm1002_vm2, %v9684_v22, %v1024_v44 }
 0x142   : > { %9682 = vst [vmem:[#allocation39_spill] sm:$0xff] %v6190_v23  ;;  %9683 = vst [vmem:[#allocation40_spill] sm:$0xff] %v6194_v19  ;;  %v1027_v43 = vsel %vm1002_vm2, %v1024_v44, %v1026_v63  ;;  %v6210_v45 = vpop.eup %5334  ;;  %v6218_v60 = vsel %vm1147_vm3, %v9685_v6, %v1169_v15  ;;  %v1172_v57 = vsel %vm1147_vm3, %v1169_v15, %v1171_v16  ;;  %v9687_v44 = vrot.slane %v6184_v46, 3 }
 0x143   : > { %v1124_v61 = vmax.f32 %v6184_v46, %v1027_v43  ;;  %v6221_v22 = vpop.eup %5336  ;;  %v6223_v35 = vmax.f32 %v1416_v2, %v1467_v30  ;;  %v1461_v52 = vrot.slane %v958_v25, 4  ;;  %v1038_v19 = vrot.slane %v6190_v23, 1 }
 0x144   : > { %v6228_v63 = vsel %vm1292_vm4, %v9687_v44, %v1316_v58  ;;  %v6231_v43 = vpop.eup %5338  ;;  %v1183_v6 = vrot.slane %v6190_v23, 2  ;;  %v9690_v2 = vrot.slane %v6184_v46, 4  ;;  %v860_v25 = vrot.slane %v6141_v36, 6 }
 0x145   : > { %9686 = vst [vmem:[#allocation41_spill] sm:$0xff] %v6223_v35  ;;  %9688 = vst [vmem:[#allocation42_spill] sm:$0xff] %v6228_v63  ;;  %v6233_v0 = vmax.f32 %v1124_v61, %v1172_v57  ;;  %v6238_v30 = vpop.eup %5340  ;;  %v6248_v44 = vmul.f32 %v6149_v54, %v5766_v12  ;;  %v6251_v61 = vmul.f32 %v5319_v7, %v5770_v17  ;;  %v698_v54 = vadd.f32 1.0, %v5327_v29 }
 0x146   : > { %v6243_v58 = vsel %vm1437_vm5, %v9690_v2, %v1461_v52  ;;  %v6253_v57 = vpop.eup %5342  ;;  %v6258_v16 = vmul.f32 %v5321_v40, %v5774_v24  ;;  %v6261_v52 = vmul.f32 %v5323_v5, %v5781_v33  ;;  %v700_v2 = vadd.f32 1.0, %v5325_v32 }
 0x147   : > { %9689 = vst [vmem:[#allocation43_spill] sm:$0xff] %v6233_v0  ;;  %9691 = vst [vmem:[#allocation44_spill] sm:$0xff] %v6243_v58  ;;  %v6264_v36 = vsel %vm841_vm1, -3.4028235e+38, %v860_v25  ;;  %v864_v12 = vrot.slane %v6248_v44, 6  ;;  %v861_v17 = vrot.slane %v6251_v61, 6 }
 0x148   : > { %9692 = vst [vmem:[#allocation45_spill] sm:$0xff] %v6248_v44  ;;  %9693 = vst [vmem:[#allocation46_spill] sm:$0xff] %v6251_v61  ;;  %v1033_v7 = vrot.slane %v6264_v36, 1  ;;  %v1178_v35 = vrot.slane %v6264_v36, 2  ;;  %v1323_v15 = vrot.slane %v6264_v36, 3  ;;  %v9696_v33 = vrot.slane %v6135_v14, 6 }
 0x149   : > { %9694 = vst [vmem:[#allocation47_spill] sm:$0xff] %v6258_v16  ;;  %9695 = vst [vmem:[#allocation48_spill] sm:$0xff] %v6261_v52  ;;  %v961_v40 = vsel %vm841_vm1, %v864_v12, -3.4028235e+38  ;;  %v6279_v5 = vsel %vm841_vm1, %v860_v25, %v861_v17  ;;  %v960_v29 = vsel %vm841_vm1, %v861_v17, -3.4028235e+38  ;;  %5344 = vrcp.f32 %v700_v2 }
 0x14a   : > { %v6275_v32 = vsel %vm841_vm1, %v9696_v33, %v864_v12  ;;  %v1041_v61 = vrot.slane %v961_v40, 1  ;;  %v1186_v48 = vrot.slane %v961_v40, 2  ;;  %v1331_v41 = vrot.slane %v961_v40, 3 }
 0x14b   : > { %9697 = vst [vmem:[#allocation49_spill] sm:$0xff] %v6275_v32  ;;  %v1039_v44 = vrot.slane %v6275_v32, 1  ;;  %v1184_v59 = vrot.slane %v6275_v32, 2  ;;  %v9489_v24 = vrot.slane %v6275_v32, 3  ;;  %v1476_v33 = vrot.slane %v961_v40, 4 }
 0x14c   : > { %v1326_v0 = vrot.slane %v960_v29, 3  ;;  %v1471_v23 = vrot.slane %v960_v29, 4  ;;  %5346 = vrcp.f32 %v698_v54  ;;  %v704_v54 = vadd.f32 1.0, %v6201_v39 }
 0x14d   : > { %v6287_v63 = vsel %vm1002_vm2, %v1038_v19, %v1039_v44  ;;  %v1042_v25 = vsel %vm1002_vm2, %v1039_v44, %v1041_v61  ;;  %v6291_v12 = vsel %vm1147_vm3, %v1183_v6, %v1184_v59  ;;  %v1187_v17 = vsel %vm1147_vm3, %v1184_v59, %v1186_v48 }
 0x14e   : > { %9698 = vst [vmem:[#allocation50_spill] sm:$0xff] %v6287_v63  ;;  %v1130_v58 = vmax.f32 %v6275_v32, %v1042_v25  ;;  %v6300_v14 = vsel %vm1292_vm4, %v9489_v24, %v1331_v41  ;;  %v9699_v19 = vrot.slane %v6275_v32, 4  ;;  %v1034_v6 = vrot.slane %v6279_v5, 1 }
 0x14f   : > { %v1036_v44 = vrot.slane %v960_v29, 1  ;;  %v1179_v48 = vrot.slane %v6279_v5, 2  ;;  %v1181_v59 = vrot.slane %v960_v29, 2  ;;  %v1324_v25 = vrot.slane %v6279_v5, 3 }
 0x150   : > { %v6305_v40 = vsel %vm1437_vm5, %v9699_v19, %v1476_v33  ;;  %v6309_v61 = vmax.f32 %v1130_v58, %v1187_v17  ;;  %v1035_v41 = vsel %vm1002_vm2, %v1033_v7, %v1034_v6  ;;  %v869_v7 = vrot.slane %v6258_v16, 6 }
 0x151   : > { %9700 = vst [vmem:[#allocation51_spill] sm:$0xff] %v6305_v40  ;;  %v1037_v24 = vsel %vm1002_vm2, %v1034_v6, %v1036_v44  ;;  %v1180_v33 = vsel %vm1147_vm3, %v1178_v35, %v1179_v48  ;;  %v1182_v19 = vsel %vm1147_vm3, %v1179_v48, %v1181_v59  ;;  %v1127_v32 = vmax.f32 %v6264_v36, %v1035_v41 }
 0x152   : > { %v1128_v58 = vmax.f32 %v6279_v5, %v1037_v24  ;;  %v6322_v17 = vsel %vm1292_vm4, %v1323_v15, %v1324_v25  ;;  %v1327_v63 = vsel %vm1292_vm4, %v1324_v25, %v1326_v0  ;;  %v866_v6 = vrot.slane %v6261_v52, 6 }
 0x153   : > { %v6327_v35 = vmax.f32 %v1127_v32, %v1180_v33  ;;  %v703_v48 = vadd.f32 1.0, %v6192_v51  ;;  %v9701_v59 = vrot.slane %v6279_v5, 4  ;;  %v6336_v15 = vsel %vm841_vm1, -3.4028235e+38, %v869_v7 }
 0x154   : > { %v1273_v44 = vmax.f32 %v1128_v58, %v1182_v19  ;;  %v6341_v0 = vsel %vm841_vm1, -3.4028235e+38, %v866_v6  ;;  %v1048_v2 = vrot.slane %v6336_v15, 1  ;;  %v1193_v51 = vrot.slane %v6336_v15, 2 }
 0x155   : > { %v1472_v24 = vsel %vm1437_vm5, %v9701_v59, %v1471_v23  ;;  %v1338_v29 = vrot.slane %v6336_v15, 3  ;;  %5348 = vrcp.f32 %v703_v48  ;;  %v707_v59 = vadd.f32 1.0, %v6221_v22  ;;  %v9705_v22 = vld [vmem:[#allocation12_spill] sm:$0xff] }
 0x156   : > { %v1418_v32 = vmax.f32 %v1273_v44, %v1327_v63  ;;  %v701_v63 = vadd.f32 1.0, %v6197_v18  ;;  %v702_v44 = vadd.f32 1.0, %v6210_v45  ;;  %v705_v23 = vadd.f32 1.0, %v6231_v43 }
 0x157   : > { %v708_v40 = vadd.f32 1.0, %v6238_v30  ;;  %v706_v33 = vadd.f32 1.0, %v6253_v57  ;;  %v9703_v18 = vrot.slane %v5855_v38, 3  ;;  %v9704_v39 = vrot.slane %v5811_v62, 3 }
 0x158   : > { %v6350_v19 = vmax.f32 %v1418_v32, %v1472_v24  ;;  %5350 = vrcp.f32 %v701_v63  ;;  %v9702_v24 = vmax.f32 %v6026_v8, %v6206_v13  ;;  %v9706_v32 = vrot.slane %v9705_v22, 3 }
 0x159   : > { %5352 = vrcp.f32 %v704_v54  ;;  %v1295_v45 = vsel %vm1292_vm4, %v9704_v39, %v9703_v18  ;;  %v9707_v43 = vmov %v9703_v18  ;;  %v9708_v57 = vrot.slane %v5826_v9, 3 }
 0x15a   : > { %v1268_v48 = vmax.f32 %v9702_v24, %v6218_v60  ;;  %v1297_v30 = vsel %vm1292_vm4, %v9707_v43, %v9706_v32  ;;  %v9709_v63 = vrot.slane %v5796_v50, 3  ;;  %5354 = vrcp.f32 %v702_v44  ;;  %v9714_v44 = vld [vmem:[#allocation11_spill] sm:$0xff] }
 0x15b   : > { %v9710_v60 = vrot.slane %v5944_v53, 3  ;;  %v9711_v54 = vrot.slane %v5930_v27, 3  ;;  %v9712_v18 = vrot.slane %v6184_v46, 3  ;;  %v9713_v39 = vrot.slane %v6026_v8, 3 }
 0x15c   : > { %v1300_v13 = vsel %vm1292_vm4, %v9709_v63, %v9708_v57  ;;  %v1405_v32 = vmax.f32 %v6125_v56, %v1295_v45  ;;  %5356 = vrcp.f32 %v707_v59  ;;  %v1406_v43 = vmax.f32 %v6131_v37, %v1297_v30  ;;  %v9715_v63 = vld [vmem:[#allocation13_spill] sm:$0xff] }
 0x15d   : > { %v1305_v24 = vsel %vm1292_vm4, %v9711_v54, %v9710_v60  ;;  %v1315_v58 = vsel %vm1292_vm4, %v9713_v39, %v9712_v18  ;;  %v1407_v57 = vmax.f32 %v6137_v42, %v1300_v13  ;;  %v1408_v41 = vmax.f32 %v9715_v63, %v9714_v44 }
 0x15e   : > { %5358 = vrcp.f32 %v705_v23  ;;  %v1409_v25 = vmax.f32 %v6147_v34, %v1305_v24  ;;  %v1411_v60 = vmax.f32 %v5970_v3, %v5960_v26  ;;  %v1413_v54 = vmax.f32 %v1268_v48, %v1315_v58  ;;  %v9722_v3 = vld [vmem:[#allocation9_spill] sm:$0xff]  ;;  %v5345_v24 = vpop.eup %5344 }
 0x15f   : > { %5360 = vrcp.f32 %v708_v40  ;;  %v9716_v18 = vrot.slane %v5855_v38, 4  ;;  %v9717_v56 = vrot.slane %v5811_v62, 4  ;;  %v9718_v37 = vrot.slane %v9705_v22, 4  ;;  %v5347_v44 = vpop.eup %5346 }
 0x160   : > { %v9720_v23 = vrot.slane %v5826_v9, 4  ;;  %v9721_v34 = vrot.slane %v5796_v50, 4  ;;  %5362 = vrcp.f32 %v706_v33  ;;  %v9723_v40 = vrot.slane %v9722_v3, 4 }
 0x161   : > { %v1440_v59 = vsel %vm1437_vm5, %v9717_v56, %v9716_v18  ;;  %v9719_v42 = vmov %v9716_v18  ;;  %v9725_v48 = vrot.slane %v5944_v53, 4  ;;  %v9726_v22 = vrot.slane %v5930_v27, 4 }
 0x162   : > { %v1442_v45 = vsel %vm1437_vm5, %v9719_v42, %v9718_v37  ;;  %v1445_v26 = vsel %vm1437_vm5, %v9721_v34, %v9720_v23  ;;  %v9724_v58 = vmov %v9720_v23  ;;  %v9727_v30 = vrot.slane %v5940_v4, 4 }
 0x163   : > { %v1447_v62 = vsel %vm1437_vm5, %v9724_v58, %v9723_v40  ;;  %v1450_v38 = vsel %vm1437_vm5, %v9726_v22, %v9725_v48  ;;  %v9728_v13 = vrot.slane %v5914_v10, 4  ;;  %5364 = vpow2.f32 %v6095_v11 }
 0x164   : > { %v9729_v33 = vrot.slane %v6184_v46, 4  ;;  %v9730_v9 = vrot.slane %v6026_v8, 4  ;;  %v6433_v53 = vmax.f32 %v1405_v32, %v1440_v59  ;;  %v6435_v27 = vmax.f32 %v1406_v43, %v1442_v45  ;;  %v9755_v59 = vld [vmem:[#allocation27_spill] sm:$0xff] }
 0x165   : > { %v1455_v50 = vsel %vm1437_vm5, %v9728_v13, %v9727_v30  ;;  %v6438_v4 = vmul.f32 %v5345_v24, %v5789_v47  ;;  %5366 = vpow2.f32 %v6098_v31  ;;  %v6441_v10 = vmax.f32 %v1407_v57, %v1445_v26  ;;  %v9736_v57 = vld [vmem:[#allocation42_spill] sm:$0xff] }
 0x166   : > { %v1460_v39 = vsel %vm1437_vm5, %v9730_v9, %v9729_v33  ;;  %v6443_v63 = vmax.f32 %v1408_v41, %v1447_v62  ;;  %v6446_v11 = vmul.f32 %v5347_v44, %v6030_v21  ;;  %5368 = vpow2.f32 %v6101_v1  ;;  %v5349_v21 = vpop.eup %5348  ;;  %v9734_v1 = vld [vmem:[#allocation44_spill] sm:$0xff] }
 0x167   : > { %9731 = vst [vmem:[#allocation12_spill] sm:$0xff] %v6438_v4  ;;  %v6449_v8 = vmax.f32 %v1409_v25, %v1450_v38  ;;  %v9733_v46 = vmax.f32 %v5997_v49, %v5987_v55  ;;  %v870_v47 = vrot.slane %v6438_v4, 6  ;;  %5370 = vpow2.f32 %v6104_v20  ;;  %v9735_v25 = vld [vmem:[#allocation43_spill] sm:$0xff]  ;;  %v5351_v37 = vpop.eup %5350 }
 0x168   : > { %9732 = vst [vmem:[#allocation11_spill] sm:$0xff] %v6446_v11  ;;  %v6459_v31 = vmax.f32 %v1411_v60, %v1455_v50  ;;  %v6461_v41 = vmax.f32 %v1413_v54, %v1460_v39  ;;  %v867_v43 = vrot.slane %v6446_v11, 6  ;;  %v9737_v18 = vmax.f32 %v9735_v25, %v9736_v57  ;;  %v9738_v60 = vld [vmem:[#allocation21_spill] sm:$0xff]  ;;  %v5353_v26 = vpop.eup %5352 }
 0x169   : > { %v6455_v32 = vmax.f32 %v9733_v46, %v6004_v28  ;;  %v6476_v28 = vsel %vm841_vm1, %v869_v7, %v870_v47  ;;  %v963_v20 = vsel %vm841_vm1, %v870_v47, -3.4028235e+38  ;;  %v6480_v54 = vmul.f32 %v5349_v21, %v9738_v60  ;;  %v5355_v62 = vpop.eup %5354 }
 0x16a   : > { %v6468_v56 = vmax.f32 %v9737_v18, %v9734_v1  ;;  %v1049_v42 = vrot.slane %v6476_v28, 1  ;;  %v1051_v45 = vrot.slane %v963_v20, 1  ;;  %v1194_v23 = vrot.slane %v6476_v28, 2  ;;  %v5357_v13 = vpop.eup %5356 }
 0x16b   : > { %9739 = vst [vmem:[#allocation13_spill] sm:$0xff] %v6480_v54  ;;  %v1196_v34 = vrot.slane %v963_v20, 2  ;;  %v1339_v3 = vrot.slane %v6476_v28, 3  ;;  %v1341_v7 = vrot.slane %v963_v20, 3  ;;  %v9494_v40 = vrot.slane %v6476_v28, 4  ;;  %v5359_v9 = vpop.eup %5358 }
 0x16c   : > { %v1486_v58 = vrot.slane %v963_v20, 4  ;;  %v1050_v48 = vsel %vm1002_vm2, %v1048_v2, %v1049_v42  ;;  %v1052_v22 = vsel %vm1002_vm2, %v1049_v42, %v1051_v45  ;;  %v1195_v38 = vsel %vm1147_vm3, %v1193_v51, %v1194_v23  ;;  %v5361_v47 = vpop.eup %5360 }
 0x16d   : > { %v1197_v30 = vsel %vm1147_vm3, %v1194_v23, %v1196_v34  ;;  %v1133_v50 = vmax.f32 %v6336_v15, %v1050_v48  ;;  %v1134_v24 = vmax.f32 %v6476_v28, %v1052_v22  ;;  %v6501_v33 = vsel %vm1292_vm4, %v1338_v29, %v1339_v3  ;;  %v5363_v57 = vpop.eup %5362 }
 0x16e   : > { %v1342_v2 = vsel %vm1292_vm4, %v1339_v3, %v1341_v7  ;;  %v1487_v39 = vsel %vm1437_vm5, %v9494_v40, %v1486_v58  ;;  %v6510_v51 = vsel %vm841_vm1, %v866_v6, %v867_v43  ;;  %v962_v44 = vsel %vm841_vm1, %v867_v43, -3.4028235e+38 }
 0x16f   : > { %v875_v46 = vrot.slane %v6480_v54, 6  ;;  %v6514_v21 = vmax.f32 %v1133_v50, %v1195_v38  ;;  %v1279_v29 = vmax.f32 %v1134_v24, %v1197_v30  ;;  %v1044_v1 = vrot.slane %v6510_v51, 1 }
 0x170   : > { %v1046_v25 = vrot.slane %v962_v44, 1  ;;  %v1189_v18 = vrot.slane %v6510_v51, 2  ;;  %v1191_v20 = vrot.slane %v962_v44, 2  ;;  %v1334_v60 = vrot.slane %v6510_v51, 3  ;;  %v6519_v6 = vpop.eup %5364 }
 0x171   : > { %v1336_v42 = vrot.slane %v962_v44, 3  ;;  %v1424_v45 = vmax.f32 %v1279_v29, %v1342_v2  ;;  %v9740_v43 = vrot.slane %v6341_v0, 1  ;;  %v9495_v3 = vrot.slane %v6510_v51, 4 }
 0x172   : > { %v1047_v34 = vsel %vm1002_vm2, %v1044_v1, %v1046_v25  ;;  %v6526_v7 = vpop.eup %5366  ;;  %v9741_v22 = vrot.slane %v6341_v0, 2  ;;  %v1192_v30 = vsel %vm1147_vm3, %v1189_v18, %v1191_v20  ;;  %v9743_v2 = vrot.slane %v6341_v0, 3 }
 0x173   : > { %v1045_v23 = vsel %vm1002_vm2, %v9740_v43, %v1044_v1  ;;  %v1132_v48 = vmax.f32 %v6510_v51, %v1047_v34  ;;  %v6534_v50 = vpop.eup %5368  ;;  %v6536_v24 = vmax.f32 %v1424_v45, %v1487_v39  ;;  %v1337_v1 = vsel %vm1292_vm4, %v1334_v60, %v1336_v42 }
 0x174   : > { %v1131_v58 = vmax.f32 %v6341_v0, %v1045_v23  ;;  %v1190_v38 = vsel %vm1147_vm3, %v9741_v22, %v1189_v18  ;;  %v6541_v29 = vsel %vm1292_vm4, %v9743_v2, %v1334_v60  ;;  %v1481_v25 = vrot.slane %v962_v44, 4  ;;  %v6544_v43 = vpop.eup %5370  ;;  %v9745_v18 = vld [vmem:[#allocation22_spill] sm:$0xff] }
 0x175   : > { %9742 = vst [vmem:[#allocation9_spill] sm:$0xff] %v6536_v24  ;;  %v1277_v34 = vmax.f32 %v1132_v48, %v1192_v30  ;;  %v6549_v22 = vsel %vm841_vm1, -3.4028235e+38, %v875_v46  ;;  %v6552_v20 = vmul.f32 %v5351_v37, %v9745_v18  ;;  %v9749_v37 = vld [vmem:[#allocation24_spill] sm:$0xff]  ;;  %v9751_v18 = vld [vmem:[#allocation25_spill] sm:$0xff]  ;;  %v6575_v49 = vmul.f32 %v5361_v47, %v9755_v59 }
 0x176   : > { %v6546_v23 = vmax.f32 %v1131_v58, %v1190_v38  ;;  %9744 = vst [vmem:[#allocation44_spill] sm:$0xff] %v6549_v22  ;;  %v1482_v39 = vsel %vm1437_vm5, %v9495_v3, %v1481_v25  ;;  %v1058_v45 = vrot.slane %v6549_v22, 1  ;;  %v1203_v60 = vrot.slane %v6549_v22, 2  ;;  %v9747_v38 = vld [vmem:[#allocation23_spill] sm:$0xff]  ;;  %v9753_v25 = vld [vmem:[#allocation26_spill] sm:$0xff] }
 0x177   : > { %9746 = vst [vmem:[#allocation43_spill] sm:$0xff] %v6552_v20  ;;  %v1348_v44 = vrot.slane %v6549_v22, 3  ;;  %v1422_v42 = vmax.f32 %v1277_v34, %v1337_v1  ;;  %v872_v48 = vrot.slane %v6552_v20, 6  ;;  %v6563_v30 = vmul.f32 %v5353_v26, %v9747_v38  ;;  %9756 = vst [vmem:[#allocation24_spill] sm:$0xff] %v6575_v49  ;;  %v9757_v38 = vld [vmem:[#allocation28_spill] sm:$0xff] }
 0x178   : > { %v6566_v2 = vmul.f32 %v5355_v62, %v9749_v37  ;;  %v6569_v40 = vmul.f32 %v5357_v13, %v9751_v18  ;;  %v6572_v3 = vmul.f32 %v5359_v9, %v9753_v25  ;;  %v6584_v58 = vmul.f32 %v5363_v57, %v9757_v38 }
 0x179   : > { %9748 = vst [vmem:[#allocation42_spill] sm:$0xff] %v6563_v30  ;;  %v6577_v1 = vmax.f32 %v1422_v42, %v1482_v39  ;;  %v6580_v34 = vsel %vm841_vm1, -3.4028235e+38, %v872_v48  ;;  %v876_v26 = vrot.slane %v6563_v30, 6 }
 0x17a   : > { %9750 = vst [vmem:[#allocation21_spill] sm:$0xff] %v6566_v2  ;;  %9752 = vst [vmem:[#allocation22_spill] sm:$0xff] %v6569_v40  ;;  %v1053_v62 = vrot.slane %v6580_v34, 1  ;;  %v1198_v13 = vrot.slane %v6580_v34, 2  ;;  %v1343_v9 = vrot.slane %v6580_v34, 3  ;;  %v873_v39 = vrot.slane %v6566_v2, 6 }
 0x17b   : > { %9754 = vst [vmem:[#allocation23_spill] sm:$0xff] %v6572_v3  ;;  %9758 = vst [vmem:[#allocation25_spill] sm:$0xff] %v6584_v58  ;;  %v6591_v59 = vsel %vm841_vm1, %v875_v46, %v876_v26  ;;  %v965_v47 = vsel %vm841_vm1, %v876_v26, -3.4028235e+38 }
 0x17c   : > { %9759 = vst [vmem:[#allocation26_spill] sm:$0xff] %v6591_v59  ;;  %v1059_v57 = vrot.slane %v6591_v59, 1  ;;  %v1061_v18 = vrot.slane %v965_v47, 1  ;;  %v1204_v25 = vrot.slane %v6591_v59, 2  ;;  %v1206_v38 = vrot.slane %v965_v47, 2 }
 0x17d   : > { %v1349_v55 = vrot.slane %v6591_v59, 3  ;;  %v1351_v54 = vrot.slane %v965_v47, 3  ;;  %v9503_v37 = vrot.slane %v6591_v59, 4  ;;  %v1496_v30 = vrot.slane %v965_v47, 4 }
 0x17e   : > { %v1060_v46 = vsel %vm1002_vm2, %v1058_v45, %v1059_v57  ;;  %v1062_v26 = vsel %vm1002_vm2, %v1059_v57, %v1061_v18  ;;  %v1205_v20 = vsel %vm1147_vm3, %v1203_v60, %v1204_v25  ;;  %v1207_v42 = vsel %vm1147_vm3, %v1204_v25, %v1206_v38 }
 0x17f   : > { %v1137_v2 = vmax.f32 %v6549_v22, %v1060_v46  ;;  %v1138_v16 = vmax.f32 %v6591_v59, %v1062_v26  ;;  %v6607_v4 = vsel %vm1292_vm4, %v1348_v44, %v1349_v55  ;;  %v1352_v52 = vsel %vm1292_vm4, %v1349_v55, %v1351_v54 }
 0x180   : > { %9760 = vst [vmem:[#allocation27_spill] sm:$0xff] %v6607_v4  ;;  %v1497_v47 = vsel %vm1437_vm5, %v9503_v37, %v1496_v30  ;;  %v6614_v45 = vsel %vm841_vm1, %v872_v48, %v873_v39  ;;  %v964_v60 = vsel %vm841_vm1, %v873_v39, -3.4028235e+38  ;;  %v9761_v57 = vrot.slane %v6569_v40, 6 }
 0x181   : > { %v6622_v25 = vmax.f32 %v1137_v2, %v1205_v20  ;;  %v1283_v44 = vmax.f32 %v1138_v16, %v1207_v42  ;;  %v1054_v38 = vrot.slane %v6614_v45, 1  ;;  %v1056_v55 = vrot.slane %v964_v60, 1 }
 0x182   : > { %v6620_v18 = vsel %vm841_vm1, -3.4028235e+38, %v9761_v57  ;;  %v1199_v54 = vrot.slane %v6614_v45, 2  ;;  %v1201_v46 = vrot.slane %v964_v60, 2  ;;  %v1344_v30 = vrot.slane %v6614_v45, 3 }
 0x183   : > { %9762 = vst [vmem:[#allocation28_spill] sm:$0xff] %v6620_v18  ;;  %9763 = vst [vmem:[#allocation52_spill] sm:$0xff] %v6622_v25  ;;  %v1346_v48 = vrot.slane %v964_v60, 3  ;;  %v1428_v26 = vmax.f32 %v1283_v44, %v1352_v52  ;;  %v1055_v39 = vsel %vm1002_vm2, %v1053_v62, %v1054_v38  ;;  %v1057_v37 = vsel %vm1002_vm2, %v1054_v38, %v1056_v55 }
 0x184   : > { %v9506_v57 = vrot.slane %v6614_v45, 4  ;;  %v1135_v20 = vmax.f32 %v6580_v34, %v1055_v39  ;;  %v1136_v16 = vmax.f32 %v6614_v45, %v1057_v37  ;;  %v1200_v2 = vsel %vm1147_vm3, %v1198_v13, %v1199_v54 }
 0x185   : > { %v1202_v42 = vsel %vm1147_vm3, %v1199_v54, %v1201_v46  ;;  %v6634_v11 = vmax.f32 %v1428_v26, %v1497_v47  ;;  %v6637_v22 = vsel %vm1292_vm4, %v1343_v9, %v1344_v30  ;;  %v1347_v52 = vsel %vm1292_vm4, %v1344_v30, %v1346_v48 }
 0x186   : > { %v1491_v62 = vrot.slane %v964_v60, 4  ;;  %v6640_v44 = vmax.f32 %v1135_v20, %v1200_v2  ;;  %v1281_v38 = vmax.f32 %v1136_v16, %v1202_v42  ;;  %v1068_v55 = vrot.slane %v6620_v18, 1 }
 0x187   : > { %9764 = vst [vmem:[#allocation53_spill] sm:$0xff] %v6634_v11  ;;  %v1213_v39 = vrot.slane %v6620_v18, 2  ;;  %v1358_v37 = vrot.slane %v6620_v18, 3  ;;  %v878_v9 = vrot.slane %v6572_v3, 6  ;;  %v882_v60 = vrot.slane %v6575_v49, 6 }
 0x188   : > { %v1492_v13 = vsel %vm1437_vm5, %v9506_v57, %v1491_v62  ;;  %v1426_v54 = vmax.f32 %v1281_v38, %v1347_v52  ;;  %v879_v46 = vrot.slane %v6584_v58, 6  ;;  %v711_v30 = vadd.f32 1.0, %v6519_v6 }
 0x189   : > { %v6654_v48 = vsel %vm841_vm1, -3.4028235e+38, %v878_v9  ;;  %v709_v26 = vadd.f32 1.0, %v6526_v7  ;;  %v712_v20 = vadd.f32 1.0, %v6534_v50  ;;  %v710_v16 = vadd.f32 1.0, %v6544_v43 }
 0x18a   : > { %9765 = vst [vmem:[#allocation54_spill] sm:$0xff] %v6654_v48  ;;  %v6659_v2 = vmax.f32 %v1426_v54, %v1492_v13  ;;  %v1063_v42 = vrot.slane %v6654_v48, 1  ;;  %v1208_v52 = vrot.slane %v6654_v48, 2  ;;  %v1353_v62 = vrot.slane %v6654_v48, 3 }
 0x18b   : > { %v9767_v6 = vrot.slane %v6569_v40, 6  ;;  %v967_v7 = vsel %vm841_vm1, %v882_v60, -3.4028235e+38  ;;  %v6672_v50 = vsel %vm841_vm1, %v878_v9, %v879_v46  ;;  %5372 = vrcp.f32 %v711_v30 }
 0x18c   : > { %9766 = vst [vmem:[#allocation55_spill] sm:$0xff] %v6659_v2  ;;  %9769 = vst [vmem:[#allocation57_spill] sm:$0xff] %v6672_v50  ;;  %v1071_v13 = vrot.slane %v967_v7, 1  ;;  %v1216_v57 = vrot.slane %v967_v7, 2  ;;  %v1361_v3 = vrot.slane %v967_v7, 3  ;;  %v1506_v40 = vrot.slane %v967_v7, 4 }
 0x18d   : > { %v6668_v47 = vsel %vm841_vm1, %v9767_v6, %v882_v60  ;;  %5374 = vrcp.f32 %v709_v26  ;;  %v9777_v30 = vmax.f32 %v6435_v27, %v6443_v63  ;;  %v1582_v26 = vmax.f32 %v6433_v53, -3.4028235e+38 }
 0x18e   : > { %9768 = vst [vmem:[#allocation56_spill] sm:$0xff] %v6668_v47  ;;  %v1069_v43 = vrot.slane %v6668_v47, 1  ;;  %v1214_v54 = vrot.slane %v6668_v47, 2  ;;  %v1359_v49 = vrot.slane %v6668_v47, 3  ;;  %v9516_v38 = vrot.slane %v6668_v47, 4 }
 0x18f   : > { %5376 = vrcp.f32 %v712_v20  ;;  %v9781_v20 = vld [vmem:[#allocation40_spill] sm:$0xff] }
 0x190   : > { %v1070_v6 = vsel %vm1002_vm2, %v1068_v55, %v1069_v43  ;;  %v1072_v58 = vsel %vm1002_vm2, %v1069_v43, %v1071_v13  ;;  %v1215_v60 = vsel %vm1147_vm3, %v1213_v39, %v1214_v54  ;;  %v1217_v9 = vsel %vm1147_vm3, %v1214_v54, %v1216_v57 }
 0x191   : > { %v1141_v11 = vmax.f32 %v6620_v18, %v1070_v6  ;;  %v1142_v59 = vmax.f32 %v6668_v47, %v1072_v58  ;;  %v6685_v25 = vsel %vm1292_vm4, %v1358_v37, %v1359_v49  ;;  %v1362_v4 = vsel %vm1292_vm4, %v1359_v49, %v1361_v3 }
 0x192   : > { %9770 = vst [vmem:[#allocation58_spill] sm:$0xff] %v6685_v25  ;;  %v1507_v7 = vsel %vm1437_vm5, %v9516_v38, %v1506_v40  ;;  %v966_v55 = vsel %vm841_vm1, %v879_v46, -3.4028235e+38  ;;  %v1064_v43 = vrot.slane %v6672_v50, 1  ;;  %v1209_v39 = vrot.slane %v6672_v50, 2  ;;  %v9795_v25 = vld [vmem:[#allocation30_spill] sm:$0xff] }
 0x193   : > { %v6694_v57 = vmax.f32 %v1141_v11, %v1215_v60  ;;  %v1287_v13 = vmax.f32 %v1142_v59, %v1217_v9  ;;  %v1066_v54 = vrot.slane %v966_v55, 1  ;;  %v1211_v58 = vrot.slane %v966_v55, 2 }
 0x194   : > { %v1065_v37 = vsel %vm1002_vm2, %v1063_v42, %v1064_v43  ;;  %v1210_v6 = vsel %vm1147_vm3, %v1208_v52, %v1209_v39  ;;  %v1354_v49 = vrot.slane %v6672_v50, 3  ;;  %v1356_v3 = vrot.slane %v966_v55, 3 }
 0x195   : > { %9771 = vst [vmem:[#allocation59_spill] sm:$0xff] %v6694_v57  ;;  %v1432_v18 = vmax.f32 %v1287_v13, %v1362_v4  ;;  %v1067_v40 = vsel %vm1002_vm2, %v1064_v43, %v1066_v54  ;;  %v1139_v46 = vmax.f32 %v6654_v48, %v1065_v37  ;;  %v1212_v38 = vsel %vm1147_vm3, %v1209_v39, %v1211_v58  ;;  %v9779_v37 = vld [vmem:[#allocation19_spill] sm:$0xff] }
 0x196   : > { %v1140_v11 = vmax.f32 %v6672_v50, %v1067_v40  ;;  %v6704_v59 = vsel %vm1292_vm4, %v1353_v62, %v1354_v49  ;;  %v1357_v60 = vsel %vm1292_vm4, %v1354_v49, %v1356_v3  ;;  %v9517_v42 = vrot.slane %v6672_v50, 4  ;;  %v9780_v3 = vld [vmem:[#allocation38_spill] sm:$0xff] }
 0x197   : > { %9772 = vst [vmem:[#allocation60_spill] sm:$0xff] %v6704_v59  ;;  %v6708_v52 = vmax.f32 %v1432_v18, %v1507_v7  ;;  %v6710_v9 = vmax.f32 %v1139_v46, %v1210_v6  ;;  %v1501_v4 = vrot.slane %v966_v55, 4  ;;  %v9775_v39 = vmax.f32 %v6435_v27, -3.4028235e+38  ;;  %v9782_v46 = vld [vmem:[#allocation37_spill] sm:$0xff]  ;;  %v9784_v27 = vld [vmem:[#allocation18_spill] sm:$0xff] }
 0x198   : > { %v1285_v43 = vmax.f32 %v1140_v11, %v1212_v38  ;;  %v9776_v62 = vmax.f32 %v6433_v53, %v6441_v10  ;;  %v1615_v38 = vmax.f32 %v9777_v30, %v6455_v32  ;;  %5378 = vrcp.f32 %v710_v16 }
 0x199   : > { %9773 = vst [vmem:[#allocation61_spill] sm:$0xff] %v6708_v52  ;;  %9774 = vst [vmem:[#allocation62_spill] sm:$0xff] %v6710_v9  ;;  %v1613_v13 = vmax.f32 %v9775_v39, %v6443_v63  ;;  %v1502_v18 = vsel %vm1437_vm5, %v9517_v42, %v1501_v4  ;;  %v1612_v49 = vmax.f32 %v1582_v26, %v6441_v10  ;;  %v9783_v11 = vrot.slane %v9782_v46, 4 }
 0x19a   : > { %v1614_v54 = vmax.f32 %v9776_v62, %v6449_v8  ;;  %v1430_v7 = vmax.f32 %v1285_v43, %v1357_v60  ;;  %v1645_v6 = vmax.f32 %v1615_v38, %v9779_v37  ;;  %v1415_v40 = vmax.f32 %v9781_v20, %v9780_v3 }
 0x19b   : > { %v6728_v55 = vmax.f32 %v1613_v13, %v6455_v32  ;;  %v9785_v4 = vrot.slane %v9784_v27, 4  ;;  %v6750_v62 = vmax.f32 %v1612_v49, %v6449_v8  ;;  %v1586_v30 = vmax.f32 %v6441_v10, %v6449_v8 }
 0x19c   : > { %v1644_v58 = vmax.f32 %v1614_v54, %v6459_v31  ;;  %v6740_v60 = vmax.f32 %v1430_v7, %v1502_v18  ;;  %v1675_v13 = vmax.f32 %v1645_v6, %v6468_v56  ;;  %v1587_v26 = vmax.f32 %v6443_v63, %v6455_v32  ;;  %v9793_v7 = vld [vmem:[#allocation29_spill] sm:$0xff] }
 0x19d   : > { %9778 = vst [vmem:[#allocation63_spill] sm:$0xff] %v6728_v55  ;;  %v1465_v53 = vsel %vm1437_vm5, %v9785_v4, %v9783_v11  ;;  %v6744_v16 = vmax.f32 %v6728_v55, %v9779_v37  ;;  %9788 = vst [vmem:[#allocation40_spill] sm:$0xff] %v6750_v62  ;;  %v6763_v6 = vmax.f32 %v6750_v62, %v6459_v31  ;;  %v9518_v49 = vrot.slane %v6750_v62, 6 }
 0x19e   : > { %9786 = vst [vmem:[#allocation19_spill] sm:$0xff] %v6740_v60  ;;  %v1674_v43 = vmax.f32 %v1644_v58, %v6461_v41  ;;  %v6752_v54 = vmax.f32 %v1415_v40, %v1465_v53  ;;  %v1741_v58 = vrot.slane %v1675_v13, 6  ;;  %v6768_v10 = vmax.f32 %v1586_v30, %v6459_v31 }
 0x19f   : > { %9787 = vst [vmem:[#allocation38_spill] sm:$0xff] %v6744_v16  ;;  %9789 = vst [vmem:[#allocation37_spill] sm:$0xff] %v6763_v6  ;;  %v6771_v40 = vmax.f32 %v1587_v26, %v9779_v37  ;;  %v9790_v63 = vrot.slane %v6279_v5, 4  ;;  %v9791_v46 = vrot.slane %v6264_v36, 4  ;;  %v9520_v4 = vrot.slane %v6763_v6, 6 }
 0x1a0   : > { %v1740_v38 = vrot.slane %v1674_v43, 6  ;;  %v4984_v3 = vpack.i.bf16 %v1675_v13, %v1674_v43  ;;  %v6781_v27 = vsel %vm841_vm1, %v1741_v58, -3.4028235e+38  ;;  %v6791_v5 = vsel %vm841_vm1, -3.4028235e+38, %v9518_v49 }
 0x1a1   : > { %v6778_v11 = vsel %vm1437_vm5, %v9791_v46, %v9790_v63  ;;  %v1907_v36 = vrot.slane %v6781_v27, 1  ;;  %v2051_v43 = vrot.slane %v6781_v27, 2  ;;  %v2195_v13 = vrot.slane %v6781_v27, 3  ;;  %v5373_v63 = vpop.eup %5372 }
 0x1a2   : > { %v1832_v20 = vsel %vm841_vm1, -3.4028235e+38, %v1740_v38  ;;  %4985 = vrot.lane.b32.xlu0 %v4984_v3, %s5570_s26  ;;  %v6786_v53 = vsel %vm841_vm1, %v1740_v38, %v1741_v58  ;;  %v6800_v26 = vsel %vm841_vm1, -3.4028235e+38, %v9520_v4  ;;  %v5375_v39 = vpop.eup %5374  ;;  %v6806_v52 = vmul.f32 %v5373_v63, %v9793_v7  ;;  %v9797_v7 = vld [vmem:[#allocation31_spill] sm:$0xff] }
 0x1a3   : > { %9792 = vst [vmem:[#allocation18_spill] sm:$0xff] %v6800_v26  ;;  %v1904_v38 = vrot.slane %v1832_v20, 1  ;;  %v1905_v58 = vrot.slane %v6786_v53, 1  ;;  %v2048_v3 = vrot.slane %v1832_v20, 2  ;;  %v2049_v46 = vrot.slane %v6786_v53, 2  ;;  %v5377_v57 = vpop.eup %5376 }
 0x1a4   : > { %v2192_v42 = vrot.slane %v1832_v20, 3  ;;  %v2193_v18 = vrot.slane %v6786_v53, 3  ;;  %v2336_v49 = vrot.slane %v1832_v20, 4  ;;  %9794 = vst [vmem:[#allocation29_spill] sm:$0xff] %v6806_v52  ;;  %v2337_v47 = vrot.slane %v6786_v53, 4 }
 0x1a5   : > { %v1906_v30 = vsel %vm1002_vm2, %v1904_v38, %v1905_v58  ;;  %v1908_v4 = vsel %vm1002_vm2, %v1905_v58, %v1907_v36  ;;  %v6812_v60 = vmul.f32 %v5375_v39, %v9795_v25  ;;  %v2050_v9 = vsel %vm1147_vm3, %v2048_v3, %v2049_v46  ;;  %v5379_v59 = vpop.eup %5378  ;;  %v9799_v25 = vld [vmem:[#allocation32_spill] sm:$0xff] }
 0x1a6   : > { %v2010_v48 = vmax.f32 %v1832_v20, %v1906_v30  ;;  %v2011_v50 = vmax.f32 %v6786_v53, %v1908_v4  ;;  %v887_v26 = vrot.slane %v6806_v52, 6  ;;  %v6818_v63 = vmul.f32 %v5377_v57, %v9797_v7 }
 0x1a7   : > { %9796 = vst [vmem:[#allocation30_spill] sm:$0xff] %v6812_v60  ;;  %v2052_v38 = vsel %vm1147_vm3, %v2049_v46, %v2051_v43  ;;  %v6822_v36 = vsel %vm1292_vm4, %v2192_v42, %v2193_v18  ;;  %v884_v58 = vrot.slane %v6812_v60, 6  ;;  %v6826_v39 = vmul.f32 %v5379_v59, %v9799_v25 }
 0x1a8   : > { %9798 = vst [vmem:[#allocation31_spill] sm:$0xff] %v6818_v63  ;;  %v6828_v20 = vmax.f32 %v2010_v48, %v2050_v9  ;;  %v2155_v4 = vmax.f32 %v2011_v50, %v2052_v38  ;;  %v6831_v53 = vsel %vm841_vm1, -3.4028235e+38, %v887_v26  ;;  %v888_v30 = vrot.slane %v6818_v63, 6 }
 0x1a9   : > { %9800 = vst [vmem:[#allocation32_spill] sm:$0xff] %v6826_v39  ;;  %9801 = vst [vmem:[#allocation64_spill] sm:$0xff] %v6831_v53  ;;  %v2196_v57 = vsel %vm1292_vm4, %v2193_v18, %v2195_v13  ;;  %v6836_v43 = vsel %vm1437_vm5, %v2336_v49, %v2337_v47  ;;  %v6843_v50 = vsel %vm841_vm1, -3.4028235e+38, %v884_v58  ;;  %v885_v18 = vrot.slane %v6826_v39, 6 }
 0x1aa   : > { %9802 = vst [vmem:[#allocation65_spill] sm:$0xff] %v6843_v50  ;;  %v6846_v9 = vsel %vm841_vm1, %v887_v26, %v888_v30  ;;  %v6849_v46 = vsel %vm841_vm1, %v888_v30, -3.4028235e+38  ;;  %v1073_v49 = vrot.slane %v6843_v50, 1 }
 0x1ab   : > { %9803 = vst [vmem:[#allocation66_spill] sm:$0xff] %v6846_v9  ;;  %9804 = vst [vmem:[#allocation67_spill] sm:$0xff] %v6849_v46  ;;  %v9527_v25 = vrot.slane %v6846_v9, 1  ;;  %v1081_v48 = vrot.slane %v6849_v46, 1  ;;  %v9528_v26 = vrot.slane %v6846_v9, 2  ;;  %v1226_v59 = vrot.slane %v6849_v46, 2 }
 0x1ac   : > { %v6875_v52 = vsel %vm841_vm1, %v884_v58, %v885_v18  ;;  %v6878_v30 = vsel %vm841_vm1, %v885_v18, -3.4028235e+38 }
 0x1ad   : > { %v6867_v38 = vsel %vm1002_vm2, %v9527_v25, %v1081_v48  ;;  %v6872_v7 = vsel %vm1147_vm3, %v9528_v26, %v1226_v59  ;;  %9807 = vst [vmem:[#allocation70_spill] sm:$0xff] %v6875_v52  ;;  %9808 = vst [vmem:[#allocation71_spill] sm:$0xff] %v6878_v30  ;;  %v1074_v13 = vrot.slane %v6875_v52, 1  ;;  %v1076_v3 = vrot.slane %v6878_v30, 1 }
 0x1ae   : > { %9805 = vst [vmem:[#allocation68_spill] sm:$0xff] %v6867_v38  ;;  %9806 = vst [vmem:[#allocation69_spill] sm:$0xff] %v6872_v7  ;;  %v1221_v25 = vrot.slane %v6878_v30, 2  ;;  %v1366_v26 = vrot.slane %v6878_v30, 3  ;;  %v9810_v39 = vrot.slane %v6875_v52, 2  ;;  %v9811_v46 = vrot.slane %v6875_v52, 3 }
 0x1af   : > { %v6890_v18 = vsel %vm1002_vm2, %v1073_v49, %v1074_v13  ;;  %v1077_v63 = vsel %vm1002_vm2, %v1074_v13, %v1076_v3  ;;  %v2299_v49 = vmax.f32 %v2155_v4, %v2196_v57  ;;  %v9813_v38 = vrot.slane %v6781_v27, 4  ;;  %v9816_v4 = vld [vmem:[#allocation41_spill] sm:$0xff]  ;;  %v9817_v57 = vld [vmem:[#allocation39_spill] sm:$0xff] }
 0x1b0   : > { %9809 = vst [vmem:[#allocation72_spill] sm:$0xff] %v6890_v18  ;;  %v1144_v48 = vmax.f32 %v6875_v52, %v1077_v63  ;;  %v1222_v59 = vsel %vm1147_vm3, %v9810_v39, %v1221_v25  ;;  %v6903_v58 = vsel %vm1292_vm4, %v9811_v46, %v1366_v26  ;;  %v1646_v13 = vmax.f32 %v6768_v10, %v6461_v41 }
 0x1b1   : > { %9812 = vst [vmem:[#allocation73_spill] sm:$0xff] %v6903_v58  ;;  %v2340_v3 = vsel %vm1437_vm5, %v2337_v47, %v9813_v38  ;;  %v1647_v63 = vmax.f32 %v6771_v40, %v6468_v56  ;;  %v9814_v39 = vmax.f32 %v6327_v35, %v6322_v17  ;;  %v1588_v27 = vmax.f32 %v6449_v8, %v6459_v31  ;;  %v9818_v38 = vld [vmem:[#allocation50_spill] sm:$0xff] }
 0x1b2   : > { %v6918_v42 = vmax.f32 %v1144_v48, %v1222_v59  ;;  %v6920_v46 = vmax.f32 %v2299_v49, %v2340_v3  ;;  %v1589_v47 = vmax.f32 %v6455_v32, %v9779_v37  ;;  %v1676_v10 = vmax.f32 %v1646_v13, %v6752_v54 }
 0x1b3   : > { %v6916_v25 = vmax.f32 %v9814_v39, %v6778_v11  ;;  %v1677_v40 = vmax.f32 %v1647_v63, %v9816_v4  ;;  %v9819_v17 = vmax.f32 %v9817_v57, %v9818_v38  ;;  %v9820_v11 = vld [vmem:[#allocation49_spill] sm:$0xff]  ;;  %v9822_v48 = vrot.slane %v9817_v57, 3  ;;  %v9825_v63 = vld [vmem:[#allocation51_spill] sm:$0xff] }
 0x1b4   : > { %9815 = vst [vmem:[#allocation74_spill] sm:$0xff] %v6918_v42  ;;  %v9821_v26 = vrot.slane %v9820_v11, 3  ;;  %v1618_v8 = vmax.f32 %v1588_v27, %v6461_v41  ;;  %v1619_v49 = vmax.f32 %v1589_v47, %v6468_v56  ;;  %v9823_v32 = vrot.slane %v9820_v11, 4 }
 0x1b5   : > { %v1274_v35 = vmax.f32 %v9819_v17, %v6291_v12  ;;  %v9824_v3 = vrot.slane %v9817_v57, 4  ;;  %v9826_v12 = vmax.f32 %v6309_v61, %v6300_v14  ;;  %v1744_v38 = vrot.slane %v1677_v40, 6 }
 0x1b6   : > { %v1330_v59 = vsel %vm1292_vm4, %v9822_v48, %v9821_v26  ;;  %v4989_v17 = vpack.i.bf16 %v1677_v40, %v1676_v10  ;;  %v1743_v60 = vrot.slane %v1676_v10, 6  ;;  %v1648_v27 = vmax.f32 %v1618_v8, %v6752_v54 }
 0x1b7   : > { %v1475_v13 = vsel %vm1437_vm5, %v9824_v3, %v9823_v32  ;;  %v6948_v39 = vmax.f32 %v9826_v12, %v9825_v63  ;;  %v1419_v26 = vmax.f32 %v1274_v35, %v1330_v59  ;;  %v1649_v47 = vmax.f32 %v1619_v49, %v9816_v4 }
 0x1b8   : > { %v1590_v11 = vmax.f32 %v6459_v31, %v6461_v41  ;;  %v1591_v57 = vmax.f32 %v9779_v37, %v6468_v56  ;;  %v1849_v48 = vsel %vm841_vm1, %v1744_v38, -3.4028235e+38  ;;  %v1745_v14 = vsel %vm841_vm1, %v1743_v60, %v1744_v38  ;;  %4990 = vrot.lane.b32.xlu0 %v4989_v17, %s5570_s26 }
 0x1b9   : > { %v1833_v61 = vsel %vm841_vm1, -3.4028235e+38, %v1743_v60  ;;  %v6960_v10 = vmax.f32 %v1419_v26, %v1475_v13  ;;  %v1912_v40 = vrot.slane %v1849_v48, 1  ;;  %v2056_v35 = vrot.slane %v1849_v48, 2 }
 0x1ba   : > { %v2200_v59 = vrot.slane %v1849_v48, 3  ;;  %v2344_v8 = vrot.slane %v1849_v48, 4  ;;  %v1909_v49 = vrot.slane %v1833_v61, 1  ;;  %v1910_v32 = vrot.slane %v1745_v14, 1 }
 0x1bb   : > { %v2053_v31 = vrot.slane %v1833_v61, 2  ;;  %v2054_v3 = vrot.slane %v1745_v14, 2  ;;  %v2197_v63 = vrot.slane %v1833_v61, 3  ;;  %v2198_v37 = vrot.slane %v1745_v14, 3 }
 0x1bc   : > { %v2341_v12 = vrot.slane %v1833_v61, 4  ;;  %v2342_v7 = vrot.slane %v1745_v14, 4  ;;  %v1911_v38 = vsel %vm1002_vm2, %v1909_v49, %v1910_v32  ;;  %v1913_v60 = vsel %vm1002_vm2, %v1910_v32, %v1912_v40 }
 0x1bd   : > { %v2055_v17 = vsel %vm1147_vm3, %v2053_v31, %v2054_v3  ;;  %v2057_v13 = vsel %vm1147_vm3, %v2054_v3, %v2056_v35  ;;  %v2012_v26 = vmax.f32 %v1833_v61, %v1911_v38  ;;  %v2013_v53 = vmax.f32 %v1745_v14, %v1913_v60 }
 0x1be   : > { %v6967_v48 = vsel %vm1292_vm4, %v2197_v63, %v2198_v37  ;;  %v2201_v9 = vsel %vm1292_vm4, %v2198_v37, %v2200_v59  ;;  %v6971_v30 = vsel %vm1437_vm5, %v2341_v12, %v2342_v7  ;;  %v2345_v42 = vsel %vm1437_vm5, %v2342_v7, %v2344_v8 }
 0x1bf   : > { %v1678_v49 = vmax.f32 %v1648_v27, %v6916_v25  ;;  %v1679_v40 = vmax.f32 %v1649_v47, %v6350_v19  ;;  %v6976_v32 = vmax.f32 %v2012_v26, %v2055_v17  ;;  %v2157_v31 = vmax.f32 %v2013_v53, %v2057_v13 }
 0x1c0   : > { %v1620_v61 = vmax.f32 %v1590_v11, %v6752_v54  ;;  %v1621_v14 = vmax.f32 %v1591_v57, %v9816_v4  ;;  %v1421_v59 = vmax.f32 %v6546_v23, %v6541_v29  ;;  %v9827_v29 = vrot.slane %v6510_v51, 4 }
 0x1c1   : > { %v1747_v35 = vrot.slane %v1679_v40, 6  ;;  %v4994_v3 = vpack.i.bf16 %v1679_v40, %v1678_v49  ;;  %v1746_v63 = vrot.slane %v1678_v49, 6  ;;  %v2301_v8 = vmax.f32 %v2157_v31, %v2201_v9 }
 0x1c2   : > { %v1650_v27 = vmax.f32 %v1620_v61, %v6916_v25  ;;  %v1651_v47 = vmax.f32 %v1621_v14, %v6350_v19  ;;  %v9828_v23 = vrot.slane %v6341_v0, 4 }
 0x1c3   : > { %v1850_v53 = vsel %vm841_vm1, %v1747_v35, -3.4028235e+38  ;;  %v6988_v11 = vsel %vm841_vm1, %v1746_v63, %v1747_v35  ;;  %v6991_v57 = vsel %vm841_vm1, -3.4028235e+38, %v1746_v63  ;;  %4995 = vrot.lane.b32.xlu0 %v4994_v3, %s5570_s26  ;;  %v6999_v37 = vmax.f32 %v2301_v8, %v2345_v42 }
 0x1c4   : > { %v1480_v9 = vsel %vm1437_vm5, %v9828_v23, %v9827_v29  ;;  %v1917_v12 = vrot.slane %v1850_v53, 1  ;;  %v2061_v38 = vrot.slane %v1850_v53, 2  ;;  %v2205_v60 = vrot.slane %v1850_v53, 3 }
 0x1c5   : > { %v2349_v17 = vrot.slane %v1850_v53, 4  ;;  %v1914_v13 = vrot.slane %v6991_v57, 1  ;;  %v1915_v26 = vrot.slane %v6988_v11, 1  ;;  %v2058_v49 = vrot.slane %v6991_v57, 2 }
 0x1c6   : > { %v2059_v40 = vrot.slane %v6988_v11, 2  ;;  %v2202_v51 = vrot.slane %v6991_v57, 3  ;;  %v2203_v0 = vrot.slane %v6988_v11, 3  ;;  %v9540_v14 = vrot.slane %v6988_v11, 4 }
 0x1c7   : > { %v1916_v42 = vsel %vm1002_vm2, %v1914_v13, %v1915_v26  ;;  %v1918_v61 = vsel %vm1002_vm2, %v1915_v26, %v1917_v12  ;;  %v1680_v35 = vmax.f32 %v1650_v27, %v6960_v10  ;;  %v1681_v27 = vmax.f32 %v1651_v47, %v6948_v39 }
 0x1c8   : > { %v2014_v3 = vmax.f32 %v6991_v57, %v1916_v42  ;;  %v2015_v63 = vmax.f32 %v6988_v11, %v1918_v61  ;;  %v2060_v8 = vsel %vm1147_vm3, %v2058_v49, %v2059_v40  ;;  %v2062_v53 = vsel %vm1147_vm3, %v2059_v40, %v2061_v38 }
 0x1c9   : > { %v7017_v29 = vsel %vm1292_vm4, %v2202_v51, %v2203_v0  ;;  %v7020_v23 = vsel %vm1292_vm4, %v2203_v0, %v2205_v60  ;;  %v7025_v12 = vsel %vm1437_vm5, %v9540_v14, %v2349_v17  ;;  %v1749_v49 = vrot.slane %v1680_v35, 6 }
 0x1ca   : > { %v7028_v13 = vmax.f32 %v2014_v3, %v2060_v8  ;;  %v7030_v26 = vmax.f32 %v2015_v63, %v2062_v53  ;;  %v7032_v42 = vmax.f32 %v1421_v59, %v1480_v9  ;;  %v1750_v38 = vrot.slane %v1681_v27, 6 }
 0x1cb   : > { %v4999_v40 = vpack.i.bf16 %v1681_v27, %v1680_v35  ;;  %v1592_v60 = vmax.f32 %v6461_v41, %v6752_v54  ;;  %v1593_v51 = vmax.f32 %v6468_v56, %v9816_v4  ;;  %v1835_v0 = vsel %vm841_vm1, -3.4028235e+38, %v1749_v49 }
 0x1cc   : > { %v1423_v59 = vmax.f32 %v6514_v21, %v6501_v33  ;;  %v1851_v9 = vsel %vm841_vm1, %v1750_v38, -3.4028235e+38  ;;  %v1751_v41 = vsel %vm841_vm1, %v1749_v49, %v1750_v38  ;;  %v1919_v61 = vrot.slane %v1835_v0, 1 }
 0x1cd   : > { %5000 = vrot.lane.b32.xlu1 %v4999_v40, %s5570_s26  ;;  %v2063_v35 = vrot.slane %v1835_v0, 2  ;;  %v1922_v56 = vrot.slane %v1851_v9, 1  ;;  %v2066_v3 = vrot.slane %v1851_v9, 2  ;;  %v2210_v63 = vrot.slane %v1851_v9, 3 }
 0x1ce   : > { %v2354_v8 = vrot.slane %v1851_v9, 4  ;;  %v1920_v53 = vrot.slane %v1751_v41, 1  ;;  %v2064_v27 = vrot.slane %v1751_v41, 2  ;;  %v2207_v47 = vrot.slane %v1835_v0, 3 }
 0x1cf   : > { %v2208_v17 = vrot.slane %v1751_v41, 3  ;;  %v2351_v7 = vrot.slane %v1835_v0, 4  ;;  %v2352_v31 = vrot.slane %v1751_v41, 4  ;;  %v1622_v33 = vmax.f32 %v1592_v60, %v6916_v25 }
 0x1d0   : > { %v1623_v21 = vmax.f32 %v1593_v51, %v6350_v19  ;;  %v1921_v40 = vsel %vm1002_vm2, %v1919_v61, %v1920_v53  ;;  %v1923_v49 = vsel %vm1002_vm2, %v1920_v53, %v1922_v56  ;;  %v2065_v38 = vsel %vm1147_vm3, %v2063_v35, %v2064_v27 }
 0x1d1   : > { %v2067_v14 = vsel %vm1147_vm3, %v2064_v27, %v2066_v3  ;;  %v2016_v58 = vmax.f32 %v1835_v0, %v1921_v40  ;;  %v2017_v9 = vmax.f32 %v1751_v41, %v1923_v49  ;;  %v7055_v52 = vsel %vm1292_vm4, %v2207_v47, %v2208_v17 }
 0x1d2   : > { %v2211_v50 = vsel %vm1292_vm4, %v2208_v17, %v2210_v63  ;;  %v7059_v18 = vsel %vm1437_vm5, %v2351_v7, %v2352_v31  ;;  %v2355_v60 = vsel %vm1437_vm5, %v2352_v31, %v2354_v8  ;;  %v1652_v51 = vmax.f32 %v1622_v33, %v6960_v10 }
 0x1d3   : > { %v1653_v61 = vmax.f32 %v1623_v21, %v6948_v39  ;;  %v7064_v56 = vmax.f32 %v2016_v58, %v2065_v38  ;;  %v2161_v35 = vmax.f32 %v2017_v9, %v2067_v14  ;;  %v9829_v0 = vrot.slane %v6476_v28, 4 }
 0x1d4   : > { %v9830_v41 = vrot.slane %v6336_v15, 4  ;;  %v1594_v17 = vmax.f32 %v6752_v54, %v6916_v25  ;;  %v1682_v7 = vmax.f32 %v1652_v51, %v7032_v42  ;;  %v1595_v58 = vmax.f32 %v9816_v4, %v6350_v19 }
 0x1d5   : > { %v1683_v31 = vmax.f32 %v1653_v61, %v6577_v1  ;;  %v2305_v28 = vmax.f32 %v2161_v35, %v2211_v50  ;;  %v1425_v63 = vmax.f32 %v6640_v44, %v6637_v22  ;;  %v9831_v4 = vrot.slane %v6614_v45, 4 }
 0x1d6   : > { %v1485_v47 = vsel %vm1437_vm5, %v9830_v41, %v9829_v0  ;;  %v1624_v15 = vmax.f32 %v1594_v17, %v6960_v10  ;;  %v1752_v53 = vrot.slane %v1682_v7, 6  ;;  %v1625_v27 = vmax.f32 %v1595_v58, %v6948_v39 }
 0x1d7   : > { %v7075_v3 = vmax.f32 %v1423_v59, %v1485_v47  ;;  %v1753_v8 = vrot.slane %v1683_v31, 6  ;;  %v5004_v54 = vpack.i.bf16 %v1683_v31, %v1682_v7  ;;  %v7085_v33 = vmax.f32 %v2305_v28, %v2355_v60 }
 0x1d8   : > { %v1654_v59 = vmax.f32 %v1624_v15, %v7032_v42  ;;  %v9832_v21 = vrot.slane %v6580_v34, 4  ;;  %v1596_v40 = vmax.f32 %v6916_v25, %v6960_v10  ;;  %v7100_v49 = vsel %vm841_vm1, -3.4028235e+38, %v1752_v53 }
 0x1d9   : > { %v1852_v22 = vsel %vm841_vm1, %v1753_v8, -3.4028235e+38  ;;  %v7097_v44 = vsel %vm841_vm1, %v1752_v53, %v1753_v8  ;;  %5005 = vrot.lane.b32.xlu0 %v5004_v54, %s5570_s26  ;;  %v1655_v38 = vmax.f32 %v1625_v27, %v6577_v1  ;;  %v1924_v51 = vrot.slane %v7100_v49, 1 }
 0x1da   : > { %v1490_v50 = vsel %vm1437_vm5, %v9832_v21, %v9831_v4  ;;  %v1927_v45 = vrot.slane %v1852_v22, 1  ;;  %v2071_v9 = vrot.slane %v1852_v22, 2  ;;  %v2215_v34 = vrot.slane %v1852_v22, 3 }
 0x1db   : > { %v2359_v60 = vrot.slane %v1852_v22, 4  ;;  %v1925_v25 = vrot.slane %v7097_v44, 1  ;;  %v2068_v61 = vrot.slane %v7100_v49, 2  ;;  %v2069_v35 = vrot.slane %v7097_v44, 2 }
 0x1dc   : > { %v2212_v0 = vrot.slane %v7100_v49, 3  ;;  %v2213_v41 = vrot.slane %v7097_v44, 3  ;;  %v9545_v17 = vrot.slane %v7097_v44, 4  ;;  %v1684_v4 = vmax.f32 %v1654_v59, %v7075_v3 }
 0x1dd   : > { %v1926_v7 = vsel %vm1002_vm2, %v1924_v51, %v1925_v25  ;;  %v1928_v31 = vsel %vm1002_vm2, %v1925_v25, %v1927_v45  ;;  %v2070_v58 = vsel %vm1147_vm3, %v2068_v61, %v2069_v35  ;;  %v2072_v28 = vsel %vm1147_vm3, %v2069_v35, %v2071_v9 }
 0x1de   : > { %v2018_v15 = vmax.f32 %v7100_v49, %v1926_v7  ;;  %v2019_v8 = vmax.f32 %v7097_v44, %v1928_v31  ;;  %v7119_v54 = vsel %vm1292_vm4, %v2212_v0, %v2213_v41  ;;  %v7122_v53 = vsel %vm1292_vm4, %v2213_v41, %v2215_v34 }
 0x1df   : > { %v7127_v27 = vsel %vm1437_vm5, %v9545_v17, %v2359_v60  ;;  %v1685_v21 = vmax.f32 %v1655_v38, %v6536_v24  ;;  %v7131_v22 = vmax.f32 %v1425_v63, %v1490_v50  ;;  %v1597_v51 = vmax.f32 %v6350_v19, %v6948_v39 }
 0x1e0   : > { %v7133_v45 = vmax.f32 %v2018_v15, %v2070_v58  ;;  %v7135_v9 = vmax.f32 %v2019_v8, %v2072_v28  ;;  %v1626_v34 = vmax.f32 %v1596_v40, %v7032_v42  ;;  %v1755_v35 = vrot.slane %v1684_v4, 6 }
 0x1e1   : > { %9833 = vst [vmem:[#allocation41_spill] sm:$0xff] %v7131_v22  ;;  %v1756_v25 = vrot.slane %v1685_v21, 6  ;;  %v5009_v61 = vpack.i.bf16 %v1685_v21, %v1684_v4  ;;  %v9834_v60 = vrot.slane %v6728_v55, 6  ;;  %v9835_v59 = vrot.slane %v6750_v62, 6 }
 0x1e2   : > { %v1627_v19 = vmax.f32 %v1597_v51, %v6577_v1  ;;  %v1656_v40 = vmax.f32 %v1626_v34, %v7075_v3  ;;  %v7158_v7 = vsel %vm841_vm1, -3.4028235e+38, %v1755_v35  ;;  %v9838_v31 = vrot.slane %v6744_v16, 6 }
 0x1e3   : > { %v7145_v38 = vsel %vm841_vm1, %v9835_v59, %v9834_v60  ;;  %v1853_v0 = vsel %vm841_vm1, %v1756_v25, -3.4028235e+38  ;;  %v7155_v41 = vsel %vm841_vm1, %v1755_v35, %v1756_v25  ;;  %9837 = vst [vmem:[#allocation50_spill] sm:$0xff] %v7158_v7  ;;  %5010 = vrot.lane.b32.xlu1 %v5009_v61, %s5570_s26  ;;  %v9839_v58 = vrot.slane %v6763_v6, 6 }
 0x1e4   : > { %9836 = vst [vmem:[#allocation39_spill] sm:$0xff] %v7155_v41  ;;  %v1932_v15 = vrot.slane %v1853_v0, 1  ;;  %v2076_v8 = vrot.slane %v1853_v0, 2  ;;  %v2220_v4 = vrot.slane %v1853_v0, 3  ;;  %v2364_v21 = vrot.slane %v1853_v0, 4 }
 0x1e5   : > { %v7166_v28 = vsel %vm841_vm1, %v9839_v58, %v9838_v31  ;;  %v1929_v51 = vrot.slane %v7158_v7, 1  ;;  %v1930_v34 = vrot.slane %v7155_v41, 1  ;;  %v2073_v25 = vrot.slane %v7158_v7, 2 }
 0x1e6   : > { %v2074_v35 = vrot.slane %v7155_v41, 2  ;;  %v2217_v61 = vrot.slane %v7158_v7, 3  ;;  %v2218_v60 = vrot.slane %v7155_v41, 3  ;;  %v9547_v31 = vrot.slane %v7155_v41, 4 }
 0x1e7   : > { %v1931_v58 = vsel %vm1002_vm2, %v1929_v51, %v1930_v34  ;;  %v1933_v0 = vsel %vm1002_vm2, %v1930_v34, %v1932_v15  ;;  %v1657_v15 = vmax.f32 %v1627_v19, %v6536_v24  ;;  %v1686_v34 = vmax.f32 %v1656_v40, %v7131_v22 }
 0x1e8   : > { %v2075_v63 = vsel %vm1147_vm3, %v2073_v25, %v2074_v35  ;;  %v2077_v50 = vsel %vm1147_vm3, %v2074_v35, %v2076_v8  ;;  %v2020_v47 = vmax.f32 %v7158_v7, %v1931_v58  ;;  %v2021_v17 = vmax.f32 %v7155_v41, %v1933_v0 }
 0x1e9   : > { %v7183_v14 = vsel %vm1292_vm4, %v2217_v61, %v2218_v60  ;;  %v7186_v6 = vsel %vm1292_vm4, %v2218_v60, %v2220_v4  ;;  %v7191_v51 = vsel %vm1437_vm5, %v9547_v31, %v2364_v21  ;;  %v9843_v8 = vrot.slane %v6728_v55, 6 }
 0x1ea   : > { %9840 = vst [vmem:[#allocation49_spill] sm:$0xff] %v7183_v14  ;;  %9841 = vst [vmem:[#allocation51_spill] sm:$0xff] %v7186_v6  ;;  %v7200_v35 = vmax.f32 %v2020_v47, %v2075_v63  ;;  %v7202_v61 = vmax.f32 %v2021_v17, %v2077_v50  ;;  %v9846_v4 = vrot.slane %v6744_v16, 6  ;;  %v1894_v21 = vrot.slane %v6791_v5, 1  ;;  %v9847_v63 = vld [vmem:[#allocation18_spill] sm:$0xff] }
 0x1eb   : > { %9842 = vst [vmem:[#allocation75_spill] sm:$0xff] %v7191_v51  ;;  %v7198_v25 = vsel %vm841_vm1, %v9843_v8, -3.4028235e+38  ;;  %v1687_v19 = vmax.f32 %v1657_v15, %v6659_v2  ;;  %v1758_v58 = vrot.slane %v1686_v34, 6  ;;  %v1895_v40 = vrot.slane %v7145_v38, 1 }
 0x1ec   : > { %9844 = vst [vmem:[#allocation76_spill] sm:$0xff] %v7200_v35  ;;  %9845 = vst [vmem:[#allocation77_spill] sm:$0xff] %v7202_v61  ;;  %v7207_v60 = vsel %vm841_vm1, %v9846_v4, -3.4028235e+38  ;;  %v1897_v0 = vrot.slane %v7198_v25, 1  ;;  %v1899_v50 = vrot.slane %v9847_v63, 1 }
 0x1ed   : > { %v1900_v8 = vrot.slane %v7166_v28, 1  ;;  %v1759_v4 = vrot.slane %v1687_v19, 6  ;;  %v5019_v59 = vpack.i.bf16 %v1687_v19, %v1686_v34  ;;  %v7220_v31 = vsel %vm841_vm1, -3.4028235e+38, %v1758_v58 }
 0x1ee   : > { %9848 = vst [vmem:[#allocation18_spill] sm:$0xff] %v7220_v31  ;;  %v1896_v15 = vsel %vm1002_vm2, %v1894_v21, %v1895_v40  ;;  %v1934_v16 = vrot.slane %v7220_v31, 1  ;;  %v2078_v55 = vrot.slane %v7220_v31, 2  ;;  %v2222_v47 = vrot.slane %v7220_v31, 3 }
 0x1ef   : > { %v1854_v17 = vsel %vm841_vm1, %v1759_v4, -3.4028235e+38  ;;  %v7229_v6 = vsel %vm841_vm1, %v1758_v58, %v1759_v4  ;;  %5020 = vrot.lane.b32.xlu0 %v5019_v59, %s5570_s26  ;;  %v1898_v34 = vsel %vm1002_vm2, %v1895_v40, %v1897_v0  ;;  %v1901_v19 = vsel %vm1002_vm2, %v1899_v50, %v1900_v8 }
 0x1f0   : > { %v1937_v21 = vrot.slane %v1854_v17, 1  ;;  %v2081_v61 = vrot.slane %v1854_v17, 2  ;;  %v2225_v51 = vrot.slane %v1854_v17, 3  ;;  %v2369_v14 = vrot.slane %v1854_v17, 4 }
 0x1f1   : > { %v1935_v35 = vrot.slane %v7229_v6, 1  ;;  %v2079_v7 = vrot.slane %v7229_v6, 2  ;;  %v2223_v62 = vrot.slane %v7229_v6, 3  ;;  %v1902_v58 = vrot.slane %v7207_v60, 1 }
 0x1f2   : > { %v2006_v59 = vmax.f32 %v6791_v5, %v1896_v15  ;;  %v2007_v40 = vmax.f32 %v7145_v38, %v1898_v34  ;;  %v2008_v0 = vmax.f32 %v9847_v63, %v1901_v19  ;;  %v9849_v34 = vrot.slane %v7229_v6, 4 }
 0x1f3   : > { %v1936_v50 = vsel %vm1002_vm2, %v1934_v16, %v1935_v35  ;;  %v1938_v17 = vsel %vm1002_vm2, %v1935_v35, %v1937_v21  ;;  %v2080_v4 = vsel %vm1147_vm3, %v2078_v55, %v2079_v7  ;;  %v2082_v2 = vsel %vm1147_vm3, %v2079_v7, %v2081_v61 }
 0x1f4   : > { %v2022_v22 = vmax.f32 %v7220_v31, %v1936_v50  ;;  %v2023_v41 = vmax.f32 %v7229_v6, %v1938_v17  ;;  %v7249_v24 = vsel %vm1292_vm4, %v2222_v47, %v2223_v62  ;;  %v7252_v15 = vsel %vm1292_vm4, %v2223_v62, %v2225_v51 }
 0x1f5   : > { %v7257_v16 = vsel %vm1437_vm5, %v9849_v34, %v2369_v14  ;;  %v1903_v35 = vsel %vm1002_vm2, %v1900_v8, %v1902_v58  ;;  %v2038_v55 = vrot.slane %v6791_v5, 2  ;;  %v2039_v7 = vrot.slane %v7145_v38, 2 }
 0x1f6   : > { %9850 = vst [vmem:[#allocation78_spill] sm:$0xff] %v7257_v16  ;;  %v7262_v61 = vmax.f32 %v2022_v22, %v2080_v4  ;;  %v7264_v19 = vmax.f32 %v2023_v41, %v2082_v2  ;;  %v2009_v47 = vmax.f32 %v7166_v28, %v1903_v35  ;;  %v2041_v62 = vrot.slane %v7198_v25, 2 }
 0x1f7   : > { %v2040_v51 = vsel %vm1147_vm3, %v2038_v55, %v2039_v7  ;;  %v2043_v21 = vrot.slane %v9847_v63, 2  ;;  %v2044_v14 = vrot.slane %v7166_v28, 2  ;;  %v2046_v8 = vrot.slane %v7207_v60, 2 }
 0x1f8   : > { %v2042_v2 = vsel %vm1147_vm3, %v2039_v7, %v2041_v62  ;;  %v2150_v41 = vmax.f32 %v2006_v59, %v2040_v51  ;;  %v2182_v34 = vrot.slane %v6791_v5, 3  ;;  %v2183_v16 = vrot.slane %v7145_v38, 3 }
 0x1f9   : > { %v2045_v50 = vsel %vm1147_vm3, %v2043_v21, %v2044_v14  ;;  %v2047_v17 = vsel %vm1147_vm3, %v2044_v14, %v2046_v8  ;;  %v2151_v4 = vmax.f32 %v2007_v40, %v2042_v2  ;;  %v2185_v31 = vrot.slane %v7198_v25, 3 }
 0x1fa   : > { %v2152_v35 = vmax.f32 %v2008_v0, %v2045_v50  ;;  %v2153_v55 = vmax.f32 %v2009_v47, %v2047_v17  ;;  %v2187_v58 = vrot.slane %v9847_v63, 3  ;;  %v2188_v22 = vrot.slane %v7166_v28, 3 }
 0x1fb   : > { %v2190_v7 = vrot.slane %v7207_v60, 3  ;;  %v2326_v59 = vrot.slane %v6791_v5, 4  ;;  %v2184_v62 = vsel %vm1292_vm4, %v2182_v34, %v2183_v16  ;;  %v2186_v40 = vsel %vm1292_vm4, %v2183_v16, %v2185_v31 }
 0x1fc   : > { %v2327_v51 = vrot.slane %v7145_v38, 4  ;;  %v2329_v0 = vrot.slane %v7198_v25, 4  ;;  %v2189_v47 = vsel %vm1292_vm4, %v2187_v58, %v2188_v22  ;;  %v2294_v14 = vmax.f32 %v2150_v41, %v2184_v62 }
 0x1fd   : > { %v2191_v21 = vsel %vm1292_vm4, %v2188_v22, %v2190_v7  ;;  %v2295_v8 = vmax.f32 %v2151_v4, %v2186_v40  ;;  %v2296_v2 = vmax.f32 %v2152_v35, %v2189_v47  ;;  %v2331_v34 = vrot.slane %v9847_v63, 4 }
 0x1fe   : > { %v2297_v50 = vmax.f32 %v2153_v55, %v2191_v21  ;;  %v2328_v17 = vsel %vm1437_vm5, %v2326_v59, %v2327_v51  ;;  %v2330_v5 = vsel %vm1437_vm5, %v2327_v51, %v2329_v0  ;;  %v2332_v31 = vrot.slane %v7166_v28, 4 }
 0x1ff   : > { %v2334_v38 = vrot.slane %v7207_v60, 4  ;;  %v9851_v25 = vrot.slane %v6988_v11, 4  ;;  %v9852_v16 = vrot.slane %v6991_v57, 4  ;;  %v2438_v22 = vmax.f32 %v2294_v14, %v2328_v17 }
 0x200   : > { %v2439_v41 = vmax.f32 %v2295_v8, %v2330_v5  ;;  %v9853_v4 = vmax.f32 %v6828_v20, %v6822_v36  ;;  %v9854_v63 = vmax.f32 %v6976_v32, %v6967_v48  ;;  %v2333_v60 = vsel %vm1437_vm5, %v2331_v34, %v2332_v31 }
 0x201   : > { %v2348_v58 = vsel %vm1437_vm5, %v9852_v16, %v9851_v25  ;;  %v2335_v11 = vsel %vm1437_vm5, %v2332_v31, %v2334_v38  ;;  %v9855_v57 = vmax.f32 %v7028_v13, %v7017_v29  ;;  %v9856_v36 = vmax.f32 %v7030_v26, %v7020_v23 }
 0x202   : > { %v2442_v35 = vmax.f32 %v9853_v4, %v6836_v43  ;;  %v7310_v28 = vmax.f32 %v9854_v63, %v6971_v30  ;;  %v2440_v43 = vmax.f32 %v2296_v2, %v2333_v60  ;;  %v2441_v7 = vmax.f32 %v2297_v50, %v2335_v11 }
 0x203   : > { %v7317_v55 = vmax.f32 %v9855_v57, %v2348_v58  ;;  %v7323_v20 = vmax.f32 %v9856_v36, %v7025_v12  ;;  %v2470_v48 = vmax.f32 %v2438_v22, -3.4028235e+38  ;;  %v2471_v30 = vmax.f32 %v2439_v41, -3.4028235e+38  ;;  %v9866_v36 = vld [vmem:[#allocation27_spill] sm:$0xff] }
 0x204   : > { %v9857_v32 = vmax.f32 %v7064_v56, %v7055_v52  ;;  %v9858_v29 = vrot.slane %v7097_v44, 4  ;;  %v9859_v13 = vrot.slane %v7100_v49, 4  ;;  %v9860_v23 = vmax.f32 %v7135_v9, %v7122_v53 }
 0x205   : > { %v2476_v26 = vmax.f32 %v2442_v35, %v7310_v28  ;;  %v2472_v40 = vmax.f32 %v2438_v22, %v2440_v43  ;;  %v2473_v51 = vmax.f32 %v2439_v41, %v2441_v7  ;;  %v2500_v0 = vmax.f32 %v2470_v48, %v2440_v43 }
 0x206   : > { %v7329_v59 = vmax.f32 %v9857_v32, %v7059_v18  ;;  %v2358_v62 = vsel %vm1437_vm5, %v9859_v13, %v9858_v29  ;;  %v7340_v12 = vmax.f32 %v9860_v23, %v7127_v27  ;;  %v2501_v52 = vmax.f32 %v2471_v30, %v2441_v7 }
 0x207   : > { %v2474_v18 = vmax.f32 %v2440_v43, %v2442_v35  ;;  %v2475_v56 = vmax.f32 %v2441_v7, %v6920_v46  ;;  %v9861_v44 = vmax.f32 %v7133_v45, %v7119_v54  ;;  %v2477_v47 = vmax.f32 %v6920_v46, %v6999_v37  ;;  %v9867_v43 = vld [vmem:[#allocation52_spill] sm:$0xff] }
 0x208   : > { %v2502_v53 = vmax.f32 %v2472_v40, %v2442_v35  ;;  %v2503_v27 = vmax.f32 %v2473_v51, %v6920_v46  ;;  %v7352_v9 = vmax.f32 %v2500_v0, %v2442_v35  ;;  %v7355_v21 = vmax.f32 %v2501_v52, %v6920_v46 }
 0x209   : > { %v7347_v49 = vmax.f32 %v9861_v44, %v2358_v62  ;;  %v2504_v14 = vmax.f32 %v2474_v18, %v7310_v28  ;;  %v2505_v8 = vmax.f32 %v2475_v56, %v6999_v37  ;;  %v2506_v2 = vmax.f32 %v2476_v26, %v7317_v55 }
 0x20a   : > { %9862 = vst [vmem:[#allocation79_spill] sm:$0xff] %v7352_v9  ;;  %9863 = vst [vmem:[#allocation80_spill] sm:$0xff] %v7355_v21  ;;  %v2507_v54 = vmax.f32 %v2477_v47, %v7323_v20  ;;  %v2532_v45 = vmax.f32 %v2502_v53, %v7310_v28  ;;  %v2533_v50 = vmax.f32 %v2503_v27, %v6999_v37 }
 0x20b   : > { %v7365_v17 = vmax.f32 %v7352_v9, %v7310_v28  ;;  %v7369_v46 = vmax.f32 %v7355_v21, %v6999_v37  ;;  %v2534_v31 = vmax.f32 %v2504_v14, %v7317_v55  ;;  %v2535_v38 = vmax.f32 %v2505_v8, %v7323_v20  ;;  %v9892_v14 = vld [vmem:[#allocation76_spill] sm:$0xff] }
 0x20c   : > { %v2562_v25 = vmax.f32 %v2532_v45, %v7317_v55  ;;  %v2563_v16 = vmax.f32 %v2533_v50, %v7323_v20  ;;  %v2536_v35 = vmax.f32 %v2506_v2, %v7329_v59  ;;  %v2537_v63 = vmax.f32 %v2507_v54, %v7085_v33 }
 0x20d   : > { %9864 = vst [vmem:[#allocation81_spill] sm:$0xff] %v7365_v17  ;;  %9865 = vst [vmem:[#allocation82_spill] sm:$0xff] %v7369_v46  ;;  %v2564_v41 = vmax.f32 %v2534_v31, %v7329_v59  ;;  %v2565_v4 = vmax.f32 %v2535_v38, %v7085_v33  ;;  %v1427_v7 = vmax.f32 %v9867_v43, %v9866_v36 }
 0x20e   : > { %v2629_v60 = vrot.slane %v2563_v16, 6  ;;  %v5014_v11 = vpack.i.bf16 %v2563_v16, %v2562_v25  ;;  %v2628_v57 = vrot.slane %v2562_v25, 6  ;;  %v7386_v29 = vmax.f32 %v2536_v35, %v7347_v49 }
 0x20f   : > { %v2632_v48 = vrot.slane %v2565_v4, 6  ;;  %v5024_v30 = vpack.i.bf16 %v2565_v4, %v2564_v41  ;;  %v2631_v32 = vrot.slane %v2564_v41, 6  ;;  %v7397_v26 = vmax.f32 %v2537_v63, %v7340_v12 }
 0x210   : > { %v2736_v13 = vsel %vm841_vm1, %v2629_v60, -3.4028235e+38  ;;  %5015 = vrot.lane.b32.xlu1 %v5014_v11, %s5571_s30  ;;  %v7391_v62 = vsel %vm841_vm1, %v2628_v57, %v2629_v60  ;;  %v7394_v23 = vsel %vm841_vm1, -3.4028235e+38, %v2628_v57  ;;  %v1598_v43 = vmax.f32 %v6960_v10, %v7032_v42 }
 0x211   : > { %v2795_v40 = vrot.slane %v2736_v13, 1  ;;  %v2939_v51 = vrot.slane %v2736_v13, 2  ;;  %v3083_v0 = vrot.slane %v2736_v13, 3  ;;  %v3227_v52 = vrot.slane %v2736_v13, 4 }
 0x212   : > { %v2792_v18 = vrot.slane %v7394_v23, 1  ;;  %v2793_v56 = vrot.slane %v7391_v62, 1  ;;  %v2936_v44 = vrot.slane %v7394_v23, 2  ;;  %v2937_v47 = vrot.slane %v7391_v62, 2 }
 0x213   : > { %v3080_v53 = vrot.slane %v7394_v23, 3  ;;  %v3081_v27 = vrot.slane %v7391_v62, 3  ;;  %v9565_v8 = vrot.slane %v7391_v62, 4  ;;  %v2737_v4 = vsel %vm841_vm1, %v2632_v48, -3.4028235e+38 }
 0x214   : > { %v2794_v2 = vsel %vm1002_vm2, %v2792_v18, %v2793_v56  ;;  %v2796_v54 = vsel %vm1002_vm2, %v2793_v56, %v2795_v40  ;;  %v2938_v45 = vsel %vm1147_vm3, %v2936_v44, %v2937_v47  ;;  %v2940_v50 = vsel %vm1147_vm3, %v2937_v47, %v2939_v51  ;;  %5025 = vrot.lane.b32.xlu1 %v5024_v30, %s5571_s30 }
 0x215   : > { %v2898_v31 = vmax.f32 %v7394_v23, %v2794_v2  ;;  %v2899_v38 = vmax.f32 %v7391_v62, %v2796_v54  ;;  %v7415_v25 = vsel %vm1292_vm4, %v3080_v53, %v3081_v27  ;;  %v7418_v16 = vsel %vm1292_vm4, %v3081_v27, %v3083_v0 }
 0x216   : > { %v7423_v41 = vsel %vm1437_vm5, %v9565_v8, %v3227_v52  ;;  %v2633_v35 = vsel %vm841_vm1, %v2631_v32, %v2632_v48  ;;  %v2721_v63 = vsel %vm841_vm1, -3.4028235e+38, %v2631_v32  ;;  %v2800_v57 = vrot.slane %v2737_v4, 1 }
 0x217   : > { %v7428_v60 = vmax.f32 %v2898_v31, %v2938_v45  ;;  %v7430_v11 = vmax.f32 %v2899_v38, %v2940_v50  ;;  %v2944_v30 = vrot.slane %v2737_v4, 2  ;;  %v3088_v13 = vrot.slane %v2737_v4, 3 }
 0x218   : > { %v3232_v40 = vrot.slane %v2737_v4, 4  ;;  %v2797_v51 = vrot.slane %v2721_v63, 1  ;;  %v2798_v0 = vrot.slane %v2633_v35, 1  ;;  %v2941_v18 = vrot.slane %v2721_v63, 2 }
 0x219   : > { %v2942_v56 = vrot.slane %v2633_v35, 2  ;;  %v3085_v44 = vrot.slane %v2721_v63, 3  ;;  %v3086_v47 = vrot.slane %v2633_v35, 3  ;;  %v3229_v53 = vrot.slane %v2721_v63, 4 }
 0x21a   : > { %v2799_v48 = vsel %vm1002_vm2, %v2797_v51, %v2798_v0  ;;  %v2801_v32 = vsel %vm1002_vm2, %v2798_v0, %v2800_v57  ;;  %v3230_v38 = vrot.slane %v2633_v35, 4  ;;  %v2635_v4 = vrot.slane %v7397_v26, 6 }
 0x21b   : > { %v2900_v27 = vmax.f32 %v2721_v63, %v2799_v48  ;;  %v2901_v2 = vmax.f32 %v2633_v35, %v2801_v32  ;;  %v2943_v54 = vsel %vm1147_vm3, %v2941_v18, %v2942_v56  ;;  %v2945_v45 = vsel %vm1147_vm3, %v2942_v56, %v2944_v30  ;;  %v9869_v56 = vld [vmem:[#allocation26_spill] sm:$0xff]  ;;  %v9871_v35 = vld [vmem:[#allocation44_spill] sm:$0xff] }
 0x21c   : > { %v7439_v50 = vsel %vm1292_vm4, %v3085_v44, %v3086_v47  ;;  %v3089_v31 = vsel %vm1292_vm4, %v3086_v47, %v3088_v13  ;;  %v5034_v57 = vpack.i.bf16 %v7397_v26, %v7386_v29  ;;  %v2634_v63 = vrot.slane %v7386_v29, 6 }
 0x21d   : > { %9868 = vst [vmem:[#allocation27_spill] sm:$0xff] %v7439_v50  ;;  %v7443_v52 = vmax.f32 %v2900_v27, %v2943_v54  ;;  %v3045_v51 = vmax.f32 %v2901_v2, %v2945_v45  ;;  %v7449_v0 = vsel %vm1437_vm5, %v3229_v53, %v3230_v38  ;;  %v3233_v30 = vsel %vm1437_vm5, %v3230_v38, %v3232_v40 }
 0x21e   : > { %v2738_v18 = vsel %vm841_vm1, %v2635_v4, -3.4028235e+38  ;;  %v9870_v13 = vrot.slane %v9869_v56, 4  ;;  %v9872_v44 = vrot.slane %v9871_v35, 4  ;;  %5035 = vrot.lane.b32.xlu0 %v5034_v57, %s5571_s30  ;;  %v7462_v40 = vsel %vm841_vm1, %v2634_v63, %v2635_v4 }
 0x21f   : > { %v3189_v47 = vmax.f32 %v3045_v51, %v3089_v31  ;;  %v2805_v26 = vrot.slane %v2738_v18, 1  ;;  %v2949_v27 = vrot.slane %v2738_v18, 2  ;;  %v3093_v29 = vrot.slane %v2738_v18, 3 }
 0x220   : > { %v1495_v48 = vsel %vm1437_vm5, %v9872_v44, %v9870_v13  ;;  %v3237_v53 = vrot.slane %v2738_v18, 4  ;;  %v7465_v2 = vsel %vm841_vm1, -3.4028235e+38, %v2634_v63  ;;  %v2803_v38 = vrot.slane %v7462_v40, 1 }
 0x221   : > { %v7467_v54 = vmax.f32 %v3189_v47, %v3233_v30  ;;  %v2802_v45 = vrot.slane %v7465_v2, 1  ;;  %v2946_v31 = vrot.slane %v7465_v2, 2  ;;  %v2947_v51 = vrot.slane %v7462_v40, 2 }
 0x222   : > { %v3090_v57 = vrot.slane %v7465_v2, 3  ;;  %v3091_v18 = vrot.slane %v7462_v40, 3  ;;  %v2806_v63 = vsel %vm1002_vm2, %v2803_v38, %v2805_v26  ;;  %v9564_v30 = vrot.slane %v7462_v40, 4 }
 0x223   : > { %9873 = vst [vmem:[#allocation52_spill] sm:$0xff] %v7467_v54  ;;  %v2804_v56 = vsel %vm1002_vm2, %v2802_v45, %v2803_v38  ;;  %v7482_v13 = vmax.f32 %v1427_v7, %v1495_v48  ;;  %v2903_v44 = vmax.f32 %v7462_v40, %v2806_v63  ;;  %v2948_v47 = vsel %vm1147_vm3, %v2946_v31, %v2947_v51  ;;  %v9879_v45 = vld [vmem:[#allocation60_spill] sm:$0xff]  ;;  %v9880_v38 = vld [vmem:[#allocation62_spill] sm:$0xff]  ;;  %v9885_v63 = vld [vmem:[#allocation9_spill] sm:$0xff] }
 0x224   : > { %v2902_v35 = vmax.f32 %v7465_v2, %v2804_v56  ;;  %v2950_v32 = vsel %vm1147_vm3, %v2947_v51, %v2949_v27  ;;  %v7489_v4 = vsel %vm1292_vm4, %v3090_v57, %v3091_v18  ;;  %v7492_v26 = vsel %vm1292_vm4, %v3091_v18, %v3093_v29  ;;  %v9881_v51 = vld [vmem:[#allocation57_spill] sm:$0xff]  ;;  %v9883_v18 = vld [vmem:[#allocation54_spill] sm:$0xff] }
 0x225   : > { %9874 = vst [vmem:[#allocation26_spill] sm:$0xff] %v7489_v4  ;;  %9875 = vst [vmem:[#allocation44_spill] sm:$0xff] %v7492_v26  ;;  %v7497_v36 = vsel %vm1437_vm5, %v9564_v30, %v3237_v53  ;;  %v7503_v48 = vmax.f32 %v2903_v44, %v2950_v32  ;;  %v1599_v27 = vmax.f32 %v6948_v39, %v6577_v1  ;;  %v9882_v57 = vrot.slane %v9881_v51, 4  ;;  %v9887_v51 = vld [vmem:[#allocation55_spill] sm:$0xff] }
 0x226   : > { %9876 = vst [vmem:[#allocation83_spill] sm:$0xff] %v7497_v36  ;;  %v7501_v7 = vmax.f32 %v2902_v35, %v2948_v47  ;;  %v1429_v31 = vmax.f32 %v9880_v38, %v9879_v45  ;;  %v1628_v29 = vmax.f32 %v1598_v43, %v7075_v3  ;;  %v9884_v53 = vrot.slane %v9883_v18, 4  ;;  %v9886_v43 = vld [vmem:[#allocation41_spill] sm:$0xff] }
 0x227   : > { %9878 = vst [vmem:[#allocation85_spill] sm:$0xff] %v7503_v48  ;;  %v1600_v10 = vmax.f32 %v7032_v42, %v7075_v3  ;;  %v1601_v32 = vmax.f32 %v6577_v1, %v9885_v63  ;;  %v1629_v44 = vmax.f32 %v1599_v27, %v9885_v63  ;;  %v9888_v42 = vld [vmem:[#allocation39_spill] sm:$0xff]  ;;  %v9893_v35 = vld [vmem:[#allocation49_spill] sm:$0xff] }
 0x228   : > { %9877 = vst [vmem:[#allocation84_spill] sm:$0xff] %v7501_v7  ;;  %v1500_v56 = vsel %vm1437_vm5, %v9884_v53, %v9882_v57  ;;  %v1658_v45 = vmax.f32 %v1628_v29, %v9886_v43  ;;  %v9889_v18 = vrot.slane %v9888_v42, 4  ;;  %v9890_v53 = vld [vmem:[#allocation50_spill] sm:$0xff]  ;;  %v9894_v8 = vmax.f32 %v9892_v14, %v9893_v35  ;;  %v9897_v29 = vld [vmem:[#allocation51_spill] sm:$0xff] }
 0x229   : > { %v7524_v47 = vmax.f32 %v1429_v31, %v1500_v56  ;;  %v1630_v38 = vmax.f32 %v1600_v10, %v9886_v43  ;;  %v1631_v57 = vmax.f32 %v1601_v32, %v9887_v51  ;;  %v9891_v1 = vrot.slane %v9890_v53, 4  ;;  %v9895_v31 = vld [vmem:[#allocation75_spill] sm:$0xff]  ;;  %v9896_v56 = vld [vmem:[#allocation77_spill] sm:$0xff]  ;;  %v9901_v35 = vld [vmem:[#allocation18_spill] sm:$0xff] }
 0x22a   : > { %v1659_v39 = vmax.f32 %v1629_v44, %v9887_v51  ;;  %v9898_v58 = vmax.f32 %v9896_v56, %v9897_v29  ;;  %v2478_v32 = vmax.f32 %v7310_v28, %v7317_v55  ;;  %v1688_v42 = vmax.f32 %v1658_v45, %v7482_v13  ;;  %v9899_v53 = vld [vmem:[#allocation53_spill] sm:$0xff]  ;;  %v9905_v56 = vld [vmem:[#allocation19_spill] sm:$0xff] }
 0x22b   : > { %v2363_v30 = vsel %vm1437_vm5, %v9891_v1, %v9889_v18  ;;  %v1660_v18 = vmax.f32 %v1630_v38, %v7482_v13  ;;  %v1661_v44 = vmax.f32 %v1631_v57, %v9899_v53  ;;  %v2479_v14 = vmax.f32 %v6999_v37, %v7323_v20 }
 0x22c   : > { %v7538_v27 = vmax.f32 %v9894_v8, %v2363_v30  ;;  %v7544_v10 = vmax.f32 %v9898_v58, %v9895_v31  ;;  %v1689_v8 = vmax.f32 %v1659_v39, %v9899_v53  ;;  %v7555_v30 = vmax.f32 %v2478_v32, %v7329_v59  ;;  %v9903_v31 = vld [vmem:[#allocation78_spill] sm:$0xff] }
 0x22d   : > { %v9900_v58 = vrot.slane %v7229_v6, 4  ;;  %v9902_v1 = vrot.slane %v9901_v35, 4  ;;  %v9904_v45 = vmax.f32 %v7264_v19, %v7252_v15  ;;  %v1761_v57 = vrot.slane %v1688_v42, 6 }
 0x22e   : > { %v1690_v37 = vmax.f32 %v1660_v18, %v7524_v47  ;;  %v1691_v39 = vmax.f32 %v1661_v44, %v9905_v56  ;;  %v7571_v29 = vmax.f32 %v2479_v14, %v7085_v33  ;;  %v1762_v32 = vrot.slane %v1689_v8, 6 }
 0x22f   : > { %v2368_v28 = vsel %vm1437_vm5, %v9902_v1, %v9900_v58  ;;  %v7566_v38 = vmax.f32 %v9904_v45, %v9903_v31  ;;  %v5029_v6 = vpack.i.bf16 %v1689_v8, %v1688_v42  ;;  %v2538_v35 = vmax.f32 %v7555_v30, %v7347_v49 }
 0x230   : > { %v9906_v58 = vmax.f32 %v7262_v61, %v7249_v24  ;;  %v7581_v15 = vsel %vm841_vm1, -3.4028235e+38, %v1761_v57  ;;  %v1765_v19 = vrot.slane %v1691_v39, 6  ;;  %v5039_v18 = vpack.i.bf16 %v1691_v39, %v1690_v37 }
 0x231   : > { %v1764_v31 = vrot.slane %v1690_v37, 6  ;;  %v1855_v44 = vsel %vm841_vm1, %v1762_v32, -3.4028235e+38  ;;  %v7585_v14 = vsel %vm841_vm1, %v1761_v57, %v1762_v32  ;;  %v1939_v42 = vrot.slane %v7581_v15, 1  ;;  %5030 = vrot.lane.b32.xlu1 %v5029_v6, %s5570_s26 }
 0x232   : > { %v7578_v1 = vmax.f32 %v9906_v58, %v2368_v28  ;;  %v2083_v8 = vrot.slane %v7581_v15, 2  ;;  %v1942_v24 = vrot.slane %v1855_v44, 1  ;;  %v2086_v61 = vrot.slane %v1855_v44, 2  ;;  %5040 = vrot.lane.b32.xlu0 %v5039_v18, %s5570_s26 }
 0x233   : > { %v2230_v30 = vrot.slane %v1855_v44, 3  ;;  %v2374_v28 = vrot.slane %v1855_v44, 4  ;;  %v1940_v45 = vrot.slane %v7585_v14, 1  ;;  %v2084_v37 = vrot.slane %v7585_v14, 2 }
 0x234   : > { %v2227_v39 = vrot.slane %v7581_v15, 3  ;;  %v2228_v57 = vrot.slane %v7585_v14, 3  ;;  %v1856_v6 = vsel %vm841_vm1, %v1765_v19, -3.4028235e+38  ;;  %v7599_v22 = vsel %vm841_vm1, %v1764_v31, %v1765_v19 }
 0x235   : > { %9907 = vst [vmem:[#allocation60_spill] sm:$0xff] %v7599_v22  ;;  %v1941_v44 = vsel %vm1002_vm2, %v1939_v42, %v1940_v45  ;;  %v1943_v18 = vsel %vm1002_vm2, %v1940_v45, %v1942_v24  ;;  %v2085_v5 = vsel %vm1147_vm3, %v2083_v8, %v2084_v37  ;;  %v2087_v34 = vsel %vm1147_vm3, %v2084_v37, %v2086_v61 }
 0x236   : > { %v2024_v54 = vmax.f32 %v7581_v15, %v1941_v44  ;;  %v2025_v26 = vmax.f32 %v7585_v14, %v1943_v18  ;;  %v7608_v32 = vsel %vm1292_vm4, %v2227_v39, %v2228_v57  ;;  %v7611_v58 = vsel %vm1292_vm4, %v2228_v57, %v2230_v30 }
 0x237   : > { %v9908_v19 = vrot.slane %v7585_v14, 4  ;;  %v1947_v24 = vrot.slane %v1856_v6, 1  ;;  %v2091_v45 = vrot.slane %v1856_v6, 2  ;;  %v2235_v8 = vrot.slane %v1856_v6, 3 }
 0x238   : > { %v7618_v48 = vmax.f32 %v2024_v54, %v2085_v5  ;;  %v7620_v61 = vmax.f32 %v2025_v26, %v2087_v34  ;;  %v2379_v37 = vrot.slane %v1856_v6, 4  ;;  %v7623_v44 = vsel %vm841_vm1, -3.4028235e+38, %v1764_v31 }
 0x239   : > { %v7616_v42 = vsel %vm1437_vm5, %v9908_v19, %v2374_v28  ;;  %9909 = vst [vmem:[#allocation62_spill] sm:$0xff] %v7623_v44  ;;  %v1944_v39 = vrot.slane %v7623_v44, 1  ;;  %v1945_v30 = vrot.slane %v7599_v22, 1  ;;  %v2088_v57 = vrot.slane %v7623_v44, 2 }
 0x23a   : > { %v2089_v28 = vrot.slane %v7599_v22, 2  ;;  %v2232_v34 = vrot.slane %v7623_v44, 3  ;;  %v2233_v54 = vrot.slane %v7599_v22, 3 }
 0x23b   : > { %v1946_v26 = vsel %vm1002_vm2, %v1944_v39, %v1945_v30  ;;  %v1948_v31 = vsel %vm1002_vm2, %v1945_v30, %v1947_v24  ;;  %v9571_v39 = vrot.slane %v7599_v22, 4  ;;  %v2539_v24 = vmax.f32 %v7571_v29, %v7340_v12 }
 0x23c   : > { %v2090_v6 = vsel %vm1147_vm3, %v2088_v57, %v2089_v28  ;;  %v2092_v19 = vsel %vm1147_vm3, %v2089_v28, %v2091_v45  ;;  %v2026_v36 = vmax.f32 %v7623_v44, %v1946_v26  ;;  %v2027_v4 = vmax.f32 %v7599_v22, %v1948_v31  ;;  %v9915_v26 = vld [vmem:[#allocation58_spill] sm:$0xff] }
 0x23d   : > { %v7642_v18 = vsel %vm1292_vm4, %v2232_v34, %v2233_v54  ;;  %v7645_v5 = vsel %vm1292_vm4, %v2233_v54, %v2235_v8  ;;  %v2568_v30 = vmax.f32 %v2538_v35, %v7538_v27  ;;  %v2480_v28 = vmax.f32 %v7317_v55, %v7329_v59  ;;  %v9916_v35 = vld [vmem:[#allocation59_spill] sm:$0xff] }
 0x23e   : > { %9910 = vst [vmem:[#allocation57_spill] sm:$0xff] %v7642_v18  ;;  %9911 = vst [vmem:[#allocation54_spill] sm:$0xff] %v7645_v5  ;;  %v7652_v45 = vmax.f32 %v2026_v36, %v2090_v6  ;;  %v7654_v57 = vmax.f32 %v2027_v4, %v2092_v19  ;;  %v2481_v8 = vmax.f32 %v7323_v20, %v7085_v33 }
 0x23f   : > { %v7663_v34 = vsel %vm1437_vm5, %v9571_v39, %v2379_v37  ;;  %v2569_v54 = vmax.f32 %v2539_v24, %v7544_v10  ;;  %v2637_v29 = vrot.slane %v2568_v30, 6  ;;  %v1431_v36 = vmax.f32 %v9916_v35, %v9915_v26  ;;  %v9918_v24 = vld [vmem:[#allocation56_spill] sm:$0xff] }
 0x240   : > { %9912 = vst [vmem:[#allocation9_spill] sm:$0xff] %v7652_v45  ;;  %9913 = vst [vmem:[#allocation41_spill] sm:$0xff] %v7654_v57  ;;  %v2510_v31 = vmax.f32 %v2480_v28, %v7347_v49  ;;  %v2511_v20 = vmax.f32 %v2481_v8, %v7340_v12  ;;  %v9919_v7 = vrot.slane %v9918_v24, 4  ;;  %v9920_v39 = vld [vmem:[#allocation28_spill] sm:$0xff] }
 0x241   : > { %9914 = vst [vmem:[#allocation55_spill] sm:$0xff] %v7663_v34  ;;  %v2638_v6 = vrot.slane %v2569_v54, 6  ;;  %v5044_v19 = vpack.i.bf16 %v2569_v54, %v2568_v30  ;;  %v7675_v37 = vsel %vm841_vm1, -3.4028235e+38, %v2637_v29  ;;  %v9921_v34 = vrot.slane %v9920_v39, 4 }
 0x242   : > { %9917 = vst [vmem:[#allocation39_spill] sm:$0xff] %v7675_v37  ;;  %v2807_v35 = vrot.slane %v7675_v37, 1  ;;  %v2951_v4 = vrot.slane %v7675_v37, 2  ;;  %v3095_v55 = vrot.slane %v7675_v37, 3  ;;  %v2540_v54 = vmax.f32 %v2510_v31, %v7538_v27 }
 0x243   : > { %v1505_v26 = vsel %vm1437_vm5, %v9921_v34, %v9919_v7  ;;  %v2739_v8 = vsel %vm841_vm1, %v2638_v6, -3.4028235e+38  ;;  %v7688_v30 = vsel %vm841_vm1, %v2637_v29, %v2638_v6  ;;  %5045 = vrot.lane.b32.xlu1 %v5044_v19, %s5571_s30  ;;  %v2541_v39 = vmax.f32 %v2511_v20, %v7544_v10 }
 0x244   : > { %v2810_v7 = vrot.slane %v2739_v8, 1  ;;  %v2954_v34 = vrot.slane %v2739_v8, 2  ;;  %v3098_v24 = vrot.slane %v2739_v8, 3  ;;  %v3242_v5 = vrot.slane %v2739_v8, 4 }
 0x245   : > { %v2808_v57 = vrot.slane %v7688_v30, 1  ;;  %v2952_v18 = vrot.slane %v7688_v30, 2  ;;  %v3096_v28 = vrot.slane %v7688_v30, 3  ;;  %v2570_v29 = vmax.f32 %v2540_v54, %v7578_v1 }
 0x246   : > { %v2571_v6 = vmax.f32 %v2541_v39, %v7566_v38  ;;  %v7699_v19 = vmax.f32 %v1431_v36, %v1505_v26  ;;  %v1602_v31 = vmax.f32 %v7075_v3, %v9886_v43  ;;  %v9924_v3 = vrot.slane %v7688_v30, 4 }
 0x247   : > { %v2809_v20 = vsel %vm1002_vm2, %v2807_v35, %v2808_v57  ;;  %v2811_v8 = vsel %vm1002_vm2, %v2808_v57, %v2810_v7  ;;  %v2953_v44 = vsel %vm1147_vm3, %v2951_v4, %v2952_v18  ;;  %v2955_v22 = vsel %vm1147_vm3, %v2952_v18, %v2954_v34 }
 0x248   : > { %v2904_v50 = vmax.f32 %v7675_v37, %v2809_v20  ;;  %v2905_v45 = vmax.f32 %v7688_v30, %v2811_v8  ;;  %v7710_v54 = vsel %vm1292_vm4, %v3095_v55, %v3096_v28  ;;  %v7713_v36 = vsel %vm1292_vm4, %v3096_v28, %v3098_v24  ;;  %v9928_v24 = vld [vmem:[#allocation72_spill] sm:$0xff] }
 0x249   : > { %9922 = vst [vmem:[#allocation50_spill] sm:$0xff] %v7710_v54  ;;  %9923 = vst [vmem:[#allocation76_spill] sm:$0xff] %v7713_v36  ;;  %v7718_v26 = vsel %vm1437_vm5, %v9924_v3, %v3242_v5  ;;  %v2641_v57 = vrot.slane %v2571_v6, 6  ;;  %v5054_v35 = vpack.i.bf16 %v2571_v6, %v2570_v29  ;;  %v2640_v4 = vrot.slane %v2570_v29, 6 }
 0x24a   : > { %9925 = vst [vmem:[#allocation49_spill] sm:$0xff] %v7718_v26  ;;  %v7720_v39 = vmax.f32 %v2904_v50, %v2953_v44  ;;  %v7722_v18 = vmax.f32 %v2905_v45, %v2955_v22  ;;  %v1603_v7 = vmax.f32 %v9885_v63, %v9887_v51  ;;  %v1632_v55 = vmax.f32 %v1602_v31, %v7482_v13  ;;  %v9929_v50 = vld [vmem:[#allocation65_spill] sm:$0xff] }
 0x24b   : > { %v2740_v28 = vsel %vm841_vm1, %v2641_v57, -3.4028235e+38  ;;  %v7729_v34 = vsel %vm841_vm1, %v2640_v4, %v2641_v57  ;;  %v7732_v5 = vsel %vm841_vm1, -3.4028235e+38, %v2640_v4  ;;  %5055 = vrot.lane.b32.xlu0 %v5054_v35, %s5571_s30  ;;  %v1143_v44 = vmax.f32 %v9929_v50, %v9928_v24 }
 0x24c   : > { %9926 = vst [vmem:[#allocation75_spill] sm:$0xff] %v7720_v39  ;;  %9927 = vst [vmem:[#allocation77_spill] sm:$0xff] %v7722_v18  ;;  %v2815_v45 = vrot.slane %v2740_v28, 1  ;;  %v2959_v29 = vrot.slane %v2740_v28, 2  ;;  %v3103_v6 = vrot.slane %v2740_v28, 3  ;;  %v3247_v31 = vrot.slane %v2740_v28, 4 }
 0x24d   : > { %v2812_v20 = vrot.slane %v7732_v5, 1  ;;  %v2813_v8 = vrot.slane %v7729_v34, 1  ;;  %v2956_v3 = vrot.slane %v7732_v5, 2  ;;  %v2957_v57 = vrot.slane %v7729_v34, 2 }
 0x24e   : > { %v3100_v35 = vrot.slane %v7732_v5, 3  ;;  %v3101_v4 = vrot.slane %v7729_v34, 3  ;;  %v9584_v28 = vrot.slane %v7729_v34, 4  ;;  %v9936_v63 = vrot.slane %v9929_v50, 3 }
 0x24f   : > { %v2814_v24 = vsel %vm1002_vm2, %v2812_v20, %v2813_v8  ;;  %v2816_v22 = vsel %vm1002_vm2, %v2813_v8, %v2815_v45  ;;  %v2958_v36 = vsel %vm1147_vm3, %v2956_v3, %v2957_v57  ;;  %v2960_v18 = vsel %vm1147_vm3, %v2957_v57, %v2959_v29  ;;  %v9932_v29 = vld [vmem:[#allocation70_spill] sm:$0xff] }
 0x250   : > { %v2906_v54 = vmax.f32 %v7732_v5, %v2814_v24  ;;  %v2907_v39 = vmax.f32 %v7729_v34, %v2816_v22  ;;  %v7756_v26 = vsel %vm1292_vm4, %v3100_v35, %v3101_v4  ;;  %v7759_v37 = vsel %vm1292_vm4, %v3101_v4, %v3103_v6 }
 0x251   : > { %9930 = vst [vmem:[#allocation51_spill] sm:$0xff] %v7759_v37  ;;  %v7764_v45 = vsel %vm1437_vm5, %v9584_v28, %v3247_v31  ;;  %v1633_v20 = vmax.f32 %v1603_v7, %v9899_v53  ;;  %v1662_v3 = vmax.f32 %v1632_v55, %v7524_v47  ;;  %v9933_v57 = vrot.slane %v9932_v29, 2 }
 0x252   : > { %9931 = vst [vmem:[#allocation53_spill] sm:$0xff] %v7764_v45  ;;  %v7767_v8 = vmax.f32 %v2906_v54, %v2958_v36  ;;  %v7769_v22 = vmax.f32 %v2907_v39, %v2960_v18  ;;  %v9934_v35 = vrot.slane %v9929_v50, 2  ;;  %v9935_v31 = vrot.slane %v9932_v29, 3  ;;  %v9937_v36 = vld [vmem:[#allocation73_spill] sm:$0xff]  ;;  %v9938_v39 = vld [vmem:[#allocation74_spill] sm:$0xff] }
 0x253   : > { %v1663_v4 = vmax.f32 %v1633_v20, %v9905_v56  ;;  %v1434_v18 = vmax.f32 %v9938_v39, %v9937_v36  ;;  %v9939_v20 = vrot.slane %v9932_v29, 4  ;;  %v1604_v55 = vmax.f32 %v9886_v43, %v7482_v13 }
 0x254   : > { %v1220_v6 = vsel %vm1147_vm3, %v9934_v35, %v9933_v57  ;;  %v1365_v54 = vsel %vm1292_vm4, %v9936_v63, %v9935_v31  ;;  %v1692_v57 = vmax.f32 %v1662_v3, %v7699_v19  ;;  %v9942_v31 = vld [vmem:[#allocation71_spill] sm:$0xff] }
 0x255   : > { %v1288_v24 = vmax.f32 %v1143_v44, %v1220_v6  ;;  %v9940_v44 = vrot.slane %v9929_v50, 4  ;;  %v9941_v6 = vld [vmem:[#allocation61_spill] sm:$0xff]  ;;  %v9943_v45 = vrot.slane %v9942_v31, 4  ;;  %v9944_v36 = vmov %v9939_v20 }
 0x256   : > { %v1693_v28 = vmax.f32 %v1663_v4, %v9941_v6  ;;  %v1767_v7 = vrot.slane %v1692_v57, 6  ;;  %v1605_v50 = vmax.f32 %v9887_v51, %v9899_v53  ;;  %v9946_v4 = vrot.slane %v7581_v15, 4 }
 0x257   : > { %v1510_v35 = vsel %vm1437_vm5, %v9940_v44, %v9939_v20  ;;  %v1433_v63 = vmax.f32 %v1288_v24, %v1365_v54  ;;  %v1512_v39 = vsel %vm1437_vm5, %v9944_v36, %v9943_v45  ;;  %v9945_v20 = vrot.slane %v7585_v14, 4 }
 0x258   : > { %v7803_v3 = vmax.f32 %v1434_v18, %v1512_v39  ;;  %v1768_v54 = vrot.slane %v1693_v28, 6  ;;  %v5049_v44 = vpack.i.bf16 %v1693_v28, %v1692_v57  ;;  %v1634_v45 = vmax.f32 %v1604_v55, %v7524_v47 }
 0x259   : > { %v2373_v24 = vsel %vm1437_vm5, %v9946_v4, %v9945_v20  ;;  %v7812_v29 = vmax.f32 %v1433_v63, %v1510_v35  ;;  %v7816_v43 = vsel %vm841_vm1, -3.4028235e+38, %v1767_v7  ;;  %v1635_v18 = vmax.f32 %v1605_v50, %v9905_v56 }
 0x25a   : > { %9947 = vst [vmem:[#allocation18_spill] sm:$0xff] %v7816_v43  ;;  %v9948_v51 = vmax.f32 %v7618_v48, %v7608_v32  ;;  %v9949_v15 = vmax.f32 %v7620_v61, %v7611_v58  ;;  %v1857_v28 = vsel %vm841_vm1, %v1768_v54, -3.4028235e+38  ;;  %v7832_v55 = vsel %vm841_vm1, %v1767_v7, %v1768_v54  ;;  %5050 = vrot.lane.b32.xlu1 %v5049_v44, %s5570_s26 }
 0x25b   : > { %9950 = vst [vmem:[#allocation78_spill] sm:$0xff] %v7832_v55  ;;  %v1949_v57 = vrot.slane %v7816_v43, 1  ;;  %v2093_v35 = vrot.slane %v7816_v43, 2  ;;  %v1952_v48 = vrot.slane %v1857_v28, 1  ;;  %v2096_v32 = vrot.slane %v1857_v28, 2 }
 0x25c   : > { %v7822_v31 = vmax.f32 %v9948_v51, %v2373_v24  ;;  %v7828_v14 = vmax.f32 %v9949_v15, %v7616_v42  ;;  %v2240_v63 = vrot.slane %v1857_v28, 3  ;;  %v2384_v36 = vrot.slane %v1857_v28, 4 }
 0x25d   : > { %v1950_v39 = vrot.slane %v7832_v55, 1  ;;  %v2094_v58 = vrot.slane %v7832_v55, 2  ;;  %v2237_v42 = vrot.slane %v7816_v43, 3  ;;  %v2238_v61 = vrot.slane %v7832_v55, 3 }
 0x25e   : > { %v1664_v20 = vmax.f32 %v1634_v45, %v7699_v19  ;;  %v1665_v4 = vmax.f32 %v1635_v18, %v9941_v6  ;;  %v9953_v45 = vrot.slane %v7832_v55, 4 }
 0x25f   : > { %v1951_v24 = vsel %vm1002_vm2, %v1949_v57, %v1950_v39  ;;  %v1953_v54 = vsel %vm1002_vm2, %v1950_v39, %v1952_v48  ;;  %v2095_v44 = vsel %vm1147_vm3, %v2093_v35, %v2094_v58  ;;  %v2097_v51 = vsel %vm1147_vm3, %v2094_v58, %v2096_v32  ;;  %v9957_v58 = vld [vmem:[#allocation66_spill] sm:$0xff] }
 0x260   : > { %v2028_v15 = vmax.f32 %v7816_v43, %v1951_v24  ;;  %v2029_v28 = vmax.f32 %v7832_v55, %v1953_v54  ;;  %v7852_v7 = vsel %vm1292_vm4, %v2237_v42, %v2238_v61  ;;  %v7855_v50 = vsel %vm1292_vm4, %v2238_v61, %v2240_v63  ;;  %v9959_v61 = vld [vmem:[#allocation64_spill] sm:$0xff] }
 0x261   : > { %9951 = vst [vmem:[#allocation19_spill] sm:$0xff] %v7852_v7  ;;  %9952 = vst [vmem:[#allocation58_spill] sm:$0xff] %v7855_v50  ;;  %v7860_v18 = vsel %vm1437_vm5, %v9953_v45, %v2384_v36  ;;  %v1694_v57 = vmax.f32 %v1664_v20, %v7812_v29  ;;  %v1695_v35 = vmax.f32 %v1665_v4, %v7803_v3  ;;  %v9958_v42 = vrot.slane %v9957_v58, 1 }
 0x262   : > { %9954 = vst [vmem:[#allocation59_spill] sm:$0xff] %v7860_v18  ;;  %v2482_v48 = vmax.f32 %v7329_v59, %v7347_v49  ;;  %v7866_v32 = vmax.f32 %v2028_v15, %v2095_v44  ;;  %v7868_v39 = vmax.f32 %v2029_v28, %v2097_v51  ;;  %v2483_v63 = vmax.f32 %v7085_v33, %v7340_v12 }
 0x263   : > { %v9960_v24 = vrot.slane %v9959_v61, 1  ;;  %v1771_v54 = vrot.slane %v1695_v35, 6  ;;  %v5059_v20 = vpack.i.bf16 %v1695_v35, %v1694_v57  ;;  %v1770_v45 = vrot.slane %v1694_v57, 6 }
 0x264   : > { %9955 = vst [vmem:[#allocation56_spill] sm:$0xff] %v7866_v32  ;;  %9956 = vst [vmem:[#allocation28_spill] sm:$0xff] %v7868_v39  ;;  %v2512_v4 = vmax.f32 %v2482_v48, %v7538_v27  ;;  %v2513_v51 = vmax.f32 %v2483_v63, %v7544_v10 }
 0x265   : > { %v1080_v36 = vsel %vm1002_vm2, %v9960_v24, %v9958_v42  ;;  %v1858_v15 = vsel %vm841_vm1, %v1771_v54, -3.4028235e+38  ;;  %v7886_v28 = vsel %vm841_vm1, %v1770_v45, %v1771_v54  ;;  %v7889_v35 = vsel %vm841_vm1, -3.4028235e+38, %v1770_v45  ;;  %5060 = vrot.lane.b32.xlu0 %v5059_v20, %s5570_s26 }
 0x266   : > { %v1145_v33 = vmax.f32 %v9959_v61, %v1080_v36  ;;  %9961 = vst [vmem:[#allocation72_spill] sm:$0xff] %v7889_v35  ;;  %v2542_v57 = vmax.f32 %v2512_v4, %v7578_v1  ;;  %v1957_v48 = vrot.slane %v1858_v15, 1  ;;  %v2101_v42 = vrot.slane %v1858_v15, 2 }
 0x267   : > { %v2245_v24 = vrot.slane %v1858_v15, 3  ;;  %v2389_v44 = vrot.slane %v1858_v15, 4  ;;  %v1954_v63 = vrot.slane %v7889_v35, 1  ;;  %v1955_v36 = vrot.slane %v7886_v28, 1 }
 0x268   : > { %v2098_v59 = vrot.slane %v7889_v35, 2  ;;  %v2099_v54 = vrot.slane %v7886_v28, 2  ;;  %v2242_v50 = vrot.slane %v7889_v35, 3  ;;  %v2243_v45 = vrot.slane %v7886_v28, 3 }
 0x269   : > { %v9592_v4 = vrot.slane %v7886_v28, 4  ;;  %v1956_v39 = vsel %vm1002_vm2, %v1954_v63, %v1955_v36  ;;  %v1958_v15 = vsel %vm1002_vm2, %v1955_v36, %v1957_v48  ;;  %v2543_v48 = vmax.f32 %v2513_v51, %v7566_v38 }
 0x26a   : > { %v2100_v18 = vsel %vm1147_vm3, %v2098_v59, %v2099_v54  ;;  %v2102_v7 = vsel %vm1147_vm3, %v2099_v54, %v2101_v42  ;;  %v2030_v32 = vmax.f32 %v7889_v35, %v1956_v39  ;;  %v2031_v43 = vmax.f32 %v7886_v28, %v1958_v15  ;;  %v9968_v15 = vld [vmem:[#allocation68_spill] sm:$0xff] }
 0x26b   : > { %v7908_v55 = vsel %vm1292_vm4, %v2242_v50, %v2243_v45  ;;  %v7911_v37 = vsel %vm1292_vm4, %v2243_v45, %v2245_v24  ;;  %v7916_v63 = vsel %vm1437_vm5, %v9592_v4, %v2389_v44  ;;  %v2572_v59 = vmax.f32 %v2542_v57, %v7822_v31  ;;  %v9967_v45 = vld [vmem:[#allocation69_spill] sm:$0xff] }
 0x26c   : > { %9962 = vst [vmem:[#allocation65_spill] sm:$0xff] %v7911_v37  ;;  %9963 = vst [vmem:[#allocation70_spill] sm:$0xff] %v7916_v63  ;;  %v9964_v42 = vrot.slane %v9957_v58, 2  ;;  %v9965_v39 = vrot.slane %v9959_v61, 2  ;;  %v7925_v50 = vmax.f32 %v2030_v32, %v2100_v18  ;;  %v7927_v54 = vmax.f32 %v2031_v43, %v2102_v7 }
 0x26d   : > { %v9969_v44 = vmax.f32 %v9957_v58, %v9968_v15  ;;  %v2573_v51 = vmax.f32 %v2543_v48, %v7828_v14  ;;  %v2643_v4 = vrot.slane %v2572_v59, 6  ;;  %v9970_v57 = vrot.slane %v9957_v58, 3 }
 0x26e   : > { %v1225_v36 = vsel %vm1147_vm3, %v9965_v39, %v9964_v42  ;;  %9966 = vst [vmem:[#allocation73_spill] sm:$0xff] %v7927_v54  ;;  %v9971_v63 = vrot.slane %v9959_v61, 3  ;;  %v9972_v42 = vld [vmem:[#allocation67_spill] sm:$0xff] }
 0x26f   : > { %v1290_v24 = vmax.f32 %v1145_v33, %v1225_v36  ;;  %v1291_v20 = vmax.f32 %v9969_v44, %v9967_v45  ;;  %v9973_v18 = vrot.slane %v9972_v42, 3  ;;  %v9974_v43 = vmov %v9970_v57 }
 0x270   : > { %v1370_v35 = vsel %vm1292_vm4, %v9971_v63, %v9970_v57  ;;  %v2644_v36 = vrot.slane %v2573_v51, 6  ;;  %v5064_v45 = vpack.i.bf16 %v2573_v51, %v2572_v59  ;;  %v7949_v15 = vsel %vm841_vm1, -3.4028235e+38, %v2643_v4 }
 0x271   : > { %v1372_v7 = vsel %vm1292_vm4, %v9974_v43, %v9973_v18  ;;  %v1435_v48 = vmax.f32 %v1290_v24, %v1370_v35  ;;  %v9975_v63 = vrot.slane %v9957_v58, 4  ;;  %v9976_v44 = vrot.slane %v9959_v61, 4 }
 0x272   : > { %v1436_v39 = vmax.f32 %v1291_v20, %v1372_v7  ;;  %v2817_v18 = vrot.slane %v7949_v15, 1  ;;  %v2961_v43 = vrot.slane %v7949_v15, 2  ;;  %v3105_v32 = vrot.slane %v7949_v15, 3  ;;  %5065 = vrot.lane.b32.xlu1 %v5064_v45, %s5571_s30 }
 0x273   : > { %v1515_v57 = vsel %vm1437_vm5, %v9976_v44, %v9975_v63  ;;  %v2741_v20 = vsel %vm841_vm1, %v2644_v36, -3.4028235e+38  ;;  %v7962_v59 = vsel %vm841_vm1, %v2643_v4, %v2644_v36  ;;  %v9977_v24 = vrot.slane %v9972_v42, 4 }
 0x274   : > { %v9978_v61 = vmov %v9975_v63  ;;  %v1580_v7 = vmax.f32 %v1435_v48, %v1515_v57  ;;  %v2820_v63 = vrot.slane %v2741_v20, 1  ;;  %v2964_v44 = vrot.slane %v2741_v20, 2 }
 0x275   : > { %v1517_v51 = vsel %vm1437_vm5, %v9978_v61, %v9977_v24  ;;  %v3108_v33 = vrot.slane %v2741_v20, 3  ;;  %v3252_v37 = vrot.slane %v2741_v20, 4  ;;  %v2818_v35 = vrot.slane %v7962_v59, 1 }
 0x276   : > { %v2962_v54 = vrot.slane %v7962_v59, 2  ;;  %v3106_v4 = vrot.slane %v7962_v59, 3  ;;  %v1581_v45 = vmax.f32 %v1436_v39, %v1517_v51  ;;  %v1606_v42 = vmax.f32 %v7482_v13, %v7524_v47 }
 0x277   : > { %v1607_v58 = vmax.f32 %v9899_v53, %v9905_v56  ;;  %v1608_v48 = vmax.f32 %v7524_v47, %v7699_v19  ;;  %v2819_v57 = vsel %vm1002_vm2, %v2817_v18, %v2818_v35  ;;  %v2821_v20 = vsel %vm1002_vm2, %v2818_v35, %v2820_v63 }
 0x278   : > { %v2963_v24 = vsel %vm1147_vm3, %v2961_v43, %v2962_v54  ;;  %v2965_v61 = vsel %vm1147_vm3, %v2962_v54, %v2964_v44  ;;  %v2908_v36 = vmax.f32 %v7949_v15, %v2819_v57  ;;  %v2909_v39 = vmax.f32 %v7962_v59, %v2821_v20 }
 0x279   : > { %v7987_v13 = vsel %vm1292_vm4, %v3105_v32, %v3106_v4  ;;  %v7990_v53 = vsel %vm1292_vm4, %v3106_v4, %v3108_v33  ;;  %v9980_v47 = vrot.slane %v7962_v59, 4  ;;  %v1609_v43 = vmax.f32 %v9905_v56, %v9941_v6 }
 0x27a   : > { %9979 = vst [vmem:[#allocation74_spill] sm:$0xff] %v7987_v13  ;;  %v1610_v54 = vmax.f32 %v7699_v19, %v7812_v29  ;;  %v1611_v35 = vmax.f32 %v9941_v6, %v7803_v3  ;;  %v8003_v51 = vmax.f32 %v2908_v36, %v2963_v24  ;;  %v8005_v32 = vmax.f32 %v2909_v39, %v2965_v61 }
 0x27b   : > { %v7995_v18 = vsel %vm1437_vm5, %v9980_v47, %v3252_v37  ;;  %v1636_v33 = vmax.f32 %v1606_v42, %v7699_v19  ;;  %v1637_v63 = vmax.f32 %v1607_v58, %v9941_v6  ;;  %v1638_v37 = vmax.f32 %v1608_v48, %v7812_v29 }
 0x27c   : > { %9981 = vst [vmem:[#allocation61_spill] sm:$0xff] %v8003_v51  ;;  %v1639_v44 = vmax.f32 %v1609_v43, %v7803_v3  ;;  %v1640_v4 = vmax.f32 %v1610_v54, %v1580_v7  ;;  %v1641_v56 = vmax.f32 %v1611_v35, %v1581_v45  ;;  %v9982_v39 = vrot.slane %v7355_v21, 6 }
 0x27d   : > { %v1666_v36 = vmax.f32 %v1636_v33, %v7812_v29  ;;  %v1667_v24 = vmax.f32 %v1637_v63, %v7803_v3  ;;  %v1668_v61 = vmax.f32 %v1638_v37, %v1580_v7  ;;  %v9983_v47 = vrot.slane %v7352_v9, 6 }
 0x27e   : > { %v1669_v19 = vmax.f32 %v1639_v44, %v1581_v45  ;;  %v1670_v42 = vmax.f32 %v1640_v4, -3.4028235e+38  ;;  %v1671_v6 = vmax.f32 %v1641_v56, -3.4028235e+38  ;;  %v9984_v54 = vrot.slane %v7369_v46, 6 }
 0x27f   : > { %v1696_v58 = vmax.f32 %v1666_v36, %v1580_v7  ;;  %v1697_v48 = vmax.f32 %v1667_v24, %v1581_v45  ;;  %v8022_v43 = vsel %vm841_vm1, %v9983_v47, %v9982_v39  ;;  %v9985_v35 = vrot.slane %v7365_v17, 6 }
 0x280   : > { %v8031_v3 = vmax.f32 %v1668_v61, -3.4028235e+38  ;;  %v8033_v33 = vmax.f32 %v1669_v19, -3.4028235e+38  ;;  %v8035_v7 = vmax.f32 %v1670_v42, -3.4028235e+38  ;;  %v9990_v61 = vmov %v9983_v47 }
 0x281   : > { %v8029_v29 = vsel %vm841_vm1, %v9985_v35, %v9984_v54  ;;  %v8039_v63 = vmax.f32 %v1671_v6, -3.4028235e+38  ;;  %v1774_v37 = vrot.slane %v1697_v48, 6  ;;  %v5069_v44 = vpack.i.bf16 %v1697_v48, %v1696_v58 }
 0x282   : > { %9986 = vst [vmem:[#allocation71_spill] sm:$0xff] %v8031_v3  ;;  %9987 = vst [vmem:[#allocation66_spill] sm:$0xff] %v8033_v33  ;;  %v1773_v4 = vrot.slane %v1696_v58, 6  ;;  %v1776_v56 = vrot.slane %v8031_v3, 6  ;;  %v1777_v36 = vrot.slane %v8033_v33, 6  ;;  %v9601_v24 = vrot.slane %v8035_v7, 6 }
 0x283   : > { %9988 = vst [vmem:[#allocation64_spill] sm:$0xff] %v8035_v7  ;;  %9989 = vst [vmem:[#allocation69_spill] sm:$0xff] %v8039_v63  ;;  %v8047_v19 = vsel %vm841_vm1, -3.4028235e+38, %v9990_v61  ;;  %v1859_v39 = vsel %vm841_vm1, %v1774_v37, -3.4028235e+38  ;;  %5070 = vrot.lane.b32.xlu1 %v5069_v44, %s5570_s26 }
 0x284   : > { %v1775_v6 = vsel %vm841_vm1, %v1773_v4, %v1774_v37  ;;  %v1843_v48 = vsel %vm841_vm1, -3.4028235e+38, %v1773_v4  ;;  %v8055_v58 = vsel %vm841_vm1, %v1776_v56, %v1777_v36  ;;  %v8058_v47 = vsel %vm841_vm1, -3.4028235e+38, %v1776_v56 }
 0x285   : > { %9991 = vst [vmem:[#allocation68_spill] sm:$0xff] %v8055_v58  ;;  %9992 = vst [vmem:[#allocation67_spill] sm:$0xff] %v8058_v47  ;;  %v8063_v54 = vsel %vm841_vm1, -3.4028235e+38, %v9601_v24  ;;  %v8066_v35 = vsel %vm841_vm1, %v1777_v36, -3.4028235e+38 }
 0x286   : > { %9993 = vst [vmem:[#allocation86_spill] sm:$0xff] %v8063_v54  ;;  %9994 = vst [vmem:[#allocation87_spill] sm:$0xff] %v8066_v35  ;;  %v1962_v61 = vrot.slane %v1859_v39, 1  ;;  %v2106_v4 = vrot.slane %v1859_v39, 2  ;;  %v2250_v42 = vrot.slane %v1859_v39, 3  ;;  %v2394_v44 = vrot.slane %v1859_v39, 4 }
 0x287   : > { %v1959_v57 = vrot.slane %v1843_v48, 1  ;;  %v1960_v20 = vrot.slane %v1775_v6, 1  ;;  %v2103_v45 = vrot.slane %v1843_v48, 2  ;;  %v2104_v9 = vrot.slane %v1775_v6, 2 }
 0x288   : > { %v2247_v56 = vrot.slane %v1843_v48, 3  ;;  %v2248_v33 = vrot.slane %v1775_v6, 3  ;;  %v2391_v3 = vrot.slane %v1843_v48, 4  ;;  %v2392_v54 = vrot.slane %v1775_v6, 4 }
 0x289   : > { %v1961_v7 = vsel %vm1002_vm2, %v1959_v57, %v1960_v20  ;;  %v1963_v24 = vsel %vm1002_vm2, %v1960_v20, %v1962_v61  ;;  %v9995_v36 = vrot.slane %v7365_v17, 6  ;;  %v2105_v39 = vsel %vm1147_vm3, %v2103_v45, %v2104_v9 }
 0x28a   : > { %v2032_v37 = vmax.f32 %v1843_v48, %v1961_v7  ;;  %v2033_v35 = vmax.f32 %v1775_v6, %v1963_v24  ;;  %v2107_v58 = vsel %vm1147_vm3, %v2104_v9, %v2106_v4  ;;  %v8079_v47 = vsel %vm1292_vm4, %v2247_v56, %v2248_v33 }
 0x28b   : > { %v8074_v63 = vsel %vm841_vm1, -3.4028235e+38, %v9995_v36  ;;  %9996 = vst [vmem:[#allocation88_spill] sm:$0xff] %v8079_v47  ;;  %v2251_v13 = vsel %vm1292_vm4, %v2248_v33, %v2250_v42  ;;  %v8083_v57 = vsel %vm1437_vm5, %v2391_v3, %v2392_v54  ;;  %v2395_v20 = vsel %vm1437_vm5, %v2392_v54, %v2394_v44 }
 0x28c   : > { %9997 = vst [vmem:[#allocation89_spill] sm:$0xff] %v8083_v57  ;;  %v8086_v61 = vmax.f32 %v2032_v37, %v2105_v39  ;;  %v2177_v36 = vmax.f32 %v2033_v35, %v2107_v58  ;;  %v9999_v7 = vrot.slane %v7355_v21, 6  ;;  %v10000_v45 = vrot.slane %v7369_v46, 6 }
 0x28d   : > { %v2782_v6 = vrot.slane %v8047_v19, 1  ;;  %v2783_v33 = vrot.slane %v8022_v43, 1  ;;  %v2787_v42 = vrot.slane %v8074_v63, 1  ;;  %v2788_v54 = vrot.slane %v8029_v29, 1 }
 0x28e   : > { %9998 = vst [vmem:[#allocation90_spill] sm:$0xff] %v8086_v61  ;;  %v2734_v24 = vsel %vm841_vm1, %v9999_v7, -3.4028235e+38  ;;  %v8094_v9 = vsel %vm841_vm1, %v10000_v45, -3.4028235e+38  ;;  %v2321_v58 = vmax.f32 %v2177_v36, %v2251_v13  ;;  %v2926_v44 = vrot.slane %v8047_v19, 2 }
 0x28f   : > { %v2785_v3 = vrot.slane %v2734_v24, 1  ;;  %v2790_v35 = vrot.slane %v8094_v9, 1  ;;  %v2784_v37 = vsel %vm1002_vm2, %v2782_v6, %v2783_v33  ;;  %v2927_v56 = vrot.slane %v8022_v43, 2 }
 0x290   : > { %v8107_v39 = vmax.f32 %v2321_v58, %v2395_v20  ;;  %v2789_v7 = vsel %vm1002_vm2, %v2787_v42, %v2788_v54  ;;  %v2894_v13 = vmax.f32 %v8047_v19, %v2784_v37  ;;  %v2931_v46 = vrot.slane %v8074_v63, 2 }
 0x291   : > { %v2786_v4 = vsel %vm1002_vm2, %v2783_v33, %v2785_v3  ;;  %v2791_v45 = vsel %vm1002_vm2, %v2788_v54, %v2790_v35  ;;  %v2896_v48 = vmax.f32 %v8074_v63, %v2789_v7  ;;  %v2928_v33 = vsel %vm1147_vm3, %v2926_v44, %v2927_v56 }
 0x292   : > { %10001 = vst [vmem:[#allocation91_spill] sm:$0xff] %v8107_v39  ;;  %v2895_v36 = vmax.f32 %v8022_v43, %v2786_v4  ;;  %v2897_v6 = vmax.f32 %v8029_v29, %v2791_v45  ;;  %v2929_v3 = vrot.slane %v2734_v24, 2  ;;  %v2932_v20 = vrot.slane %v8029_v29, 2 }
 0x293   : > { %v2934_v58 = vrot.slane %v8094_v9, 2  ;;  %v3038_v42 = vmax.f32 %v2894_v13, %v2928_v33  ;;  %v3070_v54 = vrot.slane %v8047_v19, 3  ;;  %v3071_v35 = vrot.slane %v8022_v43, 3 }
 0x294   : > { %v3073_v37 = vrot.slane %v2734_v24, 3  ;;  %v2930_v4 = vsel %vm1147_vm3, %v2927_v56, %v2929_v3  ;;  %v2933_v7 = vsel %vm1147_vm3, %v2931_v46, %v2932_v20  ;;  %v3075_v44 = vrot.slane %v8074_v63, 3 }
 0x295   : > { %v2935_v45 = vsel %vm1147_vm3, %v2932_v20, %v2934_v58  ;;  %v3039_v17 = vmax.f32 %v2895_v36, %v2930_v4  ;;  %v3040_v21 = vmax.f32 %v2896_v48, %v2933_v7  ;;  %v3072_v47 = vsel %vm1292_vm4, %v3070_v54, %v3071_v35  ;;  %v10016_v7 = vld [vmem:[#allocation84_spill] sm:$0xff] }
 0x296   : > { %v3041_v39 = vmax.f32 %v2897_v6, %v2935_v45  ;;  %v3074_v13 = vsel %vm1292_vm4, %v3071_v35, %v3073_v37  ;;  %v3076_v33 = vrot.slane %v8029_v29, 3  ;;  %v3078_v61 = vrot.slane %v8094_v9, 3  ;;  %v10017_v45 = vld [vmem:[#allocation26_spill] sm:$0xff] }
 0x297   : > { %v3182_v57 = vmax.f32 %v3038_v42, %v3072_v47  ;;  %v3183_v51 = vmax.f32 %v3039_v17, %v3074_v13  ;;  %v3214_v56 = vrot.slane %v8047_v19, 4  ;;  %v3215_v46 = vrot.slane %v8022_v43, 4  ;;  %v10020_v13 = vld [vmem:[#allocation83_spill] sm:$0xff] }
 0x298   : > { %v3217_v3 = vrot.slane %v2734_v24, 4  ;;  %v3077_v20 = vsel %vm1292_vm4, %v3075_v44, %v3076_v33  ;;  %v3079_v48 = vsel %vm1292_vm4, %v3076_v33, %v3078_v61  ;;  %v3219_v36 = vrot.slane %v8074_v63, 4  ;;  %v10021_v33 = vld [vmem:[#allocation85_spill] sm:$0xff] }
 0x299   : > { %v3220_v6 = vrot.slane %v8029_v29, 4  ;;  %v3184_v58 = vmax.f32 %v3040_v21, %v3077_v20  ;;  %v3185_v54 = vmax.f32 %v3041_v39, %v3079_v48  ;;  %v3216_v35 = vsel %vm1437_vm5, %v3214_v56, %v3215_v46  ;;  %v10022_v56 = vld [vmem:[#allocation44_spill] sm:$0xff]  ;;  %v10028_v48 = vld [vmem:[#allocation9_spill] sm:$0xff] }
 0x29a   : > { %v3218_v47 = vsel %vm1437_vm5, %v3215_v46, %v3217_v3  ;;  %v3222_v19 = vrot.slane %v8094_v9, 4  ;;  %v10002_v43 = vrot.slane %v7391_v62, 4  ;;  %v10003_v24 = vrot.slane %v7394_v23, 4 }
 0x29b   : > { %v3221_v17 = vsel %vm1437_vm5, %v3219_v36, %v3220_v6  ;;  %v10004_v63 = vrot.slane %v7462_v40, 4  ;;  %v10005_v29 = vrot.slane %v7465_v2, 4  ;;  %v8149_v39 = vmax.f32 %v3182_v57, %v3216_v35  ;;  %v10013_v57 = vld [vmem:[#allocation27_spill] sm:$0xff]  ;;  %v10029_v36 = vld [vmem:[#allocation57_spill] sm:$0xff] }
 0x29c   : > { %v3226_v61 = vsel %vm1437_vm5, %v10003_v24, %v10002_v43  ;;  %v8151_v42 = vmax.f32 %v3183_v51, %v3218_v47  ;;  %v8153_v37 = vmax.f32 %v3184_v58, %v3221_v17  ;;  %v10009_v9 = vmax.f32 %v7428_v60, %v7415_v25  ;;  %v10032_v35 = vld [vmem:[#allocation41_spill] sm:$0xff]  ;;  %v10033_v47 = vld [vmem:[#allocation54_spill] sm:$0xff] }
 0x29d   : > { %v3236_v21 = vsel %vm1437_vm5, %v10005_v29, %v10004_v63  ;;  %10006 = vst [vmem:[#allocation92_spill] sm:$0xff] %v8149_v39  ;;  %v3223_v23 = vsel %vm1437_vm5, %v3220_v6, %v3222_v19  ;;  %v10011_v40 = vmax.f32 %v7430_v11, %v7418_v16  ;;  %v10014_v51 = vmax.f32 %v7443_v52, %v10013_v57  ;;  %v10024_v11 = vld [vmem:[#allocation60_spill] sm:$0xff]  ;;  %v10039_v57 = vld [vmem:[#allocation77_spill] sm:$0xff] }
 0x29e   : > { %10007 = vst [vmem:[#allocation93_spill] sm:$0xff] %v8151_v42  ;;  %10008 = vst [vmem:[#allocation94_spill] sm:$0xff] %v8153_v37  ;;  %v8158_v62 = vmax.f32 %v10009_v9, %v3226_v61  ;;  %v10018_v44 = vmax.f32 %v10016_v7, %v10017_v45  ;;  %v8178_v60 = vmax.f32 %v3185_v54, %v3223_v23  ;;  %v10025_v52 = vrot.slane %v10024_v11, 4  ;;  %v10031_v54 = vld [vmem:[#allocation55_spill] sm:$0xff] }
 0x29f   : > { %v8165_v2 = vmax.f32 %v10011_v40, %v7423_v41  ;;  %v8171_v4 = vmax.f32 %v10014_v51, %v7449_v0  ;;  %v10023_v46 = vmax.f32 %v10021_v33, %v10022_v56  ;;  %v3360_v41 = vmax.f32 %v8149_v39, %v8153_v37  ;;  %v10026_v0 = vld [vmem:[#allocation62_spill] sm:$0xff]  ;;  %v10038_v40 = vld [vmem:[#allocation49_spill] sm:$0xff]  ;;  %v10040_v51 = vld [vmem:[#allocation76_spill] sm:$0xff] }
 0x2a0   : > { %10010 = vst [vmem:[#allocation95_spill] sm:$0xff] %v8158_v62  ;;  %v8176_v25 = vmax.f32 %v10018_v44, %v3236_v21  ;;  %10019 = vst [vmem:[#allocation84_spill] sm:$0xff] %v8178_v60  ;;  %v10027_v3 = vrot.slane %v10026_v0, 4  ;;  %v10030_v6 = vmax.f32 %v10028_v48, %v10029_v36  ;;  %v10034_v17 = vmax.f32 %v10032_v35, %v10033_v47  ;;  %v10036_v21 = vld [vmem:[#allocation39_spill] sm:$0xff]  ;;  %v10048_v35 = vld [vmem:[#allocation52_spill] sm:$0xff] }
 0x2a1   : > { %10012 = vst [vmem:[#allocation96_spill] sm:$0xff] %v8165_v2  ;;  %10015 = vst [vmem:[#allocation27_spill] sm:$0xff] %v8171_v4  ;;  %v8184_v16 = vmax.f32 %v10023_v46, %v10020_v13  ;;  %v2484_v43 = vmax.f32 %v7347_v49, %v7538_v27  ;;  %v2485_v24 = vmax.f32 %v7340_v12, %v7544_v10  ;;  %v10035_v29 = vrot.slane %v7688_v30, 4  ;;  %v10042_v44 = vld [vmem:[#allocation75_spill] sm:$0xff]  ;;  %v10043_v13 = vld [vmem:[#allocation50_spill] sm:$0xff] }
 0x2a2   : > { %v2378_v20 = vsel %vm1437_vm5, %v10027_v3, %v10025_v52  ;;  %v8202_v19 = vmax.f32 %v10034_v17, %v10031_v54  ;;  %v3361_v61 = vmax.f32 %v8151_v42, %v8178_v60  ;;  %v3390_v63 = vmax.f32 %v3360_v41, %v8158_v62 }
 0x2a3   : > { %v8196_v58 = vmax.f32 %v10030_v6, %v2378_v20  ;;  %v10037_v9 = vrot.slane %v10036_v21, 4  ;;  %v10041_v7 = vmax.f32 %v10039_v57, %v10040_v51  ;;  %v2514_v49 = vmax.f32 %v2484_v43, %v7578_v1  ;;  %v10050_v43 = vld [vmem:[#allocation51_spill] sm:$0xff]  ;;  %v10054_v57 = vld [vmem:[#allocation18_spill] sm:$0xff] }
 0x2a4   : > { %v2515_v12 = vmax.f32 %v2485_v24, %v7566_v38  ;;  %v10044_v33 = vmax.f32 %v10042_v44, %v10043_v13  ;;  %v3362_v30 = vmax.f32 %v8153_v37, %v8158_v62  ;;  %v3391_v46 = vmax.f32 %v3361_v61, %v8165_v2 }
 0x2a5   : > { %v3241_v23 = vsel %vm1437_vm5, %v10037_v9, %v10035_v29  ;;  %v8220_v45 = vmax.f32 %v10041_v7, %v10038_v40  ;;  %v3420_v41 = vmax.f32 %v3390_v63, %v8171_v4  ;;  %v3363_v11 = vmax.f32 %v8178_v60, %v8165_v2  ;;  %v10052_v40 = vld [vmem:[#allocation78_spill] sm:$0xff] }
 0x2a6   : > { %v8227_v56 = vmax.f32 %v10044_v33, %v3241_v23  ;;  %v10045_v52 = vrot.slane %v7729_v34, 4  ;;  %v10046_v0 = vrot.slane %v7732_v5, 4  ;;  %v2544_v20 = vmax.f32 %v2514_v49, %v7822_v31  ;;  %v10049_v5 = vld [vmem:[#allocation53_spill] sm:$0xff] }
 0x2a7   : > { %v2545_v48 = vmax.f32 %v2515_v12, %v7828_v14  ;;  %v3392_v36 = vmax.f32 %v3362_v30, %v8171_v4  ;;  %v10047_v6 = vmax.f32 %v7767_v8, %v7756_v26  ;;  %v3421_v47 = vmax.f32 %v3391_v46, %v10048_v35 }
 0x2a8   : > { %v3246_v3 = vsel %vm1437_vm5, %v10046_v0, %v10045_v52  ;;  %v3450_v17 = vmax.f32 %v3420_v41, %v8176_v25  ;;  %v3393_v34 = vmax.f32 %v3363_v11, %v10048_v35  ;;  %v10051_v24 = vmax.f32 %v7769_v22, %v10050_v43 }
 0x2a9   : > { %v8246_v54 = vmax.f32 %v10047_v6, %v3246_v3  ;;  %v2574_v63 = vmax.f32 %v2544_v20, %v8196_v58  ;;  %v2575_v29 = vmax.f32 %v2545_v48, %v8202_v19  ;;  %v3422_v26 = vmax.f32 %v3392_v36, %v8176_v25  ;;  %v10056_v3 = vld [vmem:[#allocation56_spill] sm:$0xff]  ;;  %v10057_v20 = vld [vmem:[#allocation19_spill] sm:$0xff] }
 0x2aa   : > { %v8255_v61 = vmax.f32 %v10051_v24, %v10049_v5  ;;  %v3364_v8 = vmax.f32 %v8158_v62, %v8171_v4  ;;  %v3451_v21 = vmax.f32 %v3421_v47, %v8184_v16  ;;  %v3423_v9 = vmax.f32 %v3393_v34, %v8184_v16  ;;  %v10086_v62 = vld [vmem:[#allocation90_spill] sm:$0xff] }
 0x2ab   : > { %v3365_v23 = vmax.f32 %v8165_v2, %v10048_v35  ;;  %v10053_v22 = vrot.slane %v10052_v40, 4  ;;  %v10055_v51 = vrot.slane %v10054_v57, 4  ;;  %v2647_v49 = vrot.slane %v2575_v29, 6 }
 0x2ac   : > { %v5079_v12 = vpack.i.bf16 %v2575_v29, %v2574_v63  ;;  %v2646_v44 = vrot.slane %v2574_v63, 6  ;;  %v3452_v13 = vmax.f32 %v3422_v26, %v8227_v56  ;;  %v5074_v33 = vpack.i.bf16 %v3451_v21, %v3450_v17 }
 0x2ad   : > { %v2383_v7 = vsel %vm1437_vm5, %v10055_v51, %v10053_v22  ;;  %v3453_v30 = vmax.f32 %v3423_v9, %v8220_v45  ;;  %v3394_v46 = vmax.f32 %v3364_v8, %v8176_v25  ;;  %v3395_v41 = vmax.f32 %v3365_v23, %v8184_v16 }
 0x2ae   : > { %v2742_v11 = vsel %vm841_vm1, %v2647_v49, -3.4028235e+38  ;;  %v8277_v52 = vsel %vm841_vm1, %v2646_v44, %v2647_v49  ;;  %v8280_v0 = vsel %vm841_vm1, -3.4028235e+38, %v2646_v44  ;;  %v10058_v48 = vmax.f32 %v10056_v3, %v10057_v20  ;;  %5075 = vrot.lane.b32.xlu0 %v5074_v33, %s5572_s6 }
 0x2af   : > { %v2825_v6 = vrot.slane %v2742_v11, 1  ;;  %v2969_v47 = vrot.slane %v2742_v11, 2  ;;  %v3113_v17 = vrot.slane %v2742_v11, 3  ;;  %v3257_v34 = vrot.slane %v2742_v11, 4 }
 0x2b0   : > { %v8285_v36 = vmax.f32 %v10058_v48, %v2383_v7  ;;  %v2822_v5 = vrot.slane %v8280_v0, 1  ;;  %v2823_v43 = vrot.slane %v8277_v52, 1  ;;  %v2966_v24 = vrot.slane %v8280_v0, 2 }
 0x2b1   : > { %v2967_v63 = vrot.slane %v8277_v52, 2  ;;  %v3110_v29 = vrot.slane %v8280_v0, 3  ;;  %v3111_v26 = vrot.slane %v8277_v52, 3  ;;  %v9617_v21 = vrot.slane %v8277_v52, 4 }
 0x2b2   : > { %v2824_v9 = vsel %vm1002_vm2, %v2822_v5, %v2823_v43  ;;  %v2826_v23 = vsel %vm1002_vm2, %v2823_v43, %v2825_v6  ;;  %5080 = vrot.lane.b32.xlu0 %v5079_v12, %s5571_s30  ;;  %v5084_v33 = vpack.i.bf16 %v3453_v30, %v3452_v13  ;;  %v3424_v11 = vmax.f32 %v3394_v46, %v8227_v56  ;;  %v10059_v6 = vld [vmem:[#allocation59_spill] sm:$0xff] }
 0x2b3   : > { %v2968_v40 = vsel %vm1147_vm3, %v2966_v24, %v2967_v63  ;;  %v2970_v22 = vsel %vm1147_vm3, %v2967_v63, %v2969_v47  ;;  %v2910_v57 = vmax.f32 %v8280_v0, %v2824_v9  ;;  %v2911_v51 = vmax.f32 %v8277_v52, %v2826_v23  ;;  %v10060_v47 = vld [vmem:[#allocation28_spill] sm:$0xff] }
 0x2b4   : > { %v8303_v7 = vsel %vm1292_vm4, %v3110_v29, %v3111_v26  ;;  %v8306_v49 = vsel %vm1292_vm4, %v3111_v26, %v3113_v17  ;;  %v8312_v44 = vsel %vm1437_vm5, %v9617_v21, %v3257_v34  ;;  %v3425_v3 = vmax.f32 %v3395_v41, %v8220_v45  ;;  %v10061_v17 = vld [vmem:[#allocation58_spill] sm:$0xff]  ;;  %5085 = vrot.lane.b32.xlu1 %v5084_v33, %s5572_s6  ;;  %v10064_v34 = vld [vmem:[#allocation72_spill] sm:$0xff] }
 0x2b5   : > { %v8316_v20 = vmax.f32 %v2910_v57, %v2968_v40  ;;  %v8318_v48 = vmax.f32 %v2911_v51, %v2970_v22  ;;  %v10062_v5 = vmax.f32 %v10060_v47, %v10061_v17  ;;  %v2486_v12 = vmax.f32 %v7538_v27, %v7578_v1  ;;  %v10067_v40 = vld [vmem:[#allocation70_spill] sm:$0xff]  ;;  %v10068_v22 = vld [vmem:[#allocation73_spill] sm:$0xff] }
 0x2b6   : > { %v3454_v13 = vmax.f32 %v3424_v11, %v8246_v54  ;;  %v3455_v30 = vmax.f32 %v3425_v3, %v8255_v61  ;;  %v2487_v46 = vmax.f32 %v7544_v10, %v7566_v38  ;;  %v10063_v41 = vrot.slane %v7886_v28, 4  ;;  %v10069_v57 = vld [vmem:[#allocation65_spill] sm:$0xff] }
 0x2b7   : > { %v8324_v43 = vmax.f32 %v10062_v5, %v10059_v6  ;;  %v10065_v24 = vrot.slane %v10064_v34, 4  ;;  %v2516_v26 = vmax.f32 %v2486_v12, %v7822_v31  ;;  %v10066_v9 = vmax.f32 %v7925_v50, %v7908_v55  ;;  %v10074_v12 = vld [vmem:[#allocation61_spill] sm:$0xff]  ;;  %v10077_v34 = vld [vmem:[#allocation67_spill] sm:$0xff] }
 0x2b8   : > { %v5094_v10 = vpack.i.bf16 %v3455_v30, %v3454_v13  ;;  %v2517_v28 = vmax.f32 %v2487_v46, %v7828_v14  ;;  %v10070_v51 = vmax.f32 %v10068_v22, %v10069_v57  ;;  %v2488_v11 = vmax.f32 %v7578_v1, %v7822_v31  ;;  %v5244_v1 = vld [vmem:[%s9440_s3 + $0x38] sm:$0xff]   ;;  %v10075_v13 = vld [vmem:[#allocation74_spill] sm:$0xff]  ;;  %v5247_v27 = vld [vmem:[%s9440_s3 + $0x20] sm:$0xff]  }
 0x2b9   : > { %v2388_v63 = vsel %vm1437_vm5, %v10065_v24, %v10063_v41  ;;  %v2546_v3 = vmax.f32 %v2516_v26, %v8196_v58  ;;  %v2489_v6 = vmax.f32 %v7566_v38, %v7828_v14  ;;  %v10071_v55 = vrot.slane %v7962_v59, 4  ;;  %v5245_v38 = vld [vmem:[%s9440_s3 + $0x30] sm:$0xff]   ;;  %4925 = vmatprep.subr.bf16.mxu1 %v5244_v1  ;;  %4877 = vmatprep.subr.bf16.mxu0 %v5244_v1 }
 0x2ba   : > { %v8346_v23 = vmax.f32 %v10066_v9, %v2388_v63  ;;  %v8353_v33 = vmax.f32 %v10070_v51, %v10067_v40  ;;  %v10072_v50 = vrot.slane %v7949_v15, 4  ;;  %v10073_v17 = vmax.f32 %v8005_v32, %v7990_v53  ;;  %5095 = vrot.lane.b32.xlu0 %v5094_v10, %s5572_s6  ;;  %v10078_v10 = vld [vmem:[#allocation68_spill] sm:$0xff]  ;;  %4933 = vmatpush3.bf16.msra.mxu1 %v5244_v1 }
 0x2bb   : > { %v2547_v15 = vmax.f32 %v2517_v28, %v8202_v19  ;;  %v2518_v59 = vmax.f32 %v2488_v11, %v8196_v58  ;;  %v10076_v30 = vmax.f32 %v10074_v12, %v10075_v13  ;;  %v2576_v32 = vmax.f32 %v2546_v3, %v8285_v36  ;;  %4878 = vmatpush3.bf16.msra.mxu0 %v5244_v1  ;;  %v5246_v11 = vld [vmem:[%s9440_s3 + $0x28] sm:$0xff]  }
 0x2bc   : > { %v3251_v47 = vsel %vm1437_vm5, %v10072_v50, %v10071_v55  ;;  %v8369_v5 = vmax.f32 %v10073_v17, %v7995_v18  ;;  %v3366_v18 = vmax.f32 %v8171_v4, %v8176_v25  ;;  %v2519_v46 = vmax.f32 %v2489_v6, %v8202_v19  ;;  %4926 = vmatprep.subr.bf16.mxu1 %v5245_v38 }
 0x2bd   : > { %v8383_v53 = vmax.f32 %v10076_v30, %v3251_v47  ;;  %v3367_v41 = vmax.f32 %v10048_v35, %v8184_v16  ;;  %v1964_v24 = vrot.slane %v10077_v34, 1  ;;  %v2577_v63 = vmax.f32 %v2547_v15, %v8324_v43  ;;  %4879 = vmatprep.subr.bf16.mxu0 %v5245_v38 }
 0x2be   : > { %v2548_v26 = vmax.f32 %v2518_v59, %v8285_v36  ;;  %v8395_v9 = vmax.f32 %v3366_v18, %v8227_v56  ;;  %v9618_v28 = vrot.slane %v10078_v10, 1  ;;  %v2649_v40 = vrot.slane %v2576_v32, 6  ;;  %4934 = vmatpush3.bf16.msra.mxu1 %v5245_v38 }
 0x2bf   : > { %v2549_v22 = vmax.f32 %v2519_v46, %v8324_v43  ;;  %v8400_v57 = vmax.f32 %v3367_v41, %v8220_v45  ;;  %v2650_v3 = vrot.slane %v2577_v63, 6  ;;  %v5089_v6 = vpack.i.bf16 %v2577_v63, %v2576_v32  ;;  %4927 = vmatprep.subr.bf16.mxu1 %v5246_v11  ;;  %4880 = vmatpush3.bf16.msra.mxu0 %v5245_v38 }
 0x2c0   : > { %v2578_v55 = vmax.f32 %v2548_v26, %v8346_v23  ;;  %v2727_v47 = vsel %vm841_vm1, -3.4028235e+38, %v2649_v40  ;;  %v8416_v15 = vsel %vm1002_vm2, %v1964_v24, %v9618_v28  ;;  %4881 = vmatprep.subr.bf16.mxu0 %v5246_v11 }
 0x2c1   : > { %v2579_v17 = vmax.f32 %v2549_v22, %v8353_v33  ;;  %v2743_v59 = vsel %vm841_vm1, %v2650_v3, -3.4028235e+38  ;;  %v2651_v12 = vsel %vm841_vm1, %v2649_v40, %v2650_v3  ;;  %v2827_v13 = vrot.slane %v2727_v47, 1  ;;  %5090 = vrot.lane.b32.xlu1 %v5089_v6, %s5571_s30 }
 0x2c2   : > { %v2971_v30 = vrot.slane %v2727_v47, 2  ;;  %v2830_v18 = vrot.slane %v2743_v59, 1  ;;  %v2974_v32 = vrot.slane %v2743_v59, 2  ;;  %v3118_v46 = vrot.slane %v2743_v59, 3  ;;  %4935 = vmatpush3.bf16.msra.mxu1 %v5246_v11 }
 0x2c3   : > { %v3262_v41 = vrot.slane %v2743_v59, 4  ;;  %v2828_v63 = vrot.slane %v2651_v12, 1  ;;  %v2972_v26 = vrot.slane %v2651_v12, 2  ;;  %v3115_v22 = vrot.slane %v2727_v47, 3  ;;  %4928 = vmatprep.subr.bf16.mxu1 %v5247_v27  ;;  %4882 = vmatpush3.bf16.msra.mxu0 %v5246_v11  ;;  %v5249_v11 = vld [vmem:[%s9440_s3 + $0x10] sm:$0xff]  }
 0x2c4   : > { %v3116_v24 = vrot.slane %v2651_v12, 3  ;;  %v3259_v40 = vrot.slane %v2727_v47, 4  ;;  %v3260_v3 = vrot.slane %v2651_v12, 4  ;;  %v2653_v29 = vrot.slane %v2579_v17, 6  ;;  %4883 = vmatprep.subr.bf16.mxu0 %v5247_v27 }
 0x2c5   : > { %v5099_v6 = vpack.i.bf16 %v2579_v17, %v2578_v55  ;;  %v2829_v8 = vsel %vm1002_vm2, %v2827_v13, %v2828_v63  ;;  %v2831_v21 = vsel %vm1002_vm2, %v2828_v63, %v2830_v18  ;;  %v2973_v59 = vsel %vm1147_vm3, %v2971_v30, %v2972_v26  ;;  %v5248_v17 = vld [vmem:[%s9440_s3 + $0x18] sm:$0xff]  }
 0x2c6   : > { %v2975_v38 = vsel %vm1147_vm3, %v2972_v26, %v2974_v32  ;;  %v2912_v51 = vmax.f32 %v2727_v47, %v2829_v8  ;;  %v2913_v28 = vmax.f32 %v2651_v12, %v2831_v21  ;;  %v8429_v1 = vsel %vm1292_vm4, %v3115_v22, %v3116_v24  ;;  %4936 = vmatpush3.bf16.msra.mxu1 %v5247_v27 }
 0x2c7   : > { %v3119_v50 = vsel %vm1292_vm4, %v3116_v24, %v3118_v46  ;;  %5100 = vrot.lane.b32.xlu0 %v5099_v6, %s5571_s30  ;;  %v8437_v13 = vsel %vm1437_vm5, %v3259_v40, %v3260_v3  ;;  %v3263_v30 = vsel %vm1437_vm5, %v3260_v3, %v3262_v41  ;;  %v2744_v18 = vsel %vm841_vm1, %v2653_v29, -3.4028235e+38  ;;  %4929 = vmatprep.subr.bf16.mxu1 %v5248_v17 }
 0x2c8   : > { %v2652_v8 = vrot.slane %v2578_v55, 6  ;;  %v8441_v21 = vmax.f32 %v2912_v51, %v2973_v59  ;;  %v3057_v47 = vmax.f32 %v2913_v28, %v2975_v38  ;;  %v2835_v12 = vrot.slane %v2744_v18, 1  ;;  %4884 = vmatpush3.bf16.msra.mxu0 %v5247_v27 }
 0x2c9   : > { %v2979_v32 = vrot.slane %v2744_v18, 2  ;;  %v3123_v46 = vrot.slane %v2744_v18, 3  ;;  %v3267_v63 = vrot.slane %v2744_v18, 4  ;;  %4885 = vmatprep.subr.bf16.mxu0 %v5248_v17 }
 0x2ca   : > { %v8444_v26 = vsel %vm841_vm1, %v2652_v8, %v2653_v29  ;;  %v8447_v22 = vsel %vm841_vm1, -3.4028235e+38, %v2652_v8  ;;  %v3201_v41 = vmax.f32 %v3057_v47, %v3119_v50  ;;  %4937 = vmatpush3.bf16.msra.mxu1 %v5248_v17 }
 0x2cb   : > { %v2832_v51 = vrot.slane %v8447_v22, 1  ;;  %v2833_v28 = vrot.slane %v8444_v26, 1  ;;  %v2976_v29 = vrot.slane %v8447_v22, 2  ;;  %v2977_v24 = vrot.slane %v8444_v26, 2  ;;  %4930 = vmatprep.subr.bf16.mxu1 %v5249_v11 }
 0x2cc   : > { %v3120_v40 = vrot.slane %v8447_v22, 3  ;;  %v3121_v3 = vrot.slane %v8444_v26, 3  ;;  %v8460_v6 = vmax.f32 %v3201_v41, %v3263_v30  ;;  %v10079_v41 = vmax.f32 %v8395_v9, %v8246_v54  ;;  %4886 = vmatpush3.bf16.msra.mxu0 %v5248_v17 }
 0x2cd   : > { %v2834_v50 = vsel %vm1002_vm2, %v2832_v51, %v2833_v28  ;;  %v2836_v59 = vsel %vm1002_vm2, %v2833_v28, %v2835_v12  ;;  %v2978_v47 = vsel %vm1147_vm3, %v2976_v29, %v2977_v24  ;;  %v2980_v55 = vsel %vm1147_vm3, %v2977_v24, %v2979_v32  ;;  %v5250_v28 = vld [vmem:[%s9440_s3 + $0x8] sm:$0xff]   ;;  %4887 = vmatprep.subr.bf16.mxu0 %v5249_v11 }
 0x2ce   : > { %v2914_v18 = vmax.f32 %v8447_v22, %v2834_v50  ;;  %v2915_v8 = vmax.f32 %v8444_v26, %v2836_v59  ;;  %v8470_v27 = vsel %vm1292_vm4, %v3120_v40, %v3121_v3  ;;  %v8473_v30 = vsel %vm1292_vm4, %v3121_v3, %v3123_v46  ;;  %v10081_v40 = vld [vmem:[#allocation87_spill] sm:$0xff]  ;;  %4938 = vmatpush3.bf16.msra.mxu1 %v5249_v11 }
 0x2cf   : > { %v9619_v12 = vrot.slane %v8444_v26, 4  ;;  %v3456_v51 = vmax.f32 %v10079_v41, %v8383_v53  ;;  %v10080_v46 = vmax.f32 %v8400_v57, %v8255_v61  ;;  %v10082_v3 = vrot.slane %v10081_v40, 1  ;;  %4931 = vmatprep.subr.bf16.mxu1 %v5250_v28 }
 0x2d0   : > { %v8483_v32 = vmax.f32 %v2914_v18, %v2978_v47  ;;  %v8485_v29 = vmax.f32 %v2915_v8, %v2980_v55  ;;  %v10083_v50 = vrot.slane %v10078_v10, 1  ;;  %v2034_v55 = vmax.f32 %v10077_v34, %v8416_v15  ;;  %4888 = vmatpush3.bf16.msra.mxu0 %v5249_v11 }
 0x2d1   : > { %v3457_v24 = vmax.f32 %v10080_v46, %v8369_v5  ;;  %v8499_v59 = vsel %vm1437_vm5, %v9619_v12, %v3267_v63  ;;  %v2109_v57 = vrot.slane %v10078_v10, 2  ;;  %v2111_v41 = vrot.slane %v10081_v40, 2  ;;  %4889 = vmatprep.subr.bf16.mxu0 %v5250_v28 }
 0x2d2   : > { %v1968_v9 = vsel %vm1002_vm2, %v10083_v50, %v10082_v3  ;;  %v10084_v63 = vrot.slane %v10077_v34, 2  ;;  %v2252_v15 = vrot.slane %v10077_v34, 3  ;;  %v2253_v3 = vrot.slane %v10078_v10, 3  ;;  %4939 = vmatpush3.bf16.msra.mxu1 %v5250_v28 }
 0x2d3   : > { %v2035_v18 = vmax.f32 %v10078_v10, %v1968_v9  ;;  %v5104_v17 = vpack.i.bf16 %v3457_v24, %v3456_v51  ;;  %v2255_v50 = vrot.slane %v10081_v40, 3  ;;  %v5251_v9 = vld [vmem:[%s9440_s3] sm:$0xff]   ;;  %v2112_v51 = vsel %vm1147_vm3, %v2109_v57, %v2111_v41 }
 0x2d4   : > { %v2110_v46 = vsel %vm1147_vm3, %v10084_v63, %v2109_v57  ;;  %v2396_v47 = vrot.slane %v10077_v34, 4  ;;  %v2397_v63 = vrot.slane %v10078_v10, 4  ;;  %v2254_v38 = vsel %vm1292_vm4, %v2252_v15, %v2253_v3  ;;  %v10087_v57 = vld [vmem:[#allocation88_spill] sm:$0xff]  ;;  %4932 = vmatprep.subr.bf16.mxu1 %v5251_v9  ;;  %4890 = vmatpush3.bf16.msra.mxu0 %v5250_v28  ;;  %v10093_v28 = vld [vmem:[#allocation91_spill] sm:$0xff] }
 0x2d5   : > { %5105 = vrot.lane.b32.xlu1 %v5104_v17, %s5572_s6  ;;  %v2178_v24 = vmax.f32 %v2034_v55, %v2110_v46  ;;  %v2179_v8 = vmax.f32 %v2035_v18, %v2112_v51  ;;  %v2256_v12 = vsel %vm1292_vm4, %v2253_v3, %v2255_v50  ;;  %v2399_v35 = vrot.slane %v10081_v40, 4  ;;  %v10085_v17 = vld [vmem:[#allocation89_spill] sm:$0xff]  ;;  %4891 = vmatprep.subr.bf16.mxu0 %v5251_v9 }
 0x2d6   : > { %v2398_v2 = vsel %vm1437_vm5, %v2396_v47, %v2397_v63  ;;  %v10088_v55 = vmax.f32 %v10086_v62, %v10087_v57  ;;  %v2492_v34 = vmax.f32 %v8196_v58, %v8285_v36  ;;  %v2493_v40 = vmax.f32 %v8202_v19, %v8324_v43  ;;  %4940 = vmatpush3.bf16.msra.mxu1 %v5251_v9  ;;  %v10094_v50 = vld [vmem:[#allocation69_spill] sm:$0xff] }
 0x2d7   : > { %v2322_v4 = vmax.f32 %v2178_v24, %v2254_v38  ;;  %v2323_v10 = vmax.f32 %v2179_v8, %v2256_v12  ;;  %v2400_v11 = vsel %vm1437_vm5, %v2397_v63, %v2399_v35  ;;  %v2490_v38 = vmax.f32 %v7822_v31, %v8196_v58  ;;  %v10096_v24 = vld [vmem:[#allocation64_spill] sm:$0xff] }
 0x2d8   : > { %v8531_v41 = vmax.f32 %v10088_v55, %v10085_v17  ;;  %v2522_v62 = vmax.f32 %v2492_v34, %v8346_v23  ;;  %v2491_v47 = vmax.f32 %v7828_v14, %v8202_v19  ;;  %v10089_v46 = vrot.slane %v8277_v52, 4  ;;  %4892 = vmatpush3.bf16.msra.mxu0 %v5251_v9 }
 0x2d9   : > { %v8540_v18 = vmax.f32 %v2322_v4, %v2398_v2  ;;  %v10090_v12 = vrot.slane %v8280_v0, 4  ;;  %v8550_v8 = vmax.f32 %v2323_v10, %v2400_v11  ;;  %v2523_v15 = vmax.f32 %v2493_v40, %v8353_v33  ;;  %v10099_v10 = vld [vmem:[#allocation86_spill] sm:$0xff] }
 0x2da   : > { %v2520_v31 = vmax.f32 %v2490_v38, %v8285_v36  ;;  %v10091_v2 = vmax.f32 %v8316_v20, %v8303_v7  ;;  %v2552_v14 = vmax.f32 %v2522_v62, %v8531_v41  ;;  %v2521_v58 = vmax.f32 %v2491_v47, %v8324_v43 }
 0x2db   : > { %v3256_v35 = vsel %vm1437_vm5, %v10090_v12, %v10089_v46  ;;  %v10092_v19 = vmax.f32 %v8318_v48, %v8306_v49  ;;  %v3368_v0 = vmax.f32 %v8176_v25, %v8227_v56  ;;  %v2553_v3 = vmax.f32 %v2523_v15, %v10093_v28 }
 0x2dc   : > { %v8557_v4 = vmax.f32 %v10091_v2, %v3256_v35  ;;  %v2550_v7 = vmax.f32 %v2520_v31, %v8346_v23  ;;  %v3369_v20 = vmax.f32 %v8184_v16, %v8220_v45  ;;  %v10095_v51 = vrot.slane %v10094_v50, 6 }
 0x2dd   : > { %v8565_v52 = vmax.f32 %v10092_v19, %v8312_v44  ;;  %v10097_v63 = vrot.slane %v10096_v24, 6  ;;  %v2582_v49 = vmax.f32 %v2552_v14, %v8540_v18  ;;  %v2551_v44 = vmax.f32 %v2521_v58, %v8353_v33 }
 0x2de   : > { %v3398_v25 = vmax.f32 %v3368_v0, %v8246_v54  ;;  %v10098_v48 = vmov %v10095_v51  ;;  %v2583_v16 = vmax.f32 %v2553_v3, %v8550_v8  ;;  %v2580_v55 = vmax.f32 %v2550_v7, %v8531_v41 }
 0x2df   : > { %v8578_v17 = vsel %vm841_vm1, %v10097_v63, %v10095_v51  ;;  %v8586_v57 = vsel %vm841_vm1, %v10098_v48, -3.4028235e+38  ;;  %v8591_v34 = vmax.f32 %v3369_v20, %v8255_v61  ;;  %v2658_v40 = vrot.slane %v2582_v49, 6 }
 0x2e0   : > { %v2581_v38 = vmax.f32 %v2551_v44, %v10093_v28  ;;  %v3428_v62 = vmax.f32 %v3398_v25, %v8383_v53  ;;  %v2659_v46 = vrot.slane %v2583_v16, 6  ;;  %v5114_v12 = vpack.i.bf16 %v2583_v16, %v2582_v49 }
 0x2e1   : > { %v2655_v35 = vrot.slane %v2580_v55, 6  ;;  %v3429_v9 = vmax.f32 %v8591_v34, %v8369_v5  ;;  %v8600_v15 = vsel %vm841_vm1, -3.4028235e+38, %v2658_v40 }
 0x2e2   : > { %v2656_v31 = vrot.slane %v2581_v38, 6  ;;  %v5109_v2 = vpack.i.bf16 %v2581_v38, %v2580_v55  ;;  %v8603_v14 = vmax.f32 %v3428_v62, %v8557_v4  ;;  %v2746_v58 = vsel %vm841_vm1, %v2659_v46, -3.4028235e+38  ;;  %5115 = vrot.lane.b32.xlu0 %v5114_v12, %s5571_s30 }
 0x2e3   : > { %v8607_v19 = vsel %vm841_vm1, %v2658_v40, %v2659_v46  ;;  %v2842_v0 = vrot.slane %v8600_v15, 1  ;;  %v2986_v3 = vrot.slane %v8600_v15, 2  ;;  %v2845_v7 = vrot.slane %v2746_v58, 1 }
 0x2e4   : > { %v2989_v20 = vrot.slane %v2746_v58, 2  ;;  %v3133_v51 = vrot.slane %v2746_v58, 3  ;;  %v3277_v63 = vrot.slane %v2746_v58, 4  ;;  %5110 = vrot.lane.b32.xlu1 %v5109_v2, %s5571_s30  ;;  %v2843_v49 = vrot.slane %v8607_v19, 1 }
 0x2e5   : > { %v2987_v44 = vrot.slane %v8607_v19, 2  ;;  %v3130_v25 = vrot.slane %v8600_v15, 3  ;;  %v3131_v48 = vrot.slane %v8607_v19, 3  ;;  %v9624_v55 = vrot.slane %v8607_v19, 4 }
 0x2e6   : > { %v2745_v34 = vsel %vm841_vm1, %v2656_v31, -3.4028235e+38  ;;  %v2657_v40 = vsel %vm841_vm1, %v2655_v35, %v2656_v31  ;;  %v2844_v38 = vsel %vm1002_vm2, %v2842_v0, %v2843_v49  ;;  %v2846_v62 = vsel %vm1002_vm2, %v2843_v49, %v2845_v7 }
 0x2e7   : > { %v2988_v46 = vsel %vm1147_vm3, %v2986_v3, %v2987_v44  ;;  %v2990_v12 = vsel %vm1147_vm3, %v2987_v44, %v2989_v20  ;;  %v2918_v2 = vmax.f32 %v8600_v15, %v2844_v38  ;;  %v2919_v58 = vmax.f32 %v8607_v19, %v2846_v62 }
 0x2e8   : > { %v8628_v16 = vsel %vm1292_vm4, %v3130_v25, %v3131_v48  ;;  %v8631_v11 = vsel %vm1292_vm4, %v3131_v48, %v3133_v51  ;;  %v8636_v31 = vsel %vm1437_vm5, %v9624_v55, %v3277_v63  ;;  %v2840_v0 = vrot.slane %v2745_v34, 1 }
 0x2e9   : > { %10100 = vst [vmem:[#allocation26_spill] sm:$0xff] %v8631_v11  ;;  %v2984_v7 = vrot.slane %v2745_v34, 2  ;;  %v3128_v3 = vrot.slane %v2745_v34, 3  ;;  %v8638_v49 = vmax.f32 %v2918_v2, %v2988_v46  ;;  %v8640_v20 = vmax.f32 %v2919_v58, %v2990_v12 }
 0x2ea   : > { %v3272_v44 = vrot.slane %v2745_v34, 4  ;;  %v2729_v38 = vsel %vm841_vm1, -3.4028235e+38, %v2655_v35  ;;  %v2838_v62 = vrot.slane %v2657_v40, 1  ;;  %v2982_v51 = vrot.slane %v2657_v40, 2 }
 0x2eb   : > { %v2837_v25 = vrot.slane %v2729_v38, 1  ;;  %v2981_v47 = vrot.slane %v2729_v38, 2  ;;  %v3125_v55 = vrot.slane %v2729_v38, 3  ;;  %v3126_v60 = vrot.slane %v2657_v40, 3 }
 0x2ec   : > { %v2841_v12 = vsel %vm1002_vm2, %v2838_v62, %v2840_v0  ;;  %v2985_v35 = vsel %vm1147_vm3, %v2982_v51, %v2984_v7  ;;  %v3269_v42 = vrot.slane %v2729_v38, 4  ;;  %v3270_v39 = vrot.slane %v2657_v40, 4 }
 0x2ed   : > { %v2839_v46 = vsel %vm1002_vm2, %v2837_v25, %v2838_v62  ;;  %v2983_v34 = vsel %vm1147_vm3, %v2981_v47, %v2982_v51  ;;  %v2917_v58 = vmax.f32 %v2657_v40, %v2841_v12  ;;  %v8652_v37 = vsel %vm1292_vm4, %v3125_v55, %v3126_v60 }
 0x2ee   : > { %v2916_v2 = vmax.f32 %v2729_v38, %v2839_v46  ;;  %v3129_v48 = vsel %vm1292_vm4, %v3126_v60, %v3128_v3  ;;  %v3459_v63 = vmax.f32 %v3429_v9, %v8565_v52  ;;  %v10101_v11 = vrot.slane %v8578_v17, 1 }
 0x2ef   : > { %v10102_v25 = vrot.slane %v10099_v10, 1  ;;  %v3061_v62 = vmax.f32 %v2917_v58, %v2985_v35  ;;  %v1972_v7 = vrot.slane %v8586_v57, 1  ;;  %v3271_v55 = vsel %vm1437_vm5, %v3269_v42, %v3270_v39 }
 0x2f0   : > { %v3060_v47 = vmax.f32 %v2916_v2, %v2983_v34  ;;  %v3273_v60 = vsel %vm1437_vm5, %v3270_v39, %v3272_v44  ;;  %v5124_v40 = vpack.i.bf16 %v3459_v63, %v8603_v14  ;;  %v2113_v9 = vrot.slane %v10099_v10, 2 }
 0x2f1   : > { %v1971_v0 = vsel %vm1002_vm2, %v10102_v25, %v10101_v11  ;;  %v3205_v38 = vmax.f32 %v3061_v62, %v3129_v48  ;;  %v10103_v46 = vmov %v10101_v11  ;;  %v2114_v12 = vrot.slane %v8578_v17, 2 }
 0x2f2   : > { %v2036_v51 = vmax.f32 %v10099_v10, %v1971_v0  ;;  %v3204_v3 = vmax.f32 %v3060_v47, %v8652_v37  ;;  %v1973_v11 = vsel %vm1002_vm2, %v10103_v46, %v1972_v7  ;;  %5125 = vrot.lane.b32.xlu0 %v5124_v40, %s5572_s6  ;;  %v2116_v42 = vrot.slane %v8586_v57, 2 }
 0x2f3   : > { %v2037_v34 = vmax.f32 %v8578_v17, %v1973_v11  ;;  %v2257_v39 = vrot.slane %v10099_v10, 3  ;;  %v2258_v14 = vrot.slane %v8578_v17, 3  ;;  %v8677_v44 = vmax.f32 %v3205_v38, %v3273_v60 }
 0x2f4   : > { %v2115_v37 = vsel %vm1147_vm3, %v2113_v9, %v2114_v12  ;;  %v2260_v48 = vrot.slane %v8586_v57, 3  ;;  %v2401_v63 = vrot.slane %v10099_v10, 4  ;;  %v2117_v35 = vsel %vm1147_vm3, %v2114_v12, %v2116_v42  ;;  %v10104_v9 = vld [vmem:[#allocation40_spill] sm:$0xff]  ;;  %v10106_v12 = vld [vmem:[#allocation71_spill] sm:$0xff] }
 0x2f5   : > { %v2180_v2 = vmax.f32 %v2036_v51, %v2115_v37  ;;  %v2259_v58 = vsel %vm1292_vm4, %v2257_v39, %v2258_v14  ;;  %v2402_v25 = vrot.slane %v8578_v17, 4  ;;  %v2181_v0 = vmax.f32 %v2037_v34, %v2117_v35  ;;  %v10105_v51 = vld [vmem:[#allocation63_spill] sm:$0xff]  ;;  %v10107_v34 = vld [vmem:[#allocation66_spill] sm:$0xff] }
 0x2f6   : > { %v2261_v47 = vsel %vm1292_vm4, %v2258_v14, %v2260_v48  ;;  %v2404_v62 = vrot.slane %v8586_v57, 4  ;;  %v2494_v7 = vmax.f32 %v8285_v36, %v8346_v23  ;;  %v2495_v10 = vmax.f32 %v8324_v43, %v8353_v33 }
 0x2f7   : > { %v2324_v60 = vmax.f32 %v2180_v2, %v2259_v58  ;;  %v2403_v40 = vsel %vm1437_vm5, %v2401_v63, %v2402_v25  ;;  %v5129_v38 = vpack.i.bf16 %v10105_v51, %v10104_v9  ;;  %v2325_v46 = vmax.f32 %v2181_v0, %v2261_v47 }
 0x2f8   : > { %v2405_v17 = vsel %vm1437_vm5, %v2402_v25, %v2404_v62  ;;  %v2524_v11 = vmax.f32 %v2494_v7, %v8531_v41  ;;  %v5134_v57 = vpack.i.bf16 %v10107_v34, %v10106_v12  ;;  %v2525_v36 = vmax.f32 %v2495_v10, %v10093_v28 }
 0x2f9   : > { %v8698_v42 = vmax.f32 %v2324_v60, %v2403_v40  ;;  %5130 = vrot.lane.b32.xlu0 %v5129_v38, %s5570_s26  ;;  %v10108_v39 = vrot.slane %v8444_v26, 4  ;;  %v10109_v43 = vrot.slane %v8447_v22, 4  ;;  %v10110_v37 = vmax.f32 %v8441_v21, %v8429_v1 }
 0x2fa   : > { %v8713_v63 = vmax.f32 %v2325_v46, %v2405_v17  ;;  %v2554_v35 = vmax.f32 %v2524_v11, %v8540_v18  ;;  %v10111_v2 = vmax.f32 %v8483_v32, %v8470_v27  ;;  %v10112_v26 = vmax.f32 %v8485_v29, %v8473_v30 }
 0x2fb   : > { %v3266_v14 = vsel %vm1437_vm5, %v10109_v43, %v10108_v39  ;;  %v8711_v48 = vmax.f32 %v10110_v37, %v8437_v13  ;;  %v2555_v25 = vmax.f32 %v2525_v36, %v8550_v8  ;;  %v3372_v1 = vmax.f32 %v8246_v54, %v8383_v53 }
 0x2fc   : > { %v8719_v58 = vmax.f32 %v10111_v2, %v3266_v14  ;;  %v8725_v22 = vmax.f32 %v10112_v26, %v8499_v59  ;;  %v3373_v13 = vmax.f32 %v8255_v61, %v8369_v5  ;;  %v3370_v21 = vmax.f32 %v8227_v56, %v8246_v54 }
 0x2fd   : > { %v2584_v27 = vmax.f32 %v2554_v35, %v8698_v42  ;;  %v3371_v32 = vmax.f32 %v8220_v45, %v8255_v61  ;;  %v5154_v30 = vpack.i.bf16 %v10094_v50, %v10096_v24  ;;  %v2585_v29 = vmax.f32 %v2555_v25, %v8713_v63 }
 0x2fe   : > { %v3402_v59 = vmax.f32 %v3372_v1, %v8557_v4  ;;  %v3403_v0 = vmax.f32 %v3373_v13, %v8565_v52  ;;  %v3400_v47 = vmax.f32 %v3370_v21, %v8383_v53  ;;  %v10113_v56 = vrot.slane %v8607_v19, 4 }
 0x2ff   : > { %v2661_v62 = vrot.slane %v2584_v27, 6  ;;  %v3401_v7 = vmax.f32 %v3371_v32, %v8369_v5  ;;  %v10114_v54 = vrot.slane %v8600_v15, 4  ;;  %v8749_v61 = vmax.f32 %v3204_v3, %v3271_v55 }
 0x300   : > { %v2662_v60 = vrot.slane %v2585_v29, 6  ;;  %v5119_v40 = vpack.i.bf16 %v2585_v29, %v2584_v27  ;;  %v3432_v10 = vmax.f32 %v3402_v59, %v8711_v48  ;;  %v3433_v9 = vmax.f32 %v3403_v0, %v8460_v6 }
 0x301   : > { %v3276_v45 = vsel %vm1437_vm5, %v10114_v54, %v10113_v56  ;;  %v2731_v51 = vsel %vm841_vm1, -3.4028235e+38, %v2661_v62  ;;  %v3430_v38 = vmax.f32 %v3400_v47, %v8557_v4  ;;  %v3431_v46 = vmax.f32 %v3401_v7, %v8565_v52  ;;  %v8776_v56 = vpop.permute.xlu0 %4985 }
 0x302   : > { %v10115_v19 = vmax.f32 %v8638_v49, %v8628_v16  ;;  %v2747_v55 = vsel %vm841_vm1, %v2662_v60, -3.4028235e+38  ;;  %v2663_v3 = vsel %vm841_vm1, %v2661_v62, %v2662_v60  ;;  %v2847_v17 = vrot.slane %v2731_v51, 1  ;;  %5120 = vrot.lane.b32.xlu1 %v5119_v40, %s5571_s30 }
 0x303   : > { %v2991_v11 = vrot.slane %v2731_v51, 2  ;;  %v2850_v12 = vrot.slane %v2747_v55, 1  ;;  %v2994_v34 = vrot.slane %v2747_v55, 2  ;;  %v3138_v36 = vrot.slane %v2747_v55, 3 }
 0x304   : > { %v8759_v15 = vmax.f32 %v10115_v19, %v3276_v45  ;;  %v3282_v39 = vrot.slane %v2747_v55, 4  ;;  %v2848_v43 = vrot.slane %v2663_v3, 1  ;;  %v2992_v14 = vrot.slane %v2663_v3, 2 }
 0x305   : > { %v3135_v37 = vrot.slane %v2731_v51, 3  ;;  %v3136_v35 = vrot.slane %v2663_v3, 3  ;;  %v3279_v2 = vrot.slane %v2731_v51, 4  ;;  %v3280_v16 = vrot.slane %v2663_v3, 4 }
 0x306   : > { %v3462_v49 = vmax.f32 %v3432_v10, %v8719_v58  ;;  %v3463_v26 = vmax.f32 %v3433_v9, %v8725_v22  ;;  %v2849_v25 = vsel %vm1002_vm2, %v2847_v17, %v2848_v43  ;;  %v2851_v1 = vsel %vm1002_vm2, %v2848_v43, %v2850_v12  ;;  %5135 = vrot.lane.b32.xlu1 %v5134_v57, %s5570_s26  ;;  %v10116_v57 = vld [vmem:[#allocation26_spill] sm:$0xff] }
 0x307   : > { %v2993_v13 = vsel %vm1147_vm3, %v2991_v11, %v2992_v14  ;;  %v2995_v21 = vsel %vm1147_vm3, %v2992_v14, %v2994_v34  ;;  %v2920_v27 = vmax.f32 %v2731_v51, %v2849_v25  ;;  %v2921_v32 = vmax.f32 %v2663_v3, %v2851_v1  ;;  %v8796_v11 = vpop.permute.xlu1 %5000 }
 0x308   : > { %v3137_v29 = vsel %vm1292_vm4, %v3135_v37, %v3136_v35  ;;  %v3139_v59 = vsel %vm1292_vm4, %v3136_v35, %v3138_v36  ;;  %v3281_v0 = vsel %vm1437_vm5, %v3279_v2, %v3280_v16  ;;  %v3283_v47 = vsel %vm1437_vm5, %v3280_v16, %v3282_v39  ;;  %v8816_v2 = vpop.permute.xlu0 %4990 }
 0x309   : > { %v5144_v62 = vpack.i.bf16 %v3463_v26, %v3462_v49  ;;  %v3460_v7 = vmax.f32 %v3430_v38, %v8711_v48  ;;  %v3064_v54 = vmax.f32 %v2920_v27, %v2993_v13  ;;  %v3065_v45 = vmax.f32 %v2921_v32, %v2995_v21 }
 0x30a   : > { %v3461_v60 = vmax.f32 %v3431_v46, %v8460_v6  ;;  %v10117_v40 = vmax.f32 %v8640_v20, %v10116_v57  ;;  %v3376_v9 = vmax.f32 %v8557_v4, %v8711_v48  ;;  %v3377_v51 = vmax.f32 %v8565_v52, %v8460_v6  ;;  %v10118_v20 = vld [vmem:[#allocation37_spill] sm:$0xff]  ;;  %v10121_v57 = vld [vmem:[#allocation80_spill] sm:$0xff] }
 0x30b   : > { %5145 = vrot.lane.b32.xlu0 %v5144_v62, %s5572_s6  ;;  %v3374_v38 = vmax.f32 %v8383_v53, %v8557_v4  ;;  %v3375_v46 = vmax.f32 %v8369_v5, %v8565_v52  ;;  %v3208_v19 = vmax.f32 %v3064_v54, %v3137_v29  ;;  %v3209_v55 = vmax.f32 %v3065_v45, %v3139_v59  ;;  %v8824_v26 = vpop.permute.xlu1 %5010 }
 0x30c   : > { %v8783_v10 = vmax.f32 %v10117_v40, %v8636_v31  ;;  %v5139_v3 = vpack.i.bf16 %v3461_v60, %v3460_v7  ;;  %v10119_v31 = vld [vmem:[#allocation38_spill] sm:$0xff]  ;;  %v3406_v12 = vmax.f32 %v3376_v9, %v8719_v58  ;;  %v3407_v34 = vmax.f32 %v3377_v51, %v8725_v22  ;;  %v10120_v60 = vld [vmem:[#allocation79_spill] sm:$0xff] }
 0x30d   : > { %v5149_v17 = vpack.i.bf16 %v10119_v31, %v10118_v20  ;;  %v3404_v36 = vmax.f32 %v3374_v38, %v8711_v48  ;;  %v3405_v39 = vmax.f32 %v3375_v46, %v8460_v6  ;;  %v8802_v53 = vmax.f32 %v3209_v55, %v3283_v47  ;;  %v10122_v20 = vld [vmem:[#allocation92_spill] sm:$0xff] }
 0x30e   : > { %5140 = vrot.lane.b32.xlu1 %v5139_v3, %s5572_s6  ;;  %v2496_v5 = vmax.f32 %v8346_v23, %v8531_v41  ;;  %v2497_v4 = vmax.f32 %v8353_v33, %v10093_v28  ;;  %v8809_v52 = vmax.f32 %v3208_v19, %v3281_v0  ;;  %v3436_v43 = vmax.f32 %v3406_v12, %v8749_v61 }
 0x30f   : > { %5150 = vrot.lane.b32.xlu0 %v5149_v17, %s5570_s26  ;;  %v3437_v14 = vmax.f32 %v3407_v34, %v8677_v44  ;;  %v3434_v37 = vmax.f32 %v3404_v36, %v8719_v58  ;;  %v3435_v35 = vmax.f32 %v3405_v39, %v8725_v22  ;;  %v3380_v33 = vmax.f32 %v8719_v58, %v8749_v61  ;;  %v8850_v45 = vpop.permute.xlu1 %5015 }
 0x310   : > { %v2526_v16 = vmax.f32 %v2496_v5, %v8540_v18  ;;  %v2527_v23 = vmax.f32 %v2497_v4, %v8550_v8  ;;  %v3381_v49 = vmax.f32 %v8725_v22, %v8677_v44  ;;  %v3466_v25 = vmax.f32 %v3436_v43, %v8759_v15 }
 0x311   : > { %v3467_v1 = vmax.f32 %v3437_v14, %v8783_v10  ;;  %v3464_v13 = vmax.f32 %v3434_v37, %v8749_v61  ;;  %v3465_v21 = vmax.f32 %v3435_v35, %v8677_v44  ;;  %v8837_v29 = vmax.f32 %v3380_v33, %v8759_v15 }
 0x312   : > { %5155 = vrot.lane.b32.xlu1 %v5154_v30, %s5570_s26  ;;  %v2556_v27 = vmax.f32 %v2526_v16, %v8698_v42  ;;  %v2557_v32 = vmax.f32 %v2527_v23, %v8713_v63  ;;  %v8840_v59 = vmax.f32 %v3381_v49, %v8783_v10  ;;  %v3378_v62 = vmax.f32 %v8711_v48, %v8719_v58 }
 0x313   : > { %v5164_v0 = vpack.i.bf16 %v3467_v1, %v3466_v25  ;;  %v5159_v47 = vpack.i.bf16 %v3465_v21, %v3464_v13  ;;  %v3379_v7 = vmax.f32 %v8460_v6, %v8725_v22  ;;  %v3440_v30 = vmax.f32 %v8837_v29, %v8809_v52  ;;  %v8859_v22 = vpop.permute.xlu0 %4995  ;;  %v8876_v14 = vpop.permute.xlu1 %5025 }
 0x314   : > { %v2586_v50 = vmax.f32 %v2556_v27, -3.4028235e+38  ;;  %v2587_v24 = vmax.f32 %v2557_v32, -3.4028235e+38  ;;  %v3441_v54 = vmax.f32 %v8840_v59, %v8802_v53  ;;  %v5169_v40 = vpack.i.bf16 %v10121_v57, %v10120_v60 }
 0x315   : > { %5165 = vrot.lane.b32.xlu0 %v5164_v0, %s5572_s6  ;;  %v3408_v48 = vmax.f32 %v3378_v62, %v8749_v61  ;;  %v3409_v58 = vmax.f32 %v3379_v7, %v8677_v44  ;;  %v2498_v6 = vmax.f32 %v8531_v41, %v8540_v18  ;;  %v2499_v46 = vmax.f32 %v10093_v28, %v8550_v8 }
 0x316   : > { %5160 = vrot.lane.b32.xlu1 %v5159_v47, %s5572_s6  ;;  %v2665_v9 = vrot.slane %v2587_v24, 6  ;;  %v5174_v51 = vpack.i.bf16 %v2587_v24, %v2586_v50  ;;  %v2664_v38 = vrot.slane %v2586_v50, 6  ;;  %v3358_v31 = vmax.f32 %v10122_v20, -3.4028235e+38 }
 0x317   : > { %v3438_v19 = vmax.f32 %v3408_v48, %v8759_v15  ;;  %v3439_v55 = vmax.f32 %v3409_v58, %v8783_v10  ;;  %v2528_v3 = vmax.f32 %v2498_v6, %v8698_v42  ;;  %v2529_v12 = vmax.f32 %v2499_v46, %v8713_v63  ;;  %v8873_v39 = vpop.permute.xlu0 %5005  ;;  %v10123_v48 = vld [vmem:[#allocation93_spill] sm:$0xff] }
 0x318   : > { %v2748_v41 = vsel %vm841_vm1, %v2665_v9, -3.4028235e+38  ;;  %v2666_v18 = vsel %vm841_vm1, %v2664_v38, %v2665_v9  ;;  %v2732_v17 = vsel %vm841_vm1, -3.4028235e+38, %v2664_v38  ;;  %v3359_v58 = vmax.f32 %v10123_v48, -3.4028235e+38  ;;  %v8893_v9 = vpop.permute.xlu1 %5030 }
 0x319   : > { %5170 = vrot.lane.b32.xlu0 %v5169_v40, %s5571_s30  ;;  %v2855_v34 = vrot.slane %v2748_v41, 1  ;;  %v2999_v8 = vrot.slane %v2748_v41, 2  ;;  %v3143_v28 = vrot.slane %v2748_v41, 3  ;;  %v3287_v36 = vrot.slane %v2748_v41, 4 }
 0x31a   : > { %v2852_v5 = vrot.slane %v2732_v17, 1  ;;  %v2853_v42 = vrot.slane %v2666_v18, 1  ;;  %v2996_v4 = vrot.slane %v2732_v17, 2  ;;  %v2997_v43 = vrot.slane %v2666_v18, 2  ;;  %5175 = vrot.lane.b32.xlu1 %v5174_v51, %s5571_s30 }
 0x31b   : > { %v3140_v37 = vrot.slane %v2732_v17, 3  ;;  %v3141_v35 = vrot.slane %v2666_v18, 3  ;;  %v3284_v16 = vrot.slane %v2732_v17, 4  ;;  %v3285_v63 = vrot.slane %v2666_v18, 4  ;;  %v8884_v32 = vpop.permute.xlu0 %5020 }
 0x31c   : > { %v2854_v23 = vsel %vm1002_vm2, %v2852_v5, %v2853_v42  ;;  %v2856_v33 = vsel %vm1002_vm2, %v2853_v42, %v2855_v34  ;;  %v3000_v49 = vsel %vm1147_vm3, %v2997_v43, %v2999_v8  ;;  %v2998_v25 = vsel %vm1147_vm3, %v2996_v4, %v2997_v43  ;;  %v10127_v42 = vld [vmem:[#allocation84_spill] sm:$0xff]  ;;  %v10128_v43 = vld [vmem:[#allocation95_spill] sm:$0xff] }
 0x31d   : > { %v2922_v1 = vmax.f32 %v2732_v17, %v2854_v23  ;;  %v2923_v13 = vmax.f32 %v2666_v18, %v2856_v33  ;;  %v3142_v21 = vsel %vm1292_vm4, %v3140_v37, %v3141_v35  ;;  %v3144_v27 = vsel %vm1292_vm4, %v3141_v35, %v3143_v28  ;;  %v10126_v18 = vld [vmem:[#allocation94_spill] sm:$0xff] }
 0x31e   : > { %v3286_v0 = vsel %vm1437_vm5, %v3284_v16, %v3285_v63  ;;  %v3288_v47 = vsel %vm1437_vm5, %v3285_v63, %v3287_v36  ;;  %v3468_v62 = vmax.f32 %v3438_v19, %v8809_v52  ;;  %v3469_v7 = vmax.f32 %v3439_v55, %v8802_v53  ;;  %v10124_v19 = vld [vmem:[#allocation81_spill] sm:$0xff]  ;;  %v10125_v55 = vld [vmem:[#allocation82_spill] sm:$0xff] }
 0x31f   : > { %v3066_v50 = vmax.f32 %v2922_v1, %v2998_v25  ;;  %v3067_v24 = vmax.f32 %v2923_v13, %v3000_v49  ;;  %v2558_v60 = vmax.f32 %v2528_v3, -3.4028235e+38  ;;  %v2559_v57 = vmax.f32 %v2529_v12, -3.4028235e+38  ;;  %v8895_v41 = vpop.permute.xlu0 %5035  ;;  %v10129_v25 = vld [vmem:[#allocation96_spill] sm:$0xff]  ;;  %v8926_v13 = vpop.permute.xlu1 %5045 }
 0x320   : > { %v5179_v40 = vpack.i.bf16 %v3469_v7, %v3468_v62  ;;  %v3382_v6 = vmax.f32 %v8749_v61, %v8759_v15  ;;  %v5189_v3 = vpack.i.bf16 %v10125_v55, %v10124_v19  ;;  %v3388_v17 = vmax.f32 %v3358_v31, %v10126_v18  ;;  %v10130_v18 = vld [vmem:[#allocation27_spill] sm:$0xff] }
 0x321   : > { %v3210_v51 = vmax.f32 %v3066_v50, %v3142_v21  ;;  %v3211_v38 = vmax.f32 %v3067_v24, %v3144_v27  ;;  %v2588_v46 = vmax.f32 %v2558_v60, -3.4028235e+38  ;;  %v2589_v20 = vmax.f32 %v2559_v57, -3.4028235e+38 }
 0x322   : > { %5180 = vrot.lane.b32.xlu1 %v5179_v40, %s5572_s6  ;;  %v3383_v12 = vmax.f32 %v8677_v44, %v8783_v10  ;;  %v8904_v61 = vmax.f32 %v3382_v6, %v8809_v52  ;;  %v3389_v4 = vmax.f32 %v3359_v58, %v10127_v42  ;;  %v3418_v37 = vmax.f32 %v3388_v17, %v10128_v43  ;;  %v10131_v43 = vld [vmem:[#allocation52_spill] sm:$0xff] }
 0x323   : > { %v8906_v34 = vmax.f32 %v3210_v51, %v3286_v0  ;;  %v8908_v8 = vmax.f32 %v3211_v38, %v3288_v47  ;;  %v2668_v28 = vrot.slane %v2589_v20, 6  ;;  %v5194_v36 = vpack.i.bf16 %v2589_v20, %v2588_v46 }
 0x324   : > { %v2667_v5 = vrot.slane %v2588_v46, 6  ;;  %v3413_v35 = vmax.f32 %v3383_v12, %v8802_v53  ;;  %v3419_v1 = vmax.f32 %v3389_v4, %v10129_v25  ;;  %v3448_v17 = vmax.f32 %v3418_v37, %v10130_v18  ;;  %v8943_v12 = vpop.permute.xlu1 %5050 }
 0x325   : > { %v3470_v44 = vmax.f32 %v3440_v30, %v8906_v34  ;;  %v3471_v31 = vmax.f32 %v3441_v54, %v8908_v8  ;;  %v2749_v16 = vsel %vm841_vm1, %v2668_v28, -3.4028235e+38  ;;  %v3442_v63 = vmax.f32 %v8904_v61, %v8906_v34  ;;  %v8930_v54 = vpop.permute.xlu0 %5040 }
 0x326   : > { %v2860_v23 = vrot.slane %v2749_v16, 1  ;;  %v3004_v33 = vrot.slane %v2749_v16, 2  ;;  %v3148_v49 = vrot.slane %v2749_v16, 3  ;;  %5195 = vrot.lane.b32.xlu1 %v5194_v36, %s5571_s30  ;;  %v3292_v30 = vrot.slane %v2749_v16, 4 }
 0x327   : > { %v5184_v29 = vpack.i.bf16 %v3471_v31, %v3470_v44  ;;  %v2669_v21 = vsel %vm841_vm1, %v2667_v5, %v2668_v28  ;;  %v2733_v59 = vsel %vm841_vm1, -3.4028235e+38, %v2667_v5  ;;  %v3443_v55 = vmax.f32 %v3413_v35, %v8908_v8 }
 0x328   : > { %v2857_v27 = vrot.slane %v2733_v59, 1  ;;  %v2858_v0 = vrot.slane %v2669_v21, 1  ;;  %v3001_v47 = vrot.slane %v2733_v59, 2  ;;  %v3002_v62 = vrot.slane %v2669_v21, 2 }
 0x329   : > { %5185 = vrot.lane.b32.xlu0 %v5184_v29, %s5572_s6  ;;  %v3145_v7 = vrot.slane %v2733_v59, 3  ;;  %v3146_v50 = vrot.slane %v2669_v21, 3  ;;  %v3289_v24 = vrot.slane %v2733_v59, 4  ;;  %v3290_v60 = vrot.slane %v2669_v21, 4  ;;  %v8950_v42 = vpop.permute.xlu0 %5055 }
 0x32a   : > { %v2859_v57 = vsel %vm1002_vm2, %v2857_v27, %v2858_v0  ;;  %v2861_v40 = vsel %vm1002_vm2, %v2858_v0, %v2860_v23  ;;  %v3003_v48 = vsel %vm1147_vm3, %v3001_v47, %v3002_v62  ;;  %v3005_v58 = vsel %vm1147_vm3, %v3002_v62, %v3004_v33 }
 0x32b   : > { %v2924_v6 = vmax.f32 %v2733_v59, %v2859_v57  ;;  %v2925_v51 = vmax.f32 %v2669_v21, %v2861_v40  ;;  %v3147_v38 = vsel %vm1292_vm4, %v3145_v7, %v3146_v50  ;;  %v3149_v46 = vsel %vm1292_vm4, %v3146_v50, %v3148_v49 }
 0x32c   : > { %v3291_v20 = vsel %vm1437_vm5, %v3289_v24, %v3290_v60  ;;  %v3293_v19 = vsel %vm1437_vm5, %v3290_v60, %v3292_v30  ;;  %v3384_v36 = vmax.f32 %v8759_v15, %v8809_v52  ;;  %v3385_v5 = vmax.f32 %v8783_v10, %v8802_v53 }
 0x32d   : > { %5190 = vrot.lane.b32.xlu0 %v5189_v3, %s5571_s30  ;;  %v3068_v61 = vmax.f32 %v2924_v6, %v3003_v48  ;;  %v3069_v28 = vmax.f32 %v2925_v51, %v3005_v58  ;;  %v5199_v4 = vpack.i.bf16 %v3419_v1, %v3418_v37  ;;  %v3449_v44 = vmax.f32 %v3419_v1, %v10131_v43  ;;  %v8960_v37 = vpop.permute.xlu1 %5065  ;;  %v8962_v30 = vpop.permute.xlu0 %5060 }
 0x32e   : > { %v3386_v35 = vmax.f32 %v8809_v52, %v8906_v34  ;;  %v3387_v31 = vmax.f32 %v8802_v53, %v8908_v8  ;;  %v3414_v23 = vmax.f32 %v3384_v36, %v8906_v34  ;;  %v3415_v15 = vmax.f32 %v3385_v5, %v8908_v8  ;;  %v10134_v5 = vld [vmem:[#allocation34_spill] sm:$0xff] }
 0x32f   : > { %v3212_v3 = vmax.f32 %v3068_v61, %v3147_v38  ;;  %v3213_v16 = vmax.f32 %v3069_v28, %v3149_v46  ;;  %v5214_v49 = vpack.i.bf16 %v3449_v44, %v3448_v17  ;;  %v4993_v57 = vunpack.i.h.bf16 %v8816_v2  ;;  %v10132_v46 = vld [vmem:[#allocation15_spill] sm:$0xff] }
 0x330   : > { %v4992_v40 = vunpack.i.l.bf16 %v8816_v2  ;;  %v4998_v58 = vunpack.i.h.bf16 %v8859_v22  ;;  %v4988_v6 = vunpack.i.h.bf16 %v8776_v56  ;;  %v4987_v51 = vunpack.i.l.bf16 %v8776_v56 }
 0x331   : > { %5200 = vrot.lane.b32.xlu0 %v5199_v4, %s5572_s6  ;;  %v3356_v10 = vmax.f32 %v3212_v3, %v3291_v20  ;;  %v3357_v33 = vmax.f32 %v3213_v16, %v3293_v19  ;;  %v5076_v50 = vpop.permute.xlu0 %5075  ;;  %v5028_v38 = vunpack.i.h.bf16 %v8876_v14  ;;  %v3806_v20 = vsel %vm3798_vm6, %v10132_v46, %v4993_v57  ;;  %v10133_v19 = vld [vmem:[#allocation10_spill] sm:$0xff] }
 0x332   : > { %v4997_v18 = vunpack.i.l.bf16 %v8859_v22  ;;  %v5027_v2 = vunpack.i.l.bf16 %v8876_v14  ;;  %v5003_v17 = vunpack.i.h.bf16 %v8796_v11  ;;  %v5002_v61 = vunpack.i.l.bf16 %v8796_v11 }
 0x333   : > { %v3472_v25 = vmax.f32 %v3442_v63, %v3356_v10  ;;  %v3473_v1 = vmax.f32 %v3443_v55, %v3357_v33  ;;  %v3444_v29 = vmax.f32 %v3414_v23, %v3356_v10  ;;  %v3445_v52 = vmax.f32 %v3415_v15, %v3357_v33  ;;  %v8966_v63 = vpop.permute.xlu1 %5070  ;;  %v10135_v23 = vld [vmem:[#allocation14_spill] sm:$0xff]  ;;  %v10136_v15 = vld [vmem:[#allocation16_spill] sm:$0xff] }
 0x334   : > { %v3416_v53 = vmax.f32 %v3386_v35, %v3356_v10  ;;  %v3417_v21 = vmax.f32 %v3387_v31, %v3357_v33  ;;  %v3805_v55 = vsel %vm3798_vm6, %v10133_v19, %v4992_v40  ;;  %v5018_v28 = vunpack.i.h.bf16 %v8850_v45 }
 0x335   : > { %v5204_v59 = vpack.i.bf16 %v3473_v1, %v3472_v25  ;;  %5215 = vrot.lane.b32.xlu0 %v5214_v49, %s5572_s6  ;;  %v3474_v34 = vmax.f32 %v3444_v29, -3.4028235e+38  ;;  %v3475_v8 = vmax.f32 %v3445_v52, -3.4028235e+38  ;;  %v8972_v48 = vpop.permute.xlu0 %5080  ;;  %v5017_v56 = vunpack.i.l.bf16 %v8850_v45 }
 0x336   : > { %v3446_v27 = vmax.f32 %v3416_v53, -3.4028235e+38  ;;  %v3447_v0 = vmax.f32 %v3417_v21, -3.4028235e+38  ;;  %v3808_v4 = vsel %vm3798_vm6, %v10134_v5, %v4998_v58  ;;  %v5038_v43 = vunpack.i.h.bf16 %v8895_v41  ;;  %v10137_v21 = vld [vmem:[#allocation20_spill] sm:$0xff] }
 0x337   : > { %5205 = vrot.lane.b32.xlu1 %v5204_v59, %s5572_s6  ;;  %v5209_v47 = vpack.i.bf16 %v3475_v8, %v3474_v34  ;;  %v5086_v60 = vpop.permute.xlu1 %5085  ;;  %v5078_v44 = vunpack.i.h.bf16 %v5076_v50  ;;  %v5077_v35 = vunpack.i.l.bf16 %v5076_v50  ;;  %v3838_v14 = vsel %vm375_vm0, %v3806_v20, %v5028_v38 }
 0x338   : > { %v3476_v62 = vmax.f32 %v3446_v27, -3.4028235e+38  ;;  %v3477_v7 = vmax.f32 %v3447_v0, -3.4028235e+38  ;;  %v5037_v31 = vunpack.i.l.bf16 %v8895_v41  ;;  %v5088_v3 = vunpack.i.h.bf16 %v5086_v60 }
 0x339   : > { %v5096_v22 = vpop.permute.xlu0 %5095  ;;  %v5087_v11 = vunpack.i.l.bf16 %v5086_v60  ;;  %v3837_v16 = vsel %vm375_vm0, %v3805_v55, %v5027_v2  ;;  %v3803_v45 = vsel %vm3798_vm6, %v10135_v23, %v4987_v51  ;;  %v3804_v10 = vsel %vm3798_vm6, %v10136_v15, %v4988_v6 }
 0x33a   : > { %v5219_v24 = vpack.i.bf16 %v3477_v7, %v3476_v62  ;;  %v5048_v33 = vunpack.i.h.bf16 %v8926_v13  ;;  %v3835_v49 = vsel %vm375_vm0, %v3803_v45, %v5017_v56  ;;  %v3836_v25 = vsel %vm375_vm0, %v3804_v10, %v5018_v28  ;;  %v10139_v7 = vld [vmem:[#allocation17_spill] sm:$0xff] }
 0x33b   : > { %5210 = vrot.lane.b32.xlu1 %v5209_v47, %s5572_s6  ;;  %v8988_v36 = vpop.permute.xlu1 %5090  ;;  %v5097_v1 = vunpack.i.l.bf16 %v5096_v22  ;;  %v5047_v41 = vunpack.i.l.bf16 %v8926_v13  ;;  %v3868_v29 = vsel %vm3863_vm7, %v3835_v49, %v5077_v35  ;;  %v3869_v52 = vsel %vm3863_vm7, %v3836_v25, %v5078_v44  ;;  %v10138_v47 = vld [vmem:[#allocation33_spill] sm:$0xff]  ;;  %v10141_v44 = vld [vmem:[#allocation36_spill] sm:$0xff] }
 0x33c   : > { %v5098_v53 = vunpack.i.h.bf16 %v5096_v22  ;;  %v3807_v59 = vsel %vm3798_vm6, %v10137_v21, %v4997_v18  ;;  %v3898_v34 = vpack.c.bf16 %v3869_v52, %v3868_v29  ;;  %v3870_v8 = vsel %vm3863_vm7, %v3837_v16, %v5087_v11  ;;  %v10142_v29 = vld [vmem:[#allocation11_spill] sm:$0xff] }
 0x33d   : > { %v3871_v27 = vsel %vm3863_vm7, %v3838_v14, %v5088_v3  ;;  %v3810_v62 = vsel %vm3798_vm6, %v10138_v47, %v5003_v17  ;;  %v3809_v13 = vsel %vm3798_vm6, %v10139_v7, %v5002_v61  ;;  %v3839_v50 = vsel %vm375_vm0, %v3807_v59, %v5037_v31  ;;  %v9022_v18 = vpop.permute.xlu0 %5100  ;;  %v10144_v7 = vld [vmem:[#allocation45_spill] sm:$0xff] }
 0x33e   : > { %v3840_v60 = vsel %vm375_vm0, %v3808_v4, %v5038_v43  ;;  %4897 = vmatprep.mubr.bf16.mxu1 %v3898_v34  ;;  %v3872_v58 = vsel %vm3863_vm7, %v3839_v50, %v5097_v1  ;;  %v3842_v6 = vsel %vm375_vm0, %v3810_v62, %v5048_v33  ;;  %v3841_v51 = vsel %vm375_vm0, %v3809_v13, %v5047_v41  ;;  %v10140_v4 = vld [vmem:[#allocation46_spill] sm:$0xff]  ;;  %v10145_v50 = vld [vmem:[#allocation35_spill] sm:$0xff] }
 0x33f   : > { %5220 = vrot.lane.b32.xlu1 %v5219_v24, %s5572_s6  ;;  %v3899_v24 = vpack.c.bf16 %v3871_v27, %v3870_v8  ;;  %v3873_v38 = vsel %vm3863_vm7, %v3840_v60, %v5098_v53  ;;  %v5008_v17 = vunpack.i.h.bf16 %v8873_v39  ;;  %v5007_v61 = vunpack.i.l.bf16 %v8873_v39  ;;  %v10143_v53 = vld [vmem:[#allocation48_spill] sm:$0xff] }
 0x340   : > { %v3900_v46 = vpack.c.bf16 %v3873_v38, %v3872_v58  ;;  %v5058_v28 = vunpack.i.h.bf16 %v8950_v42  ;;  %v5057_v56 = vunpack.i.l.bf16 %v8950_v42  ;;  %v5023_v15 = vunpack.i.h.bf16 %v8884_v32 }
 0x341   : > { %4898 = vmatmul.mubr.bf16.vlgmr.msra.gmra.mxu1 %v3899_v24  ;;  %v3812_v43 = vsel %vm3798_vm6, %v10140_v4, %v5008_v17  ;;  %v3811_v35 = vsel %vm3798_vm6, %v10141_v44, %v5007_v61  ;;  %v5022_v10 = vunpack.i.l.bf16 %v8884_v32  ;;  %v5083_v49 = vunpack.i.h.bf16 %v8972_v48  ;;  %v10146_v4 = vld [vmem:[#allocation12_spill] sm:$0xff]  ;;  %v10147_v44 = vld [vmem:[#allocation47_spill] sm:$0xff] }
 0x342   : > { %4901 = vmatprep.mubr.bf16.mxu1 %v3900_v46  ;;  %v3844_v31 = vsel %vm375_vm0, %v3812_v43, %v5058_v28  ;;  %v3843_v3 = vsel %vm375_vm0, %v3811_v35, %v5057_v56  ;;  %v5082_v25 = vunpack.i.l.bf16 %v8972_v48  ;;  %v5013_v1 = vunpack.i.h.bf16 %v8824_v26 }
 0x343   : > { %v5012_v41 = vunpack.i.l.bf16 %v8824_v26  ;;  %v3816_v52 = vsel %vm3798_vm6, %v10142_v29, %v5023_v15  ;;  %v3815_v21 = vsel %vm3798_vm6, %v10143_v53, %v5022_v10  ;;  %v5068_v34 = vunpack.i.h.bf16 %v8960_v37 }
 0x344   : > { %v5067_v32 = vunpack.i.l.bf16 %v8960_v37  ;;  %v3847_v48 = vsel %vm375_vm0, %v3815_v21, %v5082_v25  ;;  %v3814_v13 = vsel %vm3798_vm6, %v10144_v7, %v5013_v1  ;;  %v5103_v28 = vunpack.i.h.bf16 %v9022_v18 }
 0x345   : > { %v3813_v24 = vsel %vm3798_vm6, %v10145_v50, %v5012_v41  ;;  %v3846_v58 = vsel %vm375_vm0, %v3814_v13, %v5068_v34  ;;  %v5102_v56 = vunpack.i.l.bf16 %v9022_v18  ;;  %v5053_v34 = vunpack.i.h.bf16 %v8943_v12 }
 0x347   : > { %v5106_v0 = vpop.permute.xlu1 %5105 }
 0x348   : > { %v5108_v57 = vunpack.i.h.bf16 %v5106_v0  ;;  %v5107_v40 = vunpack.i.l.bf16 %v5106_v0  ;;  %v3848_v0 = vsel %vm375_vm0, %v3816_v52, %v5083_v49 }
 0x34a   : > { %v3874_v20 = vsel %vm3863_vm7, %v3841_v51, %v5107_v40  ;;  %v3875_v19 = vsel %vm3863_vm7, %v3842_v6, %v5108_v57  ;;  %v5033_v40 = vunpack.i.h.bf16 %v8893_v9  ;;  %v3845_v6 = vsel %vm375_vm0, %v3813_v24, %v5067_v32 }
 0x34b   : > { %v3901_v55 = vpack.c.bf16 %v3875_v19, %v3874_v20  ;;  %v5032_v51 = vunpack.i.l.bf16 %v8893_v9  ;;  %v5043_v19 = vunpack.i.h.bf16 %v8930_v54  ;;  %v5092_v9 = vunpack.i.l.bf16 %v8988_v36 }
 0x34c   : > { %v3818_v43 = vsel %vm3798_vm6, %v10146_v4, %v5033_v40  ;;  %v5052_v32 = vunpack.i.l.bf16 %v8943_v12  ;;  %v5062_v40 = vunpack.i.l.bf16 %v8962_v30 }
 0x34d   : > { %4902 = vmatmul.mubr.bf16.gmra.mxu1 %v3901_v55  ;;  %v5042_v55 = vunpack.i.l.bf16 %v8930_v54  ;;  %v3817_v35 = vsel %vm3798_vm6, %v10147_v44, %v5032_v51 }
 0x34e   : > { %v3849_v25 = vsel %vm375_vm0, %v3817_v35, %v5092_v9 }
 0x354   : > { %v9024_v2 = vpop.permute.xlu0 %5115 }
 0x355   : > { %v5117_v51 = vunpack.i.l.bf16 %v9024_v2 }
 0x356   : > { %v9038_v42 = vpop.permute.xlu1 %5110 }
 0x364   : > { %v5126_v5 = vpop.permute.xlu0 %5125 }
 0x365   : > { %v5128_v22 = vunpack.i.h.bf16 %v5126_v5  ;;  %v5127_v14 = vunpack.i.l.bf16 %v5126_v5  ;;  %v5093_v5 = vunpack.i.h.bf16 %v8988_v36 }
 0x367   : > { %v3876_v11 = vsel %vm3863_vm7, %v3843_v3, %v5127_v14  ;;  %v3877_v39 = vsel %vm3863_vm7, %v3844_v31, %v5128_v22  ;;  %v10148_v22 = vld [vmem:[#allocation21_spill] sm:$0xff]  ;;  %v10149_v31 = vld [vmem:[#allocation43_spill] sm:$0xff]  ;;  %v3850_v49 = vsel %vm375_vm0, %v3818_v43, %v5093_v5 }
 0x368   : > { %v3902_v16 = vpack.c.bf16 %v3877_v39, %v3876_v11  ;;  %v3820_v14 = vsel %vm3798_vm6, %v10148_v22, %v5043_v19  ;;  %v3819_v3 = vsel %vm3798_vm6, %v10149_v31, %v5042_v55  ;;  %v10153_v19 = vld [vmem:[#allocation23_spill] sm:$0xff]  ;;  %v5073_v22 = vunpack.i.h.bf16 %v8966_v63 }
 0x369   : > { %v3852_v36 = vsel %vm375_vm0, %v3820_v14, %v5103_v28  ;;  %v3823_v55 = vsel %vm3798_vm6, %v10153_v19, %v5062_v40  ;;  %v5072_v14 = vunpack.i.l.bf16 %v8966_v63  ;;  %v10160_v19 = vld [vmem:[#allocation32_spill] sm:$0xff] }
 0x36a   : > { %4905 = vmatprep.mubr.bf16.mxu1 %v3902_v16  ;;  %v3851_v16 = vsel %vm375_vm0, %v3819_v3, %v5102_v56  ;;  %v3855_v5 = vsel %vm375_vm0, %v3823_v55, %v5117_v51  ;;  %v10154_v3 = vld [vmem:[#allocation8_spill] sm:$0xff] }
 0x36b   : > { %v9042_v45 = vpop.permute.xlu0 %5130 }
 0x36c   : > { %v5132_v4 = vunpack.i.l.bf16 %v9042_v45 }
 0x374   : > { %v9040_v23 = vpop.permute.xlu1 %5120 }
 0x375   : > { %v5123_v31 = vunpack.i.h.bf16 %v9040_v23 }
 0x378   : > { %v9046_v33 = vpop.permute.xlu1 %5135 }
 0x37d   : > { %v5146_v59 = vpop.permute.xlu0 %5145 }
 0x37e   : > { %v5148_v8 = vunpack.i.h.bf16 %v5146_v59  ;;  %v5147_v27 = vunpack.i.l.bf16 %v5146_v59 }
 0x380   : > { %v5141_v47 = vpop.permute.xlu1 %5140  ;;  %v3880_v26 = vsel %vm3863_vm7, %v3847_v48, %v5147_v27  ;;  %v3881_v62 = vsel %vm3863_vm7, %v3848_v0, %v5148_v8  ;;  %v5113_v8 = vunpack.i.h.bf16 %v9038_v42  ;;  %v5112_v27 = vunpack.i.l.bf16 %v9038_v42  ;;  %v10150_v48 = vld [vmem:[#allocation42_spill] sm:$0xff] }
 0x381   : > { %v5143_v60 = vunpack.i.h.bf16 %v5141_v47  ;;  %v5142_v57 = vunpack.i.l.bf16 %v5141_v47  ;;  %v9066_v37 = vpop.permute.xlu0 %5150  ;;  %v3904_v20 = vpack.c.bf16 %v3881_v62, %v3880_v26  ;;  %v3822_v47 = vsel %vm3798_vm6, %v10150_v48, %v5053_v34  ;;  %v10151_v26 = vld [vmem:[#allocation13_spill] sm:$0xff]  ;;  %v10157_v34 = vld [vmem:[#allocation22_spill] sm:$0xff]  ;;  %v10158_v48 = vld [vmem:[#allocation7_spill] sm:$0xff] }
 0x382   : > { %v3821_v62 = vsel %vm3798_vm6, %v10151_v26, %v5052_v32  ;;  %v3854_v24 = vsel %vm375_vm0, %v3822_v47, %v5113_v8  ;;  %v5063_v42 = vunpack.i.h.bf16 %v8962_v30  ;;  %v3825_v32 = vsel %vm3798_vm6, %v10157_v34, %v5072_v14  ;;  %v10159_v26 = vld [vmem:[#allocation5_spill] sm:$0xff] }
 0x383   : > { %v3878_v38 = vsel %vm3863_vm7, %v3845_v6, %v5142_v57  ;;  %v3879_v46 = vsel %vm3863_vm7, %v3846_v58, %v5143_v60  ;;  %v3853_v60 = vsel %vm375_vm0, %v3821_v62, %v5112_v27  ;;  %v5118_v6 = vunpack.i.h.bf16 %v9024_v2 }
 0x384   : > { %v9076_v17 = vpop.permute.xlu1 %5155  ;;  %v3903_v61 = vpack.c.bf16 %v3879_v46, %v3878_v38  ;;  %v10152_v46 = vld [vmem:[#allocation25_spill] sm:$0xff]  ;;  %v5133_v2 = vunpack.i.h.bf16 %v9042_v45  ;;  %v5122_v8 = vunpack.i.l.bf16 %v9040_v23 }
 0x386   : > { %4906 = vmatmul.mubr.bf16.gmra.mxu1 %v3903_v61 }
 0x387   : > { %4909 = vmatprep.mubr.bf16.mxu1 %v3904_v20  ;;  %v5166_v54 = vpop.permute.xlu0 %5165  ;;  %v3824_v20 = vsel %vm3798_vm6, %v10152_v46, %v5063_v42 }
 0x388   : > { %v5168_v18 = vunpack.i.h.bf16 %v5166_v54  ;;  %v5167_v11 = vunpack.i.l.bf16 %v5166_v54  ;;  %v5161_v39 = vpop.permute.xlu1 %5160  ;;  %v3856_v56 = vsel %vm375_vm0, %v3824_v20, %v5118_v6  ;;  %v3857_v6 = vsel %vm375_vm0, %v3825_v32, %v5122_v8 }
 0x389   : > { %v5163_v15 = vunpack.i.h.bf16 %v5161_v39  ;;  %v5162_v10 = vunpack.i.l.bf16 %v5161_v39 }
 0x38a   : > { %v3884_v1 = vsel %vm3863_vm7, %v3851_v16, %v5167_v11  ;;  %v3885_v41 = vsel %vm3863_vm7, %v3852_v36, %v5168_v18  ;;  %v3800_v18 = vsel %vm3798_vm6, %v10154_v3, %v5133_v2  ;;  %v10155_v11 = vld [vmem:[#allocation6_spill] sm:$0xff]  ;;  %v5153_v16 = vunpack.i.h.bf16 %v9066_v37  ;;  %v10162_v3 = vld [vmem:[#allocation31_spill] sm:$0xff] }
 0x38b   : > { %v3882_v29 = vsel %vm3863_vm7, %v3849_v25, %v5162_v10  ;;  %v3883_v52 = vsel %vm3863_vm7, %v3850_v49, %v5163_v15  ;;  %v3906_v53 = vpack.c.bf16 %v3885_v41, %v3884_v1  ;;  %v5171_v7 = vpop.permute.xlu0 %5170  ;;  %v3799_v39 = vsel %vm3798_vm6, %v10155_v11, %v5132_v4 }
 0x38c   : > { %v3905_v21 = vpack.c.bf16 %v3883_v52, %v3882_v29  ;;  %v9098_v59 = vpop.permute.xlu1 %5175  ;;  %v5173_v35 = vunpack.i.h.bf16 %v5171_v7  ;;  %v5172_v54 = vunpack.i.l.bf16 %v5171_v7  ;;  %v5152_v15 = vunpack.i.l.bf16 %v9066_v37  ;;  %v10156_v29 = vld [vmem:[#allocation24_spill] sm:$0xff] }
 0x38d   : > { %v3826_v52 = vsel %vm3798_vm6, %v10156_v29, %v5073_v22  ;;  %v3802_v47 = vsel %vm3798_vm6, %v10158_v48, %v5153_v16  ;;  %v5178_v51 = vunpack.i.h.bf16 %v9098_v59 }
 0x38e   : > { %4910 = vmatmul.mubr.bf16.gmra.mxu1 %v3905_v21  ;;  %v3831_v25 = vsel %vm375_vm0, %v3799_v39, %v5172_v54  ;;  %v3832_v63 = vsel %vm375_vm0, %v3800_v18, %v5173_v35  ;;  %v3858_v37 = vsel %vm375_vm0, %v3826_v52, %v5123_v31  ;;  %v3801_v62 = vsel %vm3798_vm6, %v10159_v26, %v5152_v15  ;;  %v10163_v18 = vld [vmem:[#allocation29_spill] sm:$0xff] }
 0x38f   : > { %4913 = vmatprep.mubr.bf16.mxu1 %v3906_v53 }
 0x394   : > { %v5181_v0 = vpop.permute.xlu1 %5180 }
 0x395   : > { %v5183_v13 = vunpack.i.h.bf16 %v5181_v0  ;;  %v5182_v50 = vunpack.i.l.bf16 %v5181_v0 }
 0x397   : > { %v3886_v12 = vsel %vm3863_vm7, %v3853_v60, %v5182_v50  ;;  %v3887_v57 = vsel %vm3863_vm7, %v3854_v24, %v5183_v13  ;;  %v5138_v50 = vunpack.i.h.bf16 %v9046_v33  ;;  %v5137_v24 = vunpack.i.l.bf16 %v9046_v33 }
 0x398   : > { %v3907_v58 = vpack.c.bf16 %v3887_v57, %v3886_v12  ;;  %v9133_v36 = vpop.permute.xlu1 %5195 }
 0x399   : > { %v3828_v55 = vsel %vm3798_vm6, %v10160_v19, %v5138_v50  ;;  %v5197_v35 = vunpack.i.l.bf16 %v9133_v36 }
 0x39a   : > { %4914 = vmatmul.mubr.bf16.gmra.mxu1 %v3907_v58 }
 0x39b   : > { %v5186_v38 = vpop.permute.xlu0 %5185 }
 0x39c   : > { %v5188_v61 = vunpack.i.h.bf16 %v5186_v38  ;;  %v5187_v28 = vunpack.i.l.bf16 %v5186_v38  ;;  %v5177_v38 = vunpack.i.l.bf16 %v9098_v59 }
 0x39e   : > { %v3888_v30 = vsel %vm3863_vm7, %v3855_v5, %v5187_v28  ;;  %v3889_v9 = vsel %vm3863_vm7, %v3856_v56, %v5188_v61  ;;  %v10161_v61 = vld [vmem:[#allocation30_spill] sm:$0xff] }
 0x39f   : > { %v5191_v43 = vpop.permute.xlu0 %5190  ;;  %v3908_v44 = vpack.c.bf16 %v3889_v9, %v3888_v30  ;;  %v3827_v28 = vsel %vm3798_vm6, %v10161_v61, %v5137_v24  ;;  %v5158_v30 = vunpack.i.h.bf16 %v9076_v17  ;;  %v5157_v9 = vunpack.i.l.bf16 %v9076_v17 }
 0x3a0   : > { %v5193_v1 = vunpack.i.h.bf16 %v5191_v43  ;;  %v5192_v41 = vunpack.i.l.bf16 %v5191_v43  ;;  %v3859_v4 = vsel %vm375_vm0, %v3827_v28, %v5177_v38  ;;  %v3860_v43 = vsel %vm375_vm0, %v3828_v55, %v5178_v51 }
 0x3a1   : > { %4917 = vmatprep.mubr.bf16.mxu1 %v3908_v44  ;;  %v5198_v44 = vunpack.i.h.bf16 %v9133_v36  ;;  %v3830_v17 = vsel %vm3798_vm6, %v10162_v3, %v5158_v30  ;;  %v3829_v11 = vsel %vm3798_vm6, %v10163_v18, %v5157_v9 }
 0x3a2   : > { %v3833_v60 = vsel %vm375_vm0, %v3801_v62, %v5192_v41  ;;  %v3834_v12 = vsel %vm375_vm0, %v3802_v47, %v5193_v1  ;;  %v3861_v16 = vsel %vm375_vm0, %v3829_v11, %v5197_v35 }
 0x3a3   : > { %v5201_v45 = vpop.permute.xlu0 %5200  ;;  %v3862_v15 = vsel %vm375_vm0, %v3830_v17, %v5198_v44 }
 0x3a4   : > { %v5203_v10 = vunpack.i.h.bf16 %v5201_v45  ;;  %v5202_v49 = vunpack.i.l.bf16 %v5201_v45 }
 0x3a6   : > { %v3864_v53 = vsel %vm3863_vm7, %v3831_v25, %v5202_v49  ;;  %v3865_v21 = vsel %vm3863_vm7, %v3832_v63, %v5203_v10  ;;  %v9185_v25 = vld [vmem:[%s9441_s4] ss:$0 sm:$0xff] }
 0x3a7   : > { %v5216_v27 = vpop.permute.xlu0 %5215  ;;  %v3896_v0 = vpack.c.bf16 %v3865_v21, %v3864_v53 }
 0x3a8   : > { %v5218_v7 = vunpack.i.h.bf16 %v5216_v27  ;;  %v5217_v13 = vunpack.i.l.bf16 %v5216_v27 }
 0x3a9   : > { %v5206_v57 = vpop.permute.xlu1 %5205  ;;  %4893 = vmatprep.mubr.bf16.mxu0 %v3896_v0 }
 0x3aa   : > { %v5208_v23 = vunpack.i.h.bf16 %v5206_v57  ;;  %v5207_v42 = vunpack.i.l.bf16 %v5206_v57  ;;  %v3866_v40 = vsel %vm3863_vm7, %v3833_v60, %v5217_v13  ;;  %v3867_v58 = vsel %vm3863_vm7, %v3834_v12, %v5218_v7 }
 0x3ab   : > { %v3897_v46 = vpack.c.bf16 %v3867_v58, %v3866_v40 }
 0x3ac   : > { %v3890_v33 = vsel %vm3863_vm7, %v3857_v6, %v5207_v42  ;;  %v3891_v20 = vsel %vm3863_vm7, %v3858_v37, %v5208_v23 }
 0x3ad   : > { %v5211_v56 = vpop.permute.xlu1 %5210  ;;  %v3909_v5 = vpack.c.bf16 %v3891_v20, %v3890_v33  ;;  %4894 = vmatmul.mubr.bf16.vlgmr.msra.gmra.mxu0 %v3897_v46 }
 0x3ae   : > { %v5213_v2 = vunpack.i.h.bf16 %v5211_v56  ;;  %v5212_v59 = vunpack.i.l.bf16 %v5211_v56 }
 0x3af   : > { %4918 = vmatmul.mubr.bf16.gmra.mxu1 %v3909_v5 }
 0x3b0   : > { %v3892_v54 = vsel %vm3863_vm7, %v3859_v4, %v5212_v59  ;;  %v3893_v22 = vsel %vm3863_vm7, %v3860_v43, %v5213_v2 }
 0x3b1   : > { %v5221_v14 = vpop.permute.xlu1 %5220  ;;  %v3910_v31 = vpack.c.bf16 %v3893_v22, %v3892_v54 }
 0x3b2   : > { %v5223_v39 = vunpack.i.h.bf16 %v5221_v14  ;;  %v5222_v45 = vunpack.i.l.bf16 %v5221_v14 }
 0x3b3   : > { %4921 = vmatprep.mubr.bf16.mxu1 %v3910_v31 }
 0x3b4   : > { %v3894_v36 = vsel %vm3863_vm7, %v3861_v16, %v5222_v45  ;;  %v3895_v10 = vsel %vm3863_vm7, %v3862_v15, %v5223_v39 }
 0x3b5   : > { %v3911_v49 = vpack.c.bf16 %v3895_v10, %v3894_v36 }
 0x3b7   : > { %4922 = vmatmul.mubr.bf16.gmra.mxu1 %v3911_v49 }
 0x401   : > { %v4899_v63 = vpop.f32.mrf.mxu1 }
 0x402   : > { %v4042_v1 = vadd.f32 %v4899_v63, %v9185_v25 }
 0x403   : > { %v4033_v41 = vpop.f32.mrf.mxu1 }
 0x404   : > { %v4696_v29 = vmul.f32 -1.442695, %v4042_v1  ;;  %v4034_v52 = vadd.f32 %v9185_v25, %v4033_v41 }
 0x405   : > { %v4900_v53 = vpop.f32.mrf.mxu1 }
 0x406   : > { %5380 = vpow2.f32 %v4696_v29  ;;  %v4694_v21 = vmul.f32 -1.442695, %v4034_v52  ;;  %v4045_v34 = vadd.f32 %v4900_v53, %v9185_v25 }
 0x407   : > { %v4036_v32 = vpop.f32.mrf.mxu1 }
 0x408   : > { %5382 = vpow2.f32 %v4694_v21  ;;  %v4697_v37 = vmul.f32 -1.442695, %v4045_v34  ;;  %v4037_v8 = vadd.f32 %v9185_v25, %v4036_v32 }
 0x40a   : > { %5384 = vpow2.f32 %v4697_v37  ;;  %v4695_v0 = vmul.f32 -1.442695, %v4037_v8 }
 0x40c   : > { %5386 = vpow2.f32 %v4695_v0 }
 0x40d   : > { %v4903_v27 = vpop.f32.mrf.mxu1 }
 0x40e   : > { %v4058_v48 = vadd.f32 %v4903_v27, %v9185_v25 }
 0x40f   : > { %v4049_v47 = vpop.f32.mrf.mxu1 }
 0x410   : > { %v4700_v26 = vmul.f32 -1.442695, %v4058_v48  ;;  %v4050_v62 = vadd.f32 %v9185_v25, %v4049_v47 }
 0x411   : > { %v4904_v7 = vpop.f32.mrf.mxu1 }
 0x412   : > { %5388 = vpow2.f32 %v4700_v26  ;;  %v4698_v13 = vmul.f32 -1.442695, %v4050_v62  ;;  %v4061_v50 = vadd.f32 %v4904_v7, %v9185_v25 }
 0x413   : > { %v4052_v24 = vpop.f32.mrf.mxu1  ;;  %v5381_v23 = vpop.eup %5380 }
 0x414   : > { %5390 = vpow2.f32 %v4698_v13  ;;  %v4701_v60 = vmul.f32 -1.442695, %v4061_v50  ;;  %v4053_v12 = vadd.f32 %v9185_v25, %v4052_v24  ;;  %v4246_v42 = vadd.f32 1.0, %v5381_v23 }
 0x415   : > { %v5383_v40 = vpop.eup %5382 }
 0x416   : > { %5392 = vpow2.f32 %v4701_v60  ;;  %v4699_v57 = vmul.f32 -1.442695, %v4053_v12  ;;  %v4244_v58 = vadd.f32 1.0, %v5383_v40 }
 0x417   : > { %v5385_v6 = vpop.eup %5384 }
 0x418   : > { %5394 = vpow2.f32 %v4699_v57  ;;  %v4247_v51 = vadd.f32 1.0, %v5385_v6 }
 0x419   : > { %5396 = vrcp.f32 %v4246_v42  ;;  %v5387_v38 = vpop.eup %5386 }
 0x41a   : > { %5398 = vrcp.f32 %v4244_v58  ;;  %v4245_v46 = vadd.f32 1.0, %v5387_v38 }
 0x41b   : > { %5400 = vrcp.f32 %v4247_v51 }
 0x41c   : > { %5402 = vrcp.f32 %v4245_v46 }
 0x41f   : > { %v5389_v33 = vpop.eup %5388 }
 0x420   : > { %v4250_v20 = vadd.f32 1.0, %v5389_v33 }
 0x421   : > { %v5391_v19 = vpop.eup %5390 }
 0x422   : > { %5404 = vrcp.f32 %v4250_v20  ;;  %v4248_v55 = vadd.f32 1.0, %v5391_v19 }
 0x423   : > { %v5393_v61 = vpop.eup %5392 }
 0x424   : > { %5406 = vrcp.f32 %v4248_v55  ;;  %v4251_v28 = vadd.f32 1.0, %v5393_v61 }
 0x425   : > { %v5395_v56 = vpop.eup %5394 }
 0x426   : > { %5408 = vrcp.f32 %v4251_v28  ;;  %v4249_v5 = vadd.f32 1.0, %v5395_v56  ;;  %v5397_v30 = vpop.eup %5396 }
 0x427   : > { %v4342_v9 = vmul.f32 %v5397_v30, %v4042_v1  ;;  %v5399_v2 = vpop.eup %5398 }
 0x428   : > { %5410 = vrcp.f32 %v4249_v5  ;;  %v4340_v4 = vmul.f32 %v5399_v2, %v4034_v52  ;;  %v5401_v43 = vpop.eup %5400 }
 0x429   : > { %v4766_v59 = vpack.c.bf16 %v4342_v9, %v4342_v9  ;;  %v4343_v35 = vmul.f32 %v5401_v43, %v4045_v34  ;;  %v5403_v54 = vpop.eup %5402 }
 0x42a   : > { %v4764_v44 = vpack.c.bf16 %v4340_v4, %v4340_v4  ;;  %v4341_v14 = vmul.f32 %v5403_v54, %v4037_v8 }
 0x42b   : > { %4503 = vst.msk [vmem:[%s9198_s12 + $0x18] sm:$0xf] %vm4496_vm8, %v4766_v59  ;;  %v4767_v22 = vpack.c.bf16 %v4343_v35, %v4343_v35 }
 0x42c   : > { %4501 = vst.msk [vmem:[%s9198_s12 + $0x10] sm:$0xf] %vm4496_vm8, %v4764_v44  ;;  %v4765_v3 = vpack.c.bf16 %v4341_v14, %v4341_v14 }
 0x42d   : > { %4504 = vst.msk [vmem:[%s9198_s12 + $0x1c] sm:$0xf] %vm4496_vm8, %v4767_v22 }
 0x42e   : > { %4502 = vst.msk [vmem:[%s9198_s12 + $0x14] sm:$0xf] %vm4496_vm8, %v4765_v3 }
 0x42f   : > { %v5405_v31 = vpop.eup %5404 }
 0x430   : > { %v4346_v17 = vmul.f32 %v5405_v31, %v4058_v48 }
 0x431   : > { %v5407_v18 = vpop.eup %5406 }
 0x432   : > { %v4770_v11 = vpack.c.bf16 %v4346_v17, %v4346_v17  ;;  %v4344_v39 = vmul.f32 %v5407_v18, %v4050_v62 }
 0x433   : > { %v5409_v45 = vpop.eup %5408 }
 0x434   : > { %4507 = vst.msk [vmem:[%s9198_s12 + $0x28] sm:$0xf] %vm4496_vm8, %v4770_v11  ;;  %v4768_v16 = vpack.c.bf16 %v4344_v39, %v4344_v39  ;;  %v4347_v15 = vmul.f32 %v5409_v45, %v4061_v50 }
 0x435   : > { %v5411_v36 = vpop.eup %5410 }
 0x436   : > { %4505 = vst.msk [vmem:[%s9198_s12 + $0x20] sm:$0xf] %vm4496_vm8, %v4768_v16  ;;  %v4771_v10 = vpack.c.bf16 %v4347_v15, %v4347_v15  ;;  %v4345_v49 = vmul.f32 %v5411_v36, %v4053_v12 }
 0x438   : > { %4508 = vst.msk [vmem:[%s9198_s12 + $0x2c] sm:$0xf] %vm4496_vm8, %v4771_v10  ;;  %v4769_v63 = vpack.c.bf16 %v4345_v49, %v4345_v49 }
 0x43a   : > { %4506 = vst.msk [vmem:[%s9198_s12 + $0x24] sm:$0xf] %vm4496_vm8, %v4769_v63 }
 0x446   : > { %v4907_v1 = vpop.f32.mrf.mxu1 }
 0x447   : > { %v9217_v41 = vadd.f32 %v4907_v1, %v9185_v25 }
 0x448   : > { %v4065_v29 = vpop.f32.mrf.mxu1 }
 0x449   : > { %v4704_v52 = vmul.f32 -1.442695, %v9217_v41  ;;  %v9221_v53 = vadd.f32 %v9185_v25, %v4065_v29 }
 0x44a   : > { %v4908_v21 = vpop.f32.mrf.mxu1 }
 0x44b   : > { %5412 = vpow2.f32 %v4704_v52  ;;  %v4702_v34 = vmul.f32 -1.442695, %v9221_v53  ;;  %v9225_v32 = vadd.f32 %v4908_v21, %v9185_v25 }
 0x44c   : > { %v4068_v37 = vpop.f32.mrf.mxu1 }
 0x44d   : > { %5414 = vpow2.f32 %v4702_v34  ;;  %v4705_v8 = vmul.f32 -1.442695, %v9225_v32  ;;  %v9229_v27 = vadd.f32 %v9185_v25, %v4068_v37 }
 0x44e   : > { %v4911_v0 = vpop.f32.mrf.mxu1 }
 0x44f   : > { %5416 = vpow2.f32 %v4705_v8  ;;  %v4703_v48 = vmul.f32 -1.442695, %v9229_v27  ;;  %v9233_v47 = vadd.f32 %v4911_v0, %v9185_v25 }
 0x450   : > { %v4081_v26 = vpop.f32.mrf.mxu1 }
 0x451   : > { %5418 = vpow2.f32 %v4703_v48  ;;  %v4708_v62 = vmul.f32 -1.442695, %v9233_v47  ;;  %v9237_v7 = vadd.f32 %v9185_v25, %v4081_v26 }
 0x452   : > { %v4912_v13 = vpop.f32.mrf.mxu1 }
 0x453   : > { %5420 = vpow2.f32 %v4708_v62  ;;  %v4706_v50 = vmul.f32 -1.442695, %v9237_v7  ;;  %v9241_v24 = vadd.f32 %v4912_v13, %v9185_v25 }
 0x454   : > { %v4084_v60 = vpop.f32.mrf.mxu1 }
 0x455   : > { %5422 = vpow2.f32 %v4706_v50  ;;  %v4709_v12 = vmul.f32 -1.442695, %v9241_v24  ;;  %v9245_v57 = vadd.f32 %v9185_v25, %v4084_v60 }
 0x457   : > { %5424 = vpow2.f32 %v4709_v12  ;;  %v4707_v23 = vmul.f32 -1.442695, %v9245_v57 }
 0x458   : > { %v5413_v42 = vpop.eup %5412 }
 0x459   : > { %v4254_v40 = vadd.f32 1.0, %v5413_v42  ;;  %5426 = vpow2.f32 %v4707_v23 }
 0x45a   : > { %v5415_v58 = vpop.eup %5414  ;;  %v4915_v6 = vpop.f32.mrf.mxu1 }
 0x45b   : > { %5428 = vrcp.f32 %v4254_v40  ;;  %v4252_v51 = vadd.f32 1.0, %v5415_v58  ;;  %v9249_v38 = vadd.f32 %v4915_v6, %v9185_v25 }
 0x45c   : > { %v5417_v46 = vpop.eup %5416  ;;  %v4097_v33 = vpop.f32.mrf.mxu1 }
 0x45d   : > { %5430 = vrcp.f32 %v4252_v51  ;;  %v4255_v20 = vadd.f32 1.0, %v5417_v46  ;;  %v4712_v19 = vmul.f32 -1.442695, %v9249_v38  ;;  %v9253_v55 = vadd.f32 %v9185_v25, %v4097_v33 }
 0x45e   : > { %v5419_v61 = vpop.eup %5418  ;;  %v4916_v28 = vpop.f32.mrf.mxu1 }
 0x45f   : > { %5432 = vrcp.f32 %v4255_v20  ;;  %v4253_v56 = vadd.f32 1.0, %v5419_v61  ;;  %v4710_v5 = vmul.f32 -1.442695, %v9253_v55  ;;  %v9257_v30 = vadd.f32 %v4916_v28, %v9185_v25 }
 0x460   : > { %v5421_v9 = vpop.eup %5420  ;;  %5434 = vpow2.f32 %v4712_v19  ;;  %v4100_v2 = vpop.f32.mrf.mxu1 }
 0x461   : > { %5436 = vrcp.f32 %v4253_v56  ;;  %v4258_v59 = vadd.f32 1.0, %v5421_v9  ;;  %v4713_v4 = vmul.f32 -1.442695, %v9257_v30  ;;  %v9261_v43 = vadd.f32 %v9185_v25, %v4100_v2 }
 0x462   : > { %v5423_v44 = vpop.eup %5422  ;;  %5438 = vpow2.f32 %v4710_v5 }
 0x463   : > { %5440 = vrcp.f32 %v4258_v59  ;;  %v4256_v35 = vadd.f32 1.0, %v5423_v44  ;;  %v4711_v54 = vmul.f32 -1.442695, %v9261_v43 }
 0x464   : > { %v5425_v22 = vpop.eup %5424  ;;  %5442 = vpow2.f32 %v4713_v4 }
 0x465   : > { %5444 = vrcp.f32 %v4256_v35  ;;  %v4259_v14 = vadd.f32 1.0, %v5425_v22 }
 0x466   : > { %v5427_v31 = vpop.eup %5426  ;;  %5446 = vpow2.f32 %v4711_v54 }
 0x467   : > { %5448 = vrcp.f32 %v4259_v14  ;;  %v4257_v3 = vadd.f32 1.0, %v5427_v31 }
 0x468   : > { %v5429_v17 = vpop.eup %5428 }
 0x469   : > { %v4350_v18 = vmul.f32 %v5429_v17, %v9217_v41  ;;  %5450 = vrcp.f32 %v4257_v3 }
 0x46a   : > { %v5431_v11 = vpop.eup %5430 }
 0x46b   : > { %v4774_v39 = vpack.c.bf16 %v4350_v18, %v4350_v18  ;;  %v4348_v45 = vmul.f32 %v5431_v11, %v9221_v53 }
 0x46c   : > { %v5433_v16 = vpop.eup %5432 }
 0x46d   : > { %v5435_v15 = vpop.eup %5434  ;;  %4511 = vst.msk [vmem:[%s9198_s12 + $0x38] sm:$0xf] %vm4496_vm8, %v4774_v39  ;;  %v4772_v36 = vpack.c.bf16 %v4348_v45, %v4348_v45  ;;  %v4351_v10 = vmul.f32 %v5433_v16, %v9225_v32  ;;  %v4895_v49 = vpop.f32.mrf.mxu0 }
 0x46e   : > { %v5437_v63 = vpop.eup %5436  ;;  %v4262_v1 = vadd.f32 1.0, %v5435_v15  ;;  %v9270_v29 = vadd.f32 %v4895_v49, %v9185_v25 }
 0x46f   : > { %v5439_v41 = vpop.eup %5438  ;;  %4509 = vst.msk [vmem:[%s9198_s12 + $0x30] sm:$0xf] %vm4496_vm8, %v4772_v36  ;;  %v4775_v52 = vpack.c.bf16 %v4351_v10, %v4351_v10  ;;  %v4349_v53 = vmul.f32 %v5437_v63, %v9229_v27  ;;  %v4919_v21 = vpop.f32.mrf.mxu1 }
 0x470   : > { %v4017_v34 = vpop.f32.mrf.mxu0  ;;  %v5441_v37 = vpop.eup %5440  ;;  %5452 = vrcp.f32 %v4262_v1  ;;  %v4260_v8 = vadd.f32 1.0, %v5439_v41  ;;  %v9276_v32 = vadd.f32 %v4919_v21, %v9185_v25  ;;  %v4692_v0 = vmul.f32 -1.442695, %v9270_v29 }
 0x471   : > { %v5443_v48 = vpop.eup %5442  ;;  %4512 = vst.msk [vmem:[%s9198_s12 + $0x3c] sm:$0xf] %vm4496_vm8, %v4775_v52  ;;  %v4773_v26 = vpack.c.bf16 %v4349_v53, %v4349_v53  ;;  %v4354_v62 = vmul.f32 %v5441_v37, %v9233_v47  ;;  %v4113_v13 = vpop.f32.mrf.mxu1  ;;  %v9283_v27 = vadd.f32 %v9185_v25, %v4017_v34 }
 0x472   : > { %v4896_v50 = vpop.f32.mrf.mxu0  ;;  %v5445_v60 = vpop.eup %5444  ;;  %5454 = vrcp.f32 %v4260_v8  ;;  %v4263_v12 = vadd.f32 1.0, %v5443_v48  ;;  %v4716_v23 = vmul.f32 -1.442695, %v9276_v32  ;;  %v9287_v42 = vadd.f32 %v9185_v25, %v4113_v13 }
 0x473   : > { %v5447_v40 = vpop.eup %5446  ;;  %4510 = vst.msk [vmem:[%s9198_s12 + $0x34] sm:$0xf] %vm4496_vm8, %v4773_v26  ;;  %v4778_v58 = vpack.c.bf16 %v4354_v62, %v4354_v62  ;;  %v4352_v47 = vmul.f32 %v5445_v60, %v9237_v7  ;;  %5456 = vpow2.f32 %v4692_v0  ;;  %v4920_v6 = vpop.f32.mrf.mxu1  ;;  %v4690_v51 = vmul.f32 -1.442695, %v9283_v27 }
 0x474   : > { %v4020_v46 = vpop.f32.mrf.mxu0  ;;  %v5449_v33 = vpop.eup %5448  ;;  %5458 = vrcp.f32 %v4263_v12  ;;  %v4261_v20 = vadd.f32 1.0, %v5447_v40  ;;  %v4714_v19 = vmul.f32 -1.442695, %v9287_v42  ;;  %v9295_v61 = vadd.f32 %v4920_v6, %v9185_v25 }
 0x475   : > { %4515 = vst.msk [vmem:[%s9198_s12 + $0x48] sm:$0xf] %vm4496_vm8, %v4778_v58  ;;  %v4776_v28 = vpack.c.bf16 %v4352_v47, %v4352_v47  ;;  %v4355_v56 = vmul.f32 %v5449_v33, %v9241_v24  ;;  %5460 = vpow2.f32 %v4716_v23  ;;  %v4116_v7 = vpop.f32.mrf.mxu1  ;;  %v9301_v5 = vadd.f32 %v4896_v50, %v9185_v25 }
 0x476   : > { %v5451_v9 = vpop.eup %5450  ;;  %5462 = vrcp.f32 %v4261_v20  ;;  %v4717_v2 = vmul.f32 -1.442695, %v9295_v61  ;;  %v9305_v59 = vadd.f32 %v9185_v25, %v4116_v7  ;;  %v9308_v4 = vadd.f32 %v9185_v25, %v4020_v46 }
 0x477   : > { %4513 = vst.msk [vmem:[%s9198_s12 + $0x40] sm:$0xf] %vm4496_vm8, %v4776_v28  ;;  %v4779_v44 = vpack.c.bf16 %v4355_v56, %v4355_v56  ;;  %v4353_v24 = vmul.f32 %v5451_v9, %v9245_v57  ;;  %5464 = vpow2.f32 %v4714_v19  ;;  %v4693_v35 = vmul.f32 -1.442695, %v9301_v5  ;;  %v4923_v54 = vpop.f32.mrf.mxu1 }
 0x478   : > { %5466 = vpow2.f32 %v4717_v2  ;;  %v4715_v22 = vmul.f32 -1.442695, %v9305_v59  ;;  %v9316_v14 = vadd.f32 %v4923_v54, %v9185_v25  ;;  %v4691_v3 = vmul.f32 -1.442695, %v9308_v4 }
 0x479   : > { %4516 = vst.msk [vmem:[%s9198_s12 + $0x4c] sm:$0xf] %vm4496_vm8, %v4779_v44  ;;  %v4777_v31 = vpack.c.bf16 %v4353_v24, %v4353_v24  ;;  %5468 = vpow2.f32 %v4690_v51  ;;  %v4129_v17 = vpop.f32.mrf.mxu1 }
 0x47a   : > { %5470 = vpow2.f32 %v4715_v22  ;;  %v4720_v57 = vmul.f32 -1.442695, %v9316_v14  ;;  %v9323_v18 = vadd.f32 %v9185_v25, %v4129_v17 }
 0x47b   : > { %4514 = vst.msk [vmem:[%s9198_s12 + $0x44] sm:$0xf] %vm4496_vm8, %v4777_v31  ;;  %5472 = vpow2.f32 %v4693_v35  ;;  %v4924_v11 = vpop.f32.mrf.mxu1 }
 0x47c   : > { %5474 = vpow2.f32 %v4720_v57  ;;  %v4718_v39 = vmul.f32 -1.442695, %v9323_v18  ;;  %v9329_v45 = vadd.f32 %v4924_v11, %v9185_v25 }
 0x47d   : > { %v5453_v16 = vpop.eup %5452  ;;  %5476 = vpow2.f32 %v4691_v3  ;;  %v4132_v15 = vpop.f32.mrf.mxu1 }
 0x47e   : > { %v4358_v36 = vmul.f32 %v5453_v16, %v9249_v38  ;;  %5478 = vpow2.f32 %v4718_v39  ;;  %v4721_v10 = vmul.f32 -1.442695, %v9329_v45  ;;  %v9334_v49 = vadd.f32 %v9185_v25, %v4132_v15 }
 0x47f   : > { %v5455_v63 = vpop.eup %5454 }
 0x480   : > { %v5457_v1 = vpop.eup %5456  ;;  %v4782_v41 = vpack.c.bf16 %v4358_v36, %v4358_v36  ;;  %v4356_v52 = vmul.f32 %v5455_v63, %v9253_v55  ;;  %5480 = vpow2.f32 %v4721_v10  ;;  %v4719_v53 = vmul.f32 -1.442695, %v9334_v49 }
 0x481   : > { %v5459_v21 = vpop.eup %5458  ;;  %v4242_v34 = vadd.f32 1.0, %v5457_v1 }
 0x482   : > { %v5461_v37 = vpop.eup %5460  ;;  %4519 = vst.msk [vmem:[%s9198_s12 + $0x58] sm:$0xf] %vm4496_vm8, %v4782_v41  ;;  %v4780_v38 = vpack.c.bf16 %v4356_v52, %v4356_v52  ;;  %v4359_v8 = vmul.f32 %v5459_v21, %v9257_v30  ;;  %5482 = vpow2.f32 %v4719_v53 }
 0x483   : > { %v5463_v25 = vpop.eup %5462  ;;  %v4266_v0 = vadd.f32 1.0, %v5461_v37  ;;  %5484 = vrcp.f32 %v4242_v34 }
 0x484   : > { %v5465_v48 = vpop.eup %5464  ;;  %4517 = vst.msk [vmem:[%s9198_s12 + $0x50] sm:$0xf] %vm4496_vm8, %v4780_v38  ;;  %v4783_v55 = vpack.c.bf16 %v4359_v8, %v4359_v8  ;;  %v4357_v26 = vmul.f32 %v5463_v25, %v9261_v43 }
 0x485   : > { %v5467_v62 = vpop.eup %5466  ;;  %5486 = vrcp.f32 %v4266_v0  ;;  %v4264_v13 = vadd.f32 1.0, %v5465_v48 }
 0x486   : > { %v5469_v50 = vpop.eup %5468  ;;  %4520 = vst.msk [vmem:[%s9198_s12 + $0x5c] sm:$0xf] %vm4496_vm8, %v4783_v55  ;;  %v4781_v60 = vpack.c.bf16 %v4357_v26, %v4357_v26  ;;  %v4267_v12 = vadd.f32 1.0, %v5467_v62 }
 0x487   : > { %v5471_v30 = vpop.eup %5470  ;;  %5488 = vrcp.f32 %v4264_v13  ;;  %v4240_v23 = vadd.f32 1.0, %v5469_v50 }
 0x488   : > { %v5473_v40 = vpop.eup %5472  ;;  %4518 = vst.msk [vmem:[%s9198_s12 + $0x54] sm:$0xf] %vm4496_vm8, %v4781_v60  ;;  %5490 = vrcp.f32 %v4267_v12  ;;  %v4265_v58 = vadd.f32 1.0, %v5471_v30 }
 0x489   : > { %v5475_v47 = vpop.eup %5474  ;;  %5492 = vrcp.f32 %v4240_v23  ;;  %v4243_v6 = vadd.f32 1.0, %v5473_v40 }
 0x48a   : > { %v5477_v43 = vpop.eup %5476  ;;  %5494 = vrcp.f32 %v4265_v58  ;;  %v4270_v51 = vadd.f32 1.0, %v5475_v47 }
 0x48b   : > { %v5479_v46 = vpop.eup %5478  ;;  %5496 = vrcp.f32 %v4243_v6  ;;  %v4241_v33 = vadd.f32 1.0, %v5477_v43 }
 0x48c   : > { %5498 = vrcp.f32 %v4270_v51  ;;  %v4268_v20 = vadd.f32 1.0, %v5479_v46 }
 0x48d   : > { %v5481_v19 = vpop.eup %5480  ;;  %5500 = vrcp.f32 %v4241_v33 }
 0x48e   : > { %5502 = vrcp.f32 %v4268_v20  ;;  %v4271_v28 = vadd.f32 1.0, %v5481_v19 }
 0x48f   : > { %v5483_v56 = vpop.eup %5482 }
 0x490   : > { %v5485_v7 = vpop.eup %5484  ;;  %5504 = vrcp.f32 %v4271_v28  ;;  %v4269_v9 = vadd.f32 1.0, %v5483_v56 }
 0x491   : > { %v4338_v2 = vmul.f32 %v5485_v7, %v9270_v29 }
 0x492   : > { %v5487_v44 = vpop.eup %5486  ;;  %5506 = vrcp.f32 %v4269_v9 }
 0x493   : > { %v4362_v24 = vmul.f32 %v5487_v44, %v9276_v32  ;;  %v4762_v35 = vpack.c.bf16 %v4338_v2, %v4338_v2 }
 0x494   : > { %v5489_v54 = vpop.eup %5488 }
 0x495   : > { %v5491_v22 = vpop.eup %5490  ;;  %v4786_v31 = vpack.c.bf16 %v4362_v24, %v4362_v24  ;;  %v4360_v3 = vmul.f32 %v5489_v54, %v9287_v42  ;;  %4499 = vst.msk [vmem:[%s9198_s12 + $0x8] sm:$0xf] %vm4496_vm8, %v4762_v35 }
 0x496   : > { %v5493_v17 = vpop.eup %5492  ;;  %v4363_v57 = vmul.f32 %v5491_v22, %v9295_v61 }
 0x497   : > { %v5495_v11 = vpop.eup %5494  ;;  %4523 = vst.msk [vmem:[%s9198_s12 + $0x68] sm:$0xf] %vm4496_vm8, %v4786_v31  ;;  %v4784_v29 = vpack.c.bf16 %v4360_v3, %v4360_v3  ;;  %v4336_v32 = vmul.f32 %v5493_v17, %v9283_v27 }
 0x498   : > { %v5497_v39 = vpop.eup %5496  ;;  %v4787_v16 = vpack.c.bf16 %v4363_v57, %v4363_v57  ;;  %v4361_v15 = vmul.f32 %v5495_v11, %v9305_v59 }
 0x499   : > { %v5499_v36 = vpop.eup %5498  ;;  %4521 = vst.msk [vmem:[%s9198_s12 + $0x60] sm:$0xf] %vm4496_vm8, %v4784_v29  ;;  %v4760_v42 = vpack.c.bf16 %v4336_v32, %v4336_v32  ;;  %v4339_v61 = vmul.f32 %v5497_v39, %v9301_v5 }
 0x49a   : > { %v5501_v10 = vpop.eup %5500  ;;  %4524 = vst.msk [vmem:[%s9198_s12 + $0x6c] sm:$0xf] %vm4496_vm8, %v4787_v16  ;;  %v4785_v63 = vpack.c.bf16 %v4361_v15, %v4361_v15  ;;  %v4366_v27 = vmul.f32 %v5499_v36, %v9316_v14 }
 0x49b   : > { %v5503_v1 = vpop.eup %5502  ;;  %4497 = vst.msk [vmem:[%s9198_s12] sm:$0xf] %vm4496_vm8, %v4760_v42  ;;  %v4763_v59 = vpack.c.bf16 %v4339_v61, %v4339_v61  ;;  %v4337_v41 = vmul.f32 %v5501_v10, %v9308_v4 }
 0x49c   : > { %4522 = vst.msk [vmem:[%s9198_s12 + $0x64] sm:$0xf] %vm4496_vm8, %v4785_v63  ;;  %v4790_v52 = vpack.c.bf16 %v4366_v27, %v4366_v27  ;;  %v4364_v5 = vmul.f32 %v5503_v1, %v9323_v18 }
 0x49d   : > { %v5505_v53 = vpop.eup %5504  ;;  %4500 = vst.msk [vmem:[%s9198_s12 + $0xc] sm:$0xf] %vm4496_vm8, %v4763_v59  ;;  %v4761_v14 = vpack.c.bf16 %v4337_v41, %v4337_v41 }
 0x49e   : > { %4527 = vst.msk [vmem:[%s9198_s12 + $0x78] sm:$0xf] %vm4496_vm8, %v4790_v52  ;;  %v4788_v21 = vpack.c.bf16 %v4364_v5, %v4364_v5  ;;  %v4367_v34 = vmul.f32 %v5505_v53, %v9329_v45 }
 0x49f   : > { %v5507_v4 = vpop.eup %5506  ;;  %4498 = vst.msk [vmem:[%s9198_s12 + $0x4] sm:$0xf] %vm4496_vm8, %v4761_v14 }
 0x4a0   : > { %4525 = vst.msk [vmem:[%s9198_s12 + $0x70] sm:$0xf] %vm4496_vm8, %v4788_v21  ;;  %v4791_v18 = vpack.c.bf16 %v4367_v34, %v4367_v34  ;;  %v4365_v37 = vmul.f32 %v5507_v4, %v9334_v49 }
 0x4a2   : > { %4528 = vst.msk [vmem:[%s9198_s12 + $0x7c] sm:$0xf] %vm4496_vm8, %v4791_v18  ;;  %v4789_v38 = vpack.c.bf16 %v4365_v37, %v4365_v37 }
 0x4a4   : > { %4526 = vst.msk [vmem:[%s9198_s12 + $0x74] sm:$0xf] %vm4496_vm8, %v4789_v38 }
 0x4a5   : > { %5521 = shalt.err (!%p5518_p3)
}
 0x4a6   : > { %s5522_s9 = scalar_lea.hbm %s9385_s17, 2048  ;;  %s5526_s10 = scalar_lea.hbm %s9442_s5, 4096 }
 0x4a7   : > { %p5523_p4 = scmp.ne.s32.totalorder %s9385_s17, %s5522_s9  ;;  %p5527_p9 = scmp.lt.s32.totalorder %s9385_s17, %s9442_s5 }
 0x4a8   : > { %p5528_p10 = scmp.lt.s32.totalorder %s5526_s10, %s5522_s9 }
 0x4a9   : > { %p5524_p7 = pnand %p5523_p4, %p5643_p5 }
 0x4aa   : > { %p5529_p11 = por %p5528_p10, %p5527_p9 }
 0x4ab   : > { %p5525_p8 = pneg %p5524_p7 }
 0x4ad   : > { %p5530_p12 = pnand %p5529_p11, %p5525_p8 }
 0x4af   : > { %5533 = shalt.err (!%p5530_p12)
}
 0x4b0   : > { %s5574_s13 = smov 4  }
 0x4b1   : > { %4941 = dma.vmem_to_hbm [thread:$0]  (%p5643_p5), %s9389_s14, 2048, %s9385_s17, %s9395_s22, %s5571_s30, %s5571_s30, %s5574_s13  }
 0x4b2 PF: > { %p4947_p13 = scmp.ge.s32.totalorder %s5568_s21, 2  ;;  %s4558_s15 = sand.u32 1, %s5556_s18  }
 0x4b3   : > { %s4559_s16 = scalar_lea.sflag [#allocation3], %s4558_s15 }
 0x4b4   : > { %p4944_p0 = pnand %p4947_p13, %p5647_p6 }
 0x4b6   : > { %p4945_p1 = pneg %p4944_p0 }
 0x4b8   : > { %5551 = dma.done.wait (%p4945_p1), %s4559_s16, 2048  }
 0x4b9   : > { %5553 = vsyncadd (%p4945_p1), %s4559_s16, 4294965248  ;;  %p15_p2 = scmp.ge.s32.totalorder %s5630_s24, 4   ;;  %s10164_s18 = smov %s5560_s19 }
 0x4ba   : > { %s10165_s19 = smov %s5564_s20  ;;  %s10166_s20 = smov %s5641_s27 }
 0x4bb   : > { %s10167_s21 = smov %s5630_s24  ;;  %17 = sbr.rel (!%p15_p2) target bundleno = 3 (0x3), region = 75 }
 0x4c0   :  { %4564 = vsyncpa [#allocation3], 1 }
 0x4c1   :  { %4566 = vsyncpa [#allocation3 + $0x1], 1 }

</bundles_post_ra>
